<compile_context>
chip_gen: v5e
topology: v5e:2x2
jax: 0.10.0
libtpu: 0.0.40
codegen_flags: <defaults>
</compile_context>

<pallas_src>
import math
import functools

import jax
import jax.numpy as jnp
from jax.experimental import pallas as pl
from jax.experimental.pallas import tpu as pltpu

EPS = 1e-5          # PyTorch LayerNorm default eps
NEG_INF = -1e9      # finite stand-in for PyTorch's -inf additive attention mask


# -------------------------- in-kernel helper math ---------------------------

def _layernorm(x, g, b):
    mean = jnp.mean(x, axis=-1, keepdims=True)
    var = jnp.mean(jnp.square(x - mean), axis=-1, keepdims=True)
    return (x - mean) * jax.lax.rsqrt(var + EPS) * g + b


def _dot(x, w):
    """MXU matmul: operands cast to the (bf16) weight dtype, f32 accumulation."""
    return jnp.dot(x.astype(w.dtype), w, preferred_element_type=jnp.float32)


def _embed(ids, table, pos, scale):
    """Token embedding as a one-hot MXU matmul (gather-free) + positional encoding.

    ids: (L, 1) int32, table: (V, E) f32, pos: (L, E) f32.
    """
    L = ids.shape[0]
    V = table.shape[0]
    onehot = (ids == jax.lax.broadcasted_iota(jnp.int32, (L, V), 1)).astype(table.dtype)
    return jnp.dot(onehot, table, preferred_element_type=jnp.float32) * scale + pos


def _mha(q, k, v, bias, wo, n_head):
    """Multi-head attention for one batch element, output projection fused in.

    q: (Tq, E), k/v: (Tk, E), bias: additive, broadcastable to (Tq, Tk), wo: (E, E).
    Uses  concat_h(head_h) @ W_O == sum_h head_h @ W_O[h*Dh:(h+1)*Dh, :]
    so no VMEM scratch / narrow masked stores / concatenate are needed.
    Softmax statistics stay in f32; only MXU operands are cast to bf16.
    """
    E = q.shape[-1]
    Dh = E // n_head
    scale = 1.0 / math.sqrt(Dh)
    out = None
    for h in range(n_head):
        lo, hi = h * Dh, (h + 1) * Dh
        qh = q[:, lo:hi].astype(jnp.bfloat16)
        kh = k[:, lo:hi].astype(jnp.bfloat16)
        s = jnp.einsum("qd,kd->qk", qh, kh,
                       preferred_element_type=jnp.float32) * scale + bias
        s = s - jnp.max(s, axis=-1, keepdims=True)
        p = jnp.exp(s)
        p = p / jnp.sum(p, axis=-1, keepdims=True)        # exact softmax
        oh = jnp.dot(p.astype(jnp.bfloat16), v[:, lo:hi].astype(jnp.bfloat16),
                     preferred_element_type=jnp.float32)
        contrib = jnp.dot(oh.astype(jnp.bfloat16), wo[lo:hi, :],
                          preferred_element_type=jnp.float32)
        out = contrib if out is None else out + contrib
    return out


# ------------------------- single fused forward kernel ----------------------

def _fused_transformer_kernel(
        # per-batch inputs (blocked over the batch grid axis)
        src_ids_ref, tgt_ids_ref, spad_ref, tpad_ref, mpad_ref,
        # shared small tensors
        smask_ref, tmask_ref, pos_s_ref, pos_t_ref, semb_ref, temb_ref,
        # encoder stack (weights stacked along a leading layer axis) + final norm
        e_wqkv_ref, e_bqkv_ref, e_wo_ref, e_bo_ref, e_g1_ref, e_b1_ref,
        e_w1_ref, e_c1_ref, e_w2_ref, e_c2_ref, e_g2_ref, e_b2_ref,
        encn_g_ref, encn_b_ref,
        # decoder stack + final norm + generator
        d_wqkv_ref, d_bqkv_ref, d_wo1_ref, d_bo1_ref, d_g1_ref, d_b1_ref,
        d_wq2_ref, d_bq2_ref, d_wkv2_ref, d_bkv2_ref, d_wo2_ref, d_bo2_ref,
        d_g2_ref, d_b2_ref, d_w1_ref, d_c1_ref, d_w2_ref, d_c2_ref,
        d_g3_ref, d_b3_ref,
        decn_g_ref, decn_b_ref, gen_w_ref, gen_b_ref,
        # output
        o_ref, *, n_head, n_enc, n_dec):
    E = pos_s_ref.shape[-1]
    emb_scale = math.sqrt(E)

    # ---- token embedding + positional encoding (dropout = identity in eval) ----
    x = _embed(src_ids_ref[0], semb_ref[...], pos_s_ref[...], emb_scale)    # (S, E)
    y = _embed(tgt_ids_ref[0], temb_ref[...], pos_t_ref[...], emb_scale)    # (T, E)

    # ---- additive attention biases for this batch element, built in-kernel ----
    src_bias = smask_ref[...] + spad_ref[0] * NEG_INF                       # (S, S)
    tgt_bias = tmask_ref[...] + tpad_ref[0] * NEG_INF                       # (T, T)
    mem_bias = mpad_ref[0] * NEG_INF                                        # (1, S)

    # ---- encoder stack (layers statically unrolled, all resident in VMEM) ----
    for l in range(n_enc):
        qkv = _dot(x, e_wqkv_ref[l]) + e_bqkv_ref[l]
        q, k, v = qkv[:, :E], qkv[:, E:2 * E], qkv[:, 2 * E:]
        attn = _mha(q, k, v, src_bias, e_wo_ref[l], n_head) + e_bo_ref[l]
        h = _layernorm(x + attn, e_g1_ref[l], e_b1_ref[l])
        ff = jnp.maximum(_dot(h, e_w1_ref[l]) + e_c1_ref[l], 0.0)
        ff = _dot(ff, e_w2_ref[l]) + e_c2_ref[l]
        x = _layernorm(h + ff, e_g2_ref[l], e_b2_ref[l])
    mem = _layernorm(x, encn_g_ref[...], encn_b_ref[...])

    # ---- decoder stack ----
    for l in range(n_dec):
        qkv = _dot(y, d_wqkv_ref[l]) + d_bqkv_ref[l]
        q, k, v = qkv[:, :E], qkv[:, E:2 * E], qkv[:, 2 * E:]
        sa = _mha(q, k, v, tgt_bias, d_wo1_ref[l], n_head) + d_bo1_ref[l]
        h = _layernorm(y + sa, d_g1_ref[l], d_b1_ref[l])
        q2 = _dot(h, d_wq2_ref[l]) + d_bq2_ref[l]
        kv = _dot(mem, d_wkv2_ref[l]) + d_bkv2_ref[l]
        k2, v2 = kv[:, :E], kv[:, E:]
        ca = _mha(q2, k2, v2, mem_bias, d_wo2_ref[l], n_head) + d_bo2_ref[l]
        h = _layernorm(h + ca, d_g2_ref[l], d_b2_ref[l])
        ff = jnp.maximum(_dot(h, d_w1_ref[l]) + d_c1_ref[l], 0.0)
        ff = _dot(ff, d_w2_ref[l]) + d_c2_ref[l]
        y = _layernorm(h + ff, d_g3_ref[l], d_b3_ref[l])

    # ---- final decoder norm + generator head (lane-dense padded vocab) ----
    hd = _layernorm(y, decn_g_ref[...], decn_b_ref[...])
    o_ref[0] = _dot(hd, gen_w_ref[...]) + gen_b_ref[...]                    # (T, Vpad)


# --------------------------- pallas_call wrapper -----------------------------

_STACK_KEYS = (
    "e_wqkv", "e_bqkv", "e_wo", "e_bo", "e_g1", "e_b1",
    "e_w1", "e_c1", "e_w2", "e_c2", "e_g2", "e_b2",
    "encn_g", "encn_b",
    "d_wqkv", "d_bqkv", "d_wo1", "d_bo1", "d_g1", "d_b1",
    "d_wq2", "d_bq2", "d_wkv2", "d_bkv2", "d_wo2", "d_bo2",
    "d_g2", "d_b2", "d_w1", "d_c1", "d_w2", "d_c2",
    "d_g3", "d_b3",
    "decn_g", "decn_b", "gen_w", "gen_b",
)


def _batch_spec(arr):
    """Per-batch 3D input: one batch element per grid step."""
    return pl.BlockSpec((1,) + arr.shape[1:], lambda n: (n, 0, 0))


def _bcast_spec(arr):
    """Whole-array block, same block for every grid step (stays resident)."""
    zeros = (0,) * arr.ndim
    return pl.BlockSpec(arr.shape, lambda n, _z=zeros: _z)


def my_transformer_forward(packed, src, trg, src_mask, tgt_mask,
                           src_padding_mask, tgt_padding_mask,
                           memory_key_padding_mask, *, n_head, tgt_vocab_size):
    S, N = src.shape
    T = trg.shape[0]
    E = packed["pos"].shape[-1]
    F = packed["e_w1"].shape[-1]
    Vp = packed["gen_w"].shape[-1]
    Vs = packed["src_emb"].shape[0]
    Vt = packed["tgt_emb"].shape[0]
    Le = packed["e_wqkv"].shape[0]
    Ld = packed["d_wqkv"].shape[0]

    # tiny glue: seq-first int ids -> batch-major column vectors, bool -> f32 masks
    src_ids = src.T.astype(jnp.int32)[:, :, None]                       # (N, S, 1)
    tgt_ids = trg.T.astype(jnp.int32)[:, :, None]                       # (N, T, 1)
    spad = src_padding_mask.astype(jnp.float32)[:, None, :]             # (N, 1, S)
    tpad = tgt_padding_mask.astype(jnp.float32)[:, None, :]             # (N, 1, T)
    mpad = memory_key_padding_mask.astype(jnp.float32)[:, None, :]      # (N, 1, S)
    smask = src_mask.astype(jnp.float32)                                # (S, S)
    tmask = tgt_mask.astype(jnp.float32)                                # (T, T)
    pos_s = packed["pos"][:S]                                           # (S, E)
    pos_t = packed["pos"][:T]                                           # (T, E)

    per_batch = [src_ids, tgt_ids, spad, tpad, mpad]
    shared = [smask, tmask, pos_s, pos_t, packed["src_emb"], packed["tgt_emb"]]
    weights = [packed[k] for k in _STACK_KEYS]
    args = per_batch + shared + weights

    in_specs = ([_batch_spec(a) for a in per_batch]
                + [_bcast_spec(a) for a in shared + weights])
    out_spec = pl.BlockSpec((1, T, Vp), lambda n: (n, 0, 0))

    # advisory cost hint so XLA overlaps the remaining glue with the custom call
    flops_enc = Le * (2 * S * E * 3 * E + 4 * S * S * E + 2 * S * E * E + 4 * S * E * F)
    flops_dec = Ld * (2 * T * E * 3 * E + 4 * T * T * E + 2 * T * E * E
                      + 2 * T * E * E + 2 * S * E * 2 * E + 4 * T * S * E
                      + 2 * T * E * E + 4 * T * E * F)
    flops = N * (2 * S * Vs * E + 2 * T * Vt * E + flops_enc + flops_dec
                 + 2 * T * E * Vp)
    transcendentals = N * (Le * n_head * S * S + Ld * n_head * (T * T + T * S))
    bytes_accessed = sum(int(a.size) * a.dtype.itemsize for a in args) + N * T * Vp * 4

    out = pl.pallas_call(
        functools.partial(_fused_transformer_kernel,
                          n_head=n_head, n_enc=Le, n_dec=Ld),
        out_shape=jax.ShapeDtypeStruct((N, T, Vp), jnp.float32),
        grid=(N,),
        in_specs=in_specs,
        out_specs=out_spec,
        compiler_params=pltpu.CompilerParams(dimension_semantics=("parallel",)),
        cost_estimate=pl.CostEstimate(flops=flops,
                                      transcendentals=transcendentals,
                                      bytes_accessed=bytes_accessed),
    )(*args)

    logits = out[:, :, :tgt_vocab_size]                  # drop lane padding
    return jnp.transpose(logits, (1, 0, 2))              # (T, N, V) seq-first


# ----------------------------- parameter packing -----------------------------

def make_pos_table(emb_size, max_len=64):
    den = jnp.exp(-jnp.arange(0, emb_size, 2, dtype=jnp.float32)
                  * math.log(10000.0) / emb_size)
    pos = jnp.arange(max_len, dtype=jnp.float32)[:, None]
    pe = jnp.zeros((max_len, emb_size), jnp.float32)
    pe = pe.at[:, 0::2].set(jnp.sin(pos * den))
    pe = pe.at[:, 1::2].set(jnp.cos(pos * den))
    return pe


def init_params(key, num_enc, num_dec, E, src_vocab, tgt_vocab, dff):
    keys = iter(jax.random.split(key, 512))

    def dense(i, o):
        return {"w": 0.02 * jax.random.normal(next(keys), (i, o), jnp.float32),
                "b": jnp.zeros((o,), jnp.float32)}

    def ln():
        return {"g": jnp.ones((E,), jnp.float32), "b": jnp.zeros((E,), jnp.float32)}

    def mha_self():   # packed QKV: columns ordered [q | k | v] (= PyTorch in_proj_weight.T)
        return {"wqkv": 0.02 * jax.random.normal(next(keys), (E, 3 * E), jnp.float32),
                "bqkv": jnp.zeros((3 * E,), jnp.float32),
                "wo": 0.02 * jax.random.normal(next(keys), (E, E), jnp.float32),
                "bo": jnp.zeros((E,), jnp.float32)}

    def mha_cross():  # q from decoder state, packed K/V from memory
        return {"wq": 0.02 * jax.random.normal(next(keys), (E, E), jnp.float32),
                "bq": jnp.zeros((E,), jnp.float32),
                "wkv": 0.02 * jax.random.normal(next(keys), (E, 2 * E), jnp.float32),
                "bkv": jnp.zeros((2 * E,), jnp.float32),
                "wo": 0.02 * jax.random.normal(next(keys), (E, E), jnp.float32),
                "bo": jnp.zeros((E,), jnp.float32)}

    def enc_layer():
        return {"attn": mha_self(), "norm1": ln(),
                "ff1": dense(E, dff), "ff2": dense(dff, E), "norm2": ln()}

    def dec_layer():
        return {"self_attn": mha_self(), "norm1": ln(),
                "cross_attn": mha_cross(), "norm2": ln(),
                "ff1": dense(E, dff), "ff2": dense(dff, E), "norm3": ln()}

    return {
        "src_emb": 0.02 * jax.random.normal(next(keys), (src_vocab, E), jnp.float32),
        "tgt_emb": 0.02 * jax.random.normal(next(keys), (tgt_vocab, E), jnp.float32),
        "enc": [enc_layer() for _ in range(num_enc)],
        "enc_norm": ln(),
        "dec": [dec_layer() for _ in range(num_dec)],
        "dec_norm": ln(),
        "gen": dense(E, tgt_vocab),
    }


def pack_params(params, max_len=64):
    """Stack per-layer weights along a leading L axis, cast MXU weights to bf16,
    pad the generator vocab to a 128-lane multiple, precompute positional table."""
    bf, f32 = jnp.bfloat16, jnp.float32
    E = params["src_emb"].shape[1]

    def stack(layers, *path):
        vals = []
        for lp in layers:
            v = lp
            for p in path:
                v = v[p]
            vals.append(v)
        return jnp.stack(vals, axis=0)

    def pad_rows(a, m=8):
        r = (-a.shape[0]) % m
        return jnp.pad(a, ((0, r), (0, 0))) if r else a

    enc, dec = params["enc"], params["dec"]
    packed = {
        "pos": make_pos_table(E, max_len),
        "src_emb": pad_rows(params["src_emb"]).astype(f32),
        "tgt_emb": pad_rows(params["tgt_emb"]).astype(f32),
        # encoder
        "e_wqkv": stack(enc, "attn", "wqkv").astype(bf),
        "e_bqkv": stack(enc, "attn", "bqkv")[:, None, :],
        "e_wo": stack(enc, "attn", "wo").astype(bf),
        "e_bo": stack(enc, "attn", "bo")[:, None, :],
        "e_g1": stack(enc, "norm1", "g")[:, None, :],
        "e_b1": stack(enc, "norm1", "b")[:, None, :],
        "e_w1": stack(enc, "ff1", "w").astype(bf),
        "e_c1": stack(enc, "ff1", "b")[:, None, :],
        "e_w2": stack(enc, "ff2", "w").astype(bf),
        "e_c2": stack(enc, "ff2", "b")[:, None, :],
        "e_g2": stack(enc, "norm2", "g")[:, None, :],
        "e_b2": stack(enc, "norm2", "b")[:, None, :],
        "encn_g": params["enc_norm"]["g"][None, :],
        "encn_b": params["enc_norm"]["b"][None, :],
        # decoder
        "d_wqkv": stack(dec, "self_attn", "wqkv").astype(bf),
        "d_bqkv": stack(dec, "self_attn", "bqkv")[:, None, :],
        "d_wo1": stack(dec, "self_attn", "wo").astype(bf),
        "d_bo1": stack(dec, "self_attn", "bo")[:, None, :],
        "d_g1": stack(dec, "norm1", "g")[:, None, :],
        "d_b1": stack(dec, "norm1", "b")[:, None, :],
        "d_wq2": stack(dec, "cross_attn", "wq").astype(bf),
        "d_bq2": stack(dec, "cross_attn", "bq")[:, None, :],
        "d_wkv2": stack(dec, "cross_attn", "wkv").astype(bf),
        "d_bkv2": stack(dec, "cross_attn", "bkv")[:, None, :],
        "d_wo2": stack(dec, "cross_attn", "wo").astype(bf),
        "d_bo2": stack(dec, "cross_attn", "bo")[:, None, :],
        "d_g2": stack(dec, "norm2", "g")[:, None, :],
        "d_b2": stack(dec, "norm2", "b")[:, None, :],
        "d_w1": stack(dec, "ff1", "w").astype(bf),
        "d_c1": stack(dec, "ff1", "b")[:, None, :],
        "d_w2": stack(dec, "ff2", "w").astype(bf),
        "d_c2": stack(dec, "ff2", "b")[:, None, :],
        "d_g3": stack(dec, "norm3", "g")[:, None, :],
        "d_b3": stack(dec, "norm3", "b")[:, None, :],
        "decn_g": params["dec_norm"]["g"][None, :],
        "decn_b": params["dec_norm"]["b"][None, :],
    }
    gw, gb = params["gen"]["w"], params["gen"]["b"]
    V = gw.shape[1]
    Vp = ((V + 127) // 128) * 128          # lane-dense generator output
    packed["gen_w"] = jnp.pad(gw, ((0, 0), (0, Vp - V))).astype(bf)
    packed["gen_b"] = jnp.pad(gb, (0, Vp - V))[None, :]
    return packed


# ---------------------------------- main ------------------------------------

if __name__ == "__main__":
    NUM_ENC, NUM_DEC = 2, 2
    EMB, NHEAD, DFF = 32, 4, 64
    SRC_VOCAB, TGT_VOCAB = 37, 41
    S, T, N = 8, 10, 2

    key = jax.random.PRNGKey(0)
    kp, ks, kt = jax.random.split(key, 3)
    params = init_params(kp, NUM_ENC, NUM_DEC, EMB, SRC_VOCAB, TGT_VOCAB, DFF)
    packed = pack_params(params, max_len=64)

    src = jax.random.randint(ks, (S, N), 0, SRC_VOCAB, dtype=jnp.int32)
    trg = jax.random.randint(kt, (T, N), 0, TGT_VOCAB, dtype=jnp.int32)
    src_mask = jnp.zeros((S, S), jnp.float32)
    tgt_mask = jnp.where(jnp.triu(jnp.ones((T, T), dtype=bool), k=1),
                         NEG_INF, 0.0).astype(jnp.float32)        # causal mask
    src_padding_mask = jnp.zeros((N, S), dtype=bool)
    tgt_padding_mask = jnp.zeros((N, T), dtype=bool)
    memory_key_padding_mask = jnp.zeros((N, S), dtype=bool)

    fwd = jax.jit(functools.partial(my_transformer_forward,
                                    n_head=NHEAD, tgt_vocab_size=TGT_VOCAB))
    out = fwd(packed, src, trg, src_mask, tgt_mask,
              src_padding_mask, tgt_padding_mask, memory_key_padding_mask)
    out = jax.block_until_ready(out)
    assert out.shape == (T, N, TGT_VOCAB), out.shape
    assert bool(jnp.all(jnp.isfinite(out)))
    print("KERNEL_OK")
</pallas_src>

<mosaic_0001>
module attributes {stable_mosaic.version = 11 : i64} {
  func.func @_fused_transformer_kernel(%arg0: i32, %arg1: memref<1x8x1xi32, #tpu.memory_space<vmem>>, %arg2: memref<1x10x1xi32, #tpu.memory_space<vmem>>, %arg3: memref<1x1x8xf32, #tpu.memory_space<vmem>>, %arg4: memref<1x1x10xf32, #tpu.memory_space<vmem>>, %arg5: memref<1x1x8xf32, #tpu.memory_space<vmem>>, %arg6: memref<8x8xf32, #tpu.memory_space<vmem>>, %arg7: memref<10x10xf32, #tpu.memory_space<vmem>>, %arg8: memref<8x32xf32, #tpu.memory_space<vmem>>, %arg9: memref<10x32xf32, #tpu.memory_space<vmem>>, %arg10: memref<40x32xf32, #tpu.memory_space<vmem>>, %arg11: memref<48x32xf32, #tpu.memory_space<vmem>>, %arg12: memref<2x32x96xbf16, #tpu.memory_space<vmem>>, %arg13: memref<2x1x96xf32, #tpu.memory_space<vmem>>, %arg14: memref<2x32x32xbf16, #tpu.memory_space<vmem>>, %arg15: memref<2x1x32xf32, #tpu.memory_space<vmem>>, %arg16: memref<2x1x32xf32, #tpu.memory_space<vmem>>, %arg17: memref<2x1x32xf32, #tpu.memory_space<vmem>>, %arg18: memref<2x32x64xbf16, #tpu.memory_space<vmem>>, %arg19: memref<2x1x64xf32, #tpu.memory_space<vmem>>, %arg20: memref<2x64x32xbf16, #tpu.memory_space<vmem>>, %arg21: memref<2x1x32xf32, #tpu.memory_space<vmem>>, %arg22: memref<2x1x32xf32, #tpu.memory_space<vmem>>, %arg23: memref<2x1x32xf32, #tpu.memory_space<vmem>>, %arg24: memref<1x32xf32, #tpu.memory_space<vmem>>, %arg25: memref<1x32xf32, #tpu.memory_space<vmem>>, %arg26: memref<2x32x96xbf16, #tpu.memory_space<vmem>>, %arg27: memref<2x1x96xf32, #tpu.memory_space<vmem>>, %arg28: memref<2x32x32xbf16, #tpu.memory_space<vmem>>, %arg29: memref<2x1x32xf32, #tpu.memory_space<vmem>>, %arg30: memref<2x1x32xf32, #tpu.memory_space<vmem>>, %arg31: memref<2x1x32xf32, #tpu.memory_space<vmem>>, %arg32: memref<2x32x32xbf16, #tpu.memory_space<vmem>>, %arg33: memref<2x1x32xf32, #tpu.memory_space<vmem>>, %arg34: memref<2x32x64xbf16, #tpu.memory_space<vmem>>, %arg35: memref<2x1x64xf32, #tpu.memory_space<vmem>>, %arg36: memref<2x32x32xbf16, #tpu.memory_space<vmem>>, %arg37: memref<2x1x32xf32, #tpu.memory_space<vmem>>, %arg38: memref<2x1x32xf32, #tpu.memory_space<vmem>>, %arg39: memref<2x1x32xf32, #tpu.memory_space<vmem>>, %arg40: memref<2x32x64xbf16, #tpu.memory_space<vmem>>, %arg41: memref<2x1x64xf32, #tpu.memory_space<vmem>>, %arg42: memref<2x64x32xbf16, #tpu.memory_space<vmem>>, %arg43: memref<2x1x32xf32, #tpu.memory_space<vmem>>, %arg44: memref<2x1x32xf32, #tpu.memory_space<vmem>>, %arg45: memref<2x1x32xf32, #tpu.memory_space<vmem>>, %arg46: memref<1x32xf32, #tpu.memory_space<vmem>>, %arg47: memref<1x32xf32, #tpu.memory_space<vmem>>, %arg48: memref<32x128xbf16, #tpu.memory_space<vmem>>, %arg49: memref<1x128xf32, #tpu.memory_space<vmem>>, %arg50: memref<1x10x128xf32, #tpu.memory_space<vmem>>) attributes {dimension_semantics = [#tpu.dimension_semantics<parallel>], iteration_bounds = array<i64: 2>, scalar_prefetch = 0 : i64, scratch_operands = 0 : i64, tpu.core_type = #tpu.core_type<tc>, window_params = [{transform_indices = @transform_0, window_bounds = array<i64: 1, 8, 1>}, {transform_indices = @transform_1, window_bounds = array<i64: 1, 10, 1>}, {transform_indices = @transform_2, window_bounds = array<i64: 1, 1, 8>}, {transform_indices = @transform_3, window_bounds = array<i64: 1, 1, 10>}, {transform_indices = @transform_4, window_bounds = array<i64: 1, 1, 8>}, {pipeline_mode = #tpu.pipeline_mode<synchronous>, transform_indices = @transform_5, window_bounds = array<i64: 8, 8>}, {pipeline_mode = #tpu.pipeline_mode<synchronous>, transform_indices = @transform_6, window_bounds = array<i64: 10, 10>}, {pipeline_mode = #tpu.pipeline_mode<synchronous>, transform_indices = @transform_7, window_bounds = array<i64: 8, 32>}, {pipeline_mode = #tpu.pipeline_mode<synchronous>, transform_indices = @transform_8, window_bounds = array<i64: 10, 32>}, {pipeline_mode = #tpu.pipeline_mode<synchronous>, transform_indices = @transform_9, window_bounds = array<i64: 40, 32>}, {pipeline_mode = #tpu.pipeline_mode<synchronous>, transform_indices = @transform_10, window_bounds = array<i64: 48, 32>}, {pipeline_mode = #tpu.pipeline_mode<synchronous>, transform_indices = @transform_11, window_bounds = array<i64: 2, 32, 96>}, {pipeline_mode = #tpu.pipeline_mode<synchronous>, transform_indices = @transform_12, window_bounds = array<i64: 2, 1, 96>}, {pipeline_mode = #tpu.pipeline_mode<synchronous>, transform_indices = @transform_13, window_bounds = array<i64: 2, 32, 32>}, {pipeline_mode = #tpu.pipeline_mode<synchronous>, transform_indices = @transform_14, window_bounds = array<i64: 2, 1, 32>}, {pipeline_mode = #tpu.pipeline_mode<synchronous>, transform_indices = @transform_15, window_bounds = array<i64: 2, 1, 32>}, {pipeline_mode = #tpu.pipeline_mode<synchronous>, transform_indices = @transform_16, window_bounds = array<i64: 2, 1, 32>}, {pipeline_mode = #tpu.pipeline_mode<synchronous>, transform_indices = @transform_17, window_bounds = array<i64: 2, 32, 64>}, {pipeline_mode = #tpu.pipeline_mode<synchronous>, transform_indices = @transform_18, window_bounds = array<i64: 2, 1, 64>}, {pipeline_mode = #tpu.pipeline_mode<synchronous>, transform_indices = @transform_19, window_bounds = array<i64: 2, 64, 32>}, {pipeline_mode = #tpu.pipeline_mode<synchronous>, transform_indices = @transform_20, window_bounds = array<i64: 2, 1, 32>}, {pipeline_mode = #tpu.pipeline_mode<synchronous>, transform_indices = @transform_21, window_bounds = array<i64: 2, 1, 32>}, {pipeline_mode = #tpu.pipeline_mode<synchronous>, transform_indices = @transform_22, window_bounds = array<i64: 2, 1, 32>}, {pipeline_mode = #tpu.pipeline_mode<synchronous>, transform_indices = @transform_23, window_bounds = array<i64: 1, 32>}, {pipeline_mode = #tpu.pipeline_mode<synchronous>, transform_indices = @transform_24, window_bounds = array<i64: 1, 32>}, {pipeline_mode = #tpu.pipeline_mode<synchronous>, transform_indices = @transform_25, window_bounds = array<i64: 2, 32, 96>}, {pipeline_mode = #tpu.pipeline_mode<synchronous>, transform_indices = @transform_26, window_bounds = array<i64: 2, 1, 96>}, {pipeline_mode = #tpu.pipeline_mode<synchronous>, transform_indices = @transform_27, window_bounds = array<i64: 2, 32, 32>}, {pipeline_mode = #tpu.pipeline_mode<synchronous>, transform_indices = @transform_28, window_bounds = array<i64: 2, 1, 32>}, {pipeline_mode = #tpu.pipeline_mode<synchronous>, transform_indices = @transform_29, window_bounds = array<i64: 2, 1, 32>}, {pipeline_mode = #tpu.pipeline_mode<synchronous>, transform_indices = @transform_30, window_bounds = array<i64: 2, 1, 32>}, {pipeline_mode = #tpu.pipeline_mode<synchronous>, transform_indices = @transform_31, window_bounds = array<i64: 2, 32, 32>}, {pipeline_mode = #tpu.pipeline_mode<synchronous>, transform_indices = @transform_32, window_bounds = array<i64: 2, 1, 32>}, {pipeline_mode = #tpu.pipeline_mode<synchronous>, transform_indices = @transform_33, window_bounds = array<i64: 2, 32, 64>}, {pipeline_mode = #tpu.pipeline_mode<synchronous>, transform_indices = @transform_34, window_bounds = array<i64: 2, 1, 64>}, {pipeline_mode = #tpu.pipeline_mode<synchronous>, transform_indices = @transform_35, window_bounds = array<i64: 2, 32, 32>}, {pipeline_mode = #tpu.pipeline_mode<synchronous>, transform_indices = @transform_36, window_bounds = array<i64: 2, 1, 32>}, {pipeline_mode = #tpu.pipeline_mode<synchronous>, transform_indices = @transform_37, window_bounds = array<i64: 2, 1, 32>}, {pipeline_mode = #tpu.pipeline_mode<synchronous>, transform_indices = @transform_38, window_bounds = array<i64: 2, 1, 32>}, {pipeline_mode = #tpu.pipeline_mode<synchronous>, transform_indices = @transform_39, window_bounds = array<i64: 2, 32, 64>}, {pipeline_mode = #tpu.pipeline_mode<synchronous>, transform_indices = @transform_40, window_bounds = array<i64: 2, 1, 64>}, {pipeline_mode = #tpu.pipeline_mode<synchronous>, transform_indices = @transform_41, window_bounds = array<i64: 2, 64, 32>}, {pipeline_mode = #tpu.pipeline_mode<synchronous>, transform_indices = @transform_42, window_bounds = array<i64: 2, 1, 32>}, {pipeline_mode = #tpu.pipeline_mode<synchronous>, transform_indices = @transform_43, window_bounds = array<i64: 2, 1, 32>}, {pipeline_mode = #tpu.pipeline_mode<synchronous>, transform_indices = @transform_44, window_bounds = array<i64: 2, 1, 32>}, {pipeline_mode = #tpu.pipeline_mode<synchronous>, transform_indices = @transform_45, window_bounds = array<i64: 1, 32>}, {pipeline_mode = #tpu.pipeline_mode<synchronous>, transform_indices = @transform_46, window_bounds = array<i64: 1, 32>}, {pipeline_mode = #tpu.pipeline_mode<synchronous>, transform_indices = @transform_47, window_bounds = array<i64: 32, 128>}, {pipeline_mode = #tpu.pipeline_mode<synchronous>, transform_indices = @transform_48, window_bounds = array<i64: 1, 128>}, {transform_indices = @transform_49, window_bounds = array<i64: 1, 10, 128>}]} {
    %c0 = arith.constant 0 : index
    %c0_0 = arith.constant 0 : index
    %c0_1 = arith.constant 0 : index
    %0 = vector.load %arg1[%c0, %c0_0, %c0_1] : memref<1x8x1xi32, #tpu.memory_space<vmem>>, vector<1x8x1xi32>
    %1 = vector.shape_cast %0 : vector<1x8x1xi32> to vector<8x1xi32>
    %c0_2 = arith.constant 0 : index
    %c0_3 = arith.constant 0 : index
    %2 = vector.load %arg10[%c0_2, %c0_3] : memref<40x32xf32, #tpu.memory_space<vmem>>, vector<40x32xf32>
    %c0_4 = arith.constant 0 : index
    %c0_5 = arith.constant 0 : index
    %3 = vector.load %arg8[%c0_4, %c0_5] : memref<8x32xf32, #tpu.memory_space<vmem>>, vector<8x32xf32>
    %4 = tpu.iota {dimensions = array<i32: 1>} : vector<8x40xi32>
    %5 = vector.broadcast %1 : vector<8x1xi32> to vector<8x40xi32>
    %6 = arith.cmpi eq, %5, %4 : vector<8x40xi32>
    %7 = arith.extui %6 : vector<8x40xi1> to vector<8x40xi32>
    %8 = arith.sitofp %7 : vector<8x40xi32> to vector<8x40xf32>
    %cst = arith.constant dense<0.000000e+00> : vector<8x32xf32>
    %9 = tpu.matmul %8, %2, %cst {dimension_numbers = #tpu.dot_dimension_numbers<[1], [0], [0], [1], [0, 0, 1, 1], [], []>} : vector<8x40xf32>, vector<40x32xf32>, vector<8x32xf32> -> vector<8x32xf32>
    %cst_6 = arith.constant 5.65685415 : f32
    %10 = vector.broadcast %cst_6 : f32 to vector<8x32xf32>
    %11 = arith.mulf %9, %10 : vector<8x32xf32>
    %12 = arith.addf %11, %3 : vector<8x32xf32>
    %c0_7 = arith.constant 0 : index
    %c0_8 = arith.constant 0 : index
    %c0_9 = arith.constant 0 : index
    %13 = vector.load %arg2[%c0_7, %c0_8, %c0_9] : memref<1x10x1xi32, #tpu.memory_space<vmem>>, vector<1x10x1xi32>
    %14 = vector.shape_cast %13 : vector<1x10x1xi32> to vector<10x1xi32>
    %c0_10 = arith.constant 0 : index
    %c0_11 = arith.constant 0 : index
    %15 = vector.load %arg11[%c0_10, %c0_11] : memref<48x32xf32, #tpu.memory_space<vmem>>, vector<48x32xf32>
    %c0_12 = arith.constant 0 : index
    %c0_13 = arith.constant 0 : index
    %16 = vector.load %arg9[%c0_12, %c0_13] : memref<10x32xf32, #tpu.memory_space<vmem>>, vector<10x32xf32>
    %17 = tpu.iota {dimensions = array<i32: 1>} : vector<10x48xi32>
    %18 = vector.broadcast %14 : vector<10x1xi32> to vector<10x48xi32>
    %19 = arith.cmpi eq, %18, %17 : vector<10x48xi32>
    %20 = arith.extui %19 : vector<10x48xi1> to vector<10x48xi32>
    %21 = arith.sitofp %20 : vector<10x48xi32> to vector<10x48xf32>
    %cst_14 = arith.constant dense<0.000000e+00> : vector<10x32xf32>
    %22 = tpu.matmul %21, %15, %cst_14 {dimension_numbers = #tpu.dot_dimension_numbers<[1], [0], [0], [1], [0, 0, 1, 1], [], []>} : vector<10x48xf32>, vector<48x32xf32>, vector<10x32xf32> -> vector<10x32xf32>
    %cst_15 = arith.constant 5.65685415 : f32
    %23 = vector.broadcast %cst_15 : f32 to vector<10x32xf32>
    %24 = arith.mulf %22, %23 : vector<10x32xf32>
    %25 = arith.addf %24, %16 : vector<10x32xf32>
    %c0_16 = arith.constant 0 : index
    %c0_17 = arith.constant 0 : index
    %26 = vector.load %arg6[%c0_16, %c0_17] : memref<8x8xf32, #tpu.memory_space<vmem>>, vector<8x8xf32>
    %c0_18 = arith.constant 0 : index
    %c0_19 = arith.constant 0 : index
    %c0_20 = arith.constant 0 : index
    %27 = vector.load %arg3[%c0_18, %c0_19, %c0_20] : memref<1x1x8xf32, #tpu.memory_space<vmem>>, vector<1x1x8xf32>
    %28 = vector.shape_cast %27 : vector<1x1x8xf32> to vector<1x8xf32>
    %cst_21 = arith.constant -1.000000e+09 : f32
    %29 = vector.broadcast %cst_21 : f32 to vector<1x8xf32>
    %30 = arith.mulf %28, %29 : vector<1x8xf32>
    %31 = vector.broadcast %30 : vector<1x8xf32> to vector<8x8xf32>
    %32 = arith.addf %26, %31 : vector<8x8xf32>
    %c0_22 = arith.constant 0 : index
    %c0_23 = arith.constant 0 : index
    %33 = vector.load %arg7[%c0_22, %c0_23] : memref<10x10xf32, #tpu.memory_space<vmem>>, vector<10x10xf32>
    %c0_24 = arith.constant 0 : index
    %c0_25 = arith.constant 0 : index
    %c0_26 = arith.constant 0 : index
    %34 = vector.load %arg4[%c0_24, %c0_25, %c0_26] : memref<1x1x10xf32, #tpu.memory_space<vmem>>, vector<1x1x10xf32>
    %35 = vector.shape_cast %34 : vector<1x1x10xf32> to vector<1x10xf32>
    %cst_27 = arith.constant -1.000000e+09 : f32
    %36 = vector.broadcast %cst_27 : f32 to vector<1x10xf32>
    %37 = arith.mulf %35, %36 : vector<1x10xf32>
    %38 = vector.broadcast %37 : vector<1x10xf32> to vector<10x10xf32>
    %39 = arith.addf %33, %38 : vector<10x10xf32>
    %c0_28 = arith.constant 0 : index
    %c0_29 = arith.constant 0 : index
    %c0_30 = arith.constant 0 : index
    %40 = vector.load %arg5[%c0_28, %c0_29, %c0_30] : memref<1x1x8xf32, #tpu.memory_space<vmem>>, vector<1x1x8xf32>
    %41 = vector.shape_cast %40 : vector<1x1x8xf32> to vector<1x8xf32>
    %cst_31 = arith.constant -1.000000e+09 : f32
    %42 = vector.broadcast %cst_31 : f32 to vector<1x8xf32>
    %43 = arith.mulf %41, %42 : vector<1x8xf32>
    %c0_32 = arith.constant 0 : index
    %c0_33 = arith.constant 0 : index
    %c0_34 = arith.constant 0 : index
    %44 = vector.load %arg12[%c0_32, %c0_33, %c0_34] : memref<2x32x96xbf16, #tpu.memory_space<vmem>>, vector<1x32x96xbf16>
    %45 = vector.shape_cast %44 : vector<1x32x96xbf16> to vector<32x96xbf16>
    %46 = arith.truncf %12 : vector<8x32xf32> to vector<8x32xbf16>
    %cst_35 = arith.constant dense<0.000000e+00> : vector<8x96xf32>
    %47 = tpu.matmul %46, %45, %cst_35 {dimension_numbers = #tpu.dot_dimension_numbers<[1], [0], [0], [1], [0, 0, 1, 1], [], []>} : vector<8x32xbf16>, vector<32x96xbf16>, vector<8x96xf32> -> vector<8x96xf32>
    %c0_36 = arith.constant 0 : index
    %c0_37 = arith.constant 0 : index
    %c0_38 = arith.constant 0 : index
    %48 = vector.load %arg13[%c0_36, %c0_37, %c0_38] : memref<2x1x96xf32, #tpu.memory_space<vmem>>, vector<1x1x96xf32>
    %49 = vector.shape_cast %48 : vector<1x1x96xf32> to vector<1x96xf32>
    %50 = vector.broadcast %49 : vector<1x96xf32> to vector<8x96xf32>
    %51 = arith.addf %47, %50 : vector<8x96xf32>
    %52 = vector.extract_strided_slice %51 {offsets = [0, 0], sizes = [8, 32], strides = [1, 1]} : vector<8x96xf32> to vector<8x32xf32>
    %53 = vector.extract_strided_slice %51 {offsets = [0, 32], sizes = [8, 32], strides = [1, 1]} : vector<8x96xf32> to vector<8x32xf32>
    %54 = vector.extract_strided_slice %51 {offsets = [0, 64], sizes = [8, 32], strides = [1, 1]} : vector<8x96xf32> to vector<8x32xf32>
    %c0_39 = arith.constant 0 : index
    %c0_40 = arith.constant 0 : index
    %c0_41 = arith.constant 0 : index
    %55 = vector.load %arg14[%c0_39, %c0_40, %c0_41] : memref<2x32x32xbf16, #tpu.memory_space<vmem>>, vector<1x32x32xbf16>
    %56 = vector.shape_cast %55 : vector<1x32x32xbf16> to vector<32x32xbf16>
    %57 = vector.extract_strided_slice %52 {offsets = [0, 0], sizes = [8, 8], strides = [1, 1]} : vector<8x32xf32> to vector<8x8xf32>
    %58 = arith.truncf %57 : vector<8x8xf32> to vector<8x8xbf16>
    %59 = vector.extract_strided_slice %53 {offsets = [0, 0], sizes = [8, 8], strides = [1, 1]} : vector<8x32xf32> to vector<8x8xf32>
    %60 = arith.truncf %59 : vector<8x8xf32> to vector<8x8xbf16>
    "tpu.trace_start"() <{level = 10 : i32, message = "qd,kd->qk"}> : () -> ()
    %cst_42 = arith.constant dense<0.000000e+00> : vector<8x8xf32>
    %61 = tpu.matmul %58, %60, %cst_42 {dimension_numbers = #tpu.dot_dimension_numbers<[1], [1], [0], [0], [0, 0, 1, 0], [], []>} : vector<8x8xbf16>, vector<8x8xbf16>, vector<8x8xf32> -> vector<8x8xf32>
    "tpu.trace_stop"() : () -> ()
    %cst_43 = arith.constant 0.353553385 : f32
    %62 = vector.broadcast %cst_43 : f32 to vector<8x8xf32>
    %63 = arith.mulf %61, %62 : vector<8x8xf32>
    %64 = arith.addf %63, %32 : vector<8x8xf32>
    %cst_44 = arith.constant dense<0xFF800000> : vector<8xf32>
    %65 = vector.multi_reduction <maximumf>, %64, %cst_44 [1] : vector<8x8xf32> to vector<8xf32>
    %66 = vector.shape_cast %65 : vector<8xf32> to vector<8x1xf32>
    %67 = vector.broadcast %66 : vector<8x1xf32> to vector<8x8xf32>
    %68 = arith.subf %64, %67 : vector<8x8xf32>
    %69 = math.exp %68 : vector<8x8xf32>
    %cst_45 = arith.constant dense<0.000000e+00> : vector<8xf32>
    %70 = vector.multi_reduction <add>, %69, %cst_45 [1] : vector<8x8xf32> to vector<8xf32>
    %71 = vector.shape_cast %70 : vector<8xf32> to vector<8x1xf32>
    %72 = vector.broadcast %71 : vector<8x1xf32> to vector<8x8xf32>
    %73 = arith.divf %69, %72 : vector<8x8xf32>
    %74 = arith.truncf %73 : vector<8x8xf32> to vector<8x8xbf16>
    %75 = vector.extract_strided_slice %54 {offsets = [0, 0], sizes = [8, 8], strides = [1, 1]} : vector<8x32xf32> to vector<8x8xf32>
    %76 = arith.truncf %75 : vector<8x8xf32> to vector<8x8xbf16>
    %cst_46 = arith.constant dense<0.000000e+00> : vector<8x8xf32>
    %77 = tpu.matmul %74, %76, %cst_46 {dimension_numbers = #tpu.dot_dimension_numbers<[1], [0], [0], [1], [0, 0, 1, 1], [], []>} : vector<8x8xbf16>, vector<8x8xbf16>, vector<8x8xf32> -> vector<8x8xf32>
    %78 = arith.truncf %77 : vector<8x8xf32> to vector<8x8xbf16>
    %79 = vector.extract_strided_slice %56 {offsets = [0, 0], sizes = [8, 32], strides = [1, 1]} : vector<32x32xbf16> to vector<8x32xbf16>
    %cst_47 = arith.constant dense<0.000000e+00> : vector<8x32xf32>
    %80 = tpu.matmul %78, %79, %cst_47 {dimension_numbers = #tpu.dot_dimension_numbers<[1], [0], [0], [1], [0, 0, 1, 1], [], []>} : vector<8x8xbf16>, vector<8x32xbf16>, vector<8x32xf32> -> vector<8x32xf32>
    %81 = vector.extract_strided_slice %52 {offsets = [0, 8], sizes = [8, 8], strides = [1, 1]} : vector<8x32xf32> to vector<8x8xf32>
    %82 = arith.truncf %81 : vector<8x8xf32> to vector<8x8xbf16>
    %83 = vector.extract_strided_slice %53 {offsets = [0, 8], sizes = [8, 8], strides = [1, 1]} : vector<8x32xf32> to vector<8x8xf32>
    %84 = arith.truncf %83 : vector<8x8xf32> to vector<8x8xbf16>
    "tpu.trace_start"() <{level = 10 : i32, message = "qd,kd->qk"}> : () -> ()
    %cst_48 = arith.constant dense<0.000000e+00> : vector<8x8xf32>
    %85 = tpu.matmul %82, %84, %cst_48 {dimension_numbers = #tpu.dot_dimension_numbers<[1], [1], [0], [0], [0, 0, 1, 0], [], []>} : vector<8x8xbf16>, vector<8x8xbf16>, vector<8x8xf32> -> vector<8x8xf32>
    "tpu.trace_stop"() : () -> ()
    %cst_49 = arith.constant 0.353553385 : f32
    %86 = vector.broadcast %cst_49 : f32 to vector<8x8xf32>
    %87 = arith.mulf %85, %86 : vector<8x8xf32>
    %88 = arith.addf %87, %32 : vector<8x8xf32>
    %cst_50 = arith.constant dense<0xFF800000> : vector<8xf32>
    %89 = vector.multi_reduction <maximumf>, %88, %cst_50 [1] : vector<8x8xf32> to vector<8xf32>
    %90 = vector.shape_cast %89 : vector<8xf32> to vector<8x1xf32>
    %91 = vector.broadcast %90 : vector<8x1xf32> to vector<8x8xf32>
    %92 = arith.subf %88, %91 : vector<8x8xf32>
    %93 = math.exp %92 : vector<8x8xf32>
    %cst_51 = arith.constant dense<0.000000e+00> : vector<8xf32>
    %94 = vector.multi_reduction <add>, %93, %cst_51 [1] : vector<8x8xf32> to vector<8xf32>
    %95 = vector.shape_cast %94 : vector<8xf32> to vector<8x1xf32>
    %96 = vector.broadcast %95 : vector<8x1xf32> to vector<8x8xf32>
    %97 = arith.divf %93, %96 : vector<8x8xf32>
    %98 = arith.truncf %97 : vector<8x8xf32> to vector<8x8xbf16>
    %99 = vector.extract_strided_slice %54 {offsets = [0, 8], sizes = [8, 8], strides = [1, 1]} : vector<8x32xf32> to vector<8x8xf32>
    %100 = arith.truncf %99 : vector<8x8xf32> to vector<8x8xbf16>
    %cst_52 = arith.constant dense<0.000000e+00> : vector<8x8xf32>
    %101 = tpu.matmul %98, %100, %cst_52 {dimension_numbers = #tpu.dot_dimension_numbers<[1], [0], [0], [1], [0, 0, 1, 1], [], []>} : vector<8x8xbf16>, vector<8x8xbf16>, vector<8x8xf32> -> vector<8x8xf32>
    %102 = arith.truncf %101 : vector<8x8xf32> to vector<8x8xbf16>
    %103 = vector.extract_strided_slice %56 {offsets = [8, 0], sizes = [8, 32], strides = [1, 1]} : vector<32x32xbf16> to vector<8x32xbf16>
    %cst_53 = arith.constant dense<0.000000e+00> : vector<8x32xf32>
    %104 = tpu.matmul %102, %103, %cst_53 {dimension_numbers = #tpu.dot_dimension_numbers<[1], [0], [0], [1], [0, 0, 1, 1], [], []>} : vector<8x8xbf16>, vector<8x32xbf16>, vector<8x32xf32> -> vector<8x32xf32>
    %105 = arith.addf %80, %104 : vector<8x32xf32>
    %106 = vector.extract_strided_slice %52 {offsets = [0, 16], sizes = [8, 8], strides = [1, 1]} : vector<8x32xf32> to vector<8x8xf32>
    %107 = arith.truncf %106 : vector<8x8xf32> to vector<8x8xbf16>
    %108 = vector.extract_strided_slice %53 {offsets = [0, 16], sizes = [8, 8], strides = [1, 1]} : vector<8x32xf32> to vector<8x8xf32>
    %109 = arith.truncf %108 : vector<8x8xf32> to vector<8x8xbf16>
    "tpu.trace_start"() <{level = 10 : i32, message = "qd,kd->qk"}> : () -> ()
    %cst_54 = arith.constant dense<0.000000e+00> : vector<8x8xf32>
    %110 = tpu.matmul %107, %109, %cst_54 {dimension_numbers = #tpu.dot_dimension_numbers<[1], [1], [0], [0], [0, 0, 1, 0], [], []>} : vector<8x8xbf16>, vector<8x8xbf16>, vector<8x8xf32> -> vector<8x8xf32>
    "tpu.trace_stop"() : () -> ()
    %cst_55 = arith.constant 0.353553385 : f32
    %111 = vector.broadcast %cst_55 : f32 to vector<8x8xf32>
    %112 = arith.mulf %110, %111 : vector<8x8xf32>
    %113 = arith.addf %112, %32 : vector<8x8xf32>
    %cst_56 = arith.constant dense<0xFF800000> : vector<8xf32>
    %114 = vector.multi_reduction <maximumf>, %113, %cst_56 [1] : vector<8x8xf32> to vector<8xf32>
    %115 = vector.shape_cast %114 : vector<8xf32> to vector<8x1xf32>
    %116 = vector.broadcast %115 : vector<8x1xf32> to vector<8x8xf32>
    %117 = arith.subf %113, %116 : vector<8x8xf32>
    %118 = math.exp %117 : vector<8x8xf32>
    %cst_57 = arith.constant dense<0.000000e+00> : vector<8xf32>
    %119 = vector.multi_reduction <add>, %118, %cst_57 [1] : vector<8x8xf32> to vector<8xf32>
    %120 = vector.shape_cast %119 : vector<8xf32> to vector<8x1xf32>
    %121 = vector.broadcast %120 : vector<8x1xf32> to vector<8x8xf32>
    %122 = arith.divf %118, %121 : vector<8x8xf32>
    %123 = arith.truncf %122 : vector<8x8xf32> to vector<8x8xbf16>
    %124 = vector.extract_strided_slice %54 {offsets = [0, 16], sizes = [8, 8], strides = [1, 1]} : vector<8x32xf32> to vector<8x8xf32>
    %125 = arith.truncf %124 : vector<8x8xf32> to vector<8x8xbf16>
    %cst_58 = arith.constant dense<0.000000e+00> : vector<8x8xf32>
    %126 = tpu.matmul %123, %125, %cst_58 {dimension_numbers = #tpu.dot_dimension_numbers<[1], [0], [0], [1], [0, 0, 1, 1], [], []>} : vector<8x8xbf16>, vector<8x8xbf16>, vector<8x8xf32> -> vector<8x8xf32>
    %127 = arith.truncf %126 : vector<8x8xf32> to vector<8x8xbf16>
    %128 = vector.extract_strided_slice %56 {offsets = [16, 0], sizes = [8, 32], strides = [1, 1]} : vector<32x32xbf16> to vector<8x32xbf16>
    %cst_59 = arith.constant dense<0.000000e+00> : vector<8x32xf32>
    %129 = tpu.matmul %127, %128, %cst_59 {dimension_numbers = #tpu.dot_dimension_numbers<[1], [0], [0], [1], [0, 0, 1, 1], [], []>} : vector<8x8xbf16>, vector<8x32xbf16>, vector<8x32xf32> -> vector<8x32xf32>
    %130 = arith.addf %105, %129 : vector<8x32xf32>
    %131 = vector.extract_strided_slice %52 {offsets = [0, 24], sizes = [8, 8], strides = [1, 1]} : vector<8x32xf32> to vector<8x8xf32>
    %132 = arith.truncf %131 : vector<8x8xf32> to vector<8x8xbf16>
    %133 = vector.extract_strided_slice %53 {offsets = [0, 24], sizes = [8, 8], strides = [1, 1]} : vector<8x32xf32> to vector<8x8xf32>
    %134 = arith.truncf %133 : vector<8x8xf32> to vector<8x8xbf16>
    "tpu.trace_start"() <{level = 10 : i32, message = "qd,kd->qk"}> : () -> ()
    %cst_60 = arith.constant dense<0.000000e+00> : vector<8x8xf32>
    %135 = tpu.matmul %132, %134, %cst_60 {dimension_numbers = #tpu.dot_dimension_numbers<[1], [1], [0], [0], [0, 0, 1, 0], [], []>} : vector<8x8xbf16>, vector<8x8xbf16>, vector<8x8xf32> -> vector<8x8xf32>
    "tpu.trace_stop"() : () -> ()
    %cst_61 = arith.constant 0.353553385 : f32
    %136 = vector.broadcast %cst_61 : f32 to vector<8x8xf32>
    %137 = arith.mulf %135, %136 : vector<8x8xf32>
    %138 = arith.addf %137, %32 : vector<8x8xf32>
    %cst_62 = arith.constant dense<0xFF800000> : vector<8xf32>
    %139 = vector.multi_reduction <maximumf>, %138, %cst_62 [1] : vector<8x8xf32> to vector<8xf32>
    %140 = vector.shape_cast %139 : vector<8xf32> to vector<8x1xf32>
    %141 = vector.broadcast %140 : vector<8x1xf32> to vector<8x8xf32>
    %142 = arith.subf %138, %141 : vector<8x8xf32>
    %143 = math.exp %142 : vector<8x8xf32>
    %cst_63 = arith.constant dense<0.000000e+00> : vector<8xf32>
    %144 = vector.multi_reduction <add>, %143, %cst_63 [1] : vector<8x8xf32> to vector<8xf32>
    %145 = vector.shape_cast %144 : vector<8xf32> to vector<8x1xf32>
    %146 = vector.broadcast %145 : vector<8x1xf32> to vector<8x8xf32>
    %147 = arith.divf %143, %146 : vector<8x8xf32>
    %148 = arith.truncf %147 : vector<8x8xf32> to vector<8x8xbf16>
    %149 = vector.extract_strided_slice %54 {offsets = [0, 24], sizes = [8, 8], strides = [1, 1]} : vector<8x32xf32> to vector<8x8xf32>
    %150 = arith.truncf %149 : vector<8x8xf32> to vector<8x8xbf16>
    %cst_64 = arith.constant dense<0.000000e+00> : vector<8x8xf32>
    %151 = tpu.matmul %148, %150, %cst_64 {dimension_numbers = #tpu.dot_dimension_numbers<[1], [0], [0], [1], [0, 0, 1, 1], [], []>} : vector<8x8xbf16>, vector<8x8xbf16>, vector<8x8xf32> -> vector<8x8xf32>
    %152 = arith.truncf %151 : vector<8x8xf32> to vector<8x8xbf16>
    %153 = vector.extract_strided_slice %56 {offsets = [24, 0], sizes = [8, 32], strides = [1, 1]} : vector<32x32xbf16> to vector<8x32xbf16>
    %cst_65 = arith.constant dense<0.000000e+00> : vector<8x32xf32>
    %154 = tpu.matmul %152, %153, %cst_65 {dimension_numbers = #tpu.dot_dimension_numbers<[1], [0], [0], [1], [0, 0, 1, 1], [], []>} : vector<8x8xbf16>, vector<8x32xbf16>, vector<8x32xf32> -> vector<8x32xf32>
    %155 = arith.addf %130, %154 : vector<8x32xf32>
    %c0_66 = arith.constant 0 : index
    %c0_67 = arith.constant 0 : index
    %c0_68 = arith.constant 0 : index
    %156 = vector.load %arg15[%c0_66, %c0_67, %c0_68] : memref<2x1x32xf32, #tpu.memory_space<vmem>>, vector<1x1x32xf32>
    %157 = vector.shape_cast %156 : vector<1x1x32xf32> to vector<1x32xf32>
    %158 = vector.broadcast %157 : vector<1x32xf32> to vector<8x32xf32>
    %159 = arith.addf %155, %158 : vector<8x32xf32>
    %160 = arith.addf %12, %159 : vector<8x32xf32>
    %c0_69 = arith.constant 0 : index
    %c0_70 = arith.constant 0 : index
    %c0_71 = arith.constant 0 : index
    %161 = vector.load %arg16[%c0_69, %c0_70, %c0_71] : memref<2x1x32xf32, #tpu.memory_space<vmem>>, vector<1x1x32xf32>
    %162 = vector.shape_cast %161 : vector<1x1x32xf32> to vector<1x32xf32>
    %c0_72 = arith.constant 0 : index
    %c0_73 = arith.constant 0 : index
    %c0_74 = arith.constant 0 : index
    %163 = vector.load %arg17[%c0_72, %c0_73, %c0_74] : memref<2x1x32xf32, #tpu.memory_space<vmem>>, vector<1x1x32xf32>
    %164 = vector.shape_cast %163 : vector<1x1x32xf32> to vector<1x32xf32>
    %cst_75 = arith.constant dense<0.000000e+00> : vector<8xf32>
    %165 = vector.multi_reduction <add>, %160, %cst_75 [1] : vector<8x32xf32> to vector<8xf32>
    %166 = vector.shape_cast %165 : vector<8xf32> to vector<8x1xf32>
    %cst_76 = arith.constant 3.200000e+01 : f32
    %167 = vector.broadcast %cst_76 : f32 to vector<8x1xf32>
    %168 = arith.divf %166, %167 : vector<8x1xf32>
    %169 = vector.broadcast %168 : vector<8x1xf32> to vector<8x32xf32>
    %170 = arith.subf %160, %169 : vector<8x32xf32>
    %171 = arith.mulf %170, %170 : vector<8x32xf32>
    %cst_77 = arith.constant dense<0.000000e+00> : vector<8xf32>
    %172 = vector.multi_reduction <add>, %171, %cst_77 [1] : vector<8x32xf32> to vector<8xf32>
    %173 = vector.shape_cast %172 : vector<8xf32> to vector<8x1xf32>
    %cst_78 = arith.constant 3.200000e+01 : f32
    %174 = vector.broadcast %cst_78 : f32 to vector<8x1xf32>
    %175 = arith.divf %173, %174 : vector<8x1xf32>
    %176 = vector.broadcast %168 : vector<8x1xf32> to vector<8x32xf32>
    %177 = arith.subf %160, %176 : vector<8x32xf32>
    %cst_79 = arith.constant 9.99999974E-6 : f32
    %178 = vector.broadcast %cst_79 : f32 to vector<8x1xf32>
    %179 = arith.addf %175, %178 : vector<8x1xf32>
    %180 = math.rsqrt %179 : vector<8x1xf32>
    %181 = vector.broadcast %180 : vector<8x1xf32> to vector<8x32xf32>
    %182 = arith.mulf %177, %181 : vector<8x32xf32>
    %183 = vector.broadcast %162 : vector<1x32xf32> to vector<8x32xf32>
    %184 = arith.mulf %182, %183 : vector<8x32xf32>
    %185 = vector.broadcast %164 : vector<1x32xf32> to vector<8x32xf32>
    %186 = arith.addf %184, %185 : vector<8x32xf32>
    %c0_80 = arith.constant 0 : index
    %c0_81 = arith.constant 0 : index
    %c0_82 = arith.constant 0 : index
    %187 = vector.load %arg18[%c0_80, %c0_81, %c0_82] : memref<2x32x64xbf16, #tpu.memory_space<vmem>>, vector<1x32x64xbf16>
    %188 = vector.shape_cast %187 : vector<1x32x64xbf16> to vector<32x64xbf16>
    %189 = arith.truncf %186 : vector<8x32xf32> to vector<8x32xbf16>
    %cst_83 = arith.constant dense<0.000000e+00> : vector<8x64xf32>
    %190 = tpu.matmul %189, %188, %cst_83 {dimension_numbers = #tpu.dot_dimension_numbers<[1], [0], [0], [1], [0, 0, 1, 1], [], []>} : vector<8x32xbf16>, vector<32x64xbf16>, vector<8x64xf32> -> vector<8x64xf32>
    %c0_84 = arith.constant 0 : index
    %c0_85 = arith.constant 0 : index
    %c0_86 = arith.constant 0 : index
    %191 = vector.load %arg19[%c0_84, %c0_85, %c0_86] : memref<2x1x64xf32, #tpu.memory_space<vmem>>, vector<1x1x64xf32>
    %192 = vector.shape_cast %191 : vector<1x1x64xf32> to vector<1x64xf32>
    %193 = vector.broadcast %192 : vector<1x64xf32> to vector<8x64xf32>
    %194 = arith.addf %190, %193 : vector<8x64xf32>
    %cst_87 = arith.constant 0.000000e+00 : f32
    %195 = vector.broadcast %cst_87 : f32 to vector<8x64xf32>
    %196 = arith.maximumf %194, %195 : vector<8x64xf32>
    %c0_88 = arith.constant 0 : index
    %c0_89 = arith.constant 0 : index
    %c0_90 = arith.constant 0 : index
    %197 = vector.load %arg20[%c0_88, %c0_89, %c0_90] : memref<2x64x32xbf16, #tpu.memory_space<vmem>>, vector<1x64x32xbf16>
    %198 = vector.shape_cast %197 : vector<1x64x32xbf16> to vector<64x32xbf16>
    %199 = arith.truncf %196 : vector<8x64xf32> to vector<8x64xbf16>
    %cst_91 = arith.constant dense<0.000000e+00> : vector<8x32xf32>
    %200 = tpu.matmul %199, %198, %cst_91 {dimension_numbers = #tpu.dot_dimension_numbers<[1], [0], [0], [1], [0, 0, 1, 1], [], []>} : vector<8x64xbf16>, vector<64x32xbf16>, vector<8x32xf32> -> vector<8x32xf32>
    %c0_92 = arith.constant 0 : index
    %c0_93 = arith.constant 0 : index
    %c0_94 = arith.constant 0 : index
    %201 = vector.load %arg21[%c0_92, %c0_93, %c0_94] : memref<2x1x32xf32, #tpu.memory_space<vmem>>, vector<1x1x32xf32>
    %202 = vector.shape_cast %201 : vector<1x1x32xf32> to vector<1x32xf32>
    %203 = vector.broadcast %202 : vector<1x32xf32> to vector<8x32xf32>
    %204 = arith.addf %200, %203 : vector<8x32xf32>
    %205 = arith.addf %186, %204 : vector<8x32xf32>
    %c0_95 = arith.constant 0 : index
    %c0_96 = arith.constant 0 : index
    %c0_97 = arith.constant 0 : index
    %206 = vector.load %arg22[%c0_95, %c0_96, %c0_97] : memref<2x1x32xf32, #tpu.memory_space<vmem>>, vector<1x1x32xf32>
    %207 = vector.shape_cast %206 : vector<1x1x32xf32> to vector<1x32xf32>
    %c0_98 = arith.constant 0 : index
    %c0_99 = arith.constant 0 : index
    %c0_100 = arith.constant 0 : index
    %208 = vector.load %arg23[%c0_98, %c0_99, %c0_100] : memref<2x1x32xf32, #tpu.memory_space<vmem>>, vector<1x1x32xf32>
    %209 = vector.shape_cast %208 : vector<1x1x32xf32> to vector<1x32xf32>
    %cst_101 = arith.constant dense<0.000000e+00> : vector<8xf32>
    %210 = vector.multi_reduction <add>, %205, %cst_101 [1] : vector<8x32xf32> to vector<8xf32>
    %211 = vector.shape_cast %210 : vector<8xf32> to vector<8x1xf32>
    %cst_102 = arith.constant 3.200000e+01 : f32
    %212 = vector.broadcast %cst_102 : f32 to vector<8x1xf32>
    %213 = arith.divf %211, %212 : vector<8x1xf32>
    %214 = vector.broadcast %213 : vector<8x1xf32> to vector<8x32xf32>
    %215 = arith.subf %205, %214 : vector<8x32xf32>
    %216 = arith.mulf %215, %215 : vector<8x32xf32>
    %cst_103 = arith.constant dense<0.000000e+00> : vector<8xf32>
    %217 = vector.multi_reduction <add>, %216, %cst_103 [1] : vector<8x32xf32> to vector<8xf32>
    %218 = vector.shape_cast %217 : vector<8xf32> to vector<8x1xf32>
    %cst_104 = arith.constant 3.200000e+01 : f32
    %219 = vector.broadcast %cst_104 : f32 to vector<8x1xf32>
    %220 = arith.divf %218, %219 : vector<8x1xf32>
    %221 = vector.broadcast %213 : vector<8x1xf32> to vector<8x32xf32>
    %222 = arith.subf %205, %221 : vector<8x32xf32>
    %cst_105 = arith.constant 9.99999974E-6 : f32
    %223 = vector.broadcast %cst_105 : f32 to vector<8x1xf32>
    %224 = arith.addf %220, %223 : vector<8x1xf32>
    %225 = math.rsqrt %224 : vector<8x1xf32>
    %226 = vector.broadcast %225 : vector<8x1xf32> to vector<8x32xf32>
    %227 = arith.mulf %222, %226 : vector<8x32xf32>
    %228 = vector.broadcast %207 : vector<1x32xf32> to vector<8x32xf32>
    %229 = arith.mulf %227, %228 : vector<8x32xf32>
    %230 = vector.broadcast %209 : vector<1x32xf32> to vector<8x32xf32>
    %231 = arith.addf %229, %230 : vector<8x32xf32>
    %c1 = arith.constant 1 : index
    %c0_106 = arith.constant 0 : index
    %c0_107 = arith.constant 0 : index
    %232 = vector.load %arg12[%c1, %c0_106, %c0_107] : memref<2x32x96xbf16, #tpu.memory_space<vmem>>, vector<1x32x96xbf16>
    %233 = vector.shape_cast %232 : vector<1x32x96xbf16> to vector<32x96xbf16>
    %234 = arith.truncf %231 : vector<8x32xf32> to vector<8x32xbf16>
    %cst_108 = arith.constant dense<0.000000e+00> : vector<8x96xf32>
    %235 = tpu.matmul %234, %233, %cst_108 {dimension_numbers = #tpu.dot_dimension_numbers<[1], [0], [0], [1], [0, 0, 1, 1], [], []>} : vector<8x32xbf16>, vector<32x96xbf16>, vector<8x96xf32> -> vector<8x96xf32>
    %c1_109 = arith.constant 1 : index
    %c0_110 = arith.constant 0 : index
    %c0_111 = arith.constant 0 : index
    %236 = vector.load %arg13[%c1_109, %c0_110, %c0_111] : memref<2x1x96xf32, #tpu.memory_space<vmem>>, vector<1x1x96xf32>
    %237 = vector.shape_cast %236 : vector<1x1x96xf32> to vector<1x96xf32>
    %238 = vector.broadcast %237 : vector<1x96xf32> to vector<8x96xf32>
    %239 = arith.addf %235, %238 : vector<8x96xf32>
    %240 = vector.extract_strided_slice %239 {offsets = [0, 0], sizes = [8, 32], strides = [1, 1]} : vector<8x96xf32> to vector<8x32xf32>
    %241 = vector.extract_strided_slice %239 {offsets = [0, 32], sizes = [8, 32], strides = [1, 1]} : vector<8x96xf32> to vector<8x32xf32>
    %242 = vector.extract_strided_slice %239 {offsets = [0, 64], sizes = [8, 32], strides = [1, 1]} : vector<8x96xf32> to vector<8x32xf32>
    %c1_112 = arith.constant 1 : index
    %c0_113 = arith.constant 0 : index
    %c0_114 = arith.constant 0 : index
    %243 = vector.load %arg14[%c1_112, %c0_113, %c0_114] : memref<2x32x32xbf16, #tpu.memory_space<vmem>>, vector<1x32x32xbf16>
    %244 = vector.shape_cast %243 : vector<1x32x32xbf16> to vector<32x32xbf16>
    %245 = vector.extract_strided_slice %240 {offsets = [0, 0], sizes = [8, 8], strides = [1, 1]} : vector<8x32xf32> to vector<8x8xf32>
    %246 = arith.truncf %245 : vector<8x8xf32> to vector<8x8xbf16>
    %247 = vector.extract_strided_slice %241 {offsets = [0, 0], sizes = [8, 8], strides = [1, 1]} : vector<8x32xf32> to vector<8x8xf32>
    %248 = arith.truncf %247 : vector<8x8xf32> to vector<8x8xbf16>
    "tpu.trace_start"() <{level = 10 : i32, message = "qd,kd->qk"}> : () -> ()
    %cst_115 = arith.constant dense<0.000000e+00> : vector<8x8xf32>
    %249 = tpu.matmul %246, %248, %cst_115 {dimension_numbers = #tpu.dot_dimension_numbers<[1], [1], [0], [0], [0, 0, 1, 0], [], []>} : vector<8x8xbf16>, vector<8x8xbf16>, vector<8x8xf32> -> vector<8x8xf32>
    "tpu.trace_stop"() : () -> ()
    %cst_116 = arith.constant 0.353553385 : f32
    %250 = vector.broadcast %cst_116 : f32 to vector<8x8xf32>
    %251 = arith.mulf %249, %250 : vector<8x8xf32>
    %252 = arith.addf %251, %32 : vector<8x8xf32>
    %cst_117 = arith.constant dense<0xFF800000> : vector<8xf32>
    %253 = vector.multi_reduction <maximumf>, %252, %cst_117 [1] : vector<8x8xf32> to vector<8xf32>
    %254 = vector.shape_cast %253 : vector<8xf32> to vector<8x1xf32>
    %255 = vector.broadcast %254 : vector<8x1xf32> to vector<8x8xf32>
    %256 = arith.subf %252, %255 : vector<8x8xf32>
    %257 = math.exp %256 : vector<8x8xf32>
    %cst_118 = arith.constant dense<0.000000e+00> : vector<8xf32>
    %258 = vector.multi_reduction <add>, %257, %cst_118 [1] : vector<8x8xf32> to vector<8xf32>
    %259 = vector.shape_cast %258 : vector<8xf32> to vector<8x1xf32>
    %260 = vector.broadcast %259 : vector<8x1xf32> to vector<8x8xf32>
    %261 = arith.divf %257, %260 : vector<8x8xf32>
    %262 = arith.truncf %261 : vector<8x8xf32> to vector<8x8xbf16>
    %263 = vector.extract_strided_slice %242 {offsets = [0, 0], sizes = [8, 8], strides = [1, 1]} : vector<8x32xf32> to vector<8x8xf32>
    %264 = arith.truncf %263 : vector<8x8xf32> to vector<8x8xbf16>
    %cst_119 = arith.constant dense<0.000000e+00> : vector<8x8xf32>
    %265 = tpu.matmul %262, %264, %cst_119 {dimension_numbers = #tpu.dot_dimension_numbers<[1], [0], [0], [1], [0, 0, 1, 1], [], []>} : vector<8x8xbf16>, vector<8x8xbf16>, vector<8x8xf32> -> vector<8x8xf32>
    %266 = arith.truncf %265 : vector<8x8xf32> to vector<8x8xbf16>
    %267 = vector.extract_strided_slice %244 {offsets = [0, 0], sizes = [8, 32], strides = [1, 1]} : vector<32x32xbf16> to vector<8x32xbf16>
    %cst_120 = arith.constant dense<0.000000e+00> : vector<8x32xf32>
    %268 = tpu.matmul %266, %267, %cst_120 {dimension_numbers = #tpu.dot_dimension_numbers<[1], [0], [0], [1], [0, 0, 1, 1], [], []>} : vector<8x8xbf16>, vector<8x32xbf16>, vector<8x32xf32> -> vector<8x32xf32>
    %269 = vector.extract_strided_slice %240 {offsets = [0, 8], sizes = [8, 8], strides = [1, 1]} : vector<8x32xf32> to vector<8x8xf32>
    %270 = arith.truncf %269 : vector<8x8xf32> to vector<8x8xbf16>
    %271 = vector.extract_strided_slice %241 {offsets = [0, 8], sizes = [8, 8], strides = [1, 1]} : vector<8x32xf32> to vector<8x8xf32>
    %272 = arith.truncf %271 : vector<8x8xf32> to vector<8x8xbf16>
    "tpu.trace_start"() <{level = 10 : i32, message = "qd,kd->qk"}> : () -> ()
    %cst_121 = arith.constant dense<0.000000e+00> : vector<8x8xf32>
    %273 = tpu.matmul %270, %272, %cst_121 {dimension_numbers = #tpu.dot_dimension_numbers<[1], [1], [0], [0], [0, 0, 1, 0], [], []>} : vector<8x8xbf16>, vector<8x8xbf16>, vector<8x8xf32> -> vector<8x8xf32>
    "tpu.trace_stop"() : () -> ()
    %cst_122 = arith.constant 0.353553385 : f32
    %274 = vector.broadcast %cst_122 : f32 to vector<8x8xf32>
    %275 = arith.mulf %273, %274 : vector<8x8xf32>
    %276 = arith.addf %275, %32 : vector<8x8xf32>
    %cst_123 = arith.constant dense<0xFF800000> : vector<8xf32>
    %277 = vector.multi_reduction <maximumf>, %276, %cst_123 [1] : vector<8x8xf32> to vector<8xf32>
    %278 = vector.shape_cast %277 : vector<8xf32> to vector<8x1xf32>
    %279 = vector.broadcast %278 : vector<8x1xf32> to vector<8x8xf32>
    %280 = arith.subf %276, %279 : vector<8x8xf32>
    %281 = math.exp %280 : vector<8x8xf32>
    %cst_124 = arith.constant dense<0.000000e+00> : vector<8xf32>
    %282 = vector.multi_reduction <add>, %281, %cst_124 [1] : vector<8x8xf32> to vector<8xf32>
    %283 = vector.shape_cast %282 : vector<8xf32> to vector<8x1xf32>
    %284 = vector.broadcast %283 : vector<8x1xf32> to vector<8x8xf32>
    %285 = arith.divf %281, %284 : vector<8x8xf32>
    %286 = arith.truncf %285 : vector<8x8xf32> to vector<8x8xbf16>
    %287 = vector.extract_strided_slice %242 {offsets = [0, 8], sizes = [8, 8], strides = [1, 1]} : vector<8x32xf32> to vector<8x8xf32>
    %288 = arith.truncf %287 : vector<8x8xf32> to vector<8x8xbf16>
    %cst_125 = arith.constant dense<0.000000e+00> : vector<8x8xf32>
    %289 = tpu.matmul %286, %288, %cst_125 {dimension_numbers = #tpu.dot_dimension_numbers<[1], [0], [0], [1], [0, 0, 1, 1], [], []>} : vector<8x8xbf16>, vector<8x8xbf16>, vector<8x8xf32> -> vector<8x8xf32>
    %290 = arith.truncf %289 : vector<8x8xf32> to vector<8x8xbf16>
    %291 = vector.extract_strided_slice %244 {offsets = [8, 0], sizes = [8, 32], strides = [1, 1]} : vector<32x32xbf16> to vector<8x32xbf16>
    %cst_126 = arith.constant dense<0.000000e+00> : vector<8x32xf32>
    %292 = tpu.matmul %290, %291, %cst_126 {dimension_numbers = #tpu.dot_dimension_numbers<[1], [0], [0], [1], [0, 0, 1, 1], [], []>} : vector<8x8xbf16>, vector<8x32xbf16>, vector<8x32xf32> -> vector<8x32xf32>
    %293 = arith.addf %268, %292 : vector<8x32xf32>
    %294 = vector.extract_strided_slice %240 {offsets = [0, 16], sizes = [8, 8], strides = [1, 1]} : vector<8x32xf32> to vector<8x8xf32>
    %295 = arith.truncf %294 : vector<8x8xf32> to vector<8x8xbf16>
    %296 = vector.extract_strided_slice %241 {offsets = [0, 16], sizes = [8, 8], strides = [1, 1]} : vector<8x32xf32> to vector<8x8xf32>
    %297 = arith.truncf %296 : vector<8x8xf32> to vector<8x8xbf16>
    "tpu.trace_start"() <{level = 10 : i32, message = "qd,kd->qk"}> : () -> ()
    %cst_127 = arith.constant dense<0.000000e+00> : vector<8x8xf32>
    %298 = tpu.matmul %295, %297, %cst_127 {dimension_numbers = #tpu.dot_dimension_numbers<[1], [1], [0], [0], [0, 0, 1, 0], [], []>} : vector<8x8xbf16>, vector<8x8xbf16>, vector<8x8xf32> -> vector<8x8xf32>
    "tpu.trace_stop"() : () -> ()
    %cst_128 = arith.constant 0.353553385 : f32
    %299 = vector.broadcast %cst_128 : f32 to vector<8x8xf32>
    %300 = arith.mulf %298, %299 : vector<8x8xf32>
    %301 = arith.addf %300, %32 : vector<8x8xf32>
    %cst_129 = arith.constant dense<0xFF800000> : vector<8xf32>
    %302 = vector.multi_reduction <maximumf>, %301, %cst_129 [1] : vector<8x8xf32> to vector<8xf32>
    %303 = vector.shape_cast %302 : vector<8xf32> to vector<8x1xf32>
    %304 = vector.broadcast %303 : vector<8x1xf32> to vector<8x8xf32>
    %305 = arith.subf %301, %304 : vector<8x8xf32>
    %306 = math.exp %305 : vector<8x8xf32>
    %cst_130 = arith.constant dense<0.000000e+00> : vector<8xf32>
    %307 = vector.multi_reduction <add>, %306, %cst_130 [1] : vector<8x8xf32> to vector<8xf32>
    %308 = vector.shape_cast %307 : vector<8xf32> to vector<8x1xf32>
    %309 = vector.broadcast %308 : vector<8x1xf32> to vector<8x8xf32>
    %310 = arith.divf %306, %309 : vector<8x8xf32>
    %311 = arith.truncf %310 : vector<8x8xf32> to vector<8x8xbf16>
    %312 = vector.extract_strided_slice %242 {offsets = [0, 16], sizes = [8, 8], strides = [1, 1]} : vector<8x32xf32> to vector<8x8xf32>
    %313 = arith.truncf %312 : vector<8x8xf32> to vector<8x8xbf16>
    %cst_131 = arith.constant dense<0.000000e+00> : vector<8x8xf32>
    %314 = tpu.matmul %311, %313, %cst_131 {dimension_numbers = #tpu.dot_dimension_numbers<[1], [0], [0], [1], [0, 0, 1, 1], [], []>} : vector<8x8xbf16>, vector<8x8xbf16>, vector<8x8xf32> -> vector<8x8xf32>
    %315 = arith.truncf %314 : vector<8x8xf32> to vector<8x8xbf16>
    %316 = vector.extract_strided_slice %244 {offsets = [16, 0], sizes = [8, 32], strides = [1, 1]} : vector<32x32xbf16> to vector<8x32xbf16>
    %cst_132 = arith.constant dense<0.000000e+00> : vector<8x32xf32>
    %317 = tpu.matmul %315, %316, %cst_132 {dimension_numbers = #tpu.dot_dimension_numbers<[1], [0], [0], [1], [0, 0, 1, 1], [], []>} : vector<8x8xbf16>, vector<8x32xbf16>, vector<8x32xf32> -> vector<8x32xf32>
    %318 = arith.addf %293, %317 : vector<8x32xf32>
    %319 = vector.extract_strided_slice %240 {offsets = [0, 24], sizes = [8, 8], strides = [1, 1]} : vector<8x32xf32> to vector<8x8xf32>
    %320 = arith.truncf %319 : vector<8x8xf32> to vector<8x8xbf16>
    %321 = vector.extract_strided_slice %241 {offsets = [0, 24], sizes = [8, 8], strides = [1, 1]} : vector<8x32xf32> to vector<8x8xf32>
    %322 = arith.truncf %321 : vector<8x8xf32> to vector<8x8xbf16>
    "tpu.trace_start"() <{level = 10 : i32, message = "qd,kd->qk"}> : () -> ()
    %cst_133 = arith.constant dense<0.000000e+00> : vector<8x8xf32>
    %323 = tpu.matmul %320, %322, %cst_133 {dimension_numbers = #tpu.dot_dimension_numbers<[1], [1], [0], [0], [0, 0, 1, 0], [], []>} : vector<8x8xbf16>, vector<8x8xbf16>, vector<8x8xf32> -> vector<8x8xf32>
    "tpu.trace_stop"() : () -> ()
    %cst_134 = arith.constant 0.353553385 : f32
    %324 = vector.broadcast %cst_134 : f32 to vector<8x8xf32>
    %325 = arith.mulf %323, %324 : vector<8x8xf32>
    %326 = arith.addf %325, %32 : vector<8x8xf32>
    %cst_135 = arith.constant dense<0xFF800000> : vector<8xf32>
    %327 = vector.multi_reduction <maximumf>, %326, %cst_135 [1] : vector<8x8xf32> to vector<8xf32>
    %328 = vector.shape_cast %327 : vector<8xf32> to vector<8x1xf32>
    %329 = vector.broadcast %328 : vector<8x1xf32> to vector<8x8xf32>
    %330 = arith.subf %326, %329 : vector<8x8xf32>
    %331 = math.exp %330 : vector<8x8xf32>
    %cst_136 = arith.constant dense<0.000000e+00> : vector<8xf32>
    %332 = vector.multi_reduction <add>, %331, %cst_136 [1] : vector<8x8xf32> to vector<8xf32>
    %333 = vector.shape_cast %332 : vector<8xf32> to vector<8x1xf32>
    %334 = vector.broadcast %333 : vector<8x1xf32> to vector<8x8xf32>
    %335 = arith.divf %331, %334 : vector<8x8xf32>
    %336 = arith.truncf %335 : vector<8x8xf32> to vector<8x8xbf16>
    %337 = vector.extract_strided_slice %242 {offsets = [0, 24], sizes = [8, 8], strides = [1, 1]} : vector<8x32xf32> to vector<8x8xf32>
    %338 = arith.truncf %337 : vector<8x8xf32> to vector<8x8xbf16>
    %cst_137 = arith.constant dense<0.000000e+00> : vector<8x8xf32>
    %339 = tpu.matmul %336, %338, %cst_137 {dimension_numbers = #tpu.dot_dimension_numbers<[1], [0], [0], [1], [0, 0, 1, 1], [], []>} : vector<8x8xbf16>, vector<8x8xbf16>, vector<8x8xf32> -> vector<8x8xf32>
    %340 = arith.truncf %339 : vector<8x8xf32> to vector<8x8xbf16>
    %341 = vector.extract_strided_slice %244 {offsets = [24, 0], sizes = [8, 32], strides = [1, 1]} : vector<32x32xbf16> to vector<8x32xbf16>
    %cst_138 = arith.constant dense<0.000000e+00> : vector<8x32xf32>
    %342 = tpu.matmul %340, %341, %cst_138 {dimension_numbers = #tpu.dot_dimension_numbers<[1], [0], [0], [1], [0, 0, 1, 1], [], []>} : vector<8x8xbf16>, vector<8x32xbf16>, vector<8x32xf32> -> vector<8x32xf32>
    %343 = arith.addf %318, %342 : vector<8x32xf32>
    %c1_139 = arith.constant 1 : index
    %c0_140 = arith.constant 0 : index
    %c0_141 = arith.constant 0 : index
    %344 = vector.load %arg15[%c1_139, %c0_140, %c0_141] : memref<2x1x32xf32, #tpu.memory_space<vmem>>, vector<1x1x32xf32>
    %345 = vector.shape_cast %344 : vector<1x1x32xf32> to vector<1x32xf32>
    %346 = vector.broadcast %345 : vector<1x32xf32> to vector<8x32xf32>
    %347 = arith.addf %343, %346 : vector<8x32xf32>
    %348 = arith.addf %231, %347 : vector<8x32xf32>
    %c1_142 = arith.constant 1 : index
    %c0_143 = arith.constant 0 : index
    %c0_144 = arith.constant 0 : index
    %349 = vector.load %arg16[%c1_142, %c0_143, %c0_144] : memref<2x1x32xf32, #tpu.memory_space<vmem>>, vector<1x1x32xf32>
    %350 = vector.shape_cast %349 : vector<1x1x32xf32> to vector<1x32xf32>
    %c1_145 = arith.constant 1 : index
    %c0_146 = arith.constant 0 : index
    %c0_147 = arith.constant 0 : index
    %351 = vector.load %arg17[%c1_145, %c0_146, %c0_147] : memref<2x1x32xf32, #tpu.memory_space<vmem>>, vector<1x1x32xf32>
    %352 = vector.shape_cast %351 : vector<1x1x32xf32> to vector<1x32xf32>
    %cst_148 = arith.constant dense<0.000000e+00> : vector<8xf32>
    %353 = vector.multi_reduction <add>, %348, %cst_148 [1] : vector<8x32xf32> to vector<8xf32>
    %354 = vector.shape_cast %353 : vector<8xf32> to vector<8x1xf32>
    %cst_149 = arith.constant 3.200000e+01 : f32
    %355 = vector.broadcast %cst_149 : f32 to vector<8x1xf32>
    %356 = arith.divf %354, %355 : vector<8x1xf32>
    %357 = vector.broadcast %356 : vector<8x1xf32> to vector<8x32xf32>
    %358 = arith.subf %348, %357 : vector<8x32xf32>
    %359 = arith.mulf %358, %358 : vector<8x32xf32>
    %cst_150 = arith.constant dense<0.000000e+00> : vector<8xf32>
    %360 = vector.multi_reduction <add>, %359, %cst_150 [1] : vector<8x32xf32> to vector<8xf32>
    %361 = vector.shape_cast %360 : vector<8xf32> to vector<8x1xf32>
    %cst_151 = arith.constant 3.200000e+01 : f32
    %362 = vector.broadcast %cst_151 : f32 to vector<8x1xf32>
    %363 = arith.divf %361, %362 : vector<8x1xf32>
    %364 = vector.broadcast %356 : vector<8x1xf32> to vector<8x32xf32>
    %365 = arith.subf %348, %364 : vector<8x32xf32>
    %cst_152 = arith.constant 9.99999974E-6 : f32
    %366 = vector.broadcast %cst_152 : f32 to vector<8x1xf32>
    %367 = arith.addf %363, %366 : vector<8x1xf32>
    %368 = math.rsqrt %367 : vector<8x1xf32>
    %369 = vector.broadcast %368 : vector<8x1xf32> to vector<8x32xf32>
    %370 = arith.mulf %365, %369 : vector<8x32xf32>
    %371 = vector.broadcast %350 : vector<1x32xf32> to vector<8x32xf32>
    %372 = arith.mulf %370, %371 : vector<8x32xf32>
    %373 = vector.broadcast %352 : vector<1x32xf32> to vector<8x32xf32>
    %374 = arith.addf %372, %373 : vector<8x32xf32>
    %c1_153 = arith.constant 1 : index
    %c0_154 = arith.constant 0 : index
    %c0_155 = arith.constant 0 : index
    %375 = vector.load %arg18[%c1_153, %c0_154, %c0_155] : memref<2x32x64xbf16, #tpu.memory_space<vmem>>, vector<1x32x64xbf16>
    %376 = vector.shape_cast %375 : vector<1x32x64xbf16> to vector<32x64xbf16>
    %377 = arith.truncf %374 : vector<8x32xf32> to vector<8x32xbf16>
    %cst_156 = arith.constant dense<0.000000e+00> : vector<8x64xf32>
    %378 = tpu.matmul %377, %376, %cst_156 {dimension_numbers = #tpu.dot_dimension_numbers<[1], [0], [0], [1], [0, 0, 1, 1], [], []>} : vector<8x32xbf16>, vector<32x64xbf16>, vector<8x64xf32> -> vector<8x64xf32>
    %c1_157 = arith.constant 1 : index
    %c0_158 = arith.constant 0 : index
    %c0_159 = arith.constant 0 : index
    %379 = vector.load %arg19[%c1_157, %c0_158, %c0_159] : memref<2x1x64xf32, #tpu.memory_space<vmem>>, vector<1x1x64xf32>
    %380 = vector.shape_cast %379 : vector<1x1x64xf32> to vector<1x64xf32>
    %381 = vector.broadcast %380 : vector<1x64xf32> to vector<8x64xf32>
    %382 = arith.addf %378, %381 : vector<8x64xf32>
    %cst_160 = arith.constant 0.000000e+00 : f32
    %383 = vector.broadcast %cst_160 : f32 to vector<8x64xf32>
    %384 = arith.maximumf %382, %383 : vector<8x64xf32>
    %c1_161 = arith.constant 1 : index
    %c0_162 = arith.constant 0 : index
    %c0_163 = arith.constant 0 : index
    %385 = vector.load %arg20[%c1_161, %c0_162, %c0_163] : memref<2x64x32xbf16, #tpu.memory_space<vmem>>, vector<1x64x32xbf16>
    %386 = vector.shape_cast %385 : vector<1x64x32xbf16> to vector<64x32xbf16>
    %387 = arith.truncf %384 : vector<8x64xf32> to vector<8x64xbf16>
    %cst_164 = arith.constant dense<0.000000e+00> : vector<8x32xf32>
    %388 = tpu.matmul %387, %386, %cst_164 {dimension_numbers = #tpu.dot_dimension_numbers<[1], [0], [0], [1], [0, 0, 1, 1], [], []>} : vector<8x64xbf16>, vector<64x32xbf16>, vector<8x32xf32> -> vector<8x32xf32>
    %c1_165 = arith.constant 1 : index
    %c0_166 = arith.constant 0 : index
    %c0_167 = arith.constant 0 : index
    %389 = vector.load %arg21[%c1_165, %c0_166, %c0_167] : memref<2x1x32xf32, #tpu.memory_space<vmem>>, vector<1x1x32xf32>
    %390 = vector.shape_cast %389 : vector<1x1x32xf32> to vector<1x32xf32>
    %391 = vector.broadcast %390 : vector<1x32xf32> to vector<8x32xf32>
    %392 = arith.addf %388, %391 : vector<8x32xf32>
    %393 = arith.addf %374, %392 : vector<8x32xf32>
    %c1_168 = arith.constant 1 : index
    %c0_169 = arith.constant 0 : index
    %c0_170 = arith.constant 0 : index
    %394 = vector.load %arg22[%c1_168, %c0_169, %c0_170] : memref<2x1x32xf32, #tpu.memory_space<vmem>>, vector<1x1x32xf32>
    %395 = vector.shape_cast %394 : vector<1x1x32xf32> to vector<1x32xf32>
    %c1_171 = arith.constant 1 : index
    %c0_172 = arith.constant 0 : index
    %c0_173 = arith.constant 0 : index
    %396 = vector.load %arg23[%c1_171, %c0_172, %c0_173] : memref<2x1x32xf32, #tpu.memory_space<vmem>>, vector<1x1x32xf32>
    %397 = vector.shape_cast %396 : vector<1x1x32xf32> to vector<1x32xf32>
    %cst_174 = arith.constant dense<0.000000e+00> : vector<8xf32>
    %398 = vector.multi_reduction <add>, %393, %cst_174 [1] : vector<8x32xf32> to vector<8xf32>
    %399 = vector.shape_cast %398 : vector<8xf32> to vector<8x1xf32>
    %cst_175 = arith.constant 3.200000e+01 : f32
    %400 = vector.broadcast %cst_175 : f32 to vector<8x1xf32>
    %401 = arith.divf %399, %400 : vector<8x1xf32>
    %402 = vector.broadcast %401 : vector<8x1xf32> to vector<8x32xf32>
    %403 = arith.subf %393, %402 : vector<8x32xf32>
    %404 = arith.mulf %403, %403 : vector<8x32xf32>
    %cst_176 = arith.constant dense<0.000000e+00> : vector<8xf32>
    %405 = vector.multi_reduction <add>, %404, %cst_176 [1] : vector<8x32xf32> to vector<8xf32>
    %406 = vector.shape_cast %405 : vector<8xf32> to vector<8x1xf32>
    %cst_177 = arith.constant 3.200000e+01 : f32
    %407 = vector.broadcast %cst_177 : f32 to vector<8x1xf32>
    %408 = arith.divf %406, %407 : vector<8x1xf32>
    %409 = vector.broadcast %401 : vector<8x1xf32> to vector<8x32xf32>
    %410 = arith.subf %393, %409 : vector<8x32xf32>
    %cst_178 = arith.constant 9.99999974E-6 : f32
    %411 = vector.broadcast %cst_178 : f32 to vector<8x1xf32>
    %412 = arith.addf %408, %411 : vector<8x1xf32>
    %413 = math.rsqrt %412 : vector<8x1xf32>
    %414 = vector.broadcast %413 : vector<8x1xf32> to vector<8x32xf32>
    %415 = arith.mulf %410, %414 : vector<8x32xf32>
    %416 = vector.broadcast %395 : vector<1x32xf32> to vector<8x32xf32>
    %417 = arith.mulf %415, %416 : vector<8x32xf32>
    %418 = vector.broadcast %397 : vector<1x32xf32> to vector<8x32xf32>
    %419 = arith.addf %417, %418 : vector<8x32xf32>
    %c0_179 = arith.constant 0 : index
    %c0_180 = arith.constant 0 : index
    %420 = vector.load %arg24[%c0_179, %c0_180] : memref<1x32xf32, #tpu.memory_space<vmem>>, vector<1x32xf32>
    %c0_181 = arith.constant 0 : index
    %c0_182 = arith.constant 0 : index
    %421 = vector.load %arg25[%c0_181, %c0_182] : memref<1x32xf32, #tpu.memory_space<vmem>>, vector<1x32xf32>
    %cst_183 = arith.constant dense<0.000000e+00> : vector<8xf32>
    %422 = vector.multi_reduction <add>, %419, %cst_183 [1] : vector<8x32xf32> to vector<8xf32>
    %423 = vector.shape_cast %422 : vector<8xf32> to vector<8x1xf32>
    %cst_184 = arith.constant 3.200000e+01 : f32
    %424 = vector.broadcast %cst_184 : f32 to vector<8x1xf32>
    %425 = arith.divf %423, %424 : vector<8x1xf32>
    %426 = vector.broadcast %425 : vector<8x1xf32> to vector<8x32xf32>
    %427 = arith.subf %419, %426 : vector<8x32xf32>
    %428 = arith.mulf %427, %427 : vector<8x32xf32>
    %cst_185 = arith.constant dense<0.000000e+00> : vector<8xf32>
    %429 = vector.multi_reduction <add>, %428, %cst_185 [1] : vector<8x32xf32> to vector<8xf32>
    %430 = vector.shape_cast %429 : vector<8xf32> to vector<8x1xf32>
    %cst_186 = arith.constant 3.200000e+01 : f32
    %431 = vector.broadcast %cst_186 : f32 to vector<8x1xf32>
    %432 = arith.divf %430, %431 : vector<8x1xf32>
    %433 = vector.broadcast %425 : vector<8x1xf32> to vector<8x32xf32>
    %434 = arith.subf %419, %433 : vector<8x32xf32>
    %cst_187 = arith.constant 9.99999974E-6 : f32
    %435 = vector.broadcast %cst_187 : f32 to vector<8x1xf32>
    %436 = arith.addf %432, %435 : vector<8x1xf32>
    %437 = math.rsqrt %436 : vector<8x1xf32>
    %438 = vector.broadcast %437 : vector<8x1xf32> to vector<8x32xf32>
    %439 = arith.mulf %434, %438 : vector<8x32xf32>
    %440 = vector.broadcast %420 : vector<1x32xf32> to vector<8x32xf32>
    %441 = arith.mulf %439, %440 : vector<8x32xf32>
    %442 = vector.broadcast %421 : vector<1x32xf32> to vector<8x32xf32>
    %443 = arith.addf %441, %442 : vector<8x32xf32>
    %c0_188 = arith.constant 0 : index
    %c0_189 = arith.constant 0 : index
    %c0_190 = arith.constant 0 : index
    %444 = vector.load %arg26[%c0_188, %c0_189, %c0_190] : memref<2x32x96xbf16, #tpu.memory_space<vmem>>, vector<1x32x96xbf16>
    %445 = vector.shape_cast %444 : vector<1x32x96xbf16> to vector<32x96xbf16>
    %446 = arith.truncf %25 : vector<10x32xf32> to vector<10x32xbf16>
    %cst_191 = arith.constant dense<0.000000e+00> : vector<10x96xf32>
    %447 = tpu.matmul %446, %445, %cst_191 {dimension_numbers = #tpu.dot_dimension_numbers<[1], [0], [0], [1], [0, 0, 1, 1], [], []>} : vector<10x32xbf16>, vector<32x96xbf16>, vector<10x96xf32> -> vector<10x96xf32>
    %c0_192 = arith.constant 0 : index
    %c0_193 = arith.constant 0 : index
    %c0_194 = arith.constant 0 : index
    %448 = vector.load %arg27[%c0_192, %c0_193, %c0_194] : memref<2x1x96xf32, #tpu.memory_space<vmem>>, vector<1x1x96xf32>
    %449 = vector.shape_cast %448 : vector<1x1x96xf32> to vector<1x96xf32>
    %450 = vector.broadcast %449 : vector<1x96xf32> to vector<10x96xf32>
    %451 = arith.addf %447, %450 : vector<10x96xf32>
    %452 = vector.extract_strided_slice %451 {offsets = [0, 0], sizes = [10, 32], strides = [1, 1]} : vector<10x96xf32> to vector<10x32xf32>
    %453 = vector.extract_strided_slice %451 {offsets = [0, 32], sizes = [10, 32], strides = [1, 1]} : vector<10x96xf32> to vector<10x32xf32>
    %454 = vector.extract_strided_slice %451 {offsets = [0, 64], sizes = [10, 32], strides = [1, 1]} : vector<10x96xf32> to vector<10x32xf32>
    %c0_195 = arith.constant 0 : index
    %c0_196 = arith.constant 0 : index
    %c0_197 = arith.constant 0 : index
    %455 = vector.load %arg28[%c0_195, %c0_196, %c0_197] : memref<2x32x32xbf16, #tpu.memory_space<vmem>>, vector<1x32x32xbf16>
    %456 = vector.shape_cast %455 : vector<1x32x32xbf16> to vector<32x32xbf16>
    %457 = vector.extract_strided_slice %452 {offsets = [0, 0], sizes = [10, 8], strides = [1, 1]} : vector<10x32xf32> to vector<10x8xf32>
    %458 = arith.truncf %457 : vector<10x8xf32> to vector<10x8xbf16>
    %459 = vector.extract_strided_slice %453 {offsets = [0, 0], sizes = [10, 8], strides = [1, 1]} : vector<10x32xf32> to vector<10x8xf32>
    %460 = arith.truncf %459 : vector<10x8xf32> to vector<10x8xbf16>
    "tpu.trace_start"() <{level = 10 : i32, message = "qd,kd->qk"}> : () -> ()
    %cst_198 = arith.constant dense<0.000000e+00> : vector<10x10xf32>
    %461 = tpu.matmul %458, %460, %cst_198 {dimension_numbers = #tpu.dot_dimension_numbers<[1], [1], [0], [0], [0, 0, 1, 0], [], []>} : vector<10x8xbf16>, vector<10x8xbf16>, vector<10x10xf32> -> vector<10x10xf32>
    "tpu.trace_stop"() : () -> ()
    %cst_199 = arith.constant 0.353553385 : f32
    %462 = vector.broadcast %cst_199 : f32 to vector<10x10xf32>
    %463 = arith.mulf %461, %462 : vector<10x10xf32>
    %464 = arith.addf %463, %39 : vector<10x10xf32>
    %cst_200 = arith.constant dense<0xFF800000> : vector<10xf32>
    %465 = vector.multi_reduction <maximumf>, %464, %cst_200 [1] : vector<10x10xf32> to vector<10xf32>
    %466 = vector.shape_cast %465 : vector<10xf32> to vector<10x1xf32>
    %467 = vector.broadcast %466 : vector<10x1xf32> to vector<10x10xf32>
    %468 = arith.subf %464, %467 : vector<10x10xf32>
    %469 = math.exp %468 : vector<10x10xf32>
    %cst_201 = arith.constant dense<0.000000e+00> : vector<10xf32>
    %470 = vector.multi_reduction <add>, %469, %cst_201 [1] : vector<10x10xf32> to vector<10xf32>
    %471 = vector.shape_cast %470 : vector<10xf32> to vector<10x1xf32>
    %472 = vector.broadcast %471 : vector<10x1xf32> to vector<10x10xf32>
    %473 = arith.divf %469, %472 : vector<10x10xf32>
    %474 = arith.truncf %473 : vector<10x10xf32> to vector<10x10xbf16>
    %475 = vector.extract_strided_slice %454 {offsets = [0, 0], sizes = [10, 8], strides = [1, 1]} : vector<10x32xf32> to vector<10x8xf32>
    %476 = arith.truncf %475 : vector<10x8xf32> to vector<10x8xbf16>
    %cst_202 = arith.constant dense<0.000000e+00> : vector<10x8xf32>
    %477 = tpu.matmul %474, %476, %cst_202 {dimension_numbers = #tpu.dot_dimension_numbers<[1], [0], [0], [1], [0, 0, 1, 1], [], []>} : vector<10x10xbf16>, vector<10x8xbf16>, vector<10x8xf32> -> vector<10x8xf32>
    %478 = arith.truncf %477 : vector<10x8xf32> to vector<10x8xbf16>
    %479 = vector.extract_strided_slice %456 {offsets = [0, 0], sizes = [8, 32], strides = [1, 1]} : vector<32x32xbf16> to vector<8x32xbf16>
    %cst_203 = arith.constant dense<0.000000e+00> : vector<10x32xf32>
    %480 = tpu.matmul %478, %479, %cst_203 {dimension_numbers = #tpu.dot_dimension_numbers<[1], [0], [0], [1], [0, 0, 1, 1], [], []>} : vector<10x8xbf16>, vector<8x32xbf16>, vector<10x32xf32> -> vector<10x32xf32>
    %481 = vector.extract_strided_slice %452 {offsets = [0, 8], sizes = [10, 8], strides = [1, 1]} : vector<10x32xf32> to vector<10x8xf32>
    %482 = arith.truncf %481 : vector<10x8xf32> to vector<10x8xbf16>
    %483 = vector.extract_strided_slice %453 {offsets = [0, 8], sizes = [10, 8], strides = [1, 1]} : vector<10x32xf32> to vector<10x8xf32>
    %484 = arith.truncf %483 : vector<10x8xf32> to vector<10x8xbf16>
    "tpu.trace_start"() <{level = 10 : i32, message = "qd,kd->qk"}> : () -> ()
    %cst_204 = arith.constant dense<0.000000e+00> : vector<10x10xf32>
    %485 = tpu.matmul %482, %484, %cst_204 {dimension_numbers = #tpu.dot_dimension_numbers<[1], [1], [0], [0], [0, 0, 1, 0], [], []>} : vector<10x8xbf16>, vector<10x8xbf16>, vector<10x10xf32> -> vector<10x10xf32>
    "tpu.trace_stop"() : () -> ()
    %cst_205 = arith.constant 0.353553385 : f32
    %486 = vector.broadcast %cst_205 : f32 to vector<10x10xf32>
    %487 = arith.mulf %485, %486 : vector<10x10xf32>
    %488 = arith.addf %487, %39 : vector<10x10xf32>
    %cst_206 = arith.constant dense<0xFF800000> : vector<10xf32>
    %489 = vector.multi_reduction <maximumf>, %488, %cst_206 [1] : vector<10x10xf32> to vector<10xf32>
    %490 = vector.shape_cast %489 : vector<10xf32> to vector<10x1xf32>
    %491 = vector.broadcast %490 : vector<10x1xf32> to vector<10x10xf32>
    %492 = arith.subf %488, %491 : vector<10x10xf32>
    %493 = math.exp %492 : vector<10x10xf32>
    %cst_207 = arith.constant dense<0.000000e+00> : vector<10xf32>
    %494 = vector.multi_reduction <add>, %493, %cst_207 [1] : vector<10x10xf32> to vector<10xf32>
    %495 = vector.shape_cast %494 : vector<10xf32> to vector<10x1xf32>
    %496 = vector.broadcast %495 : vector<10x1xf32> to vector<10x10xf32>
    %497 = arith.divf %493, %496 : vector<10x10xf32>
    %498 = arith.truncf %497 : vector<10x10xf32> to vector<10x10xbf16>
    %499 = vector.extract_strided_slice %454 {offsets = [0, 8], sizes = [10, 8], strides = [1, 1]} : vector<10x32xf32> to vector<10x8xf32>
    %500 = arith.truncf %499 : vector<10x8xf32> to vector<10x8xbf16>
    %cst_208 = arith.constant dense<0.000000e+00> : vector<10x8xf32>
    %501 = tpu.matmul %498, %500, %cst_208 {dimension_numbers = #tpu.dot_dimension_numbers<[1], [0], [0], [1], [0, 0, 1, 1], [], []>} : vector<10x10xbf16>, vector<10x8xbf16>, vector<10x8xf32> -> vector<10x8xf32>
    %502 = arith.truncf %501 : vector<10x8xf32> to vector<10x8xbf16>
    %503 = vector.extract_strided_slice %456 {offsets = [8, 0], sizes = [8, 32], strides = [1, 1]} : vector<32x32xbf16> to vector<8x32xbf16>
    %cst_209 = arith.constant dense<0.000000e+00> : vector<10x32xf32>
    %504 = tpu.matmul %502, %503, %cst_209 {dimension_numbers = #tpu.dot_dimension_numbers<[1], [0], [0], [1], [0, 0, 1, 1], [], []>} : vector<10x8xbf16>, vector<8x32xbf16>, vector<10x32xf32> -> vector<10x32xf32>
    %505 = arith.addf %480, %504 : vector<10x32xf32>
    %506 = vector.extract_strided_slice %452 {offsets = [0, 16], sizes = [10, 8], strides = [1, 1]} : vector<10x32xf32> to vector<10x8xf32>
    %507 = arith.truncf %506 : vector<10x8xf32> to vector<10x8xbf16>
    %508 = vector.extract_strided_slice %453 {offsets = [0, 16], sizes = [10, 8], strides = [1, 1]} : vector<10x32xf32> to vector<10x8xf32>
    %509 = arith.truncf %508 : vector<10x8xf32> to vector<10x8xbf16>
    "tpu.trace_start"() <{level = 10 : i32, message = "qd,kd->qk"}> : () -> ()
    %cst_210 = arith.constant dense<0.000000e+00> : vector<10x10xf32>
    %510 = tpu.matmul %507, %509, %cst_210 {dimension_numbers = #tpu.dot_dimension_numbers<[1], [1], [0], [0], [0, 0, 1, 0], [], []>} : vector<10x8xbf16>, vector<10x8xbf16>, vector<10x10xf32> -> vector<10x10xf32>
    "tpu.trace_stop"() : () -> ()
    %cst_211 = arith.constant 0.353553385 : f32
    %511 = vector.broadcast %cst_211 : f32 to vector<10x10xf32>
    %512 = arith.mulf %510, %511 : vector<10x10xf32>
    %513 = arith.addf %512, %39 : vector<10x10xf32>
    %cst_212 = arith.constant dense<0xFF800000> : vector<10xf32>
    %514 = vector.multi_reduction <maximumf>, %513, %cst_212 [1] : vector<10x10xf32> to vector<10xf32>
    %515 = vector.shape_cast %514 : vector<10xf32> to vector<10x1xf32>
    %516 = vector.broadcast %515 : vector<10x1xf32> to vector<10x10xf32>
    %517 = arith.subf %513, %516 : vector<10x10xf32>
    %518 = math.exp %517 : vector<10x10xf32>
    %cst_213 = arith.constant dense<0.000000e+00> : vector<10xf32>
    %519 = vector.multi_reduction <add>, %518, %cst_213 [1] : vector<10x10xf32> to vector<10xf32>
    %520 = vector.shape_cast %519 : vector<10xf32> to vector<10x1xf32>
    %521 = vector.broadcast %520 : vector<10x1xf32> to vector<10x10xf32>
    %522 = arith.divf %518, %521 : vector<10x10xf32>
    %523 = arith.truncf %522 : vector<10x10xf32> to vector<10x10xbf16>
    %524 = vector.extract_strided_slice %454 {offsets = [0, 16], sizes = [10, 8], strides = [1, 1]} : vector<10x32xf32> to vector<10x8xf32>
    %525 = arith.truncf %524 : vector<10x8xf32> to vector<10x8xbf16>
    %cst_214 = arith.constant dense<0.000000e+00> : vector<10x8xf32>
    %526 = tpu.matmul %523, %525, %cst_214 {dimension_numbers = #tpu.dot_dimension_numbers<[1], [0], [0], [1], [0, 0, 1, 1], [], []>} : vector<10x10xbf16>, vector<10x8xbf16>, vector<10x8xf32> -> vector<10x8xf32>
    %527 = arith.truncf %526 : vector<10x8xf32> to vector<10x8xbf16>
    %528 = vector.extract_strided_slice %456 {offsets = [16, 0], sizes = [8, 32], strides = [1, 1]} : vector<32x32xbf16> to vector<8x32xbf16>
    %cst_215 = arith.constant dense<0.000000e+00> : vector<10x32xf32>
    %529 = tpu.matmul %527, %528, %cst_215 {dimension_numbers = #tpu.dot_dimension_numbers<[1], [0], [0], [1], [0, 0, 1, 1], [], []>} : vector<10x8xbf16>, vector<8x32xbf16>, vector<10x32xf32> -> vector<10x32xf32>
    %530 = arith.addf %505, %529 : vector<10x32xf32>
    %531 = vector.extract_strided_slice %452 {offsets = [0, 24], sizes = [10, 8], strides = [1, 1]} : vector<10x32xf32> to vector<10x8xf32>
    %532 = arith.truncf %531 : vector<10x8xf32> to vector<10x8xbf16>
    %533 = vector.extract_strided_slice %453 {offsets = [0, 24], sizes = [10, 8], strides = [1, 1]} : vector<10x32xf32> to vector<10x8xf32>
    %534 = arith.truncf %533 : vector<10x8xf32> to vector<10x8xbf16>
    "tpu.trace_start"() <{level = 10 : i32, message = "qd,kd->qk"}> : () -> ()
    %cst_216 = arith.constant dense<0.000000e+00> : vector<10x10xf32>
    %535 = tpu.matmul %532, %534, %cst_216 {dimension_numbers = #tpu.dot_dimension_numbers<[1], [1], [0], [0], [0, 0, 1, 0], [], []>} : vector<10x8xbf16>, vector<10x8xbf16>, vector<10x10xf32> -> vector<10x10xf32>
    "tpu.trace_stop"() : () -> ()
    %cst_217 = arith.constant 0.353553385 : f32
    %536 = vector.broadcast %cst_217 : f32 to vector<10x10xf32>
    %537 = arith.mulf %535, %536 : vector<10x10xf32>
    %538 = arith.addf %537, %39 : vector<10x10xf32>
    %cst_218 = arith.constant dense<0xFF800000> : vector<10xf32>
    %539 = vector.multi_reduction <maximumf>, %538, %cst_218 [1] : vector<10x10xf32> to vector<10xf32>
    %540 = vector.shape_cast %539 : vector<10xf32> to vector<10x1xf32>
    %541 = vector.broadcast %540 : vector<10x1xf32> to vector<10x10xf32>
    %542 = arith.subf %538, %541 : vector<10x10xf32>
    %543 = math.exp %542 : vector<10x10xf32>
    %cst_219 = arith.constant dense<0.000000e+00> : vector<10xf32>
    %544 = vector.multi_reduction <add>, %543, %cst_219 [1] : vector<10x10xf32> to vector<10xf32>
    %545 = vector.shape_cast %544 : vector<10xf32> to vector<10x1xf32>
    %546 = vector.broadcast %545 : vector<10x1xf32> to vector<10x10xf32>
    %547 = arith.divf %543, %546 : vector<10x10xf32>
    %548 = arith.truncf %547 : vector<10x10xf32> to vector<10x10xbf16>
    %549 = vector.extract_strided_slice %454 {offsets = [0, 24], sizes = [10, 8], strides = [1, 1]} : vector<10x32xf32> to vector<10x8xf32>
    %550 = arith.truncf %549 : vector<10x8xf32> to vector<10x8xbf16>
    %cst_220 = arith.constant dense<0.000000e+00> : vector<10x8xf32>
    %551 = tpu.matmul %548, %550, %cst_220 {dimension_numbers = #tpu.dot_dimension_numbers<[1], [0], [0], [1], [0, 0, 1, 1], [], []>} : vector<10x10xbf16>, vector<10x8xbf16>, vector<10x8xf32> -> vector<10x8xf32>
    %552 = arith.truncf %551 : vector<10x8xf32> to vector<10x8xbf16>
    %553 = vector.extract_strided_slice %456 {offsets = [24, 0], sizes = [8, 32], strides = [1, 1]} : vector<32x32xbf16> to vector<8x32xbf16>
    %cst_221 = arith.constant dense<0.000000e+00> : vector<10x32xf32>
    %554 = tpu.matmul %552, %553, %cst_221 {dimension_numbers = #tpu.dot_dimension_numbers<[1], [0], [0], [1], [0, 0, 1, 1], [], []>} : vector<10x8xbf16>, vector<8x32xbf16>, vector<10x32xf32> -> vector<10x32xf32>
    %555 = arith.addf %530, %554 : vector<10x32xf32>
    %c0_222 = arith.constant 0 : index
    %c0_223 = arith.constant 0 : index
    %c0_224 = arith.constant 0 : index
    %556 = vector.load %arg29[%c0_222, %c0_223, %c0_224] : memref<2x1x32xf32, #tpu.memory_space<vmem>>, vector<1x1x32xf32>
    %557 = vector.shape_cast %556 : vector<1x1x32xf32> to vector<1x32xf32>
    %558 = vector.broadcast %557 : vector<1x32xf32> to vector<10x32xf32>
    %559 = arith.addf %555, %558 : vector<10x32xf32>
    %560 = arith.addf %25, %559 : vector<10x32xf32>
    %c0_225 = arith.constant 0 : index
    %c0_226 = arith.constant 0 : index
    %c0_227 = arith.constant 0 : index
    %561 = vector.load %arg30[%c0_225, %c0_226, %c0_227] : memref<2x1x32xf32, #tpu.memory_space<vmem>>, vector<1x1x32xf32>
    %562 = vector.shape_cast %561 : vector<1x1x32xf32> to vector<1x32xf32>
    %c0_228 = arith.constant 0 : index
    %c0_229 = arith.constant 0 : index
    %c0_230 = arith.constant 0 : index
    %563 = vector.load %arg31[%c0_228, %c0_229, %c0_230] : memref<2x1x32xf32, #tpu.memory_space<vmem>>, vector<1x1x32xf32>
    %564 = vector.shape_cast %563 : vector<1x1x32xf32> to vector<1x32xf32>
    %cst_231 = arith.constant dense<0.000000e+00> : vector<10xf32>
    %565 = vector.multi_reduction <add>, %560, %cst_231 [1] : vector<10x32xf32> to vector<10xf32>
    %566 = vector.shape_cast %565 : vector<10xf32> to vector<10x1xf32>
    %cst_232 = arith.constant 3.200000e+01 : f32
    %567 = vector.broadcast %cst_232 : f32 to vector<10x1xf32>
    %568 = arith.divf %566, %567 : vector<10x1xf32>
    %569 = vector.broadcast %568 : vector<10x1xf32> to vector<10x32xf32>
    %570 = arith.subf %560, %569 : vector<10x32xf32>
    %571 = arith.mulf %570, %570 : vector<10x32xf32>
    %cst_233 = arith.constant dense<0.000000e+00> : vector<10xf32>
    %572 = vector.multi_reduction <add>, %571, %cst_233 [1] : vector<10x32xf32> to vector<10xf32>
    %573 = vector.shape_cast %572 : vector<10xf32> to vector<10x1xf32>
    %cst_234 = arith.constant 3.200000e+01 : f32
    %574 = vector.broadcast %cst_234 : f32 to vector<10x1xf32>
    %575 = arith.divf %573, %574 : vector<10x1xf32>
    %576 = vector.broadcast %568 : vector<10x1xf32> to vector<10x32xf32>
    %577 = arith.subf %560, %576 : vector<10x32xf32>
    %cst_235 = arith.constant 9.99999974E-6 : f32
    %578 = vector.broadcast %cst_235 : f32 to vector<10x1xf32>
    %579 = arith.addf %575, %578 : vector<10x1xf32>
    %580 = math.rsqrt %579 : vector<10x1xf32>
    %581 = vector.broadcast %580 : vector<10x1xf32> to vector<10x32xf32>
    %582 = arith.mulf %577, %581 : vector<10x32xf32>
    %583 = vector.broadcast %562 : vector<1x32xf32> to vector<10x32xf32>
    %584 = arith.mulf %582, %583 : vector<10x32xf32>
    %585 = vector.broadcast %564 : vector<1x32xf32> to vector<10x32xf32>
    %586 = arith.addf %584, %585 : vector<10x32xf32>
    %c0_236 = arith.constant 0 : index
    %c0_237 = arith.constant 0 : index
    %c0_238 = arith.constant 0 : index
    %587 = vector.load %arg32[%c0_236, %c0_237, %c0_238] : memref<2x32x32xbf16, #tpu.memory_space<vmem>>, vector<1x32x32xbf16>
    %588 = vector.shape_cast %587 : vector<1x32x32xbf16> to vector<32x32xbf16>
    %589 = arith.truncf %586 : vector<10x32xf32> to vector<10x32xbf16>
    %cst_239 = arith.constant dense<0.000000e+00> : vector<10x32xf32>
    %590 = tpu.matmul %589, %588, %cst_239 {dimension_numbers = #tpu.dot_dimension_numbers<[1], [0], [0], [1], [0, 0, 1, 1], [], []>} : vector<10x32xbf16>, vector<32x32xbf16>, vector<10x32xf32> -> vector<10x32xf32>
    %c0_240 = arith.constant 0 : index
    %c0_241 = arith.constant 0 : index
    %c0_242 = arith.constant 0 : index
    %591 = vector.load %arg33[%c0_240, %c0_241, %c0_242] : memref<2x1x32xf32, #tpu.memory_space<vmem>>, vector<1x1x32xf32>
    %592 = vector.shape_cast %591 : vector<1x1x32xf32> to vector<1x32xf32>
    %593 = vector.broadcast %592 : vector<1x32xf32> to vector<10x32xf32>
    %594 = arith.addf %590, %593 : vector<10x32xf32>
    %c0_243 = arith.constant 0 : index
    %c0_244 = arith.constant 0 : index
    %c0_245 = arith.constant 0 : index
    %595 = vector.load %arg34[%c0_243, %c0_244, %c0_245] : memref<2x32x64xbf16, #tpu.memory_space<vmem>>, vector<1x32x64xbf16>
    %596 = vector.shape_cast %595 : vector<1x32x64xbf16> to vector<32x64xbf16>
    %597 = arith.truncf %443 : vector<8x32xf32> to vector<8x32xbf16>
    %cst_246 = arith.constant dense<0.000000e+00> : vector<8x64xf32>
    %598 = tpu.matmul %597, %596, %cst_246 {dimension_numbers = #tpu.dot_dimension_numbers<[1], [0], [0], [1], [0, 0, 1, 1], [], []>} : vector<8x32xbf16>, vector<32x64xbf16>, vector<8x64xf32> -> vector<8x64xf32>
    %c0_247 = arith.constant 0 : index
    %c0_248 = arith.constant 0 : index
    %c0_249 = arith.constant 0 : index
    %599 = vector.load %arg35[%c0_247, %c0_248, %c0_249] : memref<2x1x64xf32, #tpu.memory_space<vmem>>, vector<1x1x64xf32>
    %600 = vector.shape_cast %599 : vector<1x1x64xf32> to vector<1x64xf32>
    %601 = vector.broadcast %600 : vector<1x64xf32> to vector<8x64xf32>
    %602 = arith.addf %598, %601 : vector<8x64xf32>
    %603 = vector.extract_strided_slice %602 {offsets = [0, 0], sizes = [8, 32], strides = [1, 1]} : vector<8x64xf32> to vector<8x32xf32>
    %604 = vector.extract_strided_slice %602 {offsets = [0, 32], sizes = [8, 32], strides = [1, 1]} : vector<8x64xf32> to vector<8x32xf32>
    %c0_250 = arith.constant 0 : index
    %c0_251 = arith.constant 0 : index
    %c0_252 = arith.constant 0 : index
    %605 = vector.load %arg36[%c0_250, %c0_251, %c0_252] : memref<2x32x32xbf16, #tpu.memory_space<vmem>>, vector<1x32x32xbf16>
    %606 = vector.shape_cast %605 : vector<1x32x32xbf16> to vector<32x32xbf16>
    %607 = vector.extract_strided_slice %594 {offsets = [0, 0], sizes = [10, 8], strides = [1, 1]} : vector<10x32xf32> to vector<10x8xf32>
    %608 = arith.truncf %607 : vector<10x8xf32> to vector<10x8xbf16>
    %609 = vector.extract_strided_slice %603 {offsets = [0, 0], sizes = [8, 8], strides = [1, 1]} : vector<8x32xf32> to vector<8x8xf32>
    %610 = arith.truncf %609 : vector<8x8xf32> to vector<8x8xbf16>
    "tpu.trace_start"() <{level = 10 : i32, message = "qd,kd->qk"}> : () -> ()
    %cst_253 = arith.constant dense<0.000000e+00> : vector<10x8xf32>
    %611 = tpu.matmul %608, %610, %cst_253 {dimension_numbers = #tpu.dot_dimension_numbers<[1], [1], [0], [0], [0, 0, 1, 0], [], []>} : vector<10x8xbf16>, vector<8x8xbf16>, vector<10x8xf32> -> vector<10x8xf32>
    "tpu.trace_stop"() : () -> ()
    %cst_254 = arith.constant 0.353553385 : f32
    %612 = vector.broadcast %cst_254 : f32 to vector<10x8xf32>
    %613 = arith.mulf %611, %612 : vector<10x8xf32>
    %614 = vector.broadcast %43 : vector<1x8xf32> to vector<10x8xf32>
    %615 = arith.addf %613, %614 : vector<10x8xf32>
    %cst_255 = arith.constant dense<0xFF800000> : vector<10xf32>
    %616 = vector.multi_reduction <maximumf>, %615, %cst_255 [1] : vector<10x8xf32> to vector<10xf32>
    %617 = vector.shape_cast %616 : vector<10xf32> to vector<10x1xf32>
    %618 = vector.broadcast %617 : vector<10x1xf32> to vector<10x8xf32>
    %619 = arith.subf %615, %618 : vector<10x8xf32>
    %620 = math.exp %619 : vector<10x8xf32>
    %cst_256 = arith.constant dense<0.000000e+00> : vector<10xf32>
    %621 = vector.multi_reduction <add>, %620, %cst_256 [1] : vector<10x8xf32> to vector<10xf32>
    %622 = vector.shape_cast %621 : vector<10xf32> to vector<10x1xf32>
    %623 = vector.broadcast %622 : vector<10x1xf32> to vector<10x8xf32>
    %624 = arith.divf %620, %623 : vector<10x8xf32>
    %625 = arith.truncf %624 : vector<10x8xf32> to vector<10x8xbf16>
    %626 = vector.extract_strided_slice %604 {offsets = [0, 0], sizes = [8, 8], strides = [1, 1]} : vector<8x32xf32> to vector<8x8xf32>
    %627 = arith.truncf %626 : vector<8x8xf32> to vector<8x8xbf16>
    %cst_257 = arith.constant dense<0.000000e+00> : vector<10x8xf32>
    %628 = tpu.matmul %625, %627, %cst_257 {dimension_numbers = #tpu.dot_dimension_numbers<[1], [0], [0], [1], [0, 0, 1, 1], [], []>} : vector<10x8xbf16>, vector<8x8xbf16>, vector<10x8xf32> -> vector<10x8xf32>
    %629 = arith.truncf %628 : vector<10x8xf32> to vector<10x8xbf16>
    %630 = vector.extract_strided_slice %606 {offsets = [0, 0], sizes = [8, 32], strides = [1, 1]} : vector<32x32xbf16> to vector<8x32xbf16>
    %cst_258 = arith.constant dense<0.000000e+00> : vector<10x32xf32>
    %631 = tpu.matmul %629, %630, %cst_258 {dimension_numbers = #tpu.dot_dimension_numbers<[1], [0], [0], [1], [0, 0, 1, 1], [], []>} : vector<10x8xbf16>, vector<8x32xbf16>, vector<10x32xf32> -> vector<10x32xf32>
    %632 = vector.extract_strided_slice %594 {offsets = [0, 8], sizes = [10, 8], strides = [1, 1]} : vector<10x32xf32> to vector<10x8xf32>
    %633 = arith.truncf %632 : vector<10x8xf32> to vector<10x8xbf16>
    %634 = vector.extract_strided_slice %603 {offsets = [0, 8], sizes = [8, 8], strides = [1, 1]} : vector<8x32xf32> to vector<8x8xf32>
    %635 = arith.truncf %634 : vector<8x8xf32> to vector<8x8xbf16>
    "tpu.trace_start"() <{level = 10 : i32, message = "qd,kd->qk"}> : () -> ()
    %cst_259 = arith.constant dense<0.000000e+00> : vector<10x8xf32>
    %636 = tpu.matmul %633, %635, %cst_259 {dimension_numbers = #tpu.dot_dimension_numbers<[1], [1], [0], [0], [0, 0, 1, 0], [], []>} : vector<10x8xbf16>, vector<8x8xbf16>, vector<10x8xf32> -> vector<10x8xf32>
    "tpu.trace_stop"() : () -> ()
    %cst_260 = arith.constant 0.353553385 : f32
    %637 = vector.broadcast %cst_260 : f32 to vector<10x8xf32>
    %638 = arith.mulf %636, %637 : vector<10x8xf32>
    %639 = vector.broadcast %43 : vector<1x8xf32> to vector<10x8xf32>
    %640 = arith.addf %638, %639 : vector<10x8xf32>
    %cst_261 = arith.constant dense<0xFF800000> : vector<10xf32>
    %641 = vector.multi_reduction <maximumf>, %640, %cst_261 [1] : vector<10x8xf32> to vector<10xf32>
    %642 = vector.shape_cast %641 : vector<10xf32> to vector<10x1xf32>
    %643 = vector.broadcast %642 : vector<10x1xf32> to vector<10x8xf32>
    %644 = arith.subf %640, %643 : vector<10x8xf32>
    %645 = math.exp %644 : vector<10x8xf32>
    %cst_262 = arith.constant dense<0.000000e+00> : vector<10xf32>
    %646 = vector.multi_reduction <add>, %645, %cst_262 [1] : vector<10x8xf32> to vector<10xf32>
    %647 = vector.shape_cast %646 : vector<10xf32> to vector<10x1xf32>
    %648 = vector.broadcast %647 : vector<10x1xf32> to vector<10x8xf32>
    %649 = arith.divf %645, %648 : vector<10x8xf32>
    %650 = arith.truncf %649 : vector<10x8xf32> to vector<10x8xbf16>
    %651 = vector.extract_strided_slice %604 {offsets = [0, 8], sizes = [8, 8], strides = [1, 1]} : vector<8x32xf32> to vector<8x8xf32>
    %652 = arith.truncf %651 : vector<8x8xf32> to vector<8x8xbf16>
    %cst_263 = arith.constant dense<0.000000e+00> : vector<10x8xf32>
    %653 = tpu.matmul %650, %652, %cst_263 {dimension_numbers = #tpu.dot_dimension_numbers<[1], [0], [0], [1], [0, 0, 1, 1], [], []>} : vector<10x8xbf16>, vector<8x8xbf16>, vector<10x8xf32> -> vector<10x8xf32>
    %654 = arith.truncf %653 : vector<10x8xf32> to vector<10x8xbf16>
    %655 = vector.extract_strided_slice %606 {offsets = [8, 0], sizes = [8, 32], strides = [1, 1]} : vector<32x32xbf16> to vector<8x32xbf16>
    %cst_264 = arith.constant dense<0.000000e+00> : vector<10x32xf32>
    %656 = tpu.matmul %654, %655, %cst_264 {dimension_numbers = #tpu.dot_dimension_numbers<[1], [0], [0], [1], [0, 0, 1, 1], [], []>} : vector<10x8xbf16>, vector<8x32xbf16>, vector<10x32xf32> -> vector<10x32xf32>
    %657 = arith.addf %631, %656 : vector<10x32xf32>
    %658 = vector.extract_strided_slice %594 {offsets = [0, 16], sizes = [10, 8], strides = [1, 1]} : vector<10x32xf32> to vector<10x8xf32>
    %659 = arith.truncf %658 : vector<10x8xf32> to vector<10x8xbf16>
    %660 = vector.extract_strided_slice %603 {offsets = [0, 16], sizes = [8, 8], strides = [1, 1]} : vector<8x32xf32> to vector<8x8xf32>
    %661 = arith.truncf %660 : vector<8x8xf32> to vector<8x8xbf16>
    "tpu.trace_start"() <{level = 10 : i32, message = "qd,kd->qk"}> : () -> ()
    %cst_265 = arith.constant dense<0.000000e+00> : vector<10x8xf32>
    %662 = tpu.matmul %659, %661, %cst_265 {dimension_numbers = #tpu.dot_dimension_numbers<[1], [1], [0], [0], [0, 0, 1, 0], [], []>} : vector<10x8xbf16>, vector<8x8xbf16>, vector<10x8xf32> -> vector<10x8xf32>
    "tpu.trace_stop"() : () -> ()
    %cst_266 = arith.constant 0.353553385 : f32
    %663 = vector.broadcast %cst_266 : f32 to vector<10x8xf32>
    %664 = arith.mulf %662, %663 : vector<10x8xf32>
    %665 = vector.broadcast %43 : vector<1x8xf32> to vector<10x8xf32>
    %666 = arith.addf %664, %665 : vector<10x8xf32>
    %cst_267 = arith.constant dense<0xFF800000> : vector<10xf32>
    %667 = vector.multi_reduction <maximumf>, %666, %cst_267 [1] : vector<10x8xf32> to vector<10xf32>
    %668 = vector.shape_cast %667 : vector<10xf32> to vector<10x1xf32>
    %669 = vector.broadcast %668 : vector<10x1xf32> to vector<10x8xf32>
    %670 = arith.subf %666, %669 : vector<10x8xf32>
    %671 = math.exp %670 : vector<10x8xf32>
    %cst_268 = arith.constant dense<0.000000e+00> : vector<10xf32>
    %672 = vector.multi_reduction <add>, %671, %cst_268 [1] : vector<10x8xf32> to vector<10xf32>
    %673 = vector.shape_cast %672 : vector<10xf32> to vector<10x1xf32>
    %674 = vector.broadcast %673 : vector<10x1xf32> to vector<10x8xf32>
    %675 = arith.divf %671, %674 : vector<10x8xf32>
    %676 = arith.truncf %675 : vector<10x8xf32> to vector<10x8xbf16>
    %677 = vector.extract_strided_slice %604 {offsets = [0, 16], sizes = [8, 8], strides = [1, 1]} : vector<8x32xf32> to vector<8x8xf32>
    %678 = arith.truncf %677 : vector<8x8xf32> to vector<8x8xbf16>
    %cst_269 = arith.constant dense<0.000000e+00> : vector<10x8xf32>
    %679 = tpu.matmul %676, %678, %cst_269 {dimension_numbers = #tpu.dot_dimension_numbers<[1], [0], [0], [1], [0, 0, 1, 1], [], []>} : vector<10x8xbf16>, vector<8x8xbf16>, vector<10x8xf32> -> vector<10x8xf32>
    %680 = arith.truncf %679 : vector<10x8xf32> to vector<10x8xbf16>
    %681 = vector.extract_strided_slice %606 {offsets = [16, 0], sizes = [8, 32], strides = [1, 1]} : vector<32x32xbf16> to vector<8x32xbf16>
    %cst_270 = arith.constant dense<0.000000e+00> : vector<10x32xf32>
    %682 = tpu.matmul %680, %681, %cst_270 {dimension_numbers = #tpu.dot_dimension_numbers<[1], [0], [0], [1], [0, 0, 1, 1], [], []>} : vector<10x8xbf16>, vector<8x32xbf16>, vector<10x32xf32> -> vector<10x32xf32>
    %683 = arith.addf %657, %682 : vector<10x32xf32>
    %684 = vector.extract_strided_slice %594 {offsets = [0, 24], sizes = [10, 8], strides = [1, 1]} : vector<10x32xf32> to vector<10x8xf32>
    %685 = arith.truncf %684 : vector<10x8xf32> to vector<10x8xbf16>
    %686 = vector.extract_strided_slice %603 {offsets = [0, 24], sizes = [8, 8], strides = [1, 1]} : vector<8x32xf32> to vector<8x8xf32>
    %687 = arith.truncf %686 : vector<8x8xf32> to vector<8x8xbf16>
    "tpu.trace_start"() <{level = 10 : i32, message = "qd,kd->qk"}> : () -> ()
    %cst_271 = arith.constant dense<0.000000e+00> : vector<10x8xf32>
    %688 = tpu.matmul %685, %687, %cst_271 {dimension_numbers = #tpu.dot_dimension_numbers<[1], [1], [0], [0], [0, 0, 1, 0], [], []>} : vector<10x8xbf16>, vector<8x8xbf16>, vector<10x8xf32> -> vector<10x8xf32>
    "tpu.trace_stop"() : () -> ()
    %cst_272 = arith.constant 0.353553385 : f32
    %689 = vector.broadcast %cst_272 : f32 to vector<10x8xf32>
    %690 = arith.mulf %688, %689 : vector<10x8xf32>
    %691 = vector.broadcast %43 : vector<1x8xf32> to vector<10x8xf32>
    %692 = arith.addf %690, %691 : vector<10x8xf32>
    %cst_273 = arith.constant dense<0xFF800000> : vector<10xf32>
    %693 = vector.multi_reduction <maximumf>, %692, %cst_273 [1] : vector<10x8xf32> to vector<10xf32>
    %694 = vector.shape_cast %693 : vector<10xf32> to vector<10x1xf32>
    %695 = vector.broadcast %694 : vector<10x1xf32> to vector<10x8xf32>
    %696 = arith.subf %692, %695 : vector<10x8xf32>
    %697 = math.exp %696 : vector<10x8xf32>
    %cst_274 = arith.constant dense<0.000000e+00> : vector<10xf32>
    %698 = vector.multi_reduction <add>, %697, %cst_274 [1] : vector<10x8xf32> to vector<10xf32>
    %699 = vector.shape_cast %698 : vector<10xf32> to vector<10x1xf32>
    %700 = vector.broadcast %699 : vector<10x1xf32> to vector<10x8xf32>
    %701 = arith.divf %697, %700 : vector<10x8xf32>
    %702 = arith.truncf %701 : vector<10x8xf32> to vector<10x8xbf16>
    %703 = vector.extract_strided_slice %604 {offsets = [0, 24], sizes = [8, 8], strides = [1, 1]} : vector<8x32xf32> to vector<8x8xf32>
    %704 = arith.truncf %703 : vector<8x8xf32> to vector<8x8xbf16>
    %cst_275 = arith.constant dense<0.000000e+00> : vector<10x8xf32>
    %705 = tpu.matmul %702, %704, %cst_275 {dimension_numbers = #tpu.dot_dimension_numbers<[1], [0], [0], [1], [0, 0, 1, 1], [], []>} : vector<10x8xbf16>, vector<8x8xbf16>, vector<10x8xf32> -> vector<10x8xf32>
    %706 = arith.truncf %705 : vector<10x8xf32> to vector<10x8xbf16>
    %707 = vector.extract_strided_slice %606 {offsets = [24, 0], sizes = [8, 32], strides = [1, 1]} : vector<32x32xbf16> to vector<8x32xbf16>
    %cst_276 = arith.constant dense<0.000000e+00> : vector<10x32xf32>
    %708 = tpu.matmul %706, %707, %cst_276 {dimension_numbers = #tpu.dot_dimension_numbers<[1], [0], [0], [1], [0, 0, 1, 1], [], []>} : vector<10x8xbf16>, vector<8x32xbf16>, vector<10x32xf32> -> vector<10x32xf32>
    %709 = arith.addf %683, %708 : vector<10x32xf32>
    %c0_277 = arith.constant 0 : index
    %c0_278 = arith.constant 0 : index
    %c0_279 = arith.constant 0 : index
    %710 = vector.load %arg37[%c0_277, %c0_278, %c0_279] : memref<2x1x32xf32, #tpu.memory_space<vmem>>, vector<1x1x32xf32>
    %711 = vector.shape_cast %710 : vector<1x1x32xf32> to vector<1x32xf32>
    %712 = vector.broadcast %711 : vector<1x32xf32> to vector<10x32xf32>
    %713 = arith.addf %709, %712 : vector<10x32xf32>
    %714 = arith.addf %586, %713 : vector<10x32xf32>
    %c0_280 = arith.constant 0 : index
    %c0_281 = arith.constant 0 : index
    %c0_282 = arith.constant 0 : index
    %715 = vector.load %arg38[%c0_280, %c0_281, %c0_282] : memref<2x1x32xf32, #tpu.memory_space<vmem>>, vector<1x1x32xf32>
    %716 = vector.shape_cast %715 : vector<1x1x32xf32> to vector<1x32xf32>
    %c0_283 = arith.constant 0 : index
    %c0_284 = arith.constant 0 : index
    %c0_285 = arith.constant 0 : index
    %717 = vector.load %arg39[%c0_283, %c0_284, %c0_285] : memref<2x1x32xf32, #tpu.memory_space<vmem>>, vector<1x1x32xf32>
    %718 = vector.shape_cast %717 : vector<1x1x32xf32> to vector<1x32xf32>
    %cst_286 = arith.constant dense<0.000000e+00> : vector<10xf32>
    %719 = vector.multi_reduction <add>, %714, %cst_286 [1] : vector<10x32xf32> to vector<10xf32>
    %720 = vector.shape_cast %719 : vector<10xf32> to vector<10x1xf32>
    %cst_287 = arith.constant 3.200000e+01 : f32
    %721 = vector.broadcast %cst_287 : f32 to vector<10x1xf32>
    %722 = arith.divf %720, %721 : vector<10x1xf32>
    %723 = vector.broadcast %722 : vector<10x1xf32> to vector<10x32xf32>
    %724 = arith.subf %714, %723 : vector<10x32xf32>
    %725 = arith.mulf %724, %724 : vector<10x32xf32>
    %cst_288 = arith.constant dense<0.000000e+00> : vector<10xf32>
    %726 = vector.multi_reduction <add>, %725, %cst_288 [1] : vector<10x32xf32> to vector<10xf32>
    %727 = vector.shape_cast %726 : vector<10xf32> to vector<10x1xf32>
    %cst_289 = arith.constant 3.200000e+01 : f32
    %728 = vector.broadcast %cst_289 : f32 to vector<10x1xf32>
    %729 = arith.divf %727, %728 : vector<10x1xf32>
    %730 = vector.broadcast %722 : vector<10x1xf32> to vector<10x32xf32>
    %731 = arith.subf %714, %730 : vector<10x32xf32>
    %cst_290 = arith.constant 9.99999974E-6 : f32
    %732 = vector.broadcast %cst_290 : f32 to vector<10x1xf32>
    %733 = arith.addf %729, %732 : vector<10x1xf32>
    %734 = math.rsqrt %733 : vector<10x1xf32>
    %735 = vector.broadcast %734 : vector<10x1xf32> to vector<10x32xf32>
    %736 = arith.mulf %731, %735 : vector<10x32xf32>
    %737 = vector.broadcast %716 : vector<1x32xf32> to vector<10x32xf32>
    %738 = arith.mulf %736, %737 : vector<10x32xf32>
    %739 = vector.broadcast %718 : vector<1x32xf32> to vector<10x32xf32>
    %740 = arith.addf %738, %739 : vector<10x32xf32>
    %c0_291 = arith.constant 0 : index
    %c0_292 = arith.constant 0 : index
    %c0_293 = arith.constant 0 : index
    %741 = vector.load %arg40[%c0_291, %c0_292, %c0_293] : memref<2x32x64xbf16, #tpu.memory_space<vmem>>, vector<1x32x64xbf16>
    %742 = vector.shape_cast %741 : vector<1x32x64xbf16> to vector<32x64xbf16>
    %743 = arith.truncf %740 : vector<10x32xf32> to vector<10x32xbf16>
    %cst_294 = arith.constant dense<0.000000e+00> : vector<10x64xf32>
    %744 = tpu.matmul %743, %742, %cst_294 {dimension_numbers = #tpu.dot_dimension_numbers<[1], [0], [0], [1], [0, 0, 1, 1], [], []>} : vector<10x32xbf16>, vector<32x64xbf16>, vector<10x64xf32> -> vector<10x64xf32>
    %c0_295 = arith.constant 0 : index
    %c0_296 = arith.constant 0 : index
    %c0_297 = arith.constant 0 : index
    %745 = vector.load %arg41[%c0_295, %c0_296, %c0_297] : memref<2x1x64xf32, #tpu.memory_space<vmem>>, vector<1x1x64xf32>
    %746 = vector.shape_cast %745 : vector<1x1x64xf32> to vector<1x64xf32>
    %747 = vector.broadcast %746 : vector<1x64xf32> to vector<10x64xf32>
    %748 = arith.addf %744, %747 : vector<10x64xf32>
    %cst_298 = arith.constant 0.000000e+00 : f32
    %749 = vector.broadcast %cst_298 : f32 to vector<10x64xf32>
    %750 = arith.maximumf %748, %749 : vector<10x64xf32>
    %c0_299 = arith.constant 0 : index
    %c0_300 = arith.constant 0 : index
    %c0_301 = arith.constant 0 : index
    %751 = vector.load %arg42[%c0_299, %c0_300, %c0_301] : memref<2x64x32xbf16, #tpu.memory_space<vmem>>, vector<1x64x32xbf16>
    %752 = vector.shape_cast %751 : vector<1x64x32xbf16> to vector<64x32xbf16>
    %753 = arith.truncf %750 : vector<10x64xf32> to vector<10x64xbf16>
    %cst_302 = arith.constant dense<0.000000e+00> : vector<10x32xf32>
    %754 = tpu.matmul %753, %752, %cst_302 {dimension_numbers = #tpu.dot_dimension_numbers<[1], [0], [0], [1], [0, 0, 1, 1], [], []>} : vector<10x64xbf16>, vector<64x32xbf16>, vector<10x32xf32> -> vector<10x32xf32>
    %c0_303 = arith.constant 0 : index
    %c0_304 = arith.constant 0 : index
    %c0_305 = arith.constant 0 : index
    %755 = vector.load %arg43[%c0_303, %c0_304, %c0_305] : memref<2x1x32xf32, #tpu.memory_space<vmem>>, vector<1x1x32xf32>
    %756 = vector.shape_cast %755 : vector<1x1x32xf32> to vector<1x32xf32>
    %757 = vector.broadcast %756 : vector<1x32xf32> to vector<10x32xf32>
    %758 = arith.addf %754, %757 : vector<10x32xf32>
    %759 = arith.addf %740, %758 : vector<10x32xf32>
    %c0_306 = arith.constant 0 : index
    %c0_307 = arith.constant 0 : index
    %c0_308 = arith.constant 0 : index
    %760 = vector.load %arg44[%c0_306, %c0_307, %c0_308] : memref<2x1x32xf32, #tpu.memory_space<vmem>>, vector<1x1x32xf32>
    %761 = vector.shape_cast %760 : vector<1x1x32xf32> to vector<1x32xf32>
    %c0_309 = arith.constant 0 : index
    %c0_310 = arith.constant 0 : index
    %c0_311 = arith.constant 0 : index
    %762 = vector.load %arg45[%c0_309, %c0_310, %c0_311] : memref<2x1x32xf32, #tpu.memory_space<vmem>>, vector<1x1x32xf32>
    %763 = vector.shape_cast %762 : vector<1x1x32xf32> to vector<1x32xf32>
    %cst_312 = arith.constant dense<0.000000e+00> : vector<10xf32>
    %764 = vector.multi_reduction <add>, %759, %cst_312 [1] : vector<10x32xf32> to vector<10xf32>
    %765 = vector.shape_cast %764 : vector<10xf32> to vector<10x1xf32>
    %cst_313 = arith.constant 3.200000e+01 : f32
    %766 = vector.broadcast %cst_313 : f32 to vector<10x1xf32>
    %767 = arith.divf %765, %766 : vector<10x1xf32>
    %768 = vector.broadcast %767 : vector<10x1xf32> to vector<10x32xf32>
    %769 = arith.subf %759, %768 : vector<10x32xf32>
    %770 = arith.mulf %769, %769 : vector<10x32xf32>
    %cst_314 = arith.constant dense<0.000000e+00> : vector<10xf32>
    %771 = vector.multi_reduction <add>, %770, %cst_314 [1] : vector<10x32xf32> to vector<10xf32>
    %772 = vector.shape_cast %771 : vector<10xf32> to vector<10x1xf32>
    %cst_315 = arith.constant 3.200000e+01 : f32
    %773 = vector.broadcast %cst_315 : f32 to vector<10x1xf32>
    %774 = arith.divf %772, %773 : vector<10x1xf32>
    %775 = vector.broadcast %767 : vector<10x1xf32> to vector<10x32xf32>
    %776 = arith.subf %759, %775 : vector<10x32xf32>
    %cst_316 = arith.constant 9.99999974E-6 : f32
    %777 = vector.broadcast %cst_316 : f32 to vector<10x1xf32>
    %778 = arith.addf %774, %777 : vector<10x1xf32>
    %779 = math.rsqrt %778 : vector<10x1xf32>
    %780 = vector.broadcast %779 : vector<10x1xf32> to vector<10x32xf32>
    %781 = arith.mulf %776, %780 : vector<10x32xf32>
    %782 = vector.broadcast %761 : vector<1x32xf32> to vector<10x32xf32>
    %783 = arith.mulf %781, %782 : vector<10x32xf32>
    %784 = vector.broadcast %763 : vector<1x32xf32> to vector<10x32xf32>
    %785 = arith.addf %783, %784 : vector<10x32xf32>
    %c1_317 = arith.constant 1 : index
    %c0_318 = arith.constant 0 : index
    %c0_319 = arith.constant 0 : index
    %786 = vector.load %arg26[%c1_317, %c0_318, %c0_319] : memref<2x32x96xbf16, #tpu.memory_space<vmem>>, vector<1x32x96xbf16>
    %787 = vector.shape_cast %786 : vector<1x32x96xbf16> to vector<32x96xbf16>
    %788 = arith.truncf %785 : vector<10x32xf32> to vector<10x32xbf16>
    %cst_320 = arith.constant dense<0.000000e+00> : vector<10x96xf32>
    %789 = tpu.matmul %788, %787, %cst_320 {dimension_numbers = #tpu.dot_dimension_numbers<[1], [0], [0], [1], [0, 0, 1, 1], [], []>} : vector<10x32xbf16>, vector<32x96xbf16>, vector<10x96xf32> -> vector<10x96xf32>
    %c1_321 = arith.constant 1 : index
    %c0_322 = arith.constant 0 : index
    %c0_323 = arith.constant 0 : index
    %790 = vector.load %arg27[%c1_321, %c0_322, %c0_323] : memref<2x1x96xf32, #tpu.memory_space<vmem>>, vector<1x1x96xf32>
    %791 = vector.shape_cast %790 : vector<1x1x96xf32> to vector<1x96xf32>
    %792 = vector.broadcast %791 : vector<1x96xf32> to vector<10x96xf32>
    %793 = arith.addf %789, %792 : vector<10x96xf32>
    %794 = vector.extract_strided_slice %793 {offsets = [0, 0], sizes = [10, 32], strides = [1, 1]} : vector<10x96xf32> to vector<10x32xf32>
    %795 = vector.extract_strided_slice %793 {offsets = [0, 32], sizes = [10, 32], strides = [1, 1]} : vector<10x96xf32> to vector<10x32xf32>
    %796 = vector.extract_strided_slice %793 {offsets = [0, 64], sizes = [10, 32], strides = [1, 1]} : vector<10x96xf32> to vector<10x32xf32>
    %c1_324 = arith.constant 1 : index
    %c0_325 = arith.constant 0 : index
    %c0_326 = arith.constant 0 : index
    %797 = vector.load %arg28[%c1_324, %c0_325, %c0_326] : memref<2x32x32xbf16, #tpu.memory_space<vmem>>, vector<1x32x32xbf16>
    %798 = vector.shape_cast %797 : vector<1x32x32xbf16> to vector<32x32xbf16>
    %799 = vector.extract_strided_slice %794 {offsets = [0, 0], sizes = [10, 8], strides = [1, 1]} : vector<10x32xf32> to vector<10x8xf32>
    %800 = arith.truncf %799 : vector<10x8xf32> to vector<10x8xbf16>
    %801 = vector.extract_strided_slice %795 {offsets = [0, 0], sizes = [10, 8], strides = [1, 1]} : vector<10x32xf32> to vector<10x8xf32>
    %802 = arith.truncf %801 : vector<10x8xf32> to vector<10x8xbf16>
    "tpu.trace_start"() <{level = 10 : i32, message = "qd,kd->qk"}> : () -> ()
    %cst_327 = arith.constant dense<0.000000e+00> : vector<10x10xf32>
    %803 = tpu.matmul %800, %802, %cst_327 {dimension_numbers = #tpu.dot_dimension_numbers<[1], [1], [0], [0], [0, 0, 1, 0], [], []>} : vector<10x8xbf16>, vector<10x8xbf16>, vector<10x10xf32> -> vector<10x10xf32>
    "tpu.trace_stop"() : () -> ()
    %cst_328 = arith.constant 0.353553385 : f32
    %804 = vector.broadcast %cst_328 : f32 to vector<10x10xf32>
    %805 = arith.mulf %803, %804 : vector<10x10xf32>
    %806 = arith.addf %805, %39 : vector<10x10xf32>
    %cst_329 = arith.constant dense<0xFF800000> : vector<10xf32>
    %807 = vector.multi_reduction <maximumf>, %806, %cst_329 [1] : vector<10x10xf32> to vector<10xf32>
    %808 = vector.shape_cast %807 : vector<10xf32> to vector<10x1xf32>
    %809 = vector.broadcast %808 : vector<10x1xf32> to vector<10x10xf32>
    %810 = arith.subf %806, %809 : vector<10x10xf32>
    %811 = math.exp %810 : vector<10x10xf32>
    %cst_330 = arith.constant dense<0.000000e+00> : vector<10xf32>
    %812 = vector.multi_reduction <add>, %811, %cst_330 [1] : vector<10x10xf32> to vector<10xf32>
    %813 = vector.shape_cast %812 : vector<10xf32> to vector<10x1xf32>
    %814 = vector.broadcast %813 : vector<10x1xf32> to vector<10x10xf32>
    %815 = arith.divf %811, %814 : vector<10x10xf32>
    %816 = arith.truncf %815 : vector<10x10xf32> to vector<10x10xbf16>
    %817 = vector.extract_strided_slice %796 {offsets = [0, 0], sizes = [10, 8], strides = [1, 1]} : vector<10x32xf32> to vector<10x8xf32>
    %818 = arith.truncf %817 : vector<10x8xf32> to vector<10x8xbf16>
    %cst_331 = arith.constant dense<0.000000e+00> : vector<10x8xf32>
    %819 = tpu.matmul %816, %818, %cst_331 {dimension_numbers = #tpu.dot_dimension_numbers<[1], [0], [0], [1], [0, 0, 1, 1], [], []>} : vector<10x10xbf16>, vector<10x8xbf16>, vector<10x8xf32> -> vector<10x8xf32>
    %820 = arith.truncf %819 : vector<10x8xf32> to vector<10x8xbf16>
    %821 = vector.extract_strided_slice %798 {offsets = [0, 0], sizes = [8, 32], strides = [1, 1]} : vector<32x32xbf16> to vector<8x32xbf16>
    %cst_332 = arith.constant dense<0.000000e+00> : vector<10x32xf32>
    %822 = tpu.matmul %820, %821, %cst_332 {dimension_numbers = #tpu.dot_dimension_numbers<[1], [0], [0], [1], [0, 0, 1, 1], [], []>} : vector<10x8xbf16>, vector<8x32xbf16>, vector<10x32xf32> -> vector<10x32xf32>
    %823 = vector.extract_strided_slice %794 {offsets = [0, 8], sizes = [10, 8], strides = [1, 1]} : vector<10x32xf32> to vector<10x8xf32>
    %824 = arith.truncf %823 : vector<10x8xf32> to vector<10x8xbf16>
    %825 = vector.extract_strided_slice %795 {offsets = [0, 8], sizes = [10, 8], strides = [1, 1]} : vector<10x32xf32> to vector<10x8xf32>
    %826 = arith.truncf %825 : vector<10x8xf32> to vector<10x8xbf16>
    "tpu.trace_start"() <{level = 10 : i32, message = "qd,kd->qk"}> : () -> ()
    %cst_333 = arith.constant dense<0.000000e+00> : vector<10x10xf32>
    %827 = tpu.matmul %824, %826, %cst_333 {dimension_numbers = #tpu.dot_dimension_numbers<[1], [1], [0], [0], [0, 0, 1, 0], [], []>} : vector<10x8xbf16>, vector<10x8xbf16>, vector<10x10xf32> -> vector<10x10xf32>
    "tpu.trace_stop"() : () -> ()
    %cst_334 = arith.constant 0.353553385 : f32
    %828 = vector.broadcast %cst_334 : f32 to vector<10x10xf32>
    %829 = arith.mulf %827, %828 : vector<10x10xf32>
    %830 = arith.addf %829, %39 : vector<10x10xf32>
    %cst_335 = arith.constant dense<0xFF800000> : vector<10xf32>
    %831 = vector.multi_reduction <maximumf>, %830, %cst_335 [1] : vector<10x10xf32> to vector<10xf32>
    %832 = vector.shape_cast %831 : vector<10xf32> to vector<10x1xf32>
    %833 = vector.broadcast %832 : vector<10x1xf32> to vector<10x10xf32>
    %834 = arith.subf %830, %833 : vector<10x10xf32>
    %835 = math.exp %834 : vector<10x10xf32>
    %cst_336 = arith.constant dense<0.000000e+00> : vector<10xf32>
    %836 = vector.multi_reduction <add>, %835, %cst_336 [1] : vector<10x10xf32> to vector<10xf32>
    %837 = vector.shape_cast %836 : vector<10xf32> to vector<10x1xf32>
    %838 = vector.broadcast %837 : vector<10x1xf32> to vector<10x10xf32>
    %839 = arith.divf %835, %838 : vector<10x10xf32>
    %840 = arith.truncf %839 : vector<10x10xf32> to vector<10x10xbf16>
    %841 = vector.extract_strided_slice %796 {offsets = [0, 8], sizes = [10, 8], strides = [1, 1]} : vector<10x32xf32> to vector<10x8xf32>
    %842 = arith.truncf %841 : vector<10x8xf32> to vector<10x8xbf16>
    %cst_337 = arith.constant dense<0.000000e+00> : vector<10x8xf32>
    %843 = tpu.matmul %840, %842, %cst_337 {dimension_numbers = #tpu.dot_dimension_numbers<[1], [0], [0], [1], [0, 0, 1, 1], [], []>} : vector<10x10xbf16>, vector<10x8xbf16>, vector<10x8xf32> -> vector<10x8xf32>
    %844 = arith.truncf %843 : vector<10x8xf32> to vector<10x8xbf16>
    %845 = vector.extract_strided_slice %798 {offsets = [8, 0], sizes = [8, 32], strides = [1, 1]} : vector<32x32xbf16> to vector<8x32xbf16>
    %cst_338 = arith.constant dense<0.000000e+00> : vector<10x32xf32>
    %846 = tpu.matmul %844, %845, %cst_338 {dimension_numbers = #tpu.dot_dimension_numbers<[1], [0], [0], [1], [0, 0, 1, 1], [], []>} : vector<10x8xbf16>, vector<8x32xbf16>, vector<10x32xf32> -> vector<10x32xf32>
    %847 = arith.addf %822, %846 : vector<10x32xf32>
    %848 = vector.extract_strided_slice %794 {offsets = [0, 16], sizes = [10, 8], strides = [1, 1]} : vector<10x32xf32> to vector<10x8xf32>
    %849 = arith.truncf %848 : vector<10x8xf32> to vector<10x8xbf16>
    %850 = vector.extract_strided_slice %795 {offsets = [0, 16], sizes = [10, 8], strides = [1, 1]} : vector<10x32xf32> to vector<10x8xf32>
    %851 = arith.truncf %850 : vector<10x8xf32> to vector<10x8xbf16>
    "tpu.trace_start"() <{level = 10 : i32, message = "qd,kd->qk"}> : () -> ()
    %cst_339 = arith.constant dense<0.000000e+00> : vector<10x10xf32>
    %852 = tpu.matmul %849, %851, %cst_339 {dimension_numbers = #tpu.dot_dimension_numbers<[1], [1], [0], [0], [0, 0, 1, 0], [], []>} : vector<10x8xbf16>, vector<10x8xbf16>, vector<10x10xf32> -> vector<10x10xf32>
    "tpu.trace_stop"() : () -> ()
    %cst_340 = arith.constant 0.353553385 : f32
    %853 = vector.broadcast %cst_340 : f32 to vector<10x10xf32>
    %854 = arith.mulf %852, %853 : vector<10x10xf32>
    %855 = arith.addf %854, %39 : vector<10x10xf32>
    %cst_341 = arith.constant dense<0xFF800000> : vector<10xf32>
    %856 = vector.multi_reduction <maximumf>, %855, %cst_341 [1] : vector<10x10xf32> to vector<10xf32>
    %857 = vector.shape_cast %856 : vector<10xf32> to vector<10x1xf32>
    %858 = vector.broadcast %857 : vector<10x1xf32> to vector<10x10xf32>
    %859 = arith.subf %855, %858 : vector<10x10xf32>
    %860 = math.exp %859 : vector<10x10xf32>
    %cst_342 = arith.constant dense<0.000000e+00> : vector<10xf32>
    %861 = vector.multi_reduction <add>, %860, %cst_342 [1] : vector<10x10xf32> to vector<10xf32>
    %862 = vector.shape_cast %861 : vector<10xf32> to vector<10x1xf32>
    %863 = vector.broadcast %862 : vector<10x1xf32> to vector<10x10xf32>
    %864 = arith.divf %860, %863 : vector<10x10xf32>
    %865 = arith.truncf %864 : vector<10x10xf32> to vector<10x10xbf16>
    %866 = vector.extract_strided_slice %796 {offsets = [0, 16], sizes = [10, 8], strides = [1, 1]} : vector<10x32xf32> to vector<10x8xf32>
    %867 = arith.truncf %866 : vector<10x8xf32> to vector<10x8xbf16>
    %cst_343 = arith.constant dense<0.000000e+00> : vector<10x8xf32>
    %868 = tpu.matmul %865, %867, %cst_343 {dimension_numbers = #tpu.dot_dimension_numbers<[1], [0], [0], [1], [0, 0, 1, 1], [], []>} : vector<10x10xbf16>, vector<10x8xbf16>, vector<10x8xf32> -> vector<10x8xf32>
    %869 = arith.truncf %868 : vector<10x8xf32> to vector<10x8xbf16>
    %870 = vector.extract_strided_slice %798 {offsets = [16, 0], sizes = [8, 32], strides = [1, 1]} : vector<32x32xbf16> to vector<8x32xbf16>
    %cst_344 = arith.constant dense<0.000000e+00> : vector<10x32xf32>
    %871 = tpu.matmul %869, %870, %cst_344 {dimension_numbers = #tpu.dot_dimension_numbers<[1], [0], [0], [1], [0, 0, 1, 1], [], []>} : vector<10x8xbf16>, vector<8x32xbf16>, vector<10x32xf32> -> vector<10x32xf32>
    %872 = arith.addf %847, %871 : vector<10x32xf32>
    %873 = vector.extract_strided_slice %794 {offsets = [0, 24], sizes = [10, 8], strides = [1, 1]} : vector<10x32xf32> to vector<10x8xf32>
    %874 = arith.truncf %873 : vector<10x8xf32> to vector<10x8xbf16>
    %875 = vector.extract_strided_slice %795 {offsets = [0, 24], sizes = [10, 8], strides = [1, 1]} : vector<10x32xf32> to vector<10x8xf32>
    %876 = arith.truncf %875 : vector<10x8xf32> to vector<10x8xbf16>
    "tpu.trace_start"() <{level = 10 : i32, message = "qd,kd->qk"}> : () -> ()
    %cst_345 = arith.constant dense<0.000000e+00> : vector<10x10xf32>
    %877 = tpu.matmul %874, %876, %cst_345 {dimension_numbers = #tpu.dot_dimension_numbers<[1], [1], [0], [0], [0, 0, 1, 0], [], []>} : vector<10x8xbf16>, vector<10x8xbf16>, vector<10x10xf32> -> vector<10x10xf32>
    "tpu.trace_stop"() : () -> ()
    %cst_346 = arith.constant 0.353553385 : f32
    %878 = vector.broadcast %cst_346 : f32 to vector<10x10xf32>
    %879 = arith.mulf %877, %878 : vector<10x10xf32>
    %880 = arith.addf %879, %39 : vector<10x10xf32>
    %cst_347 = arith.constant dense<0xFF800000> : vector<10xf32>
    %881 = vector.multi_reduction <maximumf>, %880, %cst_347 [1] : vector<10x10xf32> to vector<10xf32>
    %882 = vector.shape_cast %881 : vector<10xf32> to vector<10x1xf32>
    %883 = vector.broadcast %882 : vector<10x1xf32> to vector<10x10xf32>
    %884 = arith.subf %880, %883 : vector<10x10xf32>
    %885 = math.exp %884 : vector<10x10xf32>
    %cst_348 = arith.constant dense<0.000000e+00> : vector<10xf32>
    %886 = vector.multi_reduction <add>, %885, %cst_348 [1] : vector<10x10xf32> to vector<10xf32>
    %887 = vector.shape_cast %886 : vector<10xf32> to vector<10x1xf32>
    %888 = vector.broadcast %887 : vector<10x1xf32> to vector<10x10xf32>
    %889 = arith.divf %885, %888 : vector<10x10xf32>
    %890 = arith.truncf %889 : vector<10x10xf32> to vector<10x10xbf16>
    %891 = vector.extract_strided_slice %796 {offsets = [0, 24], sizes = [10, 8], strides = [1, 1]} : vector<10x32xf32> to vector<10x8xf32>
    %892 = arith.truncf %891 : vector<10x8xf32> to vector<10x8xbf16>
    %cst_349 = arith.constant dense<0.000000e+00> : vector<10x8xf32>
    %893 = tpu.matmul %890, %892, %cst_349 {dimension_numbers = #tpu.dot_dimension_numbers<[1], [0], [0], [1], [0, 0, 1, 1], [], []>} : vector<10x10xbf16>, vector<10x8xbf16>, vector<10x8xf32> -> vector<10x8xf32>
    %894 = arith.truncf %893 : vector<10x8xf32> to vector<10x8xbf16>
    %895 = vector.extract_strided_slice %798 {offsets = [24, 0], sizes = [8, 32], strides = [1, 1]} : vector<32x32xbf16> to vector<8x32xbf16>
    %cst_350 = arith.constant dense<0.000000e+00> : vector<10x32xf32>
    %896 = tpu.matmul %894, %895, %cst_350 {dimension_numbers = #tpu.dot_dimension_numbers<[1], [0], [0], [1], [0, 0, 1, 1], [], []>} : vector<10x8xbf16>, vector<8x32xbf16>, vector<10x32xf32> -> vector<10x32xf32>
    %897 = arith.addf %872, %896 : vector<10x32xf32>
    %c1_351 = arith.constant 1 : index
    %c0_352 = arith.constant 0 : index
    %c0_353 = arith.constant 0 : index
    %898 = vector.load %arg29[%c1_351, %c0_352, %c0_353] : memref<2x1x32xf32, #tpu.memory_space<vmem>>, vector<1x1x32xf32>
    %899 = vector.shape_cast %898 : vector<1x1x32xf32> to vector<1x32xf32>
    %900 = vector.broadcast %899 : vector<1x32xf32> to vector<10x32xf32>
    %901 = arith.addf %897, %900 : vector<10x32xf32>
    %902 = arith.addf %785, %901 : vector<10x32xf32>
    %c1_354 = arith.constant 1 : index
    %c0_355 = arith.constant 0 : index
    %c0_356 = arith.constant 0 : index
    %903 = vector.load %arg30[%c1_354, %c0_355, %c0_356] : memref<2x1x32xf32, #tpu.memory_space<vmem>>, vector<1x1x32xf32>
    %904 = vector.shape_cast %903 : vector<1x1x32xf32> to vector<1x32xf32>
    %c1_357 = arith.constant 1 : index
    %c0_358 = arith.constant 0 : index
    %c0_359 = arith.constant 0 : index
    %905 = vector.load %arg31[%c1_357, %c0_358, %c0_359] : memref<2x1x32xf32, #tpu.memory_space<vmem>>, vector<1x1x32xf32>
    %906 = vector.shape_cast %905 : vector<1x1x32xf32> to vector<1x32xf32>
    %cst_360 = arith.constant dense<0.000000e+00> : vector<10xf32>
    %907 = vector.multi_reduction <add>, %902, %cst_360 [1] : vector<10x32xf32> to vector<10xf32>
    %908 = vector.shape_cast %907 : vector<10xf32> to vector<10x1xf32>
    %cst_361 = arith.constant 3.200000e+01 : f32
    %909 = vector.broadcast %cst_361 : f32 to vector<10x1xf32>
    %910 = arith.divf %908, %909 : vector<10x1xf32>
    %911 = vector.broadcast %910 : vector<10x1xf32> to vector<10x32xf32>
    %912 = arith.subf %902, %911 : vector<10x32xf32>
    %913 = arith.mulf %912, %912 : vector<10x32xf32>
    %cst_362 = arith.constant dense<0.000000e+00> : vector<10xf32>
    %914 = vector.multi_reduction <add>, %913, %cst_362 [1] : vector<10x32xf32> to vector<10xf32>
    %915 = vector.shape_cast %914 : vector<10xf32> to vector<10x1xf32>
    %cst_363 = arith.constant 3.200000e+01 : f32
    %916 = vector.broadcast %cst_363 : f32 to vector<10x1xf32>
    %917 = arith.divf %915, %916 : vector<10x1xf32>
    %918 = vector.broadcast %910 : vector<10x1xf32> to vector<10x32xf32>
    %919 = arith.subf %902, %918 : vector<10x32xf32>
    %cst_364 = arith.constant 9.99999974E-6 : f32
    %920 = vector.broadcast %cst_364 : f32 to vector<10x1xf32>
    %921 = arith.addf %917, %920 : vector<10x1xf32>
    %922 = math.rsqrt %921 : vector<10x1xf32>
    %923 = vector.broadcast %922 : vector<10x1xf32> to vector<10x32xf32>
    %924 = arith.mulf %919, %923 : vector<10x32xf32>
    %925 = vector.broadcast %904 : vector<1x32xf32> to vector<10x32xf32>
    %926 = arith.mulf %924, %925 : vector<10x32xf32>
    %927 = vector.broadcast %906 : vector<1x32xf32> to vector<10x32xf32>
    %928 = arith.addf %926, %927 : vector<10x32xf32>
    %c1_365 = arith.constant 1 : index
    %c0_366 = arith.constant 0 : index
    %c0_367 = arith.constant 0 : index
    %929 = vector.load %arg32[%c1_365, %c0_366, %c0_367] : memref<2x32x32xbf16, #tpu.memory_space<vmem>>, vector<1x32x32xbf16>
    %930 = vector.shape_cast %929 : vector<1x32x32xbf16> to vector<32x32xbf16>
    %931 = arith.truncf %928 : vector<10x32xf32> to vector<10x32xbf16>
    %cst_368 = arith.constant dense<0.000000e+00> : vector<10x32xf32>
    %932 = tpu.matmul %931, %930, %cst_368 {dimension_numbers = #tpu.dot_dimension_numbers<[1], [0], [0], [1], [0, 0, 1, 1], [], []>} : vector<10x32xbf16>, vector<32x32xbf16>, vector<10x32xf32> -> vector<10x32xf32>
    %c1_369 = arith.constant 1 : index
    %c0_370 = arith.constant 0 : index
    %c0_371 = arith.constant 0 : index
    %933 = vector.load %arg33[%c1_369, %c0_370, %c0_371] : memref<2x1x32xf32, #tpu.memory_space<vmem>>, vector<1x1x32xf32>
    %934 = vector.shape_cast %933 : vector<1x1x32xf32> to vector<1x32xf32>
    %935 = vector.broadcast %934 : vector<1x32xf32> to vector<10x32xf32>
    %936 = arith.addf %932, %935 : vector<10x32xf32>
    %c1_372 = arith.constant 1 : index
    %c0_373 = arith.constant 0 : index
    %c0_374 = arith.constant 0 : index
    %937 = vector.load %arg34[%c1_372, %c0_373, %c0_374] : memref<2x32x64xbf16, #tpu.memory_space<vmem>>, vector<1x32x64xbf16>
    %938 = vector.shape_cast %937 : vector<1x32x64xbf16> to vector<32x64xbf16>
    %939 = arith.truncf %443 : vector<8x32xf32> to vector<8x32xbf16>
    %cst_375 = arith.constant dense<0.000000e+00> : vector<8x64xf32>
    %940 = tpu.matmul %939, %938, %cst_375 {dimension_numbers = #tpu.dot_dimension_numbers<[1], [0], [0], [1], [0, 0, 1, 1], [], []>} : vector<8x32xbf16>, vector<32x64xbf16>, vector<8x64xf32> -> vector<8x64xf32>
    %c1_376 = arith.constant 1 : index
    %c0_377 = arith.constant 0 : index
    %c0_378 = arith.constant 0 : index
    %941 = vector.load %arg35[%c1_376, %c0_377, %c0_378] : memref<2x1x64xf32, #tpu.memory_space<vmem>>, vector<1x1x64xf32>
    %942 = vector.shape_cast %941 : vector<1x1x64xf32> to vector<1x64xf32>
    %943 = vector.broadcast %942 : vector<1x64xf32> to vector<8x64xf32>
    %944 = arith.addf %940, %943 : vector<8x64xf32>
    %945 = vector.extract_strided_slice %944 {offsets = [0, 0], sizes = [8, 32], strides = [1, 1]} : vector<8x64xf32> to vector<8x32xf32>
    %946 = vector.extract_strided_slice %944 {offsets = [0, 32], sizes = [8, 32], strides = [1, 1]} : vector<8x64xf32> to vector<8x32xf32>
    %c1_379 = arith.constant 1 : index
    %c0_380 = arith.constant 0 : index
    %c0_381 = arith.constant 0 : index
    %947 = vector.load %arg36[%c1_379, %c0_380, %c0_381] : memref<2x32x32xbf16, #tpu.memory_space<vmem>>, vector<1x32x32xbf16>
    %948 = vector.shape_cast %947 : vector<1x32x32xbf16> to vector<32x32xbf16>
    %949 = vector.extract_strided_slice %936 {offsets = [0, 0], sizes = [10, 8], strides = [1, 1]} : vector<10x32xf32> to vector<10x8xf32>
    %950 = arith.truncf %949 : vector<10x8xf32> to vector<10x8xbf16>
    %951 = vector.extract_strided_slice %945 {offsets = [0, 0], sizes = [8, 8], strides = [1, 1]} : vector<8x32xf32> to vector<8x8xf32>
    %952 = arith.truncf %951 : vector<8x8xf32> to vector<8x8xbf16>
    "tpu.trace_start"() <{level = 10 : i32, message = "qd,kd->qk"}> : () -> ()
    %cst_382 = arith.constant dense<0.000000e+00> : vector<10x8xf32>
    %953 = tpu.matmul %950, %952, %cst_382 {dimension_numbers = #tpu.dot_dimension_numbers<[1], [1], [0], [0], [0, 0, 1, 0], [], []>} : vector<10x8xbf16>, vector<8x8xbf16>, vector<10x8xf32> -> vector<10x8xf32>
    "tpu.trace_stop"() : () -> ()
    %cst_383 = arith.constant 0.353553385 : f32
    %954 = vector.broadcast %cst_383 : f32 to vector<10x8xf32>
    %955 = arith.mulf %953, %954 : vector<10x8xf32>
    %956 = vector.broadcast %43 : vector<1x8xf32> to vector<10x8xf32>
    %957 = arith.addf %955, %956 : vector<10x8xf32>
    %cst_384 = arith.constant dense<0xFF800000> : vector<10xf32>
    %958 = vector.multi_reduction <maximumf>, %957, %cst_384 [1] : vector<10x8xf32> to vector<10xf32>
    %959 = vector.shape_cast %958 : vector<10xf32> to vector<10x1xf32>
    %960 = vector.broadcast %959 : vector<10x1xf32> to vector<10x8xf32>
    %961 = arith.subf %957, %960 : vector<10x8xf32>
    %962 = math.exp %961 : vector<10x8xf32>
    %cst_385 = arith.constant dense<0.000000e+00> : vector<10xf32>
    %963 = vector.multi_reduction <add>, %962, %cst_385 [1] : vector<10x8xf32> to vector<10xf32>
    %964 = vector.shape_cast %963 : vector<10xf32> to vector<10x1xf32>
    %965 = vector.broadcast %964 : vector<10x1xf32> to vector<10x8xf32>
    %966 = arith.divf %962, %965 : vector<10x8xf32>
    %967 = arith.truncf %966 : vector<10x8xf32> to vector<10x8xbf16>
    %968 = vector.extract_strided_slice %946 {offsets = [0, 0], sizes = [8, 8], strides = [1, 1]} : vector<8x32xf32> to vector<8x8xf32>
    %969 = arith.truncf %968 : vector<8x8xf32> to vector<8x8xbf16>
    %cst_386 = arith.constant dense<0.000000e+00> : vector<10x8xf32>
    %970 = tpu.matmul %967, %969, %cst_386 {dimension_numbers = #tpu.dot_dimension_numbers<[1], [0], [0], [1], [0, 0, 1, 1], [], []>} : vector<10x8xbf16>, vector<8x8xbf16>, vector<10x8xf32> -> vector<10x8xf32>
    %971 = arith.truncf %970 : vector<10x8xf32> to vector<10x8xbf16>
    %972 = vector.extract_strided_slice %948 {offsets = [0, 0], sizes = [8, 32], strides = [1, 1]} : vector<32x32xbf16> to vector<8x32xbf16>
    %cst_387 = arith.constant dense<0.000000e+00> : vector<10x32xf32>
    %973 = tpu.matmul %971, %972, %cst_387 {dimension_numbers = #tpu.dot_dimension_numbers<[1], [0], [0], [1], [0, 0, 1, 1], [], []>} : vector<10x8xbf16>, vector<8x32xbf16>, vector<10x32xf32> -> vector<10x32xf32>
    %974 = vector.extract_strided_slice %936 {offsets = [0, 8], sizes = [10, 8], strides = [1, 1]} : vector<10x32xf32> to vector<10x8xf32>
    %975 = arith.truncf %974 : vector<10x8xf32> to vector<10x8xbf16>
    %976 = vector.extract_strided_slice %945 {offsets = [0, 8], sizes = [8, 8], strides = [1, 1]} : vector<8x32xf32> to vector<8x8xf32>
    %977 = arith.truncf %976 : vector<8x8xf32> to vector<8x8xbf16>
    "tpu.trace_start"() <{level = 10 : i32, message = "qd,kd->qk"}> : () -> ()
    %cst_388 = arith.constant dense<0.000000e+00> : vector<10x8xf32>
    %978 = tpu.matmul %975, %977, %cst_388 {dimension_numbers = #tpu.dot_dimension_numbers<[1], [1], [0], [0], [0, 0, 1, 0], [], []>} : vector<10x8xbf16>, vector<8x8xbf16>, vector<10x8xf32> -> vector<10x8xf32>
    "tpu.trace_stop"() : () -> ()
    %cst_389 = arith.constant 0.353553385 : f32
    %979 = vector.broadcast %cst_389 : f32 to vector<10x8xf32>
    %980 = arith.mulf %978, %979 : vector<10x8xf32>
    %981 = vector.broadcast %43 : vector<1x8xf32> to vector<10x8xf32>
    %982 = arith.addf %980, %981 : vector<10x8xf32>
    %cst_390 = arith.constant dense<0xFF800000> : vector<10xf32>
    %983 = vector.multi_reduction <maximumf>, %982, %cst_390 [1] : vector<10x8xf32> to vector<10xf32>
    %984 = vector.shape_cast %983 : vector<10xf32> to vector<10x1xf32>
    %985 = vector.broadcast %984 : vector<10x1xf32> to vector<10x8xf32>
    %986 = arith.subf %982, %985 : vector<10x8xf32>
    %987 = math.exp %986 : vector<10x8xf32>
    %cst_391 = arith.constant dense<0.000000e+00> : vector<10xf32>
    %988 = vector.multi_reduction <add>, %987, %cst_391 [1] : vector<10x8xf32> to vector<10xf32>
    %989 = vector.shape_cast %988 : vector<10xf32> to vector<10x1xf32>
    %990 = vector.broadcast %989 : vector<10x1xf32> to vector<10x8xf32>
    %991 = arith.divf %987, %990 : vector<10x8xf32>
    %992 = arith.truncf %991 : vector<10x8xf32> to vector<10x8xbf16>
    %993 = vector.extract_strided_slice %946 {offsets = [0, 8], sizes = [8, 8], strides = [1, 1]} : vector<8x32xf32> to vector<8x8xf32>
    %994 = arith.truncf %993 : vector<8x8xf32> to vector<8x8xbf16>
    %cst_392 = arith.constant dense<0.000000e+00> : vector<10x8xf32>
    %995 = tpu.matmul %992, %994, %cst_392 {dimension_numbers = #tpu.dot_dimension_numbers<[1], [0], [0], [1], [0, 0, 1, 1], [], []>} : vector<10x8xbf16>, vector<8x8xbf16>, vector<10x8xf32> -> vector<10x8xf32>
    %996 = arith.truncf %995 : vector<10x8xf32> to vector<10x8xbf16>
    %997 = vector.extract_strided_slice %948 {offsets = [8, 0], sizes = [8, 32], strides = [1, 1]} : vector<32x32xbf16> to vector<8x32xbf16>
    %cst_393 = arith.constant dense<0.000000e+00> : vector<10x32xf32>
    %998 = tpu.matmul %996, %997, %cst_393 {dimension_numbers = #tpu.dot_dimension_numbers<[1], [0], [0], [1], [0, 0, 1, 1], [], []>} : vector<10x8xbf16>, vector<8x32xbf16>, vector<10x32xf32> -> vector<10x32xf32>
    %999 = arith.addf %973, %998 : vector<10x32xf32>
    %1000 = vector.extract_strided_slice %936 {offsets = [0, 16], sizes = [10, 8], strides = [1, 1]} : vector<10x32xf32> to vector<10x8xf32>
    %1001 = arith.truncf %1000 : vector<10x8xf32> to vector<10x8xbf16>
    %1002 = vector.extract_strided_slice %945 {offsets = [0, 16], sizes = [8, 8], strides = [1, 1]} : vector<8x32xf32> to vector<8x8xf32>
    %1003 = arith.truncf %1002 : vector<8x8xf32> to vector<8x8xbf16>
    "tpu.trace_start"() <{level = 10 : i32, message = "qd,kd->qk"}> : () -> ()
    %cst_394 = arith.constant dense<0.000000e+00> : vector<10x8xf32>
    %1004 = tpu.matmul %1001, %1003, %cst_394 {dimension_numbers = #tpu.dot_dimension_numbers<[1], [1], [0], [0], [0, 0, 1, 0], [], []>} : vector<10x8xbf16>, vector<8x8xbf16>, vector<10x8xf32> -> vector<10x8xf32>
    "tpu.trace_stop"() : () -> ()
    %cst_395 = arith.constant 0.353553385 : f32
    %1005 = vector.broadcast %cst_395 : f32 to vector<10x8xf32>
    %1006 = arith.mulf %1004, %1005 : vector<10x8xf32>
    %1007 = vector.broadcast %43 : vector<1x8xf32> to vector<10x8xf32>
    %1008 = arith.addf %1006, %1007 : vector<10x8xf32>
    %cst_396 = arith.constant dense<0xFF800000> : vector<10xf32>
    %1009 = vector.multi_reduction <maximumf>, %1008, %cst_396 [1] : vector<10x8xf32> to vector<10xf32>
    %1010 = vector.shape_cast %1009 : vector<10xf32> to vector<10x1xf32>
    %1011 = vector.broadcast %1010 : vector<10x1xf32> to vector<10x8xf32>
    %1012 = arith.subf %1008, %1011 : vector<10x8xf32>
    %1013 = math.exp %1012 : vector<10x8xf32>
    %cst_397 = arith.constant dense<0.000000e+00> : vector<10xf32>
    %1014 = vector.multi_reduction <add>, %1013, %cst_397 [1] : vector<10x8xf32> to vector<10xf32>
    %1015 = vector.shape_cast %1014 : vector<10xf32> to vector<10x1xf32>
    %1016 = vector.broadcast %1015 : vector<10x1xf32> to vector<10x8xf32>
    %1017 = arith.divf %1013, %1016 : vector<10x8xf32>
    %1018 = arith.truncf %1017 : vector<10x8xf32> to vector<10x8xbf16>
    %1019 = vector.extract_strided_slice %946 {offsets = [0, 16], sizes = [8, 8], strides = [1, 1]} : vector<8x32xf32> to vector<8x8xf32>
    %1020 = arith.truncf %1019 : vector<8x8xf32> to vector<8x8xbf16>
    %cst_398 = arith.constant dense<0.000000e+00> : vector<10x8xf32>
    %1021 = tpu.matmul %1018, %1020, %cst_398 {dimension_numbers = #tpu.dot_dimension_numbers<[1], [0], [0], [1], [0, 0, 1, 1], [], []>} : vector<10x8xbf16>, vector<8x8xbf16>, vector<10x8xf32> -> vector<10x8xf32>
    %1022 = arith.truncf %1021 : vector<10x8xf32> to vector<10x8xbf16>
    %1023 = vector.extract_strided_slice %948 {offsets = [16, 0], sizes = [8, 32], strides = [1, 1]} : vector<32x32xbf16> to vector<8x32xbf16>
    %cst_399 = arith.constant dense<0.000000e+00> : vector<10x32xf32>
    %1024 = tpu.matmul %1022, %1023, %cst_399 {dimension_numbers = #tpu.dot_dimension_numbers<[1], [0], [0], [1], [0, 0, 1, 1], [], []>} : vector<10x8xbf16>, vector<8x32xbf16>, vector<10x32xf32> -> vector<10x32xf32>
    %1025 = arith.addf %999, %1024 : vector<10x32xf32>
    %1026 = vector.extract_strided_slice %936 {offsets = [0, 24], sizes = [10, 8], strides = [1, 1]} : vector<10x32xf32> to vector<10x8xf32>
    %1027 = arith.truncf %1026 : vector<10x8xf32> to vector<10x8xbf16>
    %1028 = vector.extract_strided_slice %945 {offsets = [0, 24], sizes = [8, 8], strides = [1, 1]} : vector<8x32xf32> to vector<8x8xf32>
    %1029 = arith.truncf %1028 : vector<8x8xf32> to vector<8x8xbf16>
    "tpu.trace_start"() <{level = 10 : i32, message = "qd,kd->qk"}> : () -> ()
    %cst_400 = arith.constant dense<0.000000e+00> : vector<10x8xf32>
    %1030 = tpu.matmul %1027, %1029, %cst_400 {dimension_numbers = #tpu.dot_dimension_numbers<[1], [1], [0], [0], [0, 0, 1, 0], [], []>} : vector<10x8xbf16>, vector<8x8xbf16>, vector<10x8xf32> -> vector<10x8xf32>
    "tpu.trace_stop"() : () -> ()
    %cst_401 = arith.constant 0.353553385 : f32
    %1031 = vector.broadcast %cst_401 : f32 to vector<10x8xf32>
    %1032 = arith.mulf %1030, %1031 : vector<10x8xf32>
    %1033 = vector.broadcast %43 : vector<1x8xf32> to vector<10x8xf32>
    %1034 = arith.addf %1032, %1033 : vector<10x8xf32>
    %cst_402 = arith.constant dense<0xFF800000> : vector<10xf32>
    %1035 = vector.multi_reduction <maximumf>, %1034, %cst_402 [1] : vector<10x8xf32> to vector<10xf32>
    %1036 = vector.shape_cast %1035 : vector<10xf32> to vector<10x1xf32>
    %1037 = vector.broadcast %1036 : vector<10x1xf32> to vector<10x8xf32>
    %1038 = arith.subf %1034, %1037 : vector<10x8xf32>
    %1039 = math.exp %1038 : vector<10x8xf32>
    %cst_403 = arith.constant dense<0.000000e+00> : vector<10xf32>
    %1040 = vector.multi_reduction <add>, %1039, %cst_403 [1] : vector<10x8xf32> to vector<10xf32>
    %1041 = vector.shape_cast %1040 : vector<10xf32> to vector<10x1xf32>
    %1042 = vector.broadcast %1041 : vector<10x1xf32> to vector<10x8xf32>
    %1043 = arith.divf %1039, %1042 : vector<10x8xf32>
    %1044 = arith.truncf %1043 : vector<10x8xf32> to vector<10x8xbf16>
    %1045 = vector.extract_strided_slice %946 {offsets = [0, 24], sizes = [8, 8], strides = [1, 1]} : vector<8x32xf32> to vector<8x8xf32>
    %1046 = arith.truncf %1045 : vector<8x8xf32> to vector<8x8xbf16>
    %cst_404 = arith.constant dense<0.000000e+00> : vector<10x8xf32>
    %1047 = tpu.matmul %1044, %1046, %cst_404 {dimension_numbers = #tpu.dot_dimension_numbers<[1], [0], [0], [1], [0, 0, 1, 1], [], []>} : vector<10x8xbf16>, vector<8x8xbf16>, vector<10x8xf32> -> vector<10x8xf32>
    %1048 = arith.truncf %1047 : vector<10x8xf32> to vector<10x8xbf16>
    %1049 = vector.extract_strided_slice %948 {offsets = [24, 0], sizes = [8, 32], strides = [1, 1]} : vector<32x32xbf16> to vector<8x32xbf16>
    %cst_405 = arith.constant dense<0.000000e+00> : vector<10x32xf32>
    %1050 = tpu.matmul %1048, %1049, %cst_405 {dimension_numbers = #tpu.dot_dimension_numbers<[1], [0], [0], [1], [0, 0, 1, 1], [], []>} : vector<10x8xbf16>, vector<8x32xbf16>, vector<10x32xf32> -> vector<10x32xf32>
    %1051 = arith.addf %1025, %1050 : vector<10x32xf32>
    %c1_406 = arith.constant 1 : index
    %c0_407 = arith.constant 0 : index
    %c0_408 = arith.constant 0 : index
    %1052 = vector.load %arg37[%c1_406, %c0_407, %c0_408] : memref<2x1x32xf32, #tpu.memory_space<vmem>>, vector<1x1x32xf32>
    %1053 = vector.shape_cast %1052 : vector<1x1x32xf32> to vector<1x32xf32>
    %1054 = vector.broadcast %1053 : vector<1x32xf32> to vector<10x32xf32>
    %1055 = arith.addf %1051, %1054 : vector<10x32xf32>
    %1056 = arith.addf %928, %1055 : vector<10x32xf32>
    %c1_409 = arith.constant 1 : index
    %c0_410 = arith.constant 0 : index
    %c0_411 = arith.constant 0 : index
    %1057 = vector.load %arg38[%c1_409, %c0_410, %c0_411] : memref<2x1x32xf32, #tpu.memory_space<vmem>>, vector<1x1x32xf32>
    %1058 = vector.shape_cast %1057 : vector<1x1x32xf32> to vector<1x32xf32>
    %c1_412 = arith.constant 1 : index
    %c0_413 = arith.constant 0 : index
    %c0_414 = arith.constant 0 : index
    %1059 = vector.load %arg39[%c1_412, %c0_413, %c0_414] : memref<2x1x32xf32, #tpu.memory_space<vmem>>, vector<1x1x32xf32>
    %1060 = vector.shape_cast %1059 : vector<1x1x32xf32> to vector<1x32xf32>
    %cst_415 = arith.constant dense<0.000000e+00> : vector<10xf32>
    %1061 = vector.multi_reduction <add>, %1056, %cst_415 [1] : vector<10x32xf32> to vector<10xf32>
    %1062 = vector.shape_cast %1061 : vector<10xf32> to vector<10x1xf32>
    %cst_416 = arith.constant 3.200000e+01 : f32
    %1063 = vector.broadcast %cst_416 : f32 to vector<10x1xf32>
    %1064 = arith.divf %1062, %1063 : vector<10x1xf32>
    %1065 = vector.broadcast %1064 : vector<10x1xf32> to vector<10x32xf32>
    %1066 = arith.subf %1056, %1065 : vector<10x32xf32>
    %1067 = arith.mulf %1066, %1066 : vector<10x32xf32>
    %cst_417 = arith.constant dense<0.000000e+00> : vector<10xf32>
    %1068 = vector.multi_reduction <add>, %1067, %cst_417 [1] : vector<10x32xf32> to vector<10xf32>
    %1069 = vector.shape_cast %1068 : vector<10xf32> to vector<10x1xf32>
    %cst_418 = arith.constant 3.200000e+01 : f32
    %1070 = vector.broadcast %cst_418 : f32 to vector<10x1xf32>
    %1071 = arith.divf %1069, %1070 : vector<10x1xf32>
    %1072 = vector.broadcast %1064 : vector<10x1xf32> to vector<10x32xf32>
    %1073 = arith.subf %1056, %1072 : vector<10x32xf32>
    %cst_419 = arith.constant 9.99999974E-6 : f32
    %1074 = vector.broadcast %cst_419 : f32 to vector<10x1xf32>
    %1075 = arith.addf %1071, %1074 : vector<10x1xf32>
    %1076 = math.rsqrt %1075 : vector<10x1xf32>
    %1077 = vector.broadcast %1076 : vector<10x1xf32> to vector<10x32xf32>
    %1078 = arith.mulf %1073, %1077 : vector<10x32xf32>
    %1079 = vector.broadcast %1058 : vector<1x32xf32> to vector<10x32xf32>
    %1080 = arith.mulf %1078, %1079 : vector<10x32xf32>
    %1081 = vector.broadcast %1060 : vector<1x32xf32> to vector<10x32xf32>
    %1082 = arith.addf %1080, %1081 : vector<10x32xf32>
    %c1_420 = arith.constant 1 : index
    %c0_421 = arith.constant 0 : index
    %c0_422 = arith.constant 0 : index
    %1083 = vector.load %arg40[%c1_420, %c0_421, %c0_422] : memref<2x32x64xbf16, #tpu.memory_space<vmem>>, vector<1x32x64xbf16>
    %1084 = vector.shape_cast %1083 : vector<1x32x64xbf16> to vector<32x64xbf16>
    %1085 = arith.truncf %1082 : vector<10x32xf32> to vector<10x32xbf16>
    %cst_423 = arith.constant dense<0.000000e+00> : vector<10x64xf32>
    %1086 = tpu.matmul %1085, %1084, %cst_423 {dimension_numbers = #tpu.dot_dimension_numbers<[1], [0], [0], [1], [0, 0, 1, 1], [], []>} : vector<10x32xbf16>, vector<32x64xbf16>, vector<10x64xf32> -> vector<10x64xf32>
    %c1_424 = arith.constant 1 : index
    %c0_425 = arith.constant 0 : index
    %c0_426 = arith.constant 0 : index
    %1087 = vector.load %arg41[%c1_424, %c0_425, %c0_426] : memref<2x1x64xf32, #tpu.memory_space<vmem>>, vector<1x1x64xf32>
    %1088 = vector.shape_cast %1087 : vector<1x1x64xf32> to vector<1x64xf32>
    %1089 = vector.broadcast %1088 : vector<1x64xf32> to vector<10x64xf32>
    %1090 = arith.addf %1086, %1089 : vector<10x64xf32>
    %cst_427 = arith.constant 0.000000e+00 : f32
    %1091 = vector.broadcast %cst_427 : f32 to vector<10x64xf32>
    %1092 = arith.maximumf %1090, %1091 : vector<10x64xf32>
    %c1_428 = arith.constant 1 : index
    %c0_429 = arith.constant 0 : index
    %c0_430 = arith.constant 0 : index
    %1093 = vector.load %arg42[%c1_428, %c0_429, %c0_430] : memref<2x64x32xbf16, #tpu.memory_space<vmem>>, vector<1x64x32xbf16>
    %1094 = vector.shape_cast %1093 : vector<1x64x32xbf16> to vector<64x32xbf16>
    %1095 = arith.truncf %1092 : vector<10x64xf32> to vector<10x64xbf16>
    %cst_431 = arith.constant dense<0.000000e+00> : vector<10x32xf32>
    %1096 = tpu.matmul %1095, %1094, %cst_431 {dimension_numbers = #tpu.dot_dimension_numbers<[1], [0], [0], [1], [0, 0, 1, 1], [], []>} : vector<10x64xbf16>, vector<64x32xbf16>, vector<10x32xf32> -> vector<10x32xf32>
    %c1_432 = arith.constant 1 : index
    %c0_433 = arith.constant 0 : index
    %c0_434 = arith.constant 0 : index
    %1097 = vector.load %arg43[%c1_432, %c0_433, %c0_434] : memref<2x1x32xf32, #tpu.memory_space<vmem>>, vector<1x1x32xf32>
    %1098 = vector.shape_cast %1097 : vector<1x1x32xf32> to vector<1x32xf32>
    %1099 = vector.broadcast %1098 : vector<1x32xf32> to vector<10x32xf32>
    %1100 = arith.addf %1096, %1099 : vector<10x32xf32>
    %1101 = arith.addf %1082, %1100 : vector<10x32xf32>
    %c1_435 = arith.constant 1 : index
    %c0_436 = arith.constant 0 : index
    %c0_437 = arith.constant 0 : index
    %1102 = vector.load %arg44[%c1_435, %c0_436, %c0_437] : memref<2x1x32xf32, #tpu.memory_space<vmem>>, vector<1x1x32xf32>
    %1103 = vector.shape_cast %1102 : vector<1x1x32xf32> to vector<1x32xf32>
    %c1_438 = arith.constant 1 : index
    %c0_439 = arith.constant 0 : index
    %c0_440 = arith.constant 0 : index
    %1104 = vector.load %arg45[%c1_438, %c0_439, %c0_440] : memref<2x1x32xf32, #tpu.memory_space<vmem>>, vector<1x1x32xf32>
    %1105 = vector.shape_cast %1104 : vector<1x1x32xf32> to vector<1x32xf32>
    %cst_441 = arith.constant dense<0.000000e+00> : vector<10xf32>
    %1106 = vector.multi_reduction <add>, %1101, %cst_441 [1] : vector<10x32xf32> to vector<10xf32>
    %1107 = vector.shape_cast %1106 : vector<10xf32> to vector<10x1xf32>
    %cst_442 = arith.constant 3.200000e+01 : f32
    %1108 = vector.broadcast %cst_442 : f32 to vector<10x1xf32>
    %1109 = arith.divf %1107, %1108 : vector<10x1xf32>
    %1110 = vector.broadcast %1109 : vector<10x1xf32> to vector<10x32xf32>
    %1111 = arith.subf %1101, %1110 : vector<10x32xf32>
    %1112 = arith.mulf %1111, %1111 : vector<10x32xf32>
    %cst_443 = arith.constant dense<0.000000e+00> : vector<10xf32>
    %1113 = vector.multi_reduction <add>, %1112, %cst_443 [1] : vector<10x32xf32> to vector<10xf32>
    %1114 = vector.shape_cast %1113 : vector<10xf32> to vector<10x1xf32>
    %cst_444 = arith.constant 3.200000e+01 : f32
    %1115 = vector.broadcast %cst_444 : f32 to vector<10x1xf32>
    %1116 = arith.divf %1114, %1115 : vector<10x1xf32>
    %1117 = vector.broadcast %1109 : vector<10x1xf32> to vector<10x32xf32>
    %1118 = arith.subf %1101, %1117 : vector<10x32xf32>
    %cst_445 = arith.constant 9.99999974E-6 : f32
    %1119 = vector.broadcast %cst_445 : f32 to vector<10x1xf32>
    %1120 = arith.addf %1116, %1119 : vector<10x1xf32>
    %1121 = math.rsqrt %1120 : vector<10x1xf32>
    %1122 = vector.broadcast %1121 : vector<10x1xf32> to vector<10x32xf32>
    %1123 = arith.mulf %1118, %1122 : vector<10x32xf32>
    %1124 = vector.broadcast %1103 : vector<1x32xf32> to vector<10x32xf32>
    %1125 = arith.mulf %1123, %1124 : vector<10x32xf32>
    %1126 = vector.broadcast %1105 : vector<1x32xf32> to vector<10x32xf32>
    %1127 = arith.addf %1125, %1126 : vector<10x32xf32>
    %c0_446 = arith.constant 0 : index
    %c0_447 = arith.constant 0 : index
    %1128 = vector.load %arg46[%c0_446, %c0_447] : memref<1x32xf32, #tpu.memory_space<vmem>>, vector<1x32xf32>
    %c0_448 = arith.constant 0 : index
    %c0_449 = arith.constant 0 : index
    %1129 = vector.load %arg47[%c0_448, %c0_449] : memref<1x32xf32, #tpu.memory_space<vmem>>, vector<1x32xf32>
    %cst_450 = arith.constant dense<0.000000e+00> : vector<10xf32>
    %1130 = vector.multi_reduction <add>, %1127, %cst_450 [1] : vector<10x32xf32> to vector<10xf32>
    %1131 = vector.shape_cast %1130 : vector<10xf32> to vector<10x1xf32>
    %cst_451 = arith.constant 3.200000e+01 : f32
    %1132 = vector.broadcast %cst_451 : f32 to vector<10x1xf32>
    %1133 = arith.divf %1131, %1132 : vector<10x1xf32>
    %1134 = vector.broadcast %1133 : vector<10x1xf32> to vector<10x32xf32>
    %1135 = arith.subf %1127, %1134 : vector<10x32xf32>
    %1136 = arith.mulf %1135, %1135 : vector<10x32xf32>
    %cst_452 = arith.constant dense<0.000000e+00> : vector<10xf32>
    %1137 = vector.multi_reduction <add>, %1136, %cst_452 [1] : vector<10x32xf32> to vector<10xf32>
    %1138 = vector.shape_cast %1137 : vector<10xf32> to vector<10x1xf32>
    %cst_453 = arith.constant 3.200000e+01 : f32
    %1139 = vector.broadcast %cst_453 : f32 to vector<10x1xf32>
    %1140 = arith.divf %1138, %1139 : vector<10x1xf32>
    %1141 = vector.broadcast %1133 : vector<10x1xf32> to vector<10x32xf32>
    %1142 = arith.subf %1127, %1141 : vector<10x32xf32>
    %cst_454 = arith.constant 9.99999974E-6 : f32
    %1143 = vector.broadcast %cst_454 : f32 to vector<10x1xf32>
    %1144 = arith.addf %1140, %1143 : vector<10x1xf32>
    %1145 = math.rsqrt %1144 : vector<10x1xf32>
    %1146 = vector.broadcast %1145 : vector<10x1xf32> to vector<10x32xf32>
    %1147 = arith.mulf %1142, %1146 : vector<10x32xf32>
    %1148 = vector.broadcast %1128 : vector<1x32xf32> to vector<10x32xf32>
    %1149 = arith.mulf %1147, %1148 : vector<10x32xf32>
    %1150 = vector.broadcast %1129 : vector<1x32xf32> to vector<10x32xf32>
    %1151 = arith.addf %1149, %1150 : vector<10x32xf32>
    %c0_455 = arith.constant 0 : index
    %c0_456 = arith.constant 0 : index
    %1152 = vector.load %arg48[%c0_455, %c0_456] : memref<32x128xbf16, #tpu.memory_space<vmem>>, vector<32x128xbf16>
    %1153 = arith.truncf %1151 : vector<10x32xf32> to vector<10x32xbf16>
    %cst_457 = arith.constant dense<0.000000e+00> : vector<10x128xf32>
    %1154 = tpu.matmul %1153, %1152, %cst_457 {dimension_numbers = #tpu.dot_dimension_numbers<[1], [0], [0], [1], [0, 0, 1, 1], [], []>} : vector<10x32xbf16>, vector<32x128xbf16>, vector<10x128xf32> -> vector<10x128xf32>
    %c0_458 = arith.constant 0 : index
    %c0_459 = arith.constant 0 : index
    %1155 = vector.load %arg49[%c0_458, %c0_459] : memref<1x128xf32, #tpu.memory_space<vmem>>, vector<1x128xf32>
    %1156 = vector.broadcast %1155 : vector<1x128xf32> to vector<10x128xf32>
    %1157 = arith.addf %1154, %1156 : vector<10x128xf32>
    %c0_460 = arith.constant 0 : index
    %c0_461 = arith.constant 0 : index
    %c0_462 = arith.constant 0 : index
    %1158 = vector.load %arg50[%c0_460, %c0_461, %c0_462] : memref<1x10x128xf32, #tpu.memory_space<vmem>>, vector<1x10x128xf32>
    %1159 = vector.shape_cast %1158 : vector<1x10x128xf32> to vector<10x128xf32>
    %1160 = vector.shape_cast %1157 : vector<10x128xf32> to vector<1x10x128xf32>
    tpu.vector_store %arg50[%c0_460, %c0_461, %c0_462], %1160 {strides = array<i32>} : memref<1x10x128xf32, #tpu.memory_space<vmem>>, vector<1x10x128xf32>,
    return
  }
  func.func @transform_0(%arg0: i32) -> (i32, i32, i32) {
    %c0_i32 = arith.constant 0 : i32
    %c0_i32_0 = arith.constant 0 : i32
    %c0_i32_1 = arith.constant 0 : i32
    return %arg0, %c0_i32, %c0_i32_0 : i32, i32, i32
  }
  func.func @transform_1(%arg0: i32) -> (i32, i32, i32) {
    %c0_i32 = arith.constant 0 : i32
    %c0_i32_0 = arith.constant 0 : i32
    %c0_i32_1 = arith.constant 0 : i32
    return %arg0, %c0_i32, %c0_i32_0 : i32, i32, i32
  }
  func.func @transform_2(%arg0: i32) -> (i32, i32, i32) {
    %c0_i32 = arith.constant 0 : i32
    %c0_i32_0 = arith.constant 0 : i32
    %c0_i32_1 = arith.constant 0 : i32
    return %arg0, %c0_i32, %c0_i32_0 : i32, i32, i32
  }
  func.func @transform_3(%arg0: i32) -> (i32, i32, i32) {
    %c0_i32 = arith.constant 0 : i32
    %c0_i32_0 = arith.constant 0 : i32
    %c0_i32_1 = arith.constant 0 : i32
    return %arg0, %c0_i32, %c0_i32_0 : i32, i32, i32
  }
  func.func @transform_4(%arg0: i32) -> (i32, i32, i32) {
    %c0_i32 = arith.constant 0 : i32
    %c0_i32_0 = arith.constant 0 : i32
    %c0_i32_1 = arith.constant 0 : i32
    return %arg0, %c0_i32, %c0_i32_0 : i32, i32, i32
  }
  func.func @transform_5(%arg0: i32) -> (i32, i32) {
    %c0_i32 = arith.constant 0 : i32
    %c0_i32_0 = arith.constant 0 : i32
    %c0_i32_1 = arith.constant 0 : i32
    return %c0_i32, %c0_i32_0 : i32, i32
  }
  func.func @transform_6(%arg0: i32) -> (i32, i32) {
    %c0_i32 = arith.constant 0 : i32
    %c0_i32_0 = arith.constant 0 : i32
    %c0_i32_1 = arith.constant 0 : i32
    return %c0_i32, %c0_i32_0 : i32, i32
  }
  func.func @transform_7(%arg0: i32) -> (i32, i32) {
    %c0_i32 = arith.constant 0 : i32
    %c0_i32_0 = arith.constant 0 : i32
    %c0_i32_1 = arith.constant 0 : i32
    return %c0_i32, %c0_i32_0 : i32, i32
  }
  func.func @transform_8(%arg0: i32) -> (i32, i32) {
    %c0_i32 = arith.constant 0 : i32
    %c0_i32_0 = arith.constant 0 : i32
    %c0_i32_1 = arith.constant 0 : i32
    return %c0_i32, %c0_i32_0 : i32, i32
  }
  func.func @transform_9(%arg0: i32) -> (i32, i32) {
    %c0_i32 = arith.constant 0 : i32
    %c0_i32_0 = arith.constant 0 : i32
    %c0_i32_1 = arith.constant 0 : i32
    return %c0_i32, %c0_i32_0 : i32, i32
  }
  func.func @transform_10(%arg0: i32) -> (i32, i32) {
    %c0_i32 = arith.constant 0 : i32
    %c0_i32_0 = arith.constant 0 : i32
    %c0_i32_1 = arith.constant 0 : i32
    return %c0_i32, %c0_i32_0 : i32, i32
  }
  func.func @transform_11(%arg0: i32) -> (i32, i32, i32) {
    %c0_i32 = arith.constant 0 : i32
    %c0_i32_0 = arith.constant 0 : i32
    %c0_i32_1 = arith.constant 0 : i32
    %c0_i32_2 = arith.constant 0 : i32
    return %c0_i32, %c0_i32_0, %c0_i32_1 : i32, i32, i32
  }
  func.func @transform_12(%arg0: i32) -> (i32, i32, i32) {
    %c0_i32 = arith.constant 0 : i32
    %c0_i32_0 = arith.constant 0 : i32
    %c0_i32_1 = arith.constant 0 : i32
    %c0_i32_2 = arith.constant 0 : i32
    return %c0_i32, %c0_i32_0, %c0_i32_1 : i32, i32, i32
  }
  func.func @transform_13(%arg0: i32) -> (i32, i32, i32) {
    %c0_i32 = arith.constant 0 : i32
    %c0_i32_0 = arith.constant 0 : i32
    %c0_i32_1 = arith.constant 0 : i32
    %c0_i32_2 = arith.constant 0 : i32
    return %c0_i32, %c0_i32_0, %c0_i32_1 : i32, i32, i32
  }
  func.func @transform_14(%arg0: i32) -> (i32, i32, i32) {
    %c0_i32 = arith.constant 0 : i32
    %c0_i32_0 = arith.constant 0 : i32
    %c0_i32_1 = arith.constant 0 : i32
    %c0_i32_2 = arith.constant 0 : i32
    return %c0_i32, %c0_i32_0, %c0_i32_1 : i32, i32, i32
  }
  func.func @transform_15(%arg0: i32) -> (i32, i32, i32) {
    %c0_i32 = arith.constant 0 : i32
    %c0_i32_0 = arith.constant 0 : i32
    %c0_i32_1 = arith.constant 0 : i32
    %c0_i32_2 = arith.constant 0 : i32
    return %c0_i32, %c0_i32_0, %c0_i32_1 : i32, i32, i32
  }
  func.func @transform_16(%arg0: i32) -> (i32, i32, i32) {
    %c0_i32 = arith.constant 0 : i32
    %c0_i32_0 = arith.constant 0 : i32
    %c0_i32_1 = arith.constant 0 : i32
    %c0_i32_2 = arith.constant 0 : i32
    return %c0_i32, %c0_i32_0, %c0_i32_1 : i32, i32, i32
  }
  func.func @transform_17(%arg0: i32) -> (i32, i32, i32) {
    %c0_i32 = arith.constant 0 : i32
    %c0_i32_0 = arith.constant 0 : i32
    %c0_i32_1 = arith.constant 0 : i32
    %c0_i32_2 = arith.constant 0 : i32
    return %c0_i32, %c0_i32_0, %c0_i32_1 : i32, i32, i32
  }
  func.func @transform_18(%arg0: i32) -> (i32, i32, i32) {
    %c0_i32 = arith.constant 0 : i32
    %c0_i32_0 = arith.constant 0 : i32
    %c0_i32_1 = arith.constant 0 : i32
    %c0_i32_2 = arith.constant 0 : i32
    return %c0_i32, %c0_i32_0, %c0_i32_1 : i32, i32, i32
  }
  func.func @transform_19(%arg0: i32) -> (i32, i32, i32) {
    %c0_i32 = arith.constant 0 : i32
    %c0_i32_0 = arith.constant 0 : i32
    %c0_i32_1 = arith.constant 0 : i32
    %c0_i32_2 = arith.constant 0 : i32
    return %c0_i32, %c0_i32_0, %c0_i32_1 : i32, i32, i32
  }
  func.func @transform_20(%arg0: i32) -> (i32, i32, i32) {
    %c0_i32 = arith.constant 0 : i32
    %c0_i32_0 = arith.constant 0 : i32
    %c0_i32_1 = arith.constant 0 : i32
    %c0_i32_2 = arith.constant 0 : i32
    return %c0_i32, %c0_i32_0, %c0_i32_1 : i32, i32, i32
  }
  func.func @transform_21(%arg0: i32) -> (i32, i32, i32) {
    %c0_i32 = arith.constant 0 : i32
    %c0_i32_0 = arith.constant 0 : i32
    %c0_i32_1 = arith.constant 0 : i32
    %c0_i32_2 = arith.constant 0 : i32
    return %c0_i32, %c0_i32_0, %c0_i32_1 : i32, i32, i32
  }
  func.func @transform_22(%arg0: i32) -> (i32, i32, i32) {
    %c0_i32 = arith.constant 0 : i32
    %c0_i32_0 = arith.constant 0 : i32
    %c0_i32_1 = arith.constant 0 : i32
    %c0_i32_2 = arith.constant 0 : i32
    return %c0_i32, %c0_i32_0, %c0_i32_1 : i32, i32, i32
  }
  func.func @transform_23(%arg0: i32) -> (i32, i32) {
    %c0_i32 = arith.constant 0 : i32
    %c0_i32_0 = arith.constant 0 : i32
    %c0_i32_1 = arith.constant 0 : i32
    return %c0_i32, %c0_i32_0 : i32, i32
  }
  func.func @transform_24(%arg0: i32) -> (i32, i32) {
    %c0_i32 = arith.constant 0 : i32
    %c0_i32_0 = arith.constant 0 : i32
    %c0_i32_1 = arith.constant 0 : i32
    return %c0_i32, %c0_i32_0 : i32, i32
  }
  func.func @transform_25(%arg0: i32) -> (i32, i32, i32) {
    %c0_i32 = arith.constant 0 : i32
    %c0_i32_0 = arith.constant 0 : i32
    %c0_i32_1 = arith.constant 0 : i32
    %c0_i32_2 = arith.constant 0 : i32
    return %c0_i32, %c0_i32_0, %c0_i32_1 : i32, i32, i32
  }
  func.func @transform_26(%arg0: i32) -> (i32, i32, i32) {
    %c0_i32 = arith.constant 0 : i32
    %c0_i32_0 = arith.constant 0 : i32
    %c0_i32_1 = arith.constant 0 : i32
    %c0_i32_2 = arith.constant 0 : i32
    return %c0_i32, %c0_i32_0, %c0_i32_1 : i32, i32, i32
  }
  func.func @transform_27(%arg0: i32) -> (i32, i32, i32) {
    %c0_i32 = arith.constant 0 : i32
    %c0_i32_0 = arith.constant 0 : i32
    %c0_i32_1 = arith.constant 0 : i32
    %c0_i32_2 = arith.constant 0 : i32
    return %c0_i32, %c0_i32_0, %c0_i32_1 : i32, i32, i32
  }
  func.func @transform_28(%arg0: i32) -> (i32, i32, i32) {
    %c0_i32 = arith.constant 0 : i32
    %c0_i32_0 = arith.constant 0 : i32
    %c0_i32_1 = arith.constant 0 : i32
    %c0_i32_2 = arith.constant 0 : i32
    return %c0_i32, %c0_i32_0, %c0_i32_1 : i32, i32, i32
  }
  func.func @transform_29(%arg0: i32) -> (i32, i32, i32) {
    %c0_i32 = arith.constant 0 : i32
    %c0_i32_0 = arith.constant 0 : i32
    %c0_i32_1 = arith.constant 0 : i32
    %c0_i32_2 = arith.constant 0 : i32
    return %c0_i32, %c0_i32_0, %c0_i32_1 : i32, i32, i32
  }
  func.func @transform_30(%arg0: i32) -> (i32, i32, i32) {
    %c0_i32 = arith.constant 0 : i32
    %c0_i32_0 = arith.constant 0 : i32
    %c0_i32_1 = arith.constant 0 : i32
    %c0_i32_2 = arith.constant 0 : i32
    return %c0_i32, %c0_i32_0, %c0_i32_1 : i32, i32, i32
  }
  func.func @transform_31(%arg0: i32) -> (i32, i32, i32) {
    %c0_i32 = arith.constant 0 : i32
    %c0_i32_0 = arith.constant 0 : i32
    %c0_i32_1 = arith.constant 0 : i32
    %c0_i32_2 = arith.constant 0 : i32
    return %c0_i32, %c0_i32_0, %c0_i32_1 : i32, i32, i32
  }
  func.func @transform_32(%arg0: i32) -> (i32, i32, i32) {
    %c0_i32 = arith.constant 0 : i32
    %c0_i32_0 = arith.constant 0 : i32
    %c0_i32_1 = arith.constant 0 : i32
    %c0_i32_2 = arith.constant 0 : i32
    return %c0_i32, %c0_i32_0, %c0_i32_1 : i32, i32, i32
  }
  func.func @transform_33(%arg0: i32) -> (i32, i32, i32) {
    %c0_i32 = arith.constant 0 : i32
    %c0_i32_0 = arith.constant 0 : i32
    %c0_i32_1 = arith.constant 0 : i32
    %c0_i32_2 = arith.constant 0 : i32
    return %c0_i32, %c0_i32_0, %c0_i32_1 : i32, i32, i32
  }
  func.func @transform_34(%arg0: i32) -> (i32, i32, i32) {
    %c0_i32 = arith.constant 0 : i32
    %c0_i32_0 = arith.constant 0 : i32
    %c0_i32_1 = arith.constant 0 : i32
    %c0_i32_2 = arith.constant 0 : i32
    return %c0_i32, %c0_i32_0, %c0_i32_1 : i32, i32, i32
  }
  func.func @transform_35(%arg0: i32) -> (i32, i32, i32) {
    %c0_i32 = arith.constant 0 : i32
    %c0_i32_0 = arith.constant 0 : i32
    %c0_i32_1 = arith.constant 0 : i32
    %c0_i32_2 = arith.constant 0 : i32
    return %c0_i32, %c0_i32_0, %c0_i32_1 : i32, i32, i32
  }
  func.func @transform_36(%arg0: i32) -> (i32, i32, i32) {
    %c0_i32 = arith.constant 0 : i32
    %c0_i32_0 = arith.constant 0 : i32
    %c0_i32_1 = arith.constant 0 : i32
    %c0_i32_2 = arith.constant 0 : i32
    return %c0_i32, %c0_i32_0, %c0_i32_1 : i32, i32, i32
  }
  func.func @transform_37(%arg0: i32) -> (i32, i32, i32) {
    %c0_i32 = arith.constant 0 : i32
    %c0_i32_0 = arith.constant 0 : i32
    %c0_i32_1 = arith.constant 0 : i32
    %c0_i32_2 = arith.constant 0 : i32
    return %c0_i32, %c0_i32_0, %c0_i32_1 : i32, i32, i32
  }
  func.func @transform_38(%arg0: i32) -> (i32, i32, i32) {
    %c0_i32 = arith.constant 0 : i32
    %c0_i32_0 = arith.constant 0 : i32
    %c0_i32_1 = arith.constant 0 : i32
    %c0_i32_2 = arith.constant 0 : i32
    return %c0_i32, %c0_i32_0, %c0_i32_1 : i32, i32, i32
  }
  func.func @transform_39(%arg0: i32) -> (i32, i32, i32) {
    %c0_i32 = arith.constant 0 : i32
    %c0_i32_0 = arith.constant 0 : i32
    %c0_i32_1 = arith.constant 0 : i32
    %c0_i32_2 = arith.constant 0 : i32
    return %c0_i32, %c0_i32_0, %c0_i32_1 : i32, i32, i32
  }
  func.func @transform_40(%arg0: i32) -> (i32, i32, i32) {
    %c0_i32 = arith.constant 0 : i32
    %c0_i32_0 = arith.constant 0 : i32
    %c0_i32_1 = arith.constant 0 : i32
    %c0_i32_2 = arith.constant 0 : i32
    return %c0_i32, %c0_i32_0, %c0_i32_1 : i32, i32, i32
  }
  func.func @transform_41(%arg0: i32) -> (i32, i32, i32) {
    %c0_i32 = arith.constant 0 : i32
    %c0_i32_0 = arith.constant 0 : i32
    %c0_i32_1 = arith.constant 0 : i32
    %c0_i32_2 = arith.constant 0 : i32
    return %c0_i32, %c0_i32_0, %c0_i32_1 : i32, i32, i32
  }
  func.func @transform_42(%arg0: i32) -> (i32, i32, i32) {
    %c0_i32 = arith.constant 0 : i32
    %c0_i32_0 = arith.constant 0 : i32
    %c0_i32_1 = arith.constant 0 : i32
    %c0_i32_2 = arith.constant 0 : i32
    return %c0_i32, %c0_i32_0, %c0_i32_1 : i32, i32, i32
  }
  func.func @transform_43(%arg0: i32) -> (i32, i32, i32) {
    %c0_i32 = arith.constant 0 : i32
    %c0_i32_0 = arith.constant 0 : i32
    %c0_i32_1 = arith.constant 0 : i32
    %c0_i32_2 = arith.constant 0 : i32
    return %c0_i32, %c0_i32_0, %c0_i32_1 : i32, i32, i32
  }
  func.func @transform_44(%arg0: i32) -> (i32, i32, i32) {
    %c0_i32 = arith.constant 0 : i32
    %c0_i32_0 = arith.constant 0 : i32
    %c0_i32_1 = arith.constant 0 : i32
    %c0_i32_2 = arith.constant 0 : i32
    return %c0_i32, %c0_i32_0, %c0_i32_1 : i32, i32, i32
  }
  func.func @transform_45(%arg0: i32) -> (i32, i32) {
    %c0_i32 = arith.constant 0 : i32
    %c0_i32_0 = arith.constant 0 : i32
    %c0_i32_1 = arith.constant 0 : i32
    return %c0_i32, %c0_i32_0 : i32, i32
  }
  func.func @transform_46(%arg0: i32) -> (i32, i32) {
    %c0_i32 = arith.constant 0 : i32
    %c0_i32_0 = arith.constant 0 : i32
    %c0_i32_1 = arith.constant 0 : i32
    return %c0_i32, %c0_i32_0 : i32, i32
  }
  func.func @transform_47(%arg0: i32) -> (i32, i32) {
    %c0_i32 = arith.constant 0 : i32
    %c0_i32_0 = arith.constant 0 : i32
    %c0_i32_1 = arith.constant 0 : i32
    return %c0_i32, %c0_i32_0 : i32, i32
  }
  func.func @transform_48(%arg0: i32) -> (i32, i32) {
    %c0_i32 = arith.constant 0 : i32
    %c0_i32_0 = arith.constant 0 : i32
    %c0_i32_1 = arith.constant 0 : i32
    return %c0_i32, %c0_i32_0 : i32, i32
  }
  func.func @transform_49(%arg0: i32) -> (i32, i32, i32) {
    %c0_i32 = arith.constant 0 : i32
    %c0_i32_0 = arith.constant 0 : i32
    %c0_i32_1 = arith.constant 0 : i32
    return %arg0, %c0_i32, %c0_i32_0 : i32, i32, i32
  }
}

</mosaic_0001>

<bundles_post_ra>
// kernel: my_transformer_forward.1
= control target key start
LH: loop header
LB: loop body
LE: loop exit
PB: predicated region body
PF: predicated region fallthrough
CT: control target
= control target key end

     0   :  { %s6898_s6 = smov 1   ;;  %s6899_s10 = smov 2   ;;  %s8321_s0 = inlined_call_operand.smem [shape: u32[50], index: -1, kind: input, shape index: {}] }
   0x1   :  { %s6974_s5 = sld [smem:[%s8321_s0]]   ;;  %s6900_s14 = smov 3  }
   0x2   :  { %s6979_s9 = sld [smem:[%s8321_s0 + %s6898_s6]]   ;;  %s6901_s18 = smov 4  }
   0x3   :  { %s6984_s13 = sld [smem:[%s8321_s0 + %s6899_s10]]   ;;  %s6902_s22 = smov 5  }
   0x4   :  { %s6989_s17 = sld [smem:[%s8321_s0 + %s6900_s14]]   ;;  %s6903_s26 = smov 6  }
   0x5   :  { %s6994_s21 = sld [smem:[%s8321_s0 + %s6901_s18]]   ;;  %s6904_s30 = smov 7  }
   0x6   :  { %s6999_s25 = sld [smem:[%s8321_s0 + %s6902_s22]]   ;;  %s6905_s4 = smov 8  }
   0x7   :  { %8400 = sst [smem:[#allocation13_spill]] %s6974_s5  ;;  %s6906_s10 = smov 9  }
   0x8   :  { %8401 = sst [smem:[#allocation14_spill]] %s6979_s9  ;;  %s6907_s15 = smov 10  }
   0x9   :  { %8402 = sst [smem:[#allocation15_spill]] %s6984_s13  ;;  %s6908_s20 = smov 11  }
   0xa   :  { %8403 = sst [smem:[#allocation16_spill]] %s6989_s17  ;;  %s6910_s1 = smov 13  }
   0xb   :  { %8404 = sst [smem:[#allocation17_spill]] %s6994_s21  ;;  %s6911_s7 = smov 14  }
   0xc   :  { %8405 = sst [smem:[#allocation18_spill]] %s6999_s25  ;;  %s6913_s22 = smov 16  }
   0xd   :  { %s7004_s29 = sld [smem:[%s8321_s0 + %s6903_s26]]   ;;  %s6909_s26 = smov 12  }
   0xe   :  { %s7009_s3 = sld [smem:[%s8321_s0 + %s6904_s30]]   ;;  %s6914_s28 = smov 17  }
   0xf   :  { %s7014_s8 = sld [smem:[%s8321_s0 + %s6905_s4]]  }
  0x10   :  { %s7019_s14 = sld [smem:[%s8321_s0 + %s6906_s10]]  }
  0x11   :  { %s7024_s19 = sld [smem:[%s8321_s0 + %s6907_s15]]   ;;  %s6912_s15 = smov 15  }
  0x12   :  { %s7029_s24 = sld [smem:[%s8321_s0 + %s6908_s20]]  }
  0x13   :  { %8406 = sst [smem:[#allocation19_spill]] %s7004_s29 }
  0x14   :  { %8407 = sst [smem:[#allocation20_spill]] %s7009_s3 }
  0x15   :  { %8408 = sst [smem:[#allocation21_spill]] %s7014_s8 }
  0x16   :  { %8409 = sst [smem:[#allocation22_spill]] %s7019_s14 }
  0x17   :  { %8410 = sst [smem:[#allocation23_spill]] %s7024_s19 }
  0x18   :  { %8411 = sst [smem:[#allocation24_spill]] %s7029_s24 }
  0x19   :  { %s7034_s30 = sld [smem:[%s8321_s0 + %s6909_s26]]  }
  0x1a   :  { %s7039_s6 = sld [smem:[%s8321_s0 + %s6910_s1]]  }
  0x1b   :  { %s7044_s12 = sld [smem:[%s8321_s0 + %s6911_s7]]   ;;  %s6915_s7 = smov 18  }
  0x1c   :  { %s7049_s20 = sld [smem:[%s8321_s0 + %s6912_s15]]   ;;  %s6916_s15 = smov 19  }
  0x1d   :  { %s7054_s27 = sld [smem:[%s8321_s0 + %s6913_s22]]   ;;  %s6917_s22 = smov 20  }
  0x1e   :  { %s7059_s4 = sld [smem:[%s8321_s0 + %s6914_s28]]   ;;  %s6918_s28 = smov 21  }
  0x1f   :  { %8412 = sst [smem:[#allocation25_spill]] %s7034_s30 }
  0x20   :  { %8413 = sst [smem:[#allocation26_spill]] %s7039_s6 }
  0x21   :  { %8414 = sst [smem:[#allocation27_spill]] %s7044_s12 }
  0x22   :  { %8415 = sst [smem:[#allocation28_spill]] %s7049_s20 }
  0x23   :  { %8416 = sst [smem:[#allocation29_spill]] %s7054_s27 }
  0x24   :  { %8417 = sst [smem:[#allocation30_spill]] %s7059_s4 }
  0x25   :  { %s7064_s21 = sld [smem:[%s8321_s0 + %s6915_s7]]   ;;  %s6919_s7 = smov 22  }
  0x26   :  { %s7069_s29 = sld [smem:[%s8321_s0 + %s6916_s15]]   ;;  %s6920_s15 = smov 23  }
  0x27   :  { %s7074_s17 = sld [smem:[%s8321_s0 + %s6917_s22]]   ;;  %s6921_s22 = smov 24  }
  0x28   :  { %s7079_s8 = sld [smem:[%s8321_s0 + %s6918_s28]]   ;;  %s6922_s28 = smov 25  }
  0x29   :  { %s7089_s27 = sld [smem:[%s8321_s0 + %s6920_s15]]   ;;  %s6924_s15 = smov 27  }
  0x2a   :  { %s7109_s20 = sld [smem:[%s8321_s0 + %s6924_s15]]   ;;  %s6928_s15 = smov 31  }
  0x2b   :  { %8418 = sst [smem:[#allocation31_spill]] %s7064_s21 }
  0x2c   :  { %8419 = sst [smem:[#allocation32_spill]] %s7069_s29 }
  0x2d   :  { %8420 = sst [smem:[#allocation33_spill]] %s7074_s17 }
  0x2e   :  { %8421 = sst [smem:[#allocation34_spill]] %s7079_s8 }
  0x2f   :  { %s7084_s21 = sld [smem:[%s8321_s0 + %s6919_s7]]   ;;  %s6923_s7 = smov 26  }
  0x30   :  { %8423 = sst [smem:[#allocation36_spill]] %s7089_s27 }
  0x31   :  { %s7094_s17 = sld [smem:[%s8321_s0 + %s6921_s22]]   ;;  %s6925_s22 = smov 28  }
  0x32   :  { %s7099_s8 = sld [smem:[%s8321_s0 + %s6922_s28]]   ;;  %s6926_s28 = smov 29  }
  0x33   :  { %8427 = sst [smem:[#allocation40_spill]] %s7109_s20 }
  0x34   :  { %s7114_s29 = sld [smem:[%s8321_s0 + %s6925_s22]]   ;;  %s6929_s22 = smov 32  }
  0x35   :  { %8422 = sst [smem:[#allocation35_spill]] %s7084_s21 }
  0x36   :  { %s7104_s21 = sld [smem:[%s8321_s0 + %s6923_s7]]   ;;  %s6927_s7 = smov 30  }
  0x37   :  { %8424 = sst [smem:[#allocation37_spill]] %s7094_s17 }
  0x38   :  { %8425 = sst [smem:[#allocation38_spill]] %s7099_s8 }
  0x39   :  { %s7119_s8 = sld [smem:[%s8321_s0 + %s6926_s28]]   ;;  %s6930_s28 = smov 33  }
  0x3a   :  { %8428 = sst [smem:[#allocation41_spill]] %s7114_s29 }
  0x3b   :  { %s7129_s20 = sld [smem:[%s8321_s0 + %s6928_s15]]   ;;  %s6932_s15 = smov 35  }
  0x3c   :  { %8426 = sst [smem:[#allocation39_spill]] %s7104_s21 }
  0x3d   :  { %s7124_s21 = sld [smem:[%s8321_s0 + %s6927_s7]]   ;;  %s6931_s7 = smov 34  }
  0x3e   :  { %s7134_s29 = sld [smem:[%s8321_s0 + %s6929_s22]]   ;;  %s6933_s22 = smov 36  }
  0x3f   :  { %8429 = sst [smem:[#allocation42_spill]] %s7119_s8 }
  0x40   :  { %s7139_s8 = sld [smem:[%s8321_s0 + %s6930_s28]]   ;;  %s6934_s28 = smov 37  }
  0x41   :  { %8431 = sst [smem:[#allocation44_spill]] %s7129_s20 }
  0x42   :  { %s7149_s20 = sld [smem:[%s8321_s0 + %s6932_s15]]   ;;  %s6936_s15 = smov 39  }
  0x43   :  { %8430 = sst [smem:[#allocation43_spill]] %s7124_s21 }
  0x44   :  { %8432 = sst [smem:[#allocation45_spill]] %s7134_s29 }
  0x45   :  { %s7144_s21 = sld [smem:[%s8321_s0 + %s6931_s7]]   ;;  %s6935_s7 = smov 38  }
  0x46   :  { %8433 = sst [smem:[#allocation46_spill]] %s7139_s8 }
  0x47   :  { %s7154_s29 = sld [smem:[%s8321_s0 + %s6933_s22]]   ;;  %s6937_s22 = smov 40  }
  0x48   :  { %8435 = sst [smem:[#allocation48_spill]] %s7149_s20 }
  0x49   :  { %s7159_s8 = sld [smem:[%s8321_s0 + %s6934_s28]]   ;;  %s6938_s28 = smov 41  }
  0x4a   :  { %s7169_s20 = sld [smem:[%s8321_s0 + %s6936_s15]]   ;;  %s6940_s15 = smov 43  }
  0x4b   :  { %8434 = sst [smem:[#allocation47_spill]] %s7144_s21 }
  0x4c   :  { %s7164_s21 = sld [smem:[%s8321_s0 + %s6935_s7]]   ;;  %s6939_s7 = smov 42  }
  0x4d   :  { %8436 = sst [smem:[#allocation49_spill]] %s7154_s29 }
  0x4e   :  { %s7174_s29 = sld [smem:[%s8321_s0 + %s6937_s22]]   ;;  %s6941_s22 = smov 44  }
  0x4f   :  { %8437 = sst [smem:[#allocation50_spill]] %s7159_s8 }
  0x50   :  { %8439 = sst [smem:[#allocation52_spill]] %s7169_s20 }
  0x51   :  { %s7179_s8 = sld [smem:[%s8321_s0 + %s6938_s28]]   ;;  %s6942_s28 = smov 45  }
  0x52   :  { %8438 = sst [smem:[#allocation51_spill]] %s7164_s21 }
  0x53   :  { %s7184_s21 = sld [smem:[%s8321_s0 + %s6939_s7]]   ;;  %s6943_s7 = smov 46  }
  0x54   :  { %8440 = sst [smem:[#allocation53_spill]] %s7174_s29 }
  0x55   :  { %s7189_s20 = sld [smem:[%s8321_s0 + %s6940_s15]]   ;;  %s6944_s15 = smov 47  }
  0x56   :  { %s7194_s29 = sld [smem:[%s8321_s0 + %s6941_s22]]   ;;  %s6945_s22 = smov 48  }
  0x57   :  { %8441 = sst [smem:[#allocation54_spill]] %s7179_s8 }
  0x58   :  { %s7199_s8 = sld [smem:[%s8321_s0 + %s6942_s28]]   ;;  %s6946_s28 = smov 49  }
  0x59   :  { %8442 = sst [smem:[#allocation55_spill]] %s7184_s21 }
  0x5a   :  { %s7204_s21 = sld [smem:[%s8321_s0 + %s6943_s7]]  }
  0x5b   :  { %8443 = sst [smem:[#allocation56_spill]] %s7189_s20 }
  0x5c   :  { %8444 = sst [smem:[#allocation57_spill]] %s7194_s29 }
  0x5d   :  { %s7209_s20 = sld [smem:[%s8321_s0 + %s6944_s15]]  }
  0x5e   :  { %8445 = sst [smem:[#allocation58_spill]] %s7199_s8 }
  0x5f   :  { %s7214_s29 = sld [smem:[%s8321_s0 + %s6945_s22]]  }
  0x60   :  { %8446 = sst [smem:[#allocation59_spill]] %s7204_s21 }
  0x61   :  { %s7219_s4 = sld [smem:[%s8321_s0 + %s6946_s28]]  }
  0x63   :  { %8447 = sst [smem:[#allocation60_spill]] %s7209_s20 }
  0x65   :  { %8448 = sst [smem:[#allocation61_spill]] %s7214_s29 }
  0x67   :  { %8449 = sst [smem:[#allocation62_spill]] %s7219_s4 }
  0x68   :  { %104 = vsyncpa [#allocation3], 0 }
  0x69   :  { %105 = vsyncpa [#allocation5], 0 }
  0x6a   :  { %106 = vsyncpa [#allocation8], 0  ;;  %s7221_s7 = smov 0  }
  0x6b LB: > { %s8450_s30 = sld [smem:[#allocation25_spill]]  ;;  %s7230_s0 = sadd.s32 4294967295, %s6896_s7   ;;  %s6896_s7 = sphi %s7221_s7, %s112_s7  }
  0x6c   : > { %s8451_s29 = sld [smem:[#allocation61_spill]]  ;;  %p5957_p0 = scmp.ge.s32.totalorder %s6896_s7, 1 }
  0x6d   : > { %s8452_s27 = sld [smem:[#allocation36_spill]]  ;;  %p1197_p1 = scmp.lt.s32.totalorder %s6896_s7, 3 }
  0x6e   : > { %s8453_s24 = sld [smem:[#allocation24_spill]]  ;;  %p6393_p2 = scmp.eq.s32.totalorder %s7230_s0, 0 }
  0x6f   : > { %s8454_s21 = sld [smem:[#allocation59_spill]]  ;;  %p7235_p3 = pnand %p5957_p0, %p1197_p1 }
  0x70   : > { %s8455_s19 = sld [smem:[#allocation23_spill]]  ;;  %s6947_s15 = smov [#allocation4]  }
  0x71   : > { %s8456_s12 = sld [smem:[#allocation27_spill]]  ;;  %s1277_s16 = sshll.u32 %s6947_s15, 4  ;;  %s1278_s16 = int_to_ptr.vmem [resolvable:$true] %s1277_s16 }
  0x72   : > { %s8457_s17 = sld [smem:[#allocation37_spill]]  ;;  %p6377_p4 = pneg %p7235_p3 }
  0x73   : > { %s8458_s14 = sld [smem:[#allocation22_spill]]  ;;  %s1263_s22 = sshll.u32 %s8452_s27, 4  ;;  %s7254_s22 = int_to_ptr.hbm [resolvable:$true] %s1263_s22 }
  0x74   : > { %s8459_s6 = sld [smem:[#allocation26_spill]]  ;;  %p7247_p5 = pnand %p6393_p2, %p6377_p4 }
  0x75   : > { %s8460_s8 = sld [smem:[#allocation58_spill]]  ;;  %s1359_s18 = sshll.u32 %s8454_s21, 4  ;;  %s7242_s18 = int_to_ptr.hbm [resolvable:$true] %s1359_s18 }
  0x76   : > { %8461 = sst [smem:[#allocation63_spill]] %s6896_s7  ;;  %s6948_s26 = smov [#allocation7]  }
  0x77   : > { %s7251_s28 = sshll.u32 %s6948_s26, 4  ;;  %p7259_p7 = pneg %p7247_p5  ;;  %s1362_s28 = int_to_ptr.vmem [resolvable:$true] %s7251_s28 }
  0x78   : > { %s1275_s10 = sshll.u32 %s8457_s17, 4  ;;  %s6735_s7 = scalar_lea.hbm %s8457_s17, 1  ;;  %s7227_s10 = int_to_ptr.hbm [resolvable:$true] %s1275_s10 }
  0x79   : > { %s6728_s1 = sshra.s32 %s7227_s10, 4  ;;  %s6729_s1 = int_to_ptr.hbm [resolvable:$true] %s6728_s1 }
  0x7a   : > { %s6730_s2 = scalar_lea.hbm %s6729_s1, 1  ;;  %p6736_p10 = scmp.lt.s32.totalorder %s6729_s1, %s8457_s17 }
  0x7b   : > { %p6731_p6 = scmp.ne.s32.totalorder %s6729_s1, %s6730_s2  ;;  %p6737_p11 = scmp.lt.s32.totalorder %s6735_s7, %s6730_s2 }
  0x7d   : > { %p6733_p8 = pnand %p7259_p7, %p6731_p6  ;;  %p6738_p12 = por %p6737_p11, %p6736_p10 }
  0x7f   : > { %p6734_p9 = pneg %p6733_p8 }
  0x81   : > { %p6739_p13 = pnand %p6738_p12, %p6734_p9 }
  0x83   : > { %6742 = shalt.err (!%p6739_p13)
}
  0x84   : > { %6383 = dma.hbm_to_vmem [thread:$0]  (!%p7247_p5), %s7227_s10, 16, %s1278_s16, [#allocation5]  }
  0x85   : > { %s6758_s26 = sshra.s32 %s7242_s18, 4  ;;  %s6765_s1 = scalar_lea.hbm %s8454_s21, 1  ;;  %s6759_s26 = int_to_ptr.hbm [resolvable:$true] %s6758_s26 }
  0x86   : > { %s6760_s4 = scalar_lea.hbm %s6759_s26, 1  ;;  %p6766_p6 = scmp.lt.s32.totalorder %s6759_s26, %s8454_s21 }
  0x87   : > { %p6761_p0 = scmp.ne.s32.totalorder %s6759_s26, %s6760_s4  ;;  %p6767_p8 = scmp.lt.s32.totalorder %s6765_s1, %s6760_s4 }
  0x89   : > { %p6763_p1 = pnand %p6761_p0, %p7259_p7  ;;  %p6768_p9 = por %p6767_p8, %p6766_p6 }
  0x8b   : > { %p6764_p4 = pneg %p6763_p1 }
  0x8d   : > { %p6769_p10 = pnand %p6768_p9, %p6764_p4 }
  0x8f   : > { %6772 = shalt.err (!%p6769_p10)
}
  0x90   : > { %6389 = dma.hbm_to_vmem [thread:$0]  (!%p7247_p5), %s7242_s18, 16, %s1362_s28, [#allocation8]  }
  0x91   : > { %s6949_s7 = smov [#allocation2]   ;;  %s1347_s16 = sshll.u32 %s8460_s8, 4  ;;  %s7279_s16 = int_to_ptr.hbm [resolvable:$true] %s1347_s16 }
  0x92   : > { %s1265_s10 = sshll.u32 %s6949_s7, 4  ;;  %s6788_s2 = sshra.s32 %s7254_s22, 4  ;;  %s1266_s10 = int_to_ptr.vmem [resolvable:$true] %s1265_s10  ;;  %s6789_s2 = int_to_ptr.hbm [resolvable:$true] %s6788_s2 }
  0x93   : > { %s6790_s4 = scalar_lea.hbm %s6789_s2, 1  ;;  %s6795_s26 = scalar_lea.hbm %s8452_s27, 1 }
  0x94   : > { %p6791_p11 = scmp.ne.s32.totalorder %s6789_s2, %s6790_s4  ;;  %p6796_p0 = scmp.lt.s32.totalorder %s6789_s2, %s8452_s27 }
  0x95   : > { %p6797_p1 = scmp.lt.s32.totalorder %s6795_s26, %s6790_s4 }
  0x96   : > { %p6793_p12 = pnand %p6791_p11, %p7259_p7 }
  0x97   : > { %p6798_p4 = por %p6797_p1, %p6796_p0 }
  0x98   : > { %p6794_p13 = pneg %p6793_p12 }
  0x9a   : > { %p6799_p6 = pnand %p6798_p4, %p6794_p13 }
  0x9c   : > { %6802 = shalt.err (!%p6799_p6)
}
  0x9d   : > { %6380 = dma.hbm_to_vmem [thread:$0]  (!%p7247_p5), %s7254_s22, 16, %s1266_s10, [#allocation3]  }
  0x9e   : > { %s1374_s18 = sshll.u32 %s8451_s29, 4  ;;  %s6950_s28 = smov [#allocation6]   ;;  %s7290_s18 = int_to_ptr.hbm [resolvable:$true] %s1374_s18 }
  0x9f   : > { %s1349_s1 = sshll.u32 %s6950_s28, 4  ;;  %s6818_s7 = sshra.s32 %s7279_s16, 4  ;;  %s1350_s1 = int_to_ptr.vmem [resolvable:$true] %s1349_s1  ;;  %s6819_s7 = int_to_ptr.hbm [resolvable:$true] %s6818_s7 }
  0xa0   : > { %s6820_s2 = scalar_lea.hbm %s6819_s7, 1  ;;  %s6825_s4 = scalar_lea.hbm %s8460_s8, 1 }
  0xa1   : > { %p6821_p8 = scmp.ne.s32.totalorder %s6819_s7, %s6820_s2  ;;  %p6826_p11 = scmp.lt.s32.totalorder %s6819_s7, %s8460_s8 }
  0xa2   : > { %p6827_p12 = scmp.lt.s32.totalorder %s6825_s4, %s6820_s2 }
  0xa3   : > { %p6823_p9 = pnand %p6821_p8, %p7259_p7 }
  0xa4   : > { %p6828_p13 = por %p6827_p12, %p6826_p11 }
  0xa5   : > { %p6824_p10 = pneg %p6823_p9 }
  0xa7   : > { %p6829_p0 = pnand %p6828_p13, %p6824_p10 }
  0xa9   : > { %6832 = shalt.err (!%p6829_p0)
}
  0xaa   : > { %6386 = dma.hbm_to_vmem [thread:$0]  (!%p7247_p5), %s7279_s16, 16, %s1350_s1, [#allocation5]  }
  0xab   : > { %s6951_s22 = smov [#allocation9]   ;;  %s6848_s26 = sshra.s32 %s7290_s18, 4  ;;  %s6849_s26 = int_to_ptr.hbm [resolvable:$true] %s6848_s26 }
  0xac   : > { %s1376_s10 = sshll.u32 %s6951_s22, 4  ;;  %s6850_s28 = scalar_lea.hbm %s6849_s26, 1  ;;  %s1377_s10 = int_to_ptr.vmem [resolvable:$true] %s1376_s10 }
  0xad   : > { %p6851_p1 = scmp.ne.s32.totalorder %s6849_s26, %s6850_s28  ;;  %s6855_s7 = scalar_lea.hbm %s8451_s29, 1 }
  0xae   : > { %p6856_p8 = scmp.lt.s32.totalorder %s6849_s26, %s8451_s29  ;;  %p6857_p9 = scmp.lt.s32.totalorder %s6855_s7, %s6850_s28 }
  0xaf   : > { %p6853_p4 = pnand %p6851_p1, %p7259_p7 }
  0xb0   : > { %p6858_p10 = por %p6857_p9, %p6856_p8 }
  0xb1   : > { %p6854_p6 = pneg %p6853_p4 }
  0xb3   : > { %p6859_p11 = pnand %p6858_p10, %p6854_p6 }
  0xb5   : > { %6862 = shalt.err (!%p6859_p11)
}
  0xb6   : > { %6392 = dma.hbm_to_vmem [thread:$0]  (!%p7247_p5), %s7290_s18, 16, %s1377_s10, [#allocation8]  }
  0xb7   : > { %1422 = sbr.rel (%p7235_p3) target bundleno = 12381 (0x305d), region = 216 }
  0xbc   : > { %6883 = dma.done.wait (%p6393_p2), [#allocation3], 16  }
  0xbd   : > { %6885 = vsyncadd (%p6393_p2), [#allocation3], 4294967280 }
  0xbe   : > { %6887 = dma.done.wait (%p6393_p2), [#allocation5], 32  }
  0xbf   : > { %6889 = vsyncadd (%p6393_p2), [#allocation5], 4294967264 }
  0xc0   : > { %6891 = dma.done.wait (%p6393_p2), [#allocation8], 32  }
  0xc1   : > { %6893 = vsyncadd (%p6393_p2), [#allocation8], 4294967264  ;;  %s8465_s5 = sld [smem:[#allocation13_spill]]  ;;  %p1572_p3 = scmp.lt.s32.totalorder %s7230_s0, 1  ;;  %v6952_v0 = vmov 0   ;;  %v1601_v2 = vld [vmem:[%s8458_s14 + $0x20] sm:$0xff]  ;;  %v1603_v7 = vlaneseq }
  0xc2   : > { %6479 = vset.pattern.permute.xlu0 %v6952_v0  ;;  %6480 = vset.pattern.permute.xlu1 %v6952_v0  ;;  %v1600_v3 = vld [vmem:[%s8458_s14 + $0x18] sm:$0xff]  ;;  %v1599_v4 = vld [vmem:[%s8458_s14 + $0x10] sm:$0xff]  ;;  %v1598_v5 = vld [vmem:[%s8458_s14 + $0x8] sm:$0xff]  ;;  %s8467_s3 = sld [smem:[#allocation20_spill]]  ;;  %vm1611_vm0 = vcmask 326656   ;;  %v6953_v10 = vmov 0.0  }
  0xc3   : > { %s8541_s0 = smov (!%p1572_p3, %s7230_s0), 1  ;;  %1626 = vmatpush.msra.mxu0 %v1601_v2  ;;  %v1597_v6 = vld [vmem:[%s8458_s14] sm:$0xff]  ;;  %v7333_v8 = vand.u32 127, %v1603_v7  ;;  %v6316_v12 = vld [vmem:[%s8453_s24 + $0x8] sm:$0xff]  ;;  %vm1732_vm2 = vcmask 261120   ;;  %s8366_s15 = smov 64  }
  0xc4   : > { %8466 = sst [smem:[#allocation64_spill]] %s8541_s0  ;;  %s5970_s11 = sshll.u32 %s8541_s0, 3  ;;  %1742 = vmatpush.bf16.msra.mxu2 %v6316_v12  ;;  %v6315_v13 = vld [vmem:[%s8453_s24] sm:$0xff]  ;;  %vm1809_vm3 = vcmask 1043456   ;;  %vm1757_vm4 = vcmask 64512  }
  0xc5   : > { %1627 = vmatpush.msra.mxu0 %v1600_v3  ;;  %v6481_v19 = vld [vmem:[%s8450_s30] ss:$0 sm:$0xff]  ;;  %s8374_s16 = smov 96   ;;  %s8370_s18 = smov 88  }
  0xc6   : > { %s8360_s1 = smov 120   ;;  %s8362_s2 = smov 72   ;;  %v1749_v51 = vld [vmem:[%s8459_s6] sm:$0xf] }
  0xc7   : > { %s1575_s23 = scalar_lea.vmem %s8465_s5, %s5970_s11  ;;  %1628 = vmatpush.msra.mxu0 %v1599_v4  ;;  %s8368_s4 = smov 112   ;;  %v1922_v52 = vsel %vm1809_vm3, %v1749_v51, 0  ;;  %v1641_v51 = vld [vmem:[%s8455_s19 + $0x10] sm:$0xff] }
  0xc8   : > { %v1596_v1 = vld [vmem:[%s1575_s23] sm:$0xff]  ;;  %1743 = vmatpush.bf16.msra.mxu2 %v6315_v13  ;;  %s8372_s22 = smov 104   ;;  %s8468_s13 = sld [smem:[#allocation15_spill]] }
  0xc9   : > { %1606 = vperm.xlu0 %6479, %v1596_v1   ;;  %1629 = vmatpush.msra.mxu0 %v1598_v5  ;;  %v1602_v14 = vld [vmem:[%s8467_s3] sm:$0xff]  ;;  %s8469_s25 = sld [smem:[#allocation18_spill]]  ;;  %s8364_s26 = smov 80  }
  0xca   : > { %s8358_s28 = smov 40   ;;  %s8470_s9 = sld [smem:[#allocation14_spill]] }
  0xcb   : > { %1630 = vmatpush.msra.mxu0 %v1597_v6  ;;  %s8354_s7 = smov 48   ;;  %s8353_s11 = sshll.u32 %s8541_s0, 4 }
  0xcc   : > { %s8486_s3 = smov 56   ;;  %s8487_s5 = sld [smem:[#allocation38_spill]] }
  0xcd   : > { %s8488_s8 = smov 48   ;;  %s8493_s14 = sld [smem:[#allocation19_spill]] }
  0xce   : > { %s1583_s10 = scalar_lea.vmem %s8468_s13, %s8541_s0  ;;  %s8490_s13 = sld [smem:[#allocation39_spill]] }
  0xcf   : > { %v1694_v31 = vld [vmem:[%s1583_s10] sm:$0x1]  ;;  %s8356_s10 = smov 56   ;;  %s8504_s21 = sld [smem:[#allocation45_spill]] }
  0xd0   : > { %v1695_v32 = vmul.f32 -1e+09, %v1694_v31  ;;  %v1693_v34 = vld [vmem:[%s8469_s25] sm:$0xff]  ;;  %s1580_s23 = scalar_lea.vmem %s8470_s9, %s8353_s11  ;;  %s8472_s11 = sld [smem:[#allocation32_spill]] }
  0xd1   : > { %s8489_s9 = sld [smem:[#allocation21_spill]] }
  0xd2   : > { %v1697_v33 = vperm.slane %v1695_v32, 0  ;;  %s8514_s25 = sld [smem:[#allocation52_spill]] }
  0xd3   : > { %s8516_s27 = sld [smem:[#allocation51_spill]] }
  0xd4   : > { %v7371_v35 = vadd.f32 %v1697_v33, %v1693_v34  ;;  %s8518_s29 = sld [smem:[#allocation53_spill]] }
  0xd5   : > { %s8521_s20 = sld [smem:[#allocation57_spill]] }
 0x13b   : > { %v1607_v9 = vpop.permute.xlu0 %1606 }
 0x13c   : > { %vm1608_vm1 = vcmp.eq.s32.totalorder %v1607_v9, %v7333_v8 }
 0x13d   : > { %v5975_v11 = vsel %vm1608_vm1, 1.0, %v6953_v10 }
 0x13e   : > { %5976 = vmatmul.msk.f32.vlgmr.msra.gmra.mxu0 %vm1611_vm0, %v5975_v11 }
 0x1bb   : > { %v1632_v15 = vpop.f32.mrf.mxu0 }
 0x1bc   : > { %v1635_v16 = vmul.f32 5.656854, %v1632_v15 }
 0x1be   : > { %v7340_v17 = vadd.f32 %v1635_v16, %v1602_v14 }
 0x1c0   : > { %v1715_v18 = vpack.c.bf16 %v7340_v17, %v7340_v17 }
 0x1c2   : > { %5989 = vmatmul.msk.bf16.vlgmr.msra.gmra.mxu2 %vm1732_vm2, %v1715_v18 }
 0x245   : > { %v1745_v20 = vpop.f32.mrf.mxu2 }
 0x246   : > { %v1746_v21 = vadd.f32 %v6481_v19, %v1745_v20 }
 0x248   : > { %v7346_v22 = vpack.c.bf16 %v1746_v21, %v1746_v21 }
 0x24a   : > { %1804 = vrot.lane.b32.xlu2 %v7346_v22, %s8366_s15  ;;  %1755 = vrot.lane.b32.xlu0 %v7346_v22, %s8374_s16  ;;  %s8480_s15 = sld [smem:[#allocation35_spill]] }
 0x24d   : > { %v1747_v23 = vpop.f32.mrf.mxu2 }
 0x252   : > { %1829 = vrot.lane.b32.xlu2 %v7346_v22, %s8370_s18  ;;  %1827 = vrot.lane.b32.xlu0 %v7346_v22, %s8360_s1  ;;  %s8476_s1 = sld [smem:[#allocation31_spill]] }
 0x25a   : > { %2031 = vrot.lane.b32.xlu2 %v7346_v22, %s8362_s2  ;;  %1937 = vrot.lane.b32.xlu0 %v7346_v22, %s8368_s4  ;;  %s8477_s2 = sld [smem:[#allocation33_spill]] }
 0x262   : > { %2029 = vrot.lane.b32.xlu2 %v7346_v22, %s8372_s22 }
 0x2a4   : > { %v1805_v24 = vpop.permute.xlu2 %1804 }
 0x2a5   : > { %v1811_v25 = vsel %vm1809_vm3, %v1805_v24, 0 }
 0x2a6   : > { %1820 = vmatpush.bf16.msrb.mxu0 %v1811_v25 }
 0x2aa   : > { %1931 = vmatpush.bf16.msra.mxu0 %v1922_v52  ;;  %v1640_v52 = vld [vmem:[%s8455_s19 + $0x8] sm:$0xff] }
 0x2ac   : > { %v1830_v26 = vpop.permute.xlu2 %1829 }
 0x2ad   : > { %v1835_v27 = vsel %vm1757_vm4, %v1830_v26, 0 }
 0x2ae   : > { %1844 = vmatpush.bf16.xpose.msrb.mxu2 %v1835_v27 }
 0x2b4   : > { %v2032_v1 = vpop.permute.xlu2 %2031 }
 0x2b5   : > { %v2037_v3 = vsel %vm1757_vm4, %v2032_v1, 0 }
 0x2bc   : > { %v1756_v28 = vpop.permute.xlu0 %1755  ;;  %v2030_v13 = vpop.permute.xlu2 %2029 }
 0x2bd   : > { %v1762_v29 = vsel %vm1757_vm4, %v1756_v28, 0 }
 0x2be   : > { %1771 = vmatpush.bf16.xpose.msra.mxu3 %v1762_v29 }
 0x2c4   : > { %v1828_v30 = vpop.permute.xlu0 %1827 }
 0x2c5   : > { %5990 = vmatmul.msk.bf16.vlgmr.msra.gmra.mxu3 %vm1757_vm4, %v7346_v22  ;;  %5992 = vmatmul.msk.bf16.vlgmr.msrb.gmra.mxu2 %vm1757_vm4, %v1828_v30 }
 0x2cc   : > { %v1938_v6 = vpop.permute.xlu0 %1937 }
 0x348   : > { %v1773_v36 = vpop.f32.mrf.mxu3  ;;  %v1846_v37 = vpop.f32.mrf.mxu2 }
 0x349   : > { %v1777_v38 = vmul.f32 0.35355338, %v1773_v36  ;;  %v1850_v39 = vmul.f32 0.35355338, %v1846_v37 }
 0x34b   : > { %v1778_v40 = vadd.f32 %v1777_v38, %v7371_v35  ;;  %v7375_v41 = vadd.f32 %v1850_v39, %v7371_v35 }
 0x34d   : > { %v1779_v42 = vsel %vm1757_vm4, %v1778_v40, -inf  ;;  %v1852_v43 = vsel %vm1757_vm4, %v7375_v41, -inf }
 0x34e   : > { %1780 = vmax.xlane.f32.xlu1 %v1779_v42  ;;  %1853 = vmax.xlane.f32.xlu0 %v1852_v43  ;;  %v1638_v43 = vld [vmem:[%s1580_s23 + $0x8] sm:$0x3] }
 0x350   : > { %v1775_v44 = vpop.f32.mrf.mxu3  ;;  %v1848_v45 = vpop.f32.mrf.mxu2 }
 0x3c1   : > { %v1781_v46 = vpop.xlane.xlu1 %1780  ;;  %v1854_v21 = vpop.xlane.xlu0 %1853 }
 0x3c2   : > { %v1782_v47 = vsub.f32 %v1778_v40, %v1781_v46  ;;  %v1855_v23 = vsub.f32 %v7375_v41, %v1854_v21  ;;  %v1637_v46 = vld [vmem:[%s1580_s23] sm:$0xff]  ;;  %s8471_s23 = sld [smem:[#allocation30_spill]] }
 0x3c4   : > { %v1783_v48 = vmul.f32 1.442695, %v1782_v47  ;;  %v1856_v24 = vmul.f32 1.442695, %v1855_v23 }
 0x3c6   : > { %6528 = vpow2.f32 %v1783_v48  ;;  %v1644_v48 = vld [vmem:[%s8455_s19 + $0x28] sm:$0xff] }
 0x3c7   : > { %1676 = vmatpush.msra.mxu1 %v1644_v48 }
 0x3cc   : > { %v6529_v49 = vpop.eup %6528 }
 0x3cd   : > { %v1785_v50 = vsel %vm1757_vm4, %v6529_v49, 0.0 }
 0x3ce   : > { %1786 = vadd.xlane.f32.xlu1 %v1785_v50  ;;  %v1642_v50 = vld [vmem:[%s8455_s19 + $0x18] sm:$0xff] }
 0x3e7   : > { %1939 = vrot.lane.b32.xlu1 %v7346_v22, %s8364_s26 }
 0x441   : > { %v1787_v53 = vpop.xlane.xlu1 %1786 }
 0x442   : > { %6530 = vrcp.f32 %v1787_v53  ;;  %v1799_v57 = vand.u32 2147483648, %v1787_v53  ;;  %v1797_v59 = vand.u32 2147483647, %v1787_v53  ;;  %vm1793_vm6 = vweird.f32 %v1787_v53 }
 0x443   : > { %6532 = vpow2.f32 %v1856_v24 }
 0x444   : > { %v1800_v61 = vor.u32 1.1754944e-38, %v1799_v57  ;;  %vm1798_vm8 = vcmp.eq.f32.partialorder %v1797_v59, 8.507059e+37 }
 0x448   : > { %v6531_v54 = vpop.eup %6530 }
 0x449   : > { %v1789_v55 = vmul.f32 %v6531_v54, %v1787_v53  ;;  %vm1794_vm5 = vweird.f32 %v6531_v54  ;;  %v7400_v33 = vpop.eup %6532 }
 0x44a   : > { %vm1795_vm7 = vmor %vm1793_vm6, %vm1794_vm5  ;;  %v1858_v34 = vsel %vm1757_vm4, %v7400_v33, 0.0 }
 0x44b   : > { %v1790_v56 = vsub.f32 1.0, %v1789_v55  ;;  %v1639_v55 = vld [vmem:[%s8455_s19] sm:$0xff] }
 0x44d   : > { %v1791_v58 = vmul.f32 %v6531_v54, %v1790_v56 }
 0x44f   : > { %v1792_v60 = vadd.f32 %v6531_v54, %v1791_v58 }
 0x451   : > { %v1796_v62 = vsel %vm1795_vm7, %v6531_v54, %v1792_v60  ;;  %vm1659_vm7 = vcmask 392192  }
 0x452   : > { %v1801_v63 = vsel %vm1798_vm8, %v1800_v61, %v1796_v62 }
 0x453   : > { %v1802_v0 = vmul.f32 %v6529_v49, %v1801_v63  ;;  %v1643_v49 = vld [vmem:[%s8455_s19 + $0x20] sm:$0xff]  ;;  %s8503_s19 = sld [smem:[#allocation47_spill]] }
 0x454   : > { %1677 = vmatpush.msra.mxu1 %v1643_v49 }
 0x455   : > { %v1803_v2 = vpack.c.bf16 %v1802_v0, %v1802_v0 }
 0x456   : > { %1678 = vmatpush.msra.mxu1 %v1642_v50 }
 0x457   : > { %5991 = vmatmul.msk.bf16.vlgmr.msrb.gmra.mxu0 %vm1757_vm4, %v1803_v2 }
 0x458   : > { %2046 = vmatpush.bf16.xpose.msrb.mxu0 %v2037_v3  ;;  %1679 = vmatpush.msra.mxu1 %v1641_v51 }
 0x459   : > { %v1940_v4 = vpop.permute.xlu1 %1939 }
 0x45a   : > { %v1945_v5 = vsel %vm1757_vm4, %v1940_v4, 0  ;;  %1680 = vmatpush.msra.mxu1 %v1640_v52 }
 0x45b   : > { %1954 = vmatpush.bf16.xpose.msra.mxu2 %v1945_v5 }
 0x45c   : > { %1681 = vmatpush.msra.mxu1 %v1639_v55 }
 0x462   : > { %5996 = vmatmul.msk.bf16.vlgmr.msra.gmra.mxu2 %vm1757_vm4, %v1938_v6 }
 0x4d4   : > { %v1822_v7 = vpop.f32.mrf.mxu0 }
 0x4d5   : > { %v1826_v9 = vpack.c.bf16 %v1822_v7, %v1822_v7 }
 0x4d7   : > { %5995 = vmatmul.msk.bf16.vlgmr.msra.gmra.mxu0 %vm1757_vm4, %v1826_v9 }
 0x4dc   : > { %v1824_v11 = vpop.f32.mrf.mxu0 }
 0x4e5   : > { %v1956_v12 = vpop.f32.mrf.mxu2 }
 0x4e6   : > { %v1960_v14 = vmul.f32 0.35355338, %v1956_v12 }
 0x4e7   : > { %5999 = vmatmul.msk.bf16.vlgmr.msrb.gmra.mxu0 %vm1757_vm4, %v2030_v13 }
 0x4e8   : > { %v1961_v15 = vadd.f32 %v1960_v14, %v7371_v35 }
 0x4ea   : > { %v1962_v16 = vsel %vm1757_vm4, %v1961_v15, -inf }
 0x4eb   : > { %1963 = vmax.xlane.f32.xlu1 %v1962_v16 }
 0x4ed   : > { %v1958_v18 = vpop.f32.mrf.mxu2 }
 0x504   : > { %2079 = vrot.lane.b32.xlu1 %v7346_v22, %s8358_s28  ;;  %s8475_s28 = sld [smem:[#allocation29_spill]] }
 0x50c   : > { %1651 = vperm.xlu1 %6480, %v1638_v43  }
 0x554   : > { %v7395_v19 = vpop.f32.mrf.mxu0 }
 0x55c   : > { %v1935_v20 = vpop.f32.mrf.mxu0 }
 0x55e   : > { %v1964_v26 = vpop.xlane.xlu1 %1963 }
 0x55f   : > { %v1965_v29 = vsub.f32 %v1961_v15, %v1964_v26 }
 0x561   : > { %v1966_v31 = vmul.f32 1.442695, %v1965_v29 }
 0x563   : > { %6534 = vpow2.f32 %v1966_v31 }
 0x564   : > { %v2048_v25 = vpop.f32.mrf.mxu0 }
 0x565   : > { %v2052_v27 = vmul.f32 0.35355338, %v2048_v25 }
 0x567   : > { %v2053_v28 = vadd.f32 %v2052_v27, %v7371_v35 }
 0x569   : > { %v2054_v30 = vsel %vm1757_vm4, %v2053_v28, -inf  ;;  %v7404_v36 = vpop.eup %6534 }
 0x56a   : > { %2055 = vmax.xlane.f32.xlu2 %v2054_v30  ;;  %v1968_v39 = vsel %vm1757_vm4, %v7404_v36, 0.0 }
 0x56c   : > { %v2050_v32 = vpop.f32.mrf.mxu0 }
 0x572   : > { %1859 = vadd.xlane.f32.xlu2 %v1858_v34 }
 0x576   : > { %v2080_v37 = vpop.permute.xlu1 %2079 }
 0x577   : > { %v2085_v38 = vsel %vm1809_vm3, %v2080_v37, 0 }
 0x578   : > { %2094 = vmatpush.bf16.msrb.mxu2 %v2085_v38 }
 0x57a   : > { %1969 = vadd.xlane.f32.xlu2 %v1968_v39 }
 0x57e   : > { %v1652_v37 = vpop.permute.xlu1 %1651 }
 0x592   : > { %1987 = vrot.lane.b32.xlu2 %v7346_v22, %s8354_s7  ;;  %s8473_s7 = sld [smem:[#allocation28_spill]] }
 0x5dd   : > { %v2056_v40 = vpop.xlane.xlu2 %2055 }
 0x5de   : > { %v2057_v41 = vsub.f32 %v2053_v28, %v2056_v40 }
 0x5e0   : > { %v2058_v42 = vmul.f32 1.442695, %v2057_v41 }
 0x5e2   : > { %6536 = vpow2.f32 %v2058_v42  ;;  %v1752_v42 = vld [vmem:[%s8459_s6 + $0xc] sm:$0xf] }
 0x5e3   : > { %v2105_v43 = vsel %vm1809_vm3, %v1752_v42, 0  ;;  %v6319_v42 = vld [vmem:[%s8472_s11] sm:$0xff] }
 0x5e5   : > { %v1860_v47 = vpop.xlane.xlu2 %1859 }
 0x5e6   : > { %6538 = vrcp.f32 %v1860_v47  ;;  %v1872_v63 = vand.u32 2147483648, %v1860_v47  ;;  %vm1866_vm10 = vweird.f32 %v1860_v47  ;;  %v1870_v1 = vand.u32 2147483647, %v1860_v47 }
 0x5e8   : > { %v6537_v44 = vpop.eup %6536  ;;  %v1873_v7 = vor.u32 1.1754944e-38, %v1872_v63  ;;  %vm1871_vm14 = vcmp.eq.f32.partialorder %v1870_v1, 8.507059e+37 }
 0x5e9   : > { %v2060_v45 = vsel %vm1757_vm4, %v6537_v44, 0.0 }
 0x5ea   : > { %2061 = vadd.xlane.f32.xlu0 %v2060_v45 }
 0x5ec   : > { %v6539_v53 = vpop.eup %6538 }
 0x5ed   : > { %v1862_v54 = vmul.f32 %v6539_v53, %v1860_v47  ;;  %vm1867_vm9 = vweird.f32 %v6539_v53 }
 0x5ee   : > { %vm1868_vm11 = vmor %vm1866_vm10, %vm1867_vm9  ;;  %vm1654_vm10 = vcmp.eq.s32.totalorder %v1652_v37, %v7333_v8  ;;  %v6484_v37 = vld [vmem:[%s8475_s28] ss:$0 sm:$0xff] }
 0x5ef   : > { %v1863_v56 = vsub.f32 1.0, %v1862_v54  ;;  %v5978_v40 = vsel %vm1654_vm10, 1.0, %v6953_v10 }
 0x5f1   : > { %v1864_v58 = vmul.f32 %v6539_v53, %v1863_v56 }
 0x5f3   : > { %v1865_v62 = vadd.f32 %v6539_v53, %v1864_v58 }
 0x5f5   : > { %v1869_v6 = vsel %vm1868_vm11, %v6539_v53, %v1865_v62  ;;  %v6482_v62 = vld [vmem:[%s8456_s12] ss:$0 sm:$0xff] }
 0x5f6   : > { %v1874_v12 = vsel %vm1871_vm14, %v1873_v7, %v1869_v6 }
 0x5f7   : > { %v1875_v20 = vmul.f32 %v7400_v33, %v1874_v12 }
 0x5f9   : > { %v1876_v27 = vpack.c.bf16 %v1875_v20, %v1875_v20  ;;  %v6322_v20 = vld [vmem:[%s8472_s11 + $0x18] sm:$0xff] }
 0x5fa   : > { %2249 = vmatpush.bf16.msra.mxu0 %v6322_v20 }
 0x5fe   : > { %1877 = vrot.lane.b32.xlu0 %v7346_v22, %s8356_s10  ;;  %v1970_v22 = vpop.xlane.xlu2 %1969  ;;  %s8474_s10 = smov %s8473_s7 }
 0x5ff   : > { %v1982_v29 = vand.u32 2147483648, %v1970_v22  ;;  %vm1976_vm5 = vweird.f32 %v1970_v22  ;;  %v1980_v30 = vand.u32 2147483647, %v1970_v22 }
 0x601   : > { %v1983_v33 = vor.u32 1.1754944e-38, %v1982_v29  ;;  %vm1981_vm9 = vcmp.eq.f32.partialorder %v1980_v30, 8.507059e+37 }
 0x606   : > { %1648 = vperm.xlu0 %6479, %v1637_v46   ;;  %v1988_v16 = vpop.permute.xlu2 %1987  ;;  %v1751_v46 = vld [vmem:[%s8459_s6 + $0x8] sm:$0xf] }
 0x607   : > { %v1993_v26 = vsel %vm1809_vm3, %v1988_v16, 0  ;;  %v2013_v47 = vsel %vm1809_vm3, %v1751_v46, 0  ;;  %v6318_v16 = vld [vmem:[%s8471_s23 + $0x8] sm:$0xff] }
 0x65d   : > { %v2062_v57 = vpop.xlane.xlu0 %2061 }
 0x65e   : > { %6540 = vrcp.f32 %v2062_v57  ;;  %v2074_v3 = vand.u32 2147483648, %v2062_v57  ;;  %v2072_v5 = vand.u32 2147483647, %v2062_v57  ;;  %vm2068_vm13 = vweird.f32 %v2062_v57 }
 0x65f   : > { %6542 = vrcp.f32 %v1970_v22 }
 0x660   : > { %v2075_v11 = vor.u32 1.1754944e-38, %v2074_v3  ;;  %vm2073_vm0 = vcmp.eq.f32.partialorder %v2072_v5, 8.507059e+37 }
 0x664   : > { %v6541_v59 = vpop.eup %6540 }
 0x665   : > { %v6543_v60 = vpop.eup %6542  ;;  %v2064_v61 = vmul.f32 %v6541_v59, %v2062_v57  ;;  %vm2069_vm12 = vweird.f32 %v6541_v59 }
 0x666   : > { %v1972_v2 = vmul.f32 %v6543_v60, %v1970_v22  ;;  %vm2070_vm15 = vmor %vm2068_vm13, %vm2069_vm12  ;;  %vm1977_vm1 = vweird.f32 %v6543_v60 }
 0x667   : > { %v2065_v0 = vsub.f32 1.0, %v2064_v61  ;;  %vm1978_vm6 = vmor %vm1976_vm5, %vm1977_vm1 }
 0x668   : > { %v1973_v13 = vsub.f32 1.0, %v1972_v2 }
 0x669   : > { %v2066_v4 = vmul.f32 %v6541_v59, %v2065_v0 }
 0x66a   : > { %v1974_v23 = vmul.f32 %v6543_v60, %v1973_v13 }
 0x66b   : > { %v2067_v9 = vadd.f32 %v6541_v59, %v2066_v4  ;;  %v6965_v4 = vmov 32.0  }
 0x66c   : > { %v1975_v28 = vadd.f32 %v6543_v60, %v1974_v23  ;;  %6544 = vrcp.f32 %v6965_v4 }
 0x66d   : > { %v2071_v14 = vsel %vm2070_vm15, %v6541_v59, %v2067_v9  ;;  %vm2241_vm15 = vcmask 523264  }
 0x66e   : > { %v2076_v15 = vsel %vm2073_vm0, %v2075_v11, %v2071_v14  ;;  %v1979_v32 = vsel %vm1978_vm6, %v6543_v60, %v1975_v28 }
 0x66f   : > { %v2077_v18 = vmul.f32 %v6537_v44, %v2076_v15  ;;  %v1984_v38 = vsel %vm1981_vm9, %v1983_v33, %v1979_v32  ;;  %v1750_v44 = vld [vmem:[%s8459_s6 + $0x4] sm:$0xf]  ;;  %v6483_v32 = vld [vmem:[%s8473_s7] ss:$0 sm:$0xff]  ;;  %s8478_s7 = sld [smem:[#allocation34_spill]] }
 0x670   : > { %v1878_v21 = vpop.permute.xlu0 %1877  ;;  %v1985_v39 = vmul.f32 %v7404_v36, %v1984_v38  ;;  %v1903_v45 = vsel %vm1809_vm3, %v1750_v44, 0 }
 0x671   : > { %v1883_v24 = vsel %vm1809_vm3, %v1878_v21, 0  ;;  %v2078_v25 = vpack.c.bf16 %v2077_v18, %v2077_v18  ;;  %1912 = vmatpush.bf16.msrb.mxu1 %v1903_v45  ;;  %v6317_v18 = vld [vmem:[%s8471_s23] sm:$0xff] }
 0x672   : > { %1892 = vmatpush.bf16.msrb.mxu3 %v1883_v24  ;;  %v1986_v41 = vpack.c.bf16 %v1985_v39, %v1985_v39  ;;  %v6545_v5 = vpop.eup %6544  ;;  %v6321_v24 = vld [vmem:[%s8472_s11 + $0x10] sm:$0xff] }
 0x673   : > { %6000 = vmatmul.msk.bf16.vlgmr.msrb.gmra.mxu2 %vm1757_vm4, %v2078_v25  ;;  %v2133_v6 = vmul.f32 32.0, %v6545_v5  ;;  %vm2137_vm11 = vweird.f32 %v6545_v5  ;;  %2250 = vmatpush.bf16.msra.mxu0 %v6321_v24 }
 0x675   : > { %5993 = vmatmul.msk.bf16.vlgmr.msrb.gmra.mxu3 %vm1757_vm4, %v1876_v27  ;;  %v2134_v7 = vsub.f32 1.0, %v2133_v6  ;;  %s8479_s26 = smov %s8478_s7 }
 0x676   : > { %2002 = vmatpush.bf16.msra.mxu3 %v1993_v26 }
 0x678   : > { %v1649_v31 = vpop.permute.xlu0 %1648 }
 0x679   : > { %vm1653_vm8 = vcmp.eq.s32.totalorder %v1649_v31, %v7333_v8 }
 0x67a   : > { %v5977_v34 = vsel %vm1653_vm8, 1.0, %v6953_v10  ;;  %2114 = vmatpush.bf16.msrb.mxu3 %v2105_v43  ;;  %v6485_v43 = vld [vmem:[%s8476_s1] ss:$0 sm:$0xff] }
 0x67b   : > { %5979 = vmatmul.msk.f32.vlgmr.msra.gmra.mxu1 %vm1659_vm7, %v5977_v34 }
 0x67c   : > { %2022 = vmatpush.bf16.msra.mxu1 %v2013_v47 }
 0x683   : > { %5980 = vmatmul.msk.f32.gmra.mxu1 %vm1659_vm7, %v5978_v40 }
 0x685   : > { %5997 = vmatmul.msk.bf16.vlgmr.msra.gmra.mxu3 %vm1757_vm4, %v1986_v41  ;;  %v6320_v41 = vld [vmem:[%s8472_s11 + $0x8] sm:$0xff] }
 0x686   : > { %2251 = vmatpush.bf16.msra.mxu0 %v6320_v41 }
 0x68a   : > { %2252 = vmatpush.bf16.msra.mxu0 %v6319_v42  ;;  %v6042_v42 = vld [vmem:[%s8459_s6 + $0x10] sm:$0xf] }
 0x6f6   : > { %v2096_v8 = vpop.f32.mrf.mxu2 }
 0x6f7   : > { %v2100_v36 = vpack.c.bf16 %v2096_v8, %v2096_v8 }
 0x6f8   : > { %v1894_v48 = vpop.f32.mrf.mxu3  ;;  %v7444_v54 = vpop.f32.mrf.mxu1 }
 0x6f9   : > { %v1898_v10 = vpack.c.bf16 %v1894_v48, %v1894_v48  ;;  %6001 = vmatmul.msk.bf16.vlgmr.msrb.gmra.mxu3 %vm1757_vm4, %v2100_v36  ;;  %v6486_v36 = vld [vmem:[%s8477_s2] ss:$0 sm:$0xff] }
 0x6fb   : > { %5994 = vmatmul.msk.bf16.vlgmr.msrb.gmra.mxu1 %vm1757_vm4, %v1898_v10 }
 0x6fc   : > { %2196 = vmatpush.bf16.msrb.mxu1 %v6318_v16 }
 0x6fe   : > { %v2098_v49 = vpop.f32.mrf.mxu2 }
 0x700   : > { %v1896_v50 = vpop.f32.mrf.mxu3  ;;  %v7446_v55 = vpop.f32.mrf.mxu1  ;;  %2197 = vmatpush.bf16.msrb.mxu1 %v6317_v18 }
 0x708   : > { %v2004_v51 = vpop.f32.mrf.mxu3 }
 0x709   : > { %v2008_v52 = vpack.c.bf16 %v2004_v51, %v2004_v51 }
 0x70b   : > { %5998 = vmatmul.msk.bf16.vlgmr.msra.gmra.mxu1 %vm1757_vm4, %v2008_v52 }
 0x710   : > { %v2006_v53 = vpop.f32.mrf.mxu3 }
 0x778   : > { %v1914_v22 = vpop.f32.mrf.mxu1 }
 0x779   : > { %v1934_v59 = vadd.f32 %v7395_v19, %v1914_v22  ;;  %v2135_v19 = vmul.f32 %v6545_v5, %v2134_v7 }
 0x77b   : > { %v2136_v9 = vadd.f32 %v6545_v5, %v2135_v19  ;;  %v6488_v19 = vld [vmem:[%s8480_s15] ss:$0 sm:$0xff] }
 0x77c   : > { %v2116_v56 = vpop.f32.mrf.mxu3 }
 0x77d   : > { %v7452_v11 = vsel %vm2137_vm11, %v6545_v5, %v2136_v9  ;;  %v6487_v5 = vld [vmem:[%s8478_s7] ss:$0 sm:$0xff]  ;;  %s8481_s7 = smov 64  }
 0x780   : > { %v1916_v57 = vpop.f32.mrf.mxu1 }
 0x784   : > { %v2118_v58 = vpop.f32.mrf.mxu3 }
 0x785   : > { %v6324_v58 = vld [vmem:[%s8453_s24 + $0x18] sm:$0xff] }
 0x786   : > { %2323 = vmatpush.bf16.msra.mxu2 %v6324_v58 }
 0x788   : > { %v2024_v60 = vpop.f32.mrf.mxu1 }
 0x789   : > { %v2028_v61 = vadd.f32 %v2024_v60, %v1934_v59  ;;  %v6323_v59 = vld [vmem:[%s8453_s24 + $0x10] sm:$0xff] }
 0x78a   : > { %2324 = vmatpush.bf16.msra.mxu2 %v6323_v59 }
 0x78b   : > { %v2120_v63 = vadd.f32 %v2116_v56, %v2028_v61 }
 0x78d   : > { %v2125_v0 = vadd.f32 %v6482_v62, %v2120_v63 }
 0x78f   : > { %v2126_v1 = vadd.f32 %v2125_v0, %v7340_v17 }
 0x790   : > { %v2026_v2 = vpop.f32.mrf.mxu1 }
 0x791   : > { %v2129_v3 = vsel %vm1732_vm2, %v2126_v1, 0.0 }
 0x792   : > { %2130 = vadd.xlane.f32.xlu0 %v2129_v3 }
 0x805   : > { %v2131_v12 = vpop.xlane.xlu0 %2130 }
 0x806   : > { %v2139_v17 = vmul.f32 %v7452_v11, %v2131_v12 }
 0x808   : > { %v2140_v13 = vsub.f32 %v2126_v1, %v2139_v17 }
 0x80a   : > { %v2141_v14 = vmul.f32 %v2140_v13, %v2140_v13 }
 0x80c   : > { %v2142_v15 = vsel %vm1732_vm2, %v2141_v14, 0.0 }
 0x80d   : > { %2143 = vadd.xlane.f32.xlu2 %v2142_v15 }
 0x880   : > { %v2144_v21 = vpop.xlane.xlu2 %2143 }
 0x881   : > { %v2145_v23 = vmul.f32 %v2144_v21, %v7452_v11 }
 0x883   : > { %v2146_v25 = vadd.f32 1e-05, %v2145_v23 }
 0x885   : > { %6546 = vrsqrt.f32 %v2146_v25  ;;  %vm2153_vm13 = vweird.f32 %v2146_v25 }
 0x88b   : > { %v6547_v26 = vpop.eup %6546 }
 0x88c   : > { %v2148_v27 = vmul.f32 %v6547_v26, %v2146_v25  ;;  %vm2154_vm12 = vweird.f32 %v6547_v26 }
 0x88d   : > { %vm2155_vm14 = vmor %vm2153_vm13, %vm2154_vm12 }
 0x88e   : > { %v2149_v28 = vmul.f32 %v6547_v26, %v2148_v27 }
 0x890   : > { %v2150_v29 = vmul.f32 0.5, %v2149_v28 }
 0x892   : > { %v2151_v30 = vsub.f32 1.5, %v2150_v29 }
 0x894   : > { %v2152_v31 = vmul.f32 %v6547_v26, %v2151_v30 }
 0x896   : > { %v2156_v33 = vsel %vm2155_vm14, %v6547_v26, %v2152_v31 }
 0x897   : > { %v2157_v34 = vmul.f32 %v2156_v33, %v2140_v13  ;;  %v6489_v13 = vld [vmem:[%s8450_s30 + $0x1] ss:$0 sm:$0xff]  ;;  %s8519_s30 = sld [smem:[#allocation55_spill]] }
 0x899   : > { %v2161_v38 = vmul.f32 %v6483_v32, %v2157_v34 }
 0x89b   : > { %v2165_v39 = vadd.f32 %v6484_v37, %v2161_v38 }
 0x89d   : > { %v2170_v40 = vpack.c.bf16 %v2165_v39, %v2165_v39 }
 0x89f   : > { %6010 = vmatmul.msk.bf16.vlgmr.msrb.gmra.mxu1 %vm1732_vm2, %v2170_v40 }
 0x91c   : > { %v2199_v44 = vpop.f32.mrf.mxu1 }
 0x91d   : > { %v2200_v45 = vadd.f32 %v6485_v43, %v2199_v44  ;;  %v2502_v43 = vsel %vm1809_vm3, %v6042_v42, 0 }
 0x91f   : > { %v2203_v46 = vmax.f32 %v2200_v45, 0.0 }
 0x921   : > { %v2212_v47 = vpack.c.bf16 %v2203_v46, %v2203_v46 }
 0x923   : > { %6027 = vmatmul.msk.bf16.vlgmr.msra.gmra.mxu0 %vm2241_vm15, %v2212_v47 }
 0x924   : > { %v2201_v8 = vpop.f32.mrf.mxu1 }
 0x9a0   : > { %v2254_v48 = vpop.f32.mrf.mxu0 }
 0x9a1   : > { %v2255_v10 = vadd.f32 %v6486_v36, %v2254_v48 }
 0x9a3   : > { %v2258_v49 = vadd.f32 %v2255_v10, %v2165_v39 }
 0x9a5   : > { %v2261_v50 = vsel %vm1732_vm2, %v2258_v49, 0.0 }
 0x9a6   : > { %2262 = vadd.xlane.f32.xlu1 %v2261_v50 }
 0x9a8   : > { %v2256_v51 = vpop.f32.mrf.mxu0 }
 0xa19   : > { %v2263_v52 = vpop.xlane.xlu1 %2262 }
 0xa1a   : > { %v2264_v53 = vmul.f32 %v2263_v52, %v7452_v11 }
 0xa1c   : > { %v2265_v22 = vsub.f32 %v2258_v49, %v2264_v53 }
 0xa1e   : > { %v2266_v56 = vmul.f32 %v2265_v22, %v2265_v22 }
 0xa20   : > { %v2267_v57 = vsel %vm1732_vm2, %v2266_v56, 0.0 }
 0xa21   : > { %2268 = vadd.xlane.f32.xlu0 %v2267_v57 }
 0xa94   : > { %v2269_v60 = vpop.xlane.xlu0 %2268 }
 0xa95   : > { %v2270_v61 = vmul.f32 %v2269_v60, %v7452_v11 }
 0xa97   : > { %v2271_v62 = vadd.f32 1e-05, %v2270_v61 }
 0xa99   : > { %6548 = vrsqrt.f32 %v2271_v62  ;;  %vm2278_vm1 = vweird.f32 %v2271_v62 }
 0xa9f   : > { %v6549_v63 = vpop.eup %6548 }
 0xaa0   : > { %v2273_v0 = vmul.f32 %v6549_v63, %v2271_v62  ;;  %vm2279_vm0 = vweird.f32 %v6549_v63 }
 0xaa1   : > { %vm2280_vm5 = vmor %vm2278_vm1, %vm2279_vm0 }
 0xaa2   : > { %v2274_v1 = vmul.f32 %v6549_v63, %v2273_v0 }
 0xaa4   : > { %v2275_v2 = vmul.f32 0.5, %v2274_v1 }
 0xaa6   : > { %v2276_v3 = vsub.f32 1.5, %v2275_v2 }
 0xaa8   : > { %v2277_v4 = vmul.f32 %v6549_v63, %v2276_v3 }
 0xaaa   : > { %v2281_v6 = vsel %vm2280_vm5, %v6549_v63, %v2277_v4 }
 0xaab   : > { %v2282_v7 = vmul.f32 %v2281_v6, %v2265_v22 }
 0xaad   : > { %v2286_v9 = vmul.f32 %v6487_v5, %v2282_v7 }
 0xaaf   : > { %v7477_v12 = vadd.f32 %v6488_v19, %v2286_v9 }
 0xab1   : > { %v2296_v17 = vpack.c.bf16 %v7477_v12, %v7477_v12 }
 0xab3   : > { %6041 = vmatmul.msk.bf16.vlgmr.msra.gmra.mxu2 %vm1732_vm2, %v2296_v17 }
 0xb36   : > { %v2326_v14 = vpop.f32.mrf.mxu2 }
 0xb37   : > { %v2327_v15 = vadd.f32 %v6489_v13, %v2326_v14 }
 0xb39   : > { %v7483_v16 = vpack.c.bf16 %v2327_v15, %v2327_v15 }
 0xb3b   : > { %2337 = vrot.lane.b32.xlu2 %v7483_v16, %s8374_s16  ;;  %s8485_s16 = smov 40  }
 0xb3e   : > { %v2328_v18 = vpop.f32.mrf.mxu2 }
 0xb43   : > { %2609 = vrot.lane.b32.xlu2 %v7483_v16, %s8372_s22  ;;  %s8484_s22 = smov 120  }
 0xb4b   : > { %2409 = vrot.lane.b32.xlu2 %v7483_v16, %s8370_s18  ;;  %s8483_s18 = smov 72  }
 0xb53   : > { %2517 = vrot.lane.b32.xlu2 %v7483_v16, %s8368_s4  ;;  %s8482_s4 = smov 80  }
 0xb95   : > { %v2338_v20 = vpop.permute.xlu2 %2337 }
 0xb96   : > { %v2343_v21 = vsel %vm1757_vm4, %v2338_v20, 0 }
 0xb97   : > { %2352 = vmatpush.bf16.xpose.msra.mxu3 %v2343_v21 }
 0xb9d   : > { %v7494_v23 = vpop.permute.xlu2 %2609 }
 0xb9e   : > { %6046 = vmatmul.msk.bf16.vlgmr.msra.gmra.mxu3 %vm1757_vm4, %v7483_v16 }
 0xba5   : > { %v2410_v24 = vpop.permute.xlu2 %2409 }
 0xba6   : > { %v2415_v25 = vsel %vm1757_vm4, %v2410_v24, 0 }
 0xba7   : > { %2424 = vmatpush.bf16.xpose.msrb.mxu0 %v2415_v25 }
 0xbad   : > { %v2518_v58 = vpop.permute.xlu2 %2517 }
 0xc21   : > { %v2354_v26 = vpop.f32.mrf.mxu3 }
 0xc22   : > { %v2358_v27 = vmul.f32 0.35355338, %v2354_v26 }
 0xc24   : > { %v2359_v28 = vadd.f32 %v2358_v27, %v7371_v35 }
 0xc26   : > { %v2360_v29 = vsel %vm1757_vm4, %v2359_v28, -inf }
 0xc27   : > { %2361 = vmax.xlane.f32.xlu1 %v2360_v29 }
 0xc29   : > { %v2356_v30 = vpop.f32.mrf.mxu3 }
 0xc40   : > { %2385 = vrot.lane.b32.xlu1 %v7483_v16, %s8481_s7 }
 0xc48   : > { %2519 = vrot.lane.b32.xlu1 %v7483_v16, %s8482_s4 }
 0xc9a   : > { %v2362_v31 = vpop.xlane.xlu1 %2361 }
 0xc9b   : > { %v2363_v32 = vsub.f32 %v2359_v28, %v2362_v31 }
 0xc9d   : > { %v2364_v33 = vmul.f32 1.442695, %v2363_v32 }
 0xc9f   : > { %6550 = vpow2.f32 %v2364_v33 }
 0xca5   : > { %v6551_v34 = vpop.eup %6550 }
 0xca6   : > { %v2366_v37 = vsel %vm1757_vm4, %v6551_v34, 0.0 }
 0xca7   : > { %2367 = vadd.xlane.f32.xlu0 %v2366_v37 }
 0xcb2   : > { %v2386_v38 = vpop.permute.xlu1 %2385 }
 0xcb3   : > { %v2391_v39 = vsel %vm1809_vm3, %v2386_v38, 0 }
 0xcb4   : > { %2400 = vmatpush.bf16.msra.mxu1 %v2391_v39 }
 0xcb8   : > { %2511 = vmatpush.bf16.msrb.mxu1 %v2502_v43 }
 0xcba   : > { %v2520_v40 = vpop.permute.xlu1 %2519 }
 0xcbb   : > { %v2525_v41 = vsel %vm1757_vm4, %v2520_v40, 0  ;;  %2611 = vrot.lane.b32.xlu0 %v7483_v16, %s8483_s18 }
 0xcbc   : > { %2534 = vmatpush.bf16.xpose.msra.mxu0 %v2525_v41 }
 0xcc3   : > { %2407 = vrot.lane.b32.xlu0 %v7483_v16, %s8484_s22 }
 0xd1a   : > { %v2368_v44 = vpop.xlane.xlu0 %2367 }
 0xd1b   : > { %6552 = vrcp.f32 %v2368_v44  ;;  %v2380_v8 = vand.u32 2147483648, %v2368_v44  ;;  %v2378_v48 = vand.u32 2147483647, %v2368_v44  ;;  %vm2374_vm7 = vweird.f32 %v2368_v44 }
 0xd1d   : > { %v2381_v49 = vor.u32 1.1754944e-38, %v2380_v8  ;;  %vm2379_vm9 = vcmp.eq.f32.partialorder %v2378_v48, 8.507059e+37 }
 0xd21   : > { %v6553_v45 = vpop.eup %6552 }
 0xd22   : > { %v2370_v46 = vmul.f32 %v6553_v45, %v2368_v44  ;;  %vm2375_vm6 = vweird.f32 %v6553_v45 }
 0xd23   : > { %vm2376_vm8 = vmor %vm2374_vm7, %vm2375_vm6 }
 0xd24   : > { %v2371_v47 = vsub.f32 1.0, %v2370_v46 }
 0xd26   : > { %v2372_v36 = vmul.f32 %v6553_v45, %v2371_v47 }
 0xd28   : > { %v2373_v10 = vadd.f32 %v6553_v45, %v2372_v36 }
 0xd2a   : > { %v2377_v50 = vsel %vm2376_vm8, %v6553_v45, %v2373_v10 }
 0xd2b   : > { %v2382_v51 = vsel %vm2379_vm9, %v2381_v49, %v2377_v50 }
 0xd2c   : > { %v2383_v52 = vmul.f32 %v6551_v34, %v2382_v51  ;;  %v6043_v51 = vld [vmem:[%s8459_s6 + $0x14] sm:$0xf] }
 0xd2d   : > { %v2612_v53 = vpop.permute.xlu0 %2611 }
 0xd2e   : > { %v2617_v22 = vsel %vm1757_vm4, %v2612_v53, 0  ;;  %v2384_v56 = vpack.c.bf16 %v2383_v52, %v2383_v52  ;;  %v2483_v52 = vsel %vm1809_vm3, %v6043_v51, 0  ;;  %v6332_v53 = vld [vmem:[%s8487_s5 + $0x8] sm:$0xff] }
 0xd2f   : > { %2492 = vmatpush.bf16.msrb.mxu3 %v2483_v52 }
 0xd30   : > { %6047 = vmatmul.msk.bf16.vlgmr.msra.gmra.mxu1 %vm1757_vm4, %v2384_v56  ;;  %v6331_v56 = vld [vmem:[%s8487_s5] sm:$0xff] }
 0xd31   : > { %2626 = vmatpush.bf16.xpose.msra.mxu1 %v2617_v22 }
 0xd35   : > { %v2408_v57 = vpop.permute.xlu0 %2407 }
 0xd36   : > { %6048 = vmatmul.msk.bf16.vlgmr.msrb.gmra.mxu0 %vm1757_vm4, %v2408_v57 }
 0xd46   : > { %6052 = vmatmul.msk.bf16.vlgmr.msra.gmra.mxu0 %vm1757_vm4, %v2518_v58 }
 0xdad   : > { %v2402_v59 = vpop.f32.mrf.mxu1 }
 0xdae   : > { %v2406_v60 = vpack.c.bf16 %v2402_v59, %v2402_v59 }
 0xdb0   : > { %6051 = vmatmul.msk.bf16.vlgmr.msrb.gmra.mxu1 %vm1757_vm4, %v2406_v60 }
 0xdb3   : > { %v2426_v61 = vpop.f32.mrf.mxu0 }
 0xdb4   : > { %v2430_v62 = vmul.f32 0.35355338, %v2426_v61 }
 0xdb5   : > { %v2404_v63 = vpop.f32.mrf.mxu1 }
 0xdb6   : > { %v2431_v0 = vadd.f32 %v2430_v62, %v7371_v35 }
 0xdb8   : > { %v2432_v1 = vsel %vm1757_vm4, %v2431_v0, -inf }
 0xdb9   : > { %2433 = vmax.xlane.f32.xlu1 %v2432_v1 }
 0xdbb   : > { %v2428_v2 = vpop.f32.mrf.mxu0 }
 0xdc0   : > { %6055 = vmatmul.msk.bf16.vlgmr.msra.gmra.mxu1 %vm1757_vm4, %v7494_v23 }
 0xdc3   : > { %v2536_v3 = vpop.f32.mrf.mxu0 }
 0xdc4   : > { %v2540_v4 = vmul.f32 0.35355338, %v2536_v3 }
 0xdc6   : > { %v2541_v5 = vadd.f32 %v2540_v4, %v7371_v35 }
 0xdc8   : > { %v2542_v6 = vsel %vm1757_vm4, %v2541_v5, -inf }
 0xdc9   : > { %2543 = vmax.xlane.f32.xlu2 %v2542_v6 }
 0xdcb   : > { %v2538_v7 = vpop.f32.mrf.mxu0 }
 0xdd2   : > { %2659 = vrot.lane.b32.xlu1 %v7483_v16, %s8485_s16 }
 0xe2c   : > { %v2434_v19 = vpop.xlane.xlu1 %2433 }
 0xe2d   : > { %v2435_v9 = vsub.f32 %v2431_v0, %v2434_v19  ;;  %v7527_v17 = vpop.f32.mrf.mxu1 }
 0xe2f   : > { %v2436_v13 = vmul.f32 1.442695, %v2435_v9 }
 0xe31   : > { %6554 = vpow2.f32 %v2436_v13 }
 0xe35   : > { %v2515_v14 = vpop.f32.mrf.mxu1 }
 0xe37   : > { %v6555_v15 = vpop.eup %6554 }
 0xe38   : > { %v2438_v18 = vsel %vm1757_vm4, %v6555_v15, 0.0 }
 0xe39   : > { %2439 = vadd.xlane.f32.xlu2 %v2438_v18 }
 0xe3c   : > { %v2544_v28 = vpop.xlane.xlu2 %2543 }
 0xe3d   : > { %v2628_v20 = vpop.f32.mrf.mxu1  ;;  %v2545_v41 = vsub.f32 %v2541_v5, %v2544_v28 }
 0xe3e   : > { %v2632_v21 = vmul.f32 0.35355338, %v2628_v20 }
 0xe3f   : > { %v2546_v46 = vmul.f32 1.442695, %v2545_v41 }
 0xe40   : > { %v2633_v23 = vadd.f32 %v2632_v21, %v7371_v35 }
 0xe42   : > { %v2634_v24 = vsel %vm1757_vm4, %v2633_v23, -inf }
 0xe43   : > { %2635 = vmax.xlane.f32.xlu0 %v2634_v24 }
 0xe44   : > { %v2660_v25 = vpop.permute.xlu1 %2659 }
 0xe45   : > { %v2665_v26 = vsel %vm1809_vm3, %v2660_v25, 0  ;;  %v2630_v27 = vpop.f32.mrf.mxu1 }
 0xe46   : > { %2674 = vmatpush.bf16.msrb.mxu0 %v2665_v26  ;;  %v1690_v27 = vmul.f32 5.656854, %v7446_v55  ;;  %v6045_v55 = vld [vmem:[%s8459_s6 + $0x1c] sm:$0xf] }
 0xe4a   : > { %2934 = vmatpush.bf16.msra.mxu0 %v6332_v53 }
 0xe4e   : > { %2935 = vmatpush.bf16.msra.mxu0 %v6331_v56 }
 0xe51   : > { %2457 = vrot.lane.b32.xlu2 %v7483_v16, %s8486_s3 }
 0xeac   : > { %v2440_v29 = vpop.xlane.xlu2 %2439 }
 0xead   : > { %6556 = vrcp.f32 %v2440_v29  ;;  %v2452_v37 = vand.u32 2147483648, %v2440_v29  ;;  %v2450_v40 = vand.u32 2147483647, %v2440_v29  ;;  %vm2446_vm11 = vweird.f32 %v2440_v29 }
 0xeaf   : > { %v2453_v44 = vor.u32 1.1754944e-38, %v2452_v37  ;;  %vm2451_vm13 = vcmp.eq.f32.partialorder %v2450_v40, 8.507059e+37  ;;  %v2685_v37 = vsel %vm1809_vm3, %v6045_v55, 0 }
 0xeb3   : > { %v6557_v30 = vpop.eup %6556 }
 0xeb4   : > { %v2442_v31 = vmul.f32 %v6557_v30, %v2440_v29  ;;  %v2458_v32 = vpop.permute.xlu2 %2457  ;;  %vm2447_vm10 = vweird.f32 %v6557_v30  ;;  %v1646_v29 = vld [vmem:[%s8489_s9 + $0x8] sm:$0x3] }
 0xeb5   : > { %v2463_v33 = vsel %vm1809_vm3, %v2458_v32, 0  ;;  %vm2448_vm12 = vmor %vm2446_vm11, %vm2447_vm10  ;;  %v1645_v32 = vld [vmem:[%s8489_s9] sm:$0xff]  ;;  %s8492_s9 = sld [smem:[#allocation16_spill]]  ;;  %vm2974_vm10 = vcmask 80896   ;;  %vm2978_vm11 = vcmask 74752  }
 0xeb6   : > { %v2443_v35 = vsub.f32 1.0, %v2442_v31  ;;  %v2636_v34 = vpop.xlane.xlu0 %2635  ;;  %2472 = vmatpush.bf16.msrb.mxu2 %v2463_v33  ;;  %v7552_v33 = vadd.f32 %v1690_v27, %v1646_v29 }
 0xeb7   : > { %v2637_v38 = vsub.f32 %v2633_v23, %v2636_v34 }
 0xeb8   : > { %v2444_v39 = vmul.f32 %v6557_v30, %v2443_v35 }
 0xeb9   : > { %v2638_v42 = vmul.f32 1.442695, %v2637_v38  ;;  %v6044_v38 = vld [vmem:[%s8459_s6 + $0x18] sm:$0xf]  ;;  %s8491_s6 = smov 96  }
 0xeba   : > { %v2445_v43 = vadd.f32 %v6557_v30, %v2444_v39 }
 0xebb   : > { %6558 = vpow2.f32 %v2638_v42  ;;  %s1586_s17 = scalar_lea.vmem %s8492_s9, %s8541_s0  ;;  %s8494_s9 = smov 104  }
 0xebc   : > { %v2449_v45 = vsel %vm2448_vm12, %v6557_v30, %v2445_v43  ;;  %6560 = vpow2.f32 %v2546_v46  ;;  %v1689_v30 = vmul.f32 5.656854, %v7444_v54  ;;  %v2593_v54 = vsel %vm1809_vm3, %v6044_v38, 0 }
 0xebd   : > { %v2454_v47 = vsel %vm2451_vm13, %v2453_v44, %v2449_v45  ;;  %2602 = vmatpush.bf16.msra.mxu3 %v2593_v54  ;;  %vm8392_vm12 = vcmask 1044480  }
 0xebe   : > { %v2455_v8 = vmul.f32 %v6555_v15, %v2454_v47  ;;  %v7555_v35 = vadd.f32 %v1689_v30, %v1645_v32  ;;  %v6490_v47 = vld [vmem:[%s8490_s13] ss:$0 sm:$0xff] }
 0xec0   : > { %v2456_v36 = vpack.c.bf16 %v2455_v8, %v2455_v8  ;;  %v2908_v34 = vpack.c.bf16 %v7552_v33, %v7555_v35 }
 0xec1   : > { %v6559_v48 = vpop.eup %6558 }
 0xec2   : > { %6049 = vmatmul.msk.bf16.vlgmr.msrb.gmra.mxu2 %vm1757_vm4, %v2456_v36  ;;  %v2640_v10 = vsel %vm1757_vm4, %v6559_v48, 0.0  ;;  %v6561_v49 = vpop.eup %6560 }
 0xec3   : > { %2641 = vadd.xlane.f32.xlu0 %v2640_v10  ;;  %v2548_v50 = vsel %vm1757_vm4, %v6561_v49, 0.0 }
 0xecb   : > { %2549 = vadd.xlane.f32.xlu0 %v2548_v50 }
 0xedf   : > { %2567 = vrot.lane.b32.xlu0 %v7483_v16, %s8488_s8 }
 0xf36   : > { %v2642_v22 = vpop.xlane.xlu0 %2641 }
 0xf37   : > { %6562 = vrcp.f32 %v2642_v22  ;;  %v2654_v61 = vand.u32 2147483648, %v2642_v22  ;;  %v2652_v63 = vand.u32 2147483647, %v2642_v22  ;;  %vm2648_vm0 = vweird.f32 %v2642_v22 }
 0xf39   : > { %v2655_v1 = vor.u32 1.1754944e-38, %v2654_v61  ;;  %vm2653_vm5 = vcmp.eq.f32.partialorder %v2652_v63, 8.507059e+37 }
 0xf3d   : > { %v6563_v57 = vpop.eup %6562 }
 0xf3e   : > { %v2644_v58 = vmul.f32 %v6563_v57, %v2642_v22  ;;  %v2550_v59 = vpop.xlane.xlu0 %2549  ;;  %vm2649_vm14 = vweird.f32 %v6563_v57 }
 0xf3f   : > { %6564 = vrcp.f32 %v2550_v59  ;;  %vm2650_vm1 = vmor %vm2648_vm0, %vm2649_vm14  ;;  %v2562_v9 = vand.u32 2147483648, %v2550_v59  ;;  %v2560_v14 = vand.u32 2147483647, %v2550_v59  ;;  %vm2556_vm7 = vweird.f32 %v2550_v59 }
 0xf40   : > { %v2645_v60 = vsub.f32 1.0, %v2644_v58  ;;  %v6491_v58 = vld [vmem:[%s8456_s12 + $0x1] ss:$0 sm:$0xff]  ;;  %s8497_s12 = smov 112  }
 0xf41   : > { %v2563_v20 = vor.u32 1.1754944e-38, %v2562_v9  ;;  %vm2561_vm9 = vcmp.eq.f32.partialorder %v2560_v14, 8.507059e+37 }
 0xf42   : > { %v2646_v62 = vmul.f32 %v6563_v57, %v2645_v60 }
 0xf44   : > { %v2647_v16 = vadd.f32 %v6563_v57, %v2646_v62 }
 0xf45   : > { %v6565_v0 = vpop.eup %6564  ;;  %v2474_v2 = vpop.f32.mrf.mxu2 }
 0xf46   : > { %v2651_v3 = vsel %vm2650_vm1, %v6563_v57, %v2647_v16  ;;  %v2552_v4 = vmul.f32 %v6565_v0, %v2550_v59  ;;  %v2478_v5 = vpack.c.bf16 %v2474_v2, %v2474_v2  ;;  %vm2557_vm6 = vweird.f32 %v6565_v0  ;;  %v1702_v16 = vld [vmem:[%s1586_s17] sm:$0x1]  ;;  %s8495_s17 = sld [smem:[#allocation40_spill]] }
 0xf47   : > { %v2656_v6 = vsel %vm2653_vm5, %v2655_v1, %v2651_v3  ;;  %vm2558_vm8 = vmor %vm2556_vm7, %vm2557_vm6 }
 0xf48   : > { %v2553_v7 = vsub.f32 1.0, %v2552_v4  ;;  %6050 = vmatmul.msk.bf16.vlgmr.msrb.gmra.mxu3 %vm1757_vm4, %v2478_v5  ;;  %v2657_v19 = vmul.f32 %v6559_v48, %v2656_v6  ;;  %v1700_v4 = vld [vmem:[%s8493_s14] sm:$0xff] }
 0xf4a   : > { %v2554_v13 = vmul.f32 %v6565_v0, %v2553_v7  ;;  %v2658_v15 = vpack.c.bf16 %v2657_v19, %v2657_v19 }
 0xf4c   : > { %v2555_v18 = vadd.f32 %v6565_v0, %v2554_v13  ;;  %6056 = vmatmul.msk.bf16.vlgmr.msrb.gmra.mxu0 %vm1757_vm4, %v2658_v15  ;;  %v1701_v13 = vld [vmem:[%s8493_s14 + $0x8] sm:$0x3]  ;;  %s8501_s14 = sld [smem:[#allocation42_spill]] }
 0xf4d   : > { %v2476_v21 = vpop.f32.mrf.mxu2 }
 0xf4e   : > { %v2559_v23 = vsel %vm2558_vm8, %v6565_v0, %v2555_v18  ;;  %v1703_v0 = vmul.f32 -1e+09, %v1702_v16 }
 0xf4f   : > { %v2564_v24 = vsel %vm2561_vm9, %v2563_v20, %v2559_v23 }
 0xf50   : > { %v2565_v25 = vmul.f32 %v6561_v49, %v2564_v24  ;;  %v1705_v2 = vperm.slane %v1703_v0, 0  ;;  %v6326_v24 = vld [vmem:[%s8471_s23 + $0x18] sm:$0xff] }
 0xf51   : > { %v2568_v26 = vpop.permute.xlu0 %2567  ;;  %2774 = vmatpush.bf16.msrb.mxu3 %v6326_v24 }
 0xf52   : > { %v2573_v28 = vsel %vm1809_vm3, %v2568_v26, 0  ;;  %v2566_v31 = vpack.c.bf16 %v2565_v25, %v2565_v25  ;;  %v7582_v6 = vadd.f32 %v1705_v2, %v1700_v4  ;;  %v7588_v15 = vadd.f32 %v1705_v2, %v1701_v13  ;;  %v6325_v25 = vld [vmem:[%s8471_s23 + $0x10] sm:$0xff]  ;;  %s8505_s23 = sld [smem:[#allocation17_spill]] }
 0xf53   : > { %2582 = vmatpush.bf16.msra.mxu2 %v2573_v28 }
 0xf55   : > { %2775 = vmatpush.bf16.msrb.mxu3 %v6325_v25 }
 0xf56   : > { %6053 = vmatmul.msk.bf16.vlgmr.msra.gmra.mxu2 %vm1757_vm4, %v2566_v31 }
 0xf57   : > { %2694 = vmatpush.bf16.msrb.mxu2 %v2685_v37 }
 0xf58   : > { %s1589_s24 = scalar_lea.vmem %s8505_s23, %s8541_s0  ;;  %s8513_s23 = sld [smem:[#allocation49_spill]] }
 0xf59   : > { %s8520_s0 = sld [smem:[#allocation56_spill]] }
 0xf5c   : > { %6111 = vmatmul.msk.bf16.vlgmr.msra.gmra.mxu0 %vm1732_vm2, %v2908_v34 }
 0xfc9   : > { %v2676_v39 = vpop.f32.mrf.mxu0 }
 0xfca   : > { %v2680_v40 = vpack.c.bf16 %v2676_v39, %v2676_v39 }
 0xfcb   : > { %v2494_v41 = vpop.f32.mrf.mxu3 }
 0xfcc   : > { %6057 = vmatmul.msk.bf16.vlgmr.msrb.gmra.mxu2 %vm1757_vm4, %v2680_v40  ;;  %v2514_v22 = vadd.f32 %v7527_v17, %v2494_v41 }
 0xfd1   : > { %v2678_v42 = vpop.f32.mrf.mxu0 }
 0xfd3   : > { %v2496_v43 = vpop.f32.mrf.mxu3 }
 0xfd9   : > { %v2584_v44 = vpop.f32.mrf.mxu2  ;;  %v2937_v45 = vpop.f32.mrf.mxu0 }
 0xfda   : > { %v2588_v46 = vpack.c.bf16 %v2584_v44, %v2584_v44  ;;  %v2938_v48 = vadd.f32 %v6490_v47, %v2937_v45 }
 0xfdc   : > { %6054 = vmatmul.msk.bf16.vlgmr.msra.gmra.mxu3 %vm1757_vm4, %v2588_v46  ;;  %v6492_v46 = vld [vmem:[%s8474_s10 + $0x1] ss:$0 sm:$0xff]  ;;  %s8496_s10 = smov 88  }
 0xfe1   : > { %v2586_v8 = vpop.f32.mrf.mxu2  ;;  %v2939_v36 = vpop.f32.mrf.mxu0 }
 0xfe2   : > { %v2940_v10 = vadd.f32 %v6490_v47, %v2939_v36  ;;  %v6493_v8 = vld [vmem:[%s8475_s28 + $0x1] ss:$0 sm:$0xff]  ;;  %s8517_s28 = sld [smem:[#allocation54_spill]] }
 0xfe4   : > { %v7567_v49 = vpack.c.bf16 %v2940_v10, %v2938_v48 }
 0xfe6   : > { %2948 = vrot.lane.b32.xlu1 %v7567_v49, %s8491_s6 }
0x104f   : > { %v2696_v50 = vpop.f32.mrf.mxu2 }
0x1057   : > { %v2698_v51 = vpop.f32.mrf.mxu2 }
0x1058   : > { %v2949_v52 = vpop.permute.xlu1 %2948 }
0x1059   : > { %v2954_v53 = vsel %vm1757_vm4, %v2949_v52, 0 }
0x105a   : > { %2963 = vmatpush.bf16.xpose.msra.mxu2 %v2954_v53  ;;  %v6330_v53 = vld [vmem:[%s8472_s11 + $0x38] sm:$0xff] }
0x105b   : > { %2828 = vmatpush.bf16.msrb.mxu1 %v6330_v53 }
0x105f   : > { %v2604_v56 = vpop.f32.mrf.mxu3 }
0x1060   : > { %v2608_v57 = vadd.f32 %v2604_v56, %v2514_v22  ;;  %v6329_v22 = vld [vmem:[%s8472_s11 + $0x30] sm:$0xff]  ;;  %v6328_v56 = vld [vmem:[%s8472_s11 + $0x28] sm:$0xff] }
0x1061   : > { %6112 = vmatmul.msk.bf16.vlgmr.msra.gmra.mxu2 %vm1757_vm4, %v7567_v49  ;;  %2829 = vmatpush.bf16.msrb.mxu1 %v6329_v22 }
0x1062   : > { %v2700_v59 = vadd.f32 %v2696_v50, %v2608_v57  ;;  %v6327_v57 = vld [vmem:[%s8472_s11 + $0x20] sm:$0xff]  ;;  %s8500_s11 = sld [smem:[#allocation44_spill]] }
0x1064   : > { %v2706_v60 = vadd.f32 %v6491_v58, %v2700_v59  ;;  %v2942_v58 = vld [vmem:[%s8495_s17] sm:$0xf] }
0x1065   : > { %2830 = vmatpush.bf16.msrb.mxu1 %v6328_v56  ;;  %v3173_v59 = vsel %vm1809_vm3, %v2942_v58, 0 }
0x1066   : > { %v2707_v61 = vadd.f32 %v2706_v60, %v7477_v12 }
0x1067   : > { %v2606_v62 = vpop.f32.mrf.mxu3 }
0x1068   : > { %v2712_v63 = vsel %vm1732_vm2, %v2707_v61, 0.0 }
0x1069   : > { %2713 = vadd.xlane.f32.xlu0 %v2712_v63  ;;  %2831 = vmatpush.bf16.msrb.mxu1 %v6327_v57 }
0x10dc   : > { %v2714_v17 = vpop.xlane.xlu0 %2713 }
0x10dd   : > { %v2715_v1 = vmul.f32 %v2714_v17, %v7452_v11 }
0x10df   : > { %v2716_v3 = vsub.f32 %v2707_v61, %v2715_v1 }
0x10e1   : > { %v2717_v5 = vmul.f32 %v2716_v3, %v2716_v3 }
0x10e3   : > { %v2718_v7 = vsel %vm1732_vm2, %v2717_v5, 0.0 }
0x10e4   : > { %2719 = vadd.xlane.f32.xlu0 %v2718_v7  ;;  %v2965_v12 = vpop.f32.mrf.mxu2 }
0x10e5   : > { %v2970_v19 = vmul.f32 0.35355338, %v2965_v12 }
0x10e7   : > { %v2972_v9 = vadd.f32 %v2970_v19, %v7582_v6 }
0x10e9   : > { %v2975_v14 = vsel %vm2974_vm10, %v2972_v9, -inf }
0x10ea   : > { %2976 = vmax.xlane.f32.xlu1 %v2975_v14 }
0x10ec   : > { %v2967_v18 = vpop.f32.mrf.mxu2 }
0x10ed   : > { %v2971_v20 = vmul.f32 0.35355338, %v2967_v18 }
0x10ef   : > { %v2973_v21 = vadd.f32 %v2971_v20, %v7588_v15 }
0x10f1   : > { %v2979_v23 = vsel %vm2978_vm11, %v2973_v21, -inf }
0x10f2   : > { %2980 = vmax.xlane.f32.xlu2 %v2979_v23 }
0x10f8   : > { %3025 = vrot.lane.b32.xlu0 %v7567_v49, %s8481_s7 }
0x1100   : > { %3191 = vrot.lane.b32.xlu0 %v7567_v49, %s8482_s4 }
0x1108   : > { %3311 = vrot.lane.b32.xlu0 %v7567_v49, %s8494_s9 }
0x1157   : > { %v2720_v26 = vpop.xlane.xlu0 %2719 }
0x1158   : > { %v2721_v27 = vmul.f32 %v2720_v26, %v7452_v11 }
0x115a   : > { %v2722_v28 = vadd.f32 1e-05, %v2721_v27  ;;  %v6494_v27 = vld [vmem:[%s8476_s1 + $0x1] ss:$0 sm:$0xff]  ;;  %s8498_s1 = sld [smem:[#allocation41_spill]] }
0x115c   : > { %6566 = vrsqrt.f32 %v2722_v28  ;;  %vm2729_vm14 = vweird.f32 %v2722_v28 }
0x115d   : > { %v2977_v29 = vpop.xlane.xlu1 %2976 }
0x115e   : > { %v2982_v30 = vsub.f32 %v2972_v9, %v2977_v29 }
0x1160   : > { %v2984_v31 = vmul.f32 1.442695, %v2982_v30 }
0x1162   : > { %v6567_v32 = vpop.eup %6566  ;;  %6568 = vpow2.f32 %v2984_v31 }
0x1163   : > { %v2724_v34 = vmul.f32 %v6567_v32, %v2722_v28  ;;  %vm2730_vm13 = vweird.f32 %v6567_v32 }
0x1164   : > { %vm2731_vm0 = vmor %vm2729_vm14, %vm2730_vm13 }
0x1165   : > { %v2725_v55 = vmul.f32 %v6567_v32, %v2724_v34  ;;  %v2981_v37 = vpop.xlane.xlu2 %2980 }
0x1166   : > { %v2983_v38 = vsub.f32 %v2973_v21, %v2981_v37 }
0x1167   : > { %v2726_v54 = vmul.f32 0.5, %v2725_v55 }
0x1168   : > { %v7601_v39 = vpop.eup %6568  ;;  %v2986_v40 = vmul.f32 1.442695, %v2983_v38 }
0x1169   : > { %v2727_v41 = vsub.f32 1.5, %v2726_v54  ;;  %v2988_v42 = vsel %vm2974_vm10, %v7601_v39, 0.0 }
0x116a   : > { %6570 = vpow2.f32 %v2986_v40  ;;  %v3026_v43 = vpop.permute.xlu0 %3025  ;;  %2989 = vadd.xlane.f32.xlu1 %v2988_v42 }
0x116b   : > { %v2728_v44 = vmul.f32 %v6567_v32, %v2727_v41  ;;  %v3032_v45 = vsel %vm8392_vm12, %v3026_v43, 0 }
0x116c   : > { %3041 = vmatpush.bf16.msra.mxu3 %v3032_v45 }
0x116d   : > { %v2732_v47 = vsel %vm2731_vm0, %v6567_v32, %v2728_v44 }
0x116e   : > { %v2733_v36 = vmul.f32 %v2732_v47, %v2716_v3 }
0x1170   : > { %v6571_v48 = vpop.eup %6570  ;;  %v2737_v10 = vmul.f32 %v6492_v46, %v2733_v36 }
0x1171   : > { %v2991_v50 = vsel %vm2978_vm11, %v6571_v48, 0.0 }
0x1172   : > { %v7609_v51 = vadd.f32 %v6493_v8, %v2737_v10  ;;  %2992 = vadd.xlane.f32.xlu2 %v2991_v50  ;;  %v3192_v38 = vpop.permute.xlu0 %3191 }
0x1173   : > { %v3197_v40 = vsel %vm1757_vm4, %v3192_v38, 0  ;;  %v6495_v38 = vld [vmem:[%s8477_s2 + $0x1] ss:$0 sm:$0xff]  ;;  %s8499_s2 = sld [smem:[#allocation46_spill]] }
0x1174   : > { %v2747_v52 = vpack.c.bf16 %v7609_v51, %v7609_v51 }
0x1176   : > { %6074 = vmatmul.msk.bf16.vlgmr.msrb.gmra.mxu3 %vm1732_vm2, %v2747_v52 }
0x1177   : > { %3182 = vmatpush.bf16.msrb.mxu3 %v3173_v59 }
0x117a   : > { %v3312_v52 = vpop.permute.xlu0 %3311 }
0x1183   : > { %3051 = vrot.lane.b32.xlu1 %v7567_v49, %s8496_s10 }
0x118a   : > { %3049 = vrot.lane.b32.xlu2 %v7567_v49, %s8484_s22 }
0x118b   : > { %3189 = vrot.lane.b32.xlu1 %v7567_v49, %s8497_s12 }
0x1192   : > { %3313 = vrot.lane.b32.xlu2 %v7567_v49, %s8483_s18 }
0x11dd   : > { %v2990_v60 = vpop.xlane.xlu1 %2989 }
0x11de   : > { %6572 = vrcp.f32 %v2990_v60  ;;  %v3005_v3 = vand.u32 2147483648, %v2990_v60  ;;  %vm2999_vm5 = vweird.f32 %v2990_v60  ;;  %v3003_v5 = vand.u32 2147483647, %v2990_v60 }
0x11e0   : > { %v3006_v14 = vor.u32 1.1754944e-38, %v3005_v3  ;;  %vm3004_vm8 = vcmp.eq.f32.partialorder %v3003_v5, 8.507059e+37 }
0x11e4   : > { %v6573_v61 = vpop.eup %6572 }
0x11e5   : > { %v2995_v62 = vmul.f32 %v6573_v61, %v2990_v60  ;;  %v2993_v63 = vpop.xlane.xlu2 %2992  ;;  %vm3000_vm1 = vweird.f32 %v6573_v61 }
0x11e6   : > { %6574 = vrcp.f32 %v2993_v63  ;;  %vm3001_vm6 = vmor %vm2999_vm5, %vm3000_vm1  ;;  %v3020_v12 = vand.u32 2147483648, %v2993_v63  ;;  %v3018_v13 = vand.u32 2147483647, %v2993_v63  ;;  %vm3014_vm9 = vweird.f32 %v2993_v63 }
0x11e7   : > { %v2996_v16 = vsub.f32 1.0, %v2995_v62 }
0x11e8   : > { %v3021_v21 = vor.u32 1.1754944e-38, %v3020_v12  ;;  %vm3019_vm14 = vcmp.eq.f32.partialorder %v3018_v13, 8.507059e+37 }
0x11e9   : > { %v2997_v0 = vmul.f32 %v6573_v61, %v2996_v16 }
0x11eb   : > { %v2998_v1 = vadd.f32 %v6573_v61, %v2997_v0 }
0x11ec   : > { %v6575_v17 = vpop.eup %6574 }
0x11ed   : > { %v3010_v2 = vmul.f32 %v6575_v17, %v2993_v63  ;;  %v3050_v4 = vpop.permute.xlu2 %3049  ;;  %v3002_v19 = vsel %vm3001_vm6, %v6573_v61, %v2998_v1  ;;  %vm3015_vm7 = vweird.f32 %v6575_v17 }
0x11ee   : > { %v3007_v20 = vsel %vm3004_vm8, %v3006_v14, %v3002_v19  ;;  %vm3016_vm13 = vmor %vm3014_vm9, %vm3015_vm7 }
0x11ef   : > { %v3011_v7 = vsub.f32 1.0, %v3010_v2  ;;  %v3008_v28 = vmul.f32 %v7601_v39, %v3007_v20 }
0x11f1   : > { %v3012_v9 = vmul.f32 %v6575_v17, %v3011_v7 }
0x11f3   : > { %v3013_v18 = vadd.f32 %v6575_v17, %v3012_v9 }
0x11f5   : > { %v3017_v23 = vsel %vm3016_vm13, %v6575_v17, %v3013_v18  ;;  %v3052_v24 = vpop.permute.xlu1 %3051  ;;  %v3314_v30 = vpop.permute.xlu2 %3313 }
0x11f6   : > { %v3022_v25 = vsel %vm3019_vm14, %v3021_v21, %v3017_v23  ;;  %v3057_v26 = vsel %vm1757_vm4, %v3052_v24, 0  ;;  %v3319_v55 = vsel %vm1757_vm4, %v3314_v30, 0 }
0x11f7   : > { %v3023_v29 = vmul.f32 %v6571_v48, %v3022_v25  ;;  %3066 = vmatpush.bf16.xpose.msra.mxu1 %v3057_v26 }
0x11f9   : > { %v2777_v31 = vpop.f32.mrf.mxu3  ;;  %v3024_v32 = vpack.c.bf16 %v3023_v29, %v3008_v28 }
0x11fa   : > { %v2778_v34 = vadd.f32 %v6494_v27, %v2777_v31 }
0x11fb   : > { %6113 = vmatmul.msk.bf16.vlgmr.msra.gmra.mxu3 %vm2974_vm10, %v3024_v32 }
0x11fc   : > { %v2781_v37 = vmax.f32 %v2778_v34, 0.0  ;;  %3328 = vmatpush.bf16.xpose.msra.mxu3 %v3319_v55 }
0x11fd   : > { %v3190_v41 = vpop.permute.xlu1 %3189 }
0x11fe   : > { %v2791_v54 = vpack.c.bf16 %v2781_v37, %v2781_v37 }
0x1200   : > { %6100 = vmatmul.msk.bf16.vlgmr.msrb.gmra.mxu1 %vm2241_vm15, %v2791_v54 }
0x1201   : > { %3206 = vmatpush.bf16.xpose.msrb.mxu1 %v3197_v40  ;;  %v2779_v39 = vpop.f32.mrf.mxu3 }
0x1210   : > { %6114 = vmatmul.msk.bf16.vlgmr.msra.gmra.mxu1 %vm1757_vm4, %v3050_v4 }
0x1220   : > { %6118 = vmatmul.msk.bf16.vlgmr.msrb.gmra.mxu1 %vm1757_vm4, %v3190_v41 }
0x127d   : > { %v7637_v42 = vpop.f32.mrf.mxu1 }
0x127e   : > { %v3043_v43 = vpop.f32.mrf.mxu3  ;;  %v2834_v54 = vadd.f32 %v6495_v38, %v7637_v42 }
0x1280   : > { %v2837_v40 = vadd.f32 %v2834_v54, %v7609_v51 }
0x1282   : > { %v2842_v39 = vsel %vm1732_vm2, %v2837_v40, 0.0 }
0x1285   : > { %v2835_v44 = vpop.f32.mrf.mxu1 }
0x1286   : > { %v3045_v45 = vpop.f32.mrf.mxu3 }
0x1287   : > { %v3048_v46 = vpack.c.bf16 %v3045_v45, %v3043_v43 }
0x1289   : > { %6117 = vmatmul.msk.bf16.vlgmr.msrb.gmra.mxu3 %vm1757_vm4, %v3048_v46 }
0x128d   : > { %v3068_v47 = vpop.f32.mrf.mxu1 }
0x128e   : > { %v3073_v8 = vmul.f32 0.35355338, %v3068_v47 }
0x1290   : > { %v3075_v36 = vadd.f32 %v3073_v8, %v7582_v6 }
0x1292   : > { %v3077_v48 = vsel %vm2974_vm10, %v3075_v36, -inf }
0x1293   : > { %3078 = vmax.xlane.f32.xlu2 %v3077_v48 }
0x1295   : > { %v3070_v10 = vpop.f32.mrf.mxu1 }
0x1296   : > { %v3074_v50 = vmul.f32 0.35355338, %v3070_v10 }
0x1298   : > { %v3076_v53 = vadd.f32 %v3074_v50, %v7588_v15 }
0x1299   : > { %6121 = vmatmul.msk.bf16.vlgmr.msra.gmra.mxu3 %vm1757_vm4, %v3312_v52 }
0x129a   : > { %v3080_v22 = vsel %vm2978_vm11, %v3076_v53, -inf }
0x129b   : > { %3081 = vmax.xlane.f32.xlu1 %v3080_v22 }
0x129d   : > { %v3208_v56 = vpop.f32.mrf.mxu1 }
0x129e   : > { %v3213_v57 = vmul.f32 0.35355338, %v3208_v56 }
0x12a0   : > { %v3215_v58 = vadd.f32 %v3213_v57, %v7582_v6 }
0x12a2   : > { %v3217_v59 = vsel %vm2974_vm10, %v3215_v58, -inf }
0x12a3   : > { %3218 = vmax.xlane.f32.xlu0 %v3217_v59 }
0x12a5   : > { %v3210_v60 = vpop.f32.mrf.mxu1 }
0x12a6   : > { %v3214_v61 = vmul.f32 0.35355338, %v3210_v60 }
0x12a8   : > { %v3216_v62 = vadd.f32 %v3214_v61, %v7588_v15 }
0x12aa   : > { %v3220_v63 = vsel %vm2978_vm11, %v3216_v62, -inf }
0x12ab   : > { %3221 = vmax.xlane.f32.xlu2 %v3220_v63 }
0x1306   : > { %v3079_v16 = vpop.xlane.xlu2 %3078 }
0x1307   : > { %v3083_v0 = vsub.f32 %v3075_v36, %v3079_v16 }
0x1309   : > { %v3085_v17 = vmul.f32 1.442695, %v3083_v0 }
0x130b   : > { %6576 = vpow2.f32 %v3085_v17 }
0x130c   : > { %v7649_v1 = vpop.f32.mrf.mxu3 }
0x130e   : > { %v3082_v5 = vpop.xlane.xlu1 %3081 }
0x130f   : > { %v3084_v7 = vsub.f32 %v3076_v53, %v3082_v5 }
0x1311   : > { %v7651_v2 = vpop.eup %6576  ;;  %v3087_v12 = vmul.f32 1.442695, %v3084_v7 }
0x1312   : > { %v3089_v3 = vsel %vm2974_vm10, %v7651_v2, 0.0 }
0x1313   : > { %3090 = vadd.xlane.f32.xlu2 %v3089_v3  ;;  %6578 = vpow2.f32 %v3087_v12 }
0x1314   : > { %v7655_v4 = vpop.f32.mrf.mxu3 }
0x1316   : > { %v3219_v9 = vpop.xlane.xlu0 %3218 }
0x1317   : > { %v3223_v21 = vsub.f32 %v3215_v58, %v3219_v9 }
0x1319   : > { %v3225_v25 = vmul.f32 1.442695, %v3223_v21  ;;  %v7659_v28 = vpop.eup %6578 }
0x131a   : > { %v3092_v31 = vsel %vm2978_vm11, %v7659_v28, 0.0 }
0x131c   : > { %v3330_v19 = vpop.f32.mrf.mxu3 }
0x131d   : > { %v3335_v13 = vmul.f32 0.35355338, %v3330_v19 }
0x131e   : > { %v3222_v14 = vpop.xlane.xlu2 %3221 }
0x131f   : > { %v3224_v18 = vsub.f32 %v3216_v62, %v3222_v14  ;;  %v3337_v20 = vadd.f32 %v3335_v13, %v7582_v6 }
0x1321   : > { %v3227_v23 = vmul.f32 1.442695, %v3224_v18  ;;  %v3339_v24 = vsel %vm2974_vm10, %v3337_v20, -inf }
0x1322   : > { %3340 = vmax.xlane.f32.xlu1 %v3339_v24 }
0x1323   : > { %6580 = vpow2.f32 %v3227_v23 }
0x1324   : > { %v3332_v26 = vpop.f32.mrf.mxu3  ;;  %6582 = vpow2.f32 %v3225_v25 }
0x1325   : > { %v3336_v27 = vmul.f32 0.35355338, %v3332_v26 }
0x1327   : > { %v3338_v29 = vadd.f32 %v3336_v27, %v7588_v15 }
0x1329   : > { %v7662_v30 = vpop.eup %6580  ;;  %v3342_v32 = vsel %vm2978_vm11, %v3338_v29, -inf }
0x132a   : > { %3093 = vadd.xlane.f32.xlu1 %v3092_v31  ;;  %3343 = vmax.xlane.f32.xlu0 %v3342_v32  ;;  %v3232_v34 = vsel %vm2978_vm11, %v7662_v30, 0.0  ;;  %v7669_v55 = vpop.eup %6582 }
0x132b   : > { %3233 = vadd.xlane.f32.xlu2 %v3232_v34  ;;  %v3229_v37 = vsel %vm2974_vm10, %v7669_v55, 0.0 }
0x1332   : > { %3230 = vadd.xlane.f32.xlu0 %v3229_v37 }
0x1343   : > { %3126 = vrot.lane.b32.xlu1 %v7567_v49, %s8486_s3 }
0x136d   : > { %2843 = vadd.xlane.f32.xlu1 %v2842_v39 }
0x1386   : > { %v3091_v41 = vpop.xlane.xlu2 %3090 }
0x1387   : > { %6584 = vrcp.f32 %v3091_v41  ;;  %v3106_v16 = vand.u32 2147483648, %v3091_v41  ;;  %vm3100_vm7 = vweird.f32 %v3091_v41  ;;  %v3104_v0 = vand.u32 2147483647, %v3091_v41 }
0x1389   : > { %v3107_v7 = vor.u32 1.1754944e-38, %v3106_v16  ;;  %vm3105_vm13 = vcmp.eq.f32.partialorder %v3104_v0, 8.507059e+37 }
0x138d   : > { %v6585_v46 = vpop.eup %6584 }
0x138e   : > { %v3096_v10 = vmul.f32 %v6585_v46, %v3091_v41  ;;  %vm3101_vm1 = vweird.f32 %v6585_v46 }
0x138f   : > { %vm3102_vm8 = vmor %vm3100_vm7, %vm3101_vm1 }
0x1390   : > { %v3097_v52 = vsub.f32 1.0, %v3096_v10 }
0x1392   : > { %v3098_v56 = vmul.f32 %v6585_v46, %v3097_v52 }
0x1394   : > { %v3099_v62 = vadd.f32 %v6585_v46, %v3098_v56 }
0x1395   : > { %v3341_v43 = vpop.xlane.xlu1 %3340 }
0x1396   : > { %v3345_v44 = vsub.f32 %v3337_v20, %v3341_v43  ;;  %v3103_v5 = vsel %vm3102_vm8, %v6585_v46, %v3099_v62 }
0x1397   : > { %v3108_v19 = vsel %vm3105_vm13, %v3107_v7, %v3103_v5 }
0x1398   : > { %v3347_v45 = vmul.f32 1.442695, %v3345_v44  ;;  %v3109_v14 = vmul.f32 %v7651_v2, %v3108_v19 }
0x139a   : > { %6586 = vpow2.f32 %v3347_v45 }
0x139d   : > { %v3094_v47 = vpop.xlane.xlu1 %3093  ;;  %v3344_v8 = vpop.xlane.xlu0 %3343 }
0x139e   : > { %6588 = vrcp.f32 %v3094_v47  ;;  %v3346_v36 = vsub.f32 %v3338_v29, %v3344_v8  ;;  %v3121_v61 = vand.u32 2147483648, %v3094_v47  ;;  %vm3115_vm5 = vweird.f32 %v3094_v47  ;;  %v3234_v27 = vpop.xlane.xlu2 %3233  ;;  %v2943_v8 = vld [vmem:[%s8495_s17 + $0x4] sm:$0xf] }
0x139f   : > { %v3119_v63 = vand.u32 2147483647, %v3094_v47  ;;  %v3153_v10 = vsel %vm1809_vm3, %v2943_v8, 0  ;;  %v2944_v8 = vld [vmem:[%s8495_s17 + $0x8] sm:$0xf] }
0x13a0   : > { %v7679_v48 = vpop.eup %6586  ;;  %v3349_v42 = vmul.f32 1.442695, %v3346_v36  ;;  %v3122_v3 = vor.u32 1.1754944e-38, %v3121_v61  ;;  %v3261_v36 = vand.u32 2147483648, %v3234_v27  ;;  %3162 = vmatpush.bf16.msrb.mxu2 %v3153_v10  ;;  %v2945_v10 = vld [vmem:[%s8495_s17 + $0xc] sm:$0xf] }
0x13a1   : > { %v3351_v51 = vsel %vm2974_vm10, %v7679_v48, 0.0  ;;  %vm3120_vm9 = vcmp.eq.f32.partialorder %v3119_v63, 8.507059e+37 }
0x13a2   : > { %3352 = vadd.xlane.f32.xlu0 %v3351_v51  ;;  %6590 = vpow2.f32 %v3349_v42  ;;  %v3259_v42 = vand.u32 2147483647, %v3234_v27 }
0x13a4   : > { %v6589_v50 = vpop.eup %6588 }
0x13a5   : > { %v3111_v53 = vmul.f32 %v6589_v50, %v3094_v47  ;;  %vm3116_vm0 = vweird.f32 %v6589_v50  ;;  %v3231_v26 = vpop.xlane.xlu0 %3230 }
0x13a6   : > { %vm3117_vm6 = vmor %vm3115_vm5, %vm3116_vm0  ;;  %6592 = vrcp.f32 %v3231_v26  ;;  %vm3240_vm1 = vweird.f32 %v3231_v26  ;;  %v3246_v43 = vand.u32 2147483648, %v3231_v26  ;;  %v3244_v46 = vand.u32 2147483647, %v3231_v26 }
0x13a7   : > { %v3112_v22 = vsub.f32 1.0, %v3111_v53  ;;  %6594 = vrcp.f32 %v3234_v27 }
0x13a8   : > { %v7683_v57 = vpop.eup %6590  ;;  %vm3245_vm8 = vcmp.eq.f32.partialorder %v3244_v46, 8.507059e+37 }
0x13a9   : > { %v3113_v58 = vmul.f32 %v6589_v50, %v3112_v22  ;;  %v3354_v59 = vsel %vm2978_vm11, %v7683_v57, 0.0  ;;  %v3262_v22 = vor.u32 1.1754944e-38, %v3261_v36  ;;  %v3293_v36 = vsel %vm1809_vm3, %v2944_v8, 0 }
0x13aa   : > { %3355 = vadd.xlane.f32.xlu2 %v3354_v59  ;;  %3302 = vmatpush.bf16.msra.mxu2 %v3293_v36 }
0x13ab   : > { %v3114_v60 = vadd.f32 %v6589_v50, %v3113_v58 }
0x13ad   : > { %v3118_v17 = vsel %vm3117_vm6, %v6589_v50, %v3114_v60  ;;  %vm3255_vm6 = vweird.f32 %v3234_v27  ;;  %v3247_v50 = vor.u32 1.1754944e-38, %v3246_v43 }
0x13ae   : > { %v3123_v12 = vsel %vm3120_vm9, %v3122_v3, %v3118_v17  ;;  %vm3260_vm9 = vcmp.eq.f32.partialorder %v3259_v42, 8.507059e+37  ;;  %v3415_v42 = vsel %vm1809_vm3, %v2945_v10, 0  ;;  %v6334_v10 = vld [vmem:[%s8500_s11 + $0x8] sm:$0xff] }
0x13af   : > { %v3124_v9 = vmul.f32 %v7659_v28, %v3123_v12  ;;  %v6593_v28 = vpop.eup %6592 }
0x13b0   : > { %v6595_v29 = vpop.eup %6594  ;;  %v3236_v31 = vmul.f32 %v6593_v28, %v3231_v26  ;;  %vm3241_vm14 = vweird.f32 %v6593_v28 }
0x13b1   : > { %v3125_v20 = vpack.c.bf16 %v3124_v9, %v3109_v14  ;;  %v3251_v32 = vmul.f32 %v6595_v29, %v3234_v27  ;;  %vm3256_vm0 = vweird.f32 %v6595_v29  ;;  %vm3242_vm5 = vmor %vm3240_vm1, %vm3241_vm14 }
0x13b2   : > { %vm3257_vm7 = vmor %vm3255_vm6, %vm3256_vm0 }
0x13b3   : > { %v3252_v37 = vsub.f32 1.0, %v3251_v32 }
0x13b5   : > { %v3127_v13 = vpop.permute.xlu1 %3126  ;;  %v3253_v54 = vmul.f32 %v6595_v29, %v3252_v37 }
0x13b6   : > { %v3132_v18 = vsel %vm8392_vm12, %v3127_v13, 0  ;;  %3266 = vrot.lane.b32.xlu0 %v7567_v49, %s8488_s8 }
0x13b7   : > { %3141 = vmatpush.bf16.msrb.mxu0 %v3132_v18  ;;  %v3254_v45 = vadd.f32 %v6595_v29, %v3253_v54 }
0x13b9   : > { %v3258_v53 = vsel %vm3257_vm7, %v6595_v29, %v3254_v45 }
0x13ba   : > { %6115 = vmatmul.msk.bf16.vlgmr.msrb.gmra.mxu0 %vm2974_vm10, %v3125_v20  ;;  %v3263_v59 = vsel %vm3260_vm9, %v3262_v22, %v3258_v53 }
0x13bb   : > { %v3264_v7 = vmul.f32 %v7662_v30, %v3263_v59 }
0x13c2   : > { %3388 = vrot.lane.b32.xlu2 %v7567_v49, %s8485_s16  ;;  %v3237_v49 = vsub.f32 1.0, %v3236_v31 }
0x13c4   : > { %v3238_v38 = vmul.f32 %v6593_v28, %v3237_v49 }
0x13c6   : > { %v3239_v39 = vadd.f32 %v6593_v28, %v3238_v38 }
0x13c8   : > { %v3243_v51 = vsel %vm3242_vm5, %v6593_v28, %v3239_v39  ;;  %v6496_v39 = vld [vmem:[%s8479_s26 + $0x1] ss:$0 sm:$0xff]  ;;  %s8515_s26 = sld [smem:[#allocation50_spill]] }
0x13c9   : > { %v3248_v56 = vsel %vm3245_vm8, %v3247_v50, %v3243_v51 }
0x13ca   : > { %v3249_v63 = vmul.f32 %v7669_v55, %v3248_v56 }
0x13cc   : > { %v3265_v18 = vpack.c.bf16 %v3264_v7, %v3249_v63  ;;  %v6498_v63 = vld [vmem:[%s8498_s1] ss:$0 sm:$0xff] }
0x13e0   : > { %v2844_v21 = vpop.xlane.xlu1 %2843 }
0x13e1   : > { %v2845_v23 = vmul.f32 %v2844_v21, %v7452_v11 }
0x13e3   : > { %v7696_v24 = vsub.f32 %v2837_v40, %v2845_v23 }
0x13e5   : > { %v2847_v2 = vmul.f32 %v7696_v24, %v7696_v24 }
0x13e7   : > { %v2848_v25 = vsel %vm1732_vm2, %v2847_v2, 0.0 }
0x13e8   : > { %2849 = vadd.xlane.f32.xlu0 %v2848_v25 }
0x1415   : > { %v3353_v34 = vpop.xlane.xlu0 %3352 }
0x1416   : > { %6596 = vrcp.f32 %v3353_v34  ;;  %v3368_v16 = vand.u32 2147483648, %v3353_v34  ;;  %vm3362_vm14 = vweird.f32 %v3353_v34  ;;  %v3366_v17 = vand.u32 2147483647, %v3353_v34 }
0x1418   : > { %v3369_v55 = vor.u32 1.1754944e-38, %v3368_v16  ;;  %vm3367_vm5 = vcmp.eq.f32.partialorder %v3366_v17, 8.507059e+37 }
0x141c   : > { %v6597_v40 = vpop.eup %6596 }
0x141d   : > { %v3358_v41 = vmul.f32 %v6597_v40, %v3353_v34  ;;  %v3356_v44 = vpop.xlane.xlu2 %3355  ;;  %vm3363_vm13 = vweird.f32 %v6597_v40 }
0x141e   : > { %6598 = vrcp.f32 %v3356_v44  ;;  %vm3364_vm0 = vmor %vm3362_vm14, %vm3363_vm13  ;;  %v3383_v12 = vand.u32 2147483648, %v3356_v44  ;;  %v3381_v14 = vand.u32 2147483647, %v3356_v44  ;;  %vm3377_vm6 = vweird.f32 %v3356_v44 }
0x141f   : > { %v3359_v47 = vsub.f32 1.0, %v3358_v41 }
0x1420   : > { %v3384_v23 = vor.u32 1.1754944e-38, %v3383_v12  ;;  %vm3382_vm8 = vcmp.eq.f32.partialorder %v3381_v14, 8.507059e+37 }
0x1421   : > { %v3360_v52 = vmul.f32 %v6597_v40, %v3359_v47 }
0x1423   : > { %v3361_v60 = vadd.f32 %v6597_v40, %v3360_v52 }
0x1424   : > { %v6599_v58 = vpop.eup %6598 }
0x1425   : > { %v3373_v61 = vmul.f32 %v6599_v58, %v3356_v44  ;;  %v3389_v62 = vpop.permute.xlu2 %3388  ;;  %v3365_v9 = vsel %vm3364_vm0, %v6597_v40, %v3361_v60  ;;  %vm3378_vm1 = vweird.f32 %v6599_v58  ;;  %v6497_v44 = vld [vmem:[%s8480_s15 + $0x1] ss:$0 sm:$0xff]  ;;  %vm3446_vm0 = vcmask 254976   ;;  %s8502_s15 = sld [smem:[#allocation43_spill]] }
0x1426   : > { %v3394_v0 = vsel %vm8392_vm12, %v3389_v62, 0  ;;  %v3370_v21 = vsel %vm3367_vm5, %v3369_v55, %v3365_v9  ;;  %vm3379_vm7 = vmor %vm3377_vm6, %vm3378_vm1 }
0x1427   : > { %v3374_v3 = vsub.f32 1.0, %v3373_v61  ;;  %3403 = vmatpush.bf16.msra.mxu1 %v3394_v0  ;;  %v3371_v25 = vmul.f32 %v7679_v48, %v3370_v21 }
0x1428   : > { %v3267_v5 = vpop.permute.xlu0 %3266 }
0x1429   : > { %v3272_v19 = vsel %vm8392_vm12, %v3267_v5, 0  ;;  %v3375_v13 = vmul.f32 %v6599_v58, %v3374_v3 }
0x142a   : > { %3281 = vmatpush.bf16.msra.mxu0 %v3272_v19 }
0x142b   : > { %v3376_v20 = vadd.f32 %v6599_v58, %v3375_v13 }
0x142d   : > { %6119 = vmatmul.msk.bf16.vlgmr.msra.gmra.mxu0 %vm2974_vm10, %v3265_v18  ;;  %v3380_v30 = vsel %vm3379_vm7, %v6599_v58, %v3376_v20 }
0x142e   : > { %v3385_v2 = vsel %vm3382_vm8, %v3384_v23, %v3380_v30  ;;  %3424 = vmatpush.bf16.msrb.mxu0 %v3415_v42  ;;  %v6336_v23 = vld [vmem:[%s8499_s2 + $0x8] sm:$0xff] }
0x142f   : > { %v3386_v26 = vmul.f32 %v7683_v57, %v3385_v2  ;;  %3566 = vmatpush.bf16.msrb.mxu3 %v6336_v23  ;;  %v6335_v2 = vld [vmem:[%s8499_s2] sm:$0xff] }
0x1431   : > { %v3387_v27 = vpack.c.bf16 %v3386_v26, %v3371_v25 }
0x1433   : > { %6122 = vmatmul.msk.bf16.vlgmr.msra.gmra.mxu1 %vm2974_vm10, %v3387_v27  ;;  %3567 = vmatpush.bf16.msrb.mxu3 %v6335_v2 }
0x1437   : > { %v3143_v28 = vpop.f32.mrf.mxu0 }
0x143f   : > { %v3145_v29 = vpop.f32.mrf.mxu0 }
0x1440   : > { %v3148_v31 = vpack.c.bf16 %v3145_v29, %v3143_v28 }
0x1442   : > { %6116 = vmatmul.msk.bf16.vlgmr.msrb.gmra.mxu2 %vm1757_vm4, %v3148_v31 }
0x1443   : > { %3528 = vmatpush.bf16.msrb.mxu2 %v6334_v10 }
0x145b   : > { %v2850_v32 = vpop.xlane.xlu0 %2849 }
0x145c   : > { %v2851_v49 = vmul.f32 %v2850_v32, %v7452_v11 }
0x145e   : > { %v2852_v34 = vadd.f32 1e-05, %v2851_v49 }
0x1460   : > { %6600 = vrsqrt.f32 %v2852_v34  ;;  %vm2859_vm13 = vweird.f32 %v2852_v34 }
0x1466   : > { %v6601_v37 = vpop.eup %6600 }
0x1467   : > { %v2854_v38 = vmul.f32 %v6601_v37, %v2852_v34  ;;  %vm2860_vm9 = vweird.f32 %v6601_v37 }
0x1468   : > { %vm2861_vm14 = vmor %vm2859_vm13, %vm2860_vm9 }
0x1469   : > { %v2855_v48 = vmul.f32 %v6601_v37, %v2854_v38 }
0x146b   : > { %v2856_v57 = vmul.f32 0.5, %v2855_v48 }
0x146d   : > { %v2857_v54 = vsub.f32 1.5, %v2856_v57 }
0x146f   : > { %v2858_v40 = vmul.f32 %v6601_v37, %v2857_v54 }
0x1471   : > { %v2862_v41 = vsel %vm2861_vm14, %v6601_v37, %v2858_v40 }
0x1472   : > { %v2863_v43 = vmul.f32 %v2862_v41, %v7696_v24  ;;  %v6499_v41 = vld [vmem:[#allocation2] ss:$0 sm:$0xff] }
0x1474   : > { %v2867_v45 = vmul.f32 %v6496_v39, %v2863_v43 }
0x1476   : > { %v2871_v46 = vadd.f32 %v6497_v44, %v2867_v45  ;;  %v6500_v45 = vld [vmem:[#allocation4] ss:$0 sm:$0xff] }
0x1478   : > { %v2874_v47 = vsel %vm1732_vm2, %v2871_v46, 0.0 }
0x1479   : > { %2875 = vadd.xlane.f32.xlu2 %v2874_v47 }
0x14aa   : > { %v3283_v51 = vpop.f32.mrf.mxu0 }
0x14b0   : > { %v3405_v50 = vpop.f32.mrf.mxu1 }
0x14b2   : > { %v3285_v52 = vpop.f32.mrf.mxu0 }
0x14b3   : > { %v3288_v53 = vpack.c.bf16 %v3285_v52, %v3283_v51 }
0x14b5   : > { %6120 = vmatmul.msk.bf16.vlgmr.msra.gmra.mxu2 %vm1757_vm4, %v3288_v53 }
0x14b8   : > { %v3407_v24 = vpop.f32.mrf.mxu1 }
0x14b9   : > { %v3410_v22 = vpack.c.bf16 %v3407_v24, %v3405_v50  ;;  %v6333_v50 = vld [vmem:[%s8500_s11] sm:$0xff] }
0x14ba   : > { %3529 = vmatpush.bf16.msrb.mxu2 %v6333_v50 }
0x14bb   : > { %6123 = vmatmul.msk.bf16.vlgmr.msrb.gmra.mxu0 %vm1757_vm4, %v3410_v22 }
0x14c5   : > { %v3164_v56 = vpop.f32.mrf.mxu2 }
0x14c6   : > { %v3185_v59 = vadd.f32 %v7649_v1, %v3164_v56 }
0x14cd   : > { %v3166_v58 = vpop.f32.mrf.mxu2 }
0x14ce   : > { %v3187_v5 = vadd.f32 %v7655_v4, %v3166_v58 }
0x14ec   : > { %v2876_v16 = vpop.xlane.xlu2 %2875 }
0x14ed   : > { %v2877_v17 = vmul.f32 %v2876_v16, %v7452_v11 }
0x14ef   : > { %v2878_v19 = vsub.f32 %v2871_v46, %v2877_v17 }
0x14f1   : > { %v2879_v18 = vmul.f32 %v2878_v19, %v2878_v19 }
0x14f3   : > { %v2880_v4 = vsel %vm1732_vm2, %v2879_v18, 0.0 }
0x1538   : > { %v3304_v60 = vpop.f32.mrf.mxu2  ;;  %v3426_v62 = vpop.f32.mrf.mxu0 }
0x1539   : > { %v3309_v61 = vadd.f32 %v3304_v60, %v3185_v59 }
0x153b   : > { %v3431_v0 = vadd.f32 %v3426_v62, %v3309_v61 }
0x153d   : > { %v3437_v3 = vadd.f32 %v6498_v63, %v3431_v0 }
0x153f   : > { %v3439_v7 = vadd.f32 %v3437_v3, %v7555_v35 }
0x1540   : > { %v3306_v12 = vpop.f32.mrf.mxu2  ;;  %v3428_v1 = vpop.f32.mrf.mxu0 }
0x1541   : > { %v3310_v9 = vadd.f32 %v3306_v12, %v3187_v5  ;;  %v3443_v13 = vsel %vm1732_vm2, %v3439_v7, 0.0  ;;  %v6501_v5 = vld [vmem:[%s8501_s14] ss:$0 sm:$0xff] }
0x1542   : > { %3444 = vadd.xlane.f32.xlu1 %v3443_v13 }
0x1543   : > { %v3432_v14 = vadd.f32 %v3428_v1, %v3310_v9  ;;  %v6502_v9 = vld [vmem:[%s8502_s15] ss:$0 sm:$0xff] }
0x1545   : > { %v3438_v55 = vadd.f32 %v6498_v63, %v3432_v14 }
0x1547   : > { %v3440_v20 = vadd.f32 %v3438_v55, %v7552_v33 }
0x1549   : > { %v3447_v21 = vsel %vm3446_vm0, %v3440_v20, 0.0 }
0x154a   : > { %3448 = vadd.xlane.f32.xlu0 %v3447_v21  ;;  %2881 = vadd.xlane.f32.xlu1 %v2880_v4  ;;  %v6503_v21 = vld [vmem:[%s8503_s19] ss:$0 sm:$0xff] }
0x15b5   : > { %v3445_v35 = vpop.xlane.xlu1 %3444 }
0x15b6   : > { %v3450_v30 = vmul.f32 %v3445_v35, %v7452_v11 }
0x15b8   : > { %v3452_v25 = vsub.f32 %v3439_v7, %v3450_v30 }
0x15ba   : > { %v3454_v26 = vmul.f32 %v3452_v25, %v3452_v25 }
0x15bc   : > { %v3456_v27 = vsel %vm1732_vm2, %v3454_v26, 0.0  ;;  %v6504_v26 = vld [vmem:[%s8504_s21] ss:$0 sm:$0xff] }
0x15bd   : > { %3457 = vadd.xlane.f32.xlu2 %v3456_v27  ;;  %v3449_v28 = vpop.xlane.xlu0 %3448  ;;  %v2882_v33 = vpop.xlane.xlu1 %2881 }
0x15be   : > { %v3451_v29 = vmul.f32 %v3449_v28, %v7452_v11  ;;  %v2883_v31 = vmul.f32 %v2882_v33, %v7452_v11 }
0x15c0   : > { %v3453_v32 = vsub.f32 %v3440_v20, %v3451_v29  ;;  %v2884_v49 = vadd.f32 1e-05, %v2883_v31  ;;  %v1709_v31 = vld [vmem:[%s1589_s24] sm:$0x1]  ;;  %s8506_s24 = sld [smem:[#allocation48_spill]] }
0x15c2   : > { %6602 = vrsqrt.f32 %v2884_v49  ;;  %v3455_v34 = vmul.f32 %v3453_v32, %v3453_v32  ;;  %vm2891_vm5 = vweird.f32 %v2884_v49 }
0x15c4   : > { %v3459_v37 = vsel %vm3446_vm0, %v3455_v34, 0.0 }
0x15c5   : > { %3460 = vadd.xlane.f32.xlu0 %v3459_v37 }
0x15c8   : > { %v6603_v38 = vpop.eup %6602 }
0x15c9   : > { %v2886_v48 = vmul.f32 %v6603_v38, %v2884_v49  ;;  %vm2892_vm1 = vweird.f32 %v6603_v38 }
0x15ca   : > { %vm2893_vm6 = vmor %vm2891_vm5, %vm2892_vm1  ;;  %vm3609_vm5 = vcmask 58368  }
0x15cb   : > { %v2887_v57 = vmul.f32 %v6603_v38, %v2886_v48 }
0x15cd   : > { %v2888_v54 = vmul.f32 0.5, %v2887_v57 }
0x15cf   : > { %v2889_v40 = vsub.f32 1.5, %v2888_v54 }
0x15d1   : > { %v2890_v39 = vmul.f32 %v6603_v38, %v2889_v40 }
0x15d3   : > { %v2894_v43 = vsel %vm2893_vm6, %v6603_v38, %v2890_v39 }
0x15d4   : > { %v2895_v44 = vmul.f32 %v2894_v43, %v2878_v19 }
0x15d6   : > { %v2899_v46 = vmul.f32 %v6499_v41, %v2895_v44 }
0x15d8   : > { %v2903_v47 = vadd.f32 %v6500_v45, %v2899_v46 }
0x15da   : > { %v7740_v8 = vpack.c.bf16 %v2903_v47, %v2903_v47 }
0x15dc   : > { %6141 = vmatmul.msk.bf16.vlgmr.msrb.gmra.mxu3 %vm1732_vm2, %v7740_v8 }
0x1630   : > { %v3458_v36 = vpop.xlane.xlu2 %3457 }
0x1631   : > { %v3462_v42 = vmul.f32 %v3458_v36, %v7452_v11 }
0x1633   : > { %v3464_v51 = vadd.f32 1e-05, %v3462_v42 }
0x1635   : > { %6604 = vrsqrt.f32 %v3464_v51  ;;  %vm3472_vm8 = vweird.f32 %v3464_v51 }
0x1638   : > { %v3461_v52 = vpop.xlane.xlu0 %3460 }
0x1639   : > { %v3463_v53 = vmul.f32 %v3461_v52, %v7452_v11 }
0x163b   : > { %v6605_v24 = vpop.eup %6604  ;;  %v3465_v22 = vadd.f32 1e-05, %v3463_v53  ;;  %v3573_v53 = vld [vmem:[%s8506_s24] sm:$0xf] }
0x163c   : > { %v3467_v56 = vmul.f32 %v6605_v24, %v3464_v51  ;;  %vm3473_vm7 = vweird.f32 %v6605_v24 }
0x163d   : > { %6606 = vrsqrt.f32 %v3465_v22  ;;  %vm3474_vm9 = vmor %vm3472_vm8, %vm3473_vm7  ;;  %vm3482_vm14 = vweird.f32 %v3465_v22 }
0x163e   : > { %v3468_v58 = vmul.f32 %v6605_v24, %v3467_v56 }
0x1640   : > { %v3469_v59 = vmul.f32 0.5, %v3468_v58 }
0x1642   : > { %v3470_v60 = vsub.f32 1.5, %v3469_v59 }
0x1643   : > { %v6607_v61 = vpop.eup %6606 }
0x1644   : > { %v3471_v62 = vmul.f32 %v6605_v24, %v3470_v60  ;;  %v3477_v63 = vmul.f32 %v6607_v61, %v3465_v22  ;;  %vm3483_vm13 = vweird.f32 %v6607_v61 }
0x1645   : > { %vm3484_vm1 = vmor %vm3482_vm14, %vm3483_vm13 }
0x1646   : > { %v3478_v16 = vmul.f32 %v6607_v61, %v3477_v63  ;;  %v3475_v0 = vsel %vm3474_vm9, %v6605_v24, %v3471_v62  ;;  %v3805_v24 = vsel %vm1809_vm3, %v3573_v53, 0 }
0x1647   : > { %v3486_v7 = vmul.f32 %v3475_v0, %v3452_v25 }
0x1648   : > { %v3479_v17 = vmul.f32 0.5, %v3478_v16 }
0x1649   : > { %v3491_v13 = vmul.f32 %v6501_v5, %v3486_v7 }
0x164a   : > { %v3480_v3 = vsub.f32 1.5, %v3479_v17 }
0x164b   : > { %v7750_v55 = vadd.f32 %v6502_v9, %v3491_v13 }
0x164c   : > { %v3481_v12 = vmul.f32 %v6607_v61, %v3480_v3 }
0x164e   : > { %v3485_v19 = vsel %vm3484_vm1, %v6607_v61, %v3481_v12 }
0x164f   : > { %v3487_v1 = vmul.f32 %v3485_v19, %v3453_v32  ;;  %v1710_v32 = vmul.f32 -1e+09, %v1709_v31 }
0x1651   : > { %v3492_v14 = vmul.f32 %v6501_v5, %v3487_v1  ;;  %v7766_v49 = vperm.slane %v1710_v32, 0 }
0x1653   : > { %v7752_v18 = vadd.f32 %v6502_v9, %v3492_v14 }
0x1655   : > { %v3502_v20 = vpack.c.bf16 %v7752_v18, %v7750_v55 }
0x1657   : > { %6132 = vmatmul.msk.bf16.vlgmr.msrb.gmra.mxu2 %vm1732_vm2, %v3502_v20 }
0x165f   : > { %v3569_v4 = vpop.f32.mrf.mxu3 }
0x1660   : > { %v3570_v35 = vadd.f32 %v6503_v21, %v3569_v4 }
0x1662   : > { %v7758_v23 = vpack.c.bf16 %v3570_v35, %v3570_v35 }
0x1664   : > { %v3583_v30 = vsel %vm1757_vm4, %v7758_v23, 0 }
0x1665   : > { %3592 = vmatpush.bf16.xpose.msrb.mxu1 %v3583_v30 }
0x1667   : > { %v3571_v2 = vpop.f32.mrf.mxu3 }
0x16da   : > { %v3531_v25 = vpop.f32.mrf.mxu2 }
0x16db   : > { %v3532_v28 = vadd.f32 %v6504_v26, %v3531_v25 }
0x16e2   : > { %v3533_v27 = vpop.f32.mrf.mxu2 }
0x16e3   : > { %v3534_v33 = vadd.f32 %v6504_v26, %v3533_v27 }
0x16e5   : > { %v3577_v29 = vpack.c.bf16 %v3534_v33, %v3532_v28 }
0x16e7   : > { %6142 = vmatmul.msk.bf16.vlgmr.msrb.gmra.mxu1 %vm1757_vm4, %v3577_v29 }
0x1764   : > { %v3594_v34 = vpop.f32.mrf.mxu1 }
0x1765   : > { %v3599_v37 = vmul.f32 0.35355338, %v3594_v34 }
0x1767   : > { %v3604_v38 = vadd.f32 %v7766_v49, %v3599_v37 }
0x1769   : > { %v3606_v48 = vsel %vm1757_vm4, %v3604_v38, -inf }
0x176a   : > { %3607 = vmax.xlane.f32.xlu1 %v3606_v48 }
0x176c   : > { %v3596_v57 = vpop.f32.mrf.mxu1 }
0x176d   : > { %v3600_v54 = vmul.f32 0.35355338, %v3596_v57 }
0x176f   : > { %v3605_v40 = vadd.f32 %v7766_v49, %v3600_v54 }
0x1771   : > { %v3610_v39 = vsel %vm3609_vm5, %v3605_v40, -inf }
0x1772   : > { %3611 = vmax.xlane.f32.xlu2 %v3610_v39 }
0x178a   : > { %3657 = vrot.lane.b32.xlu2 %v7758_v23, %s8491_s6 }
0x1792   : > { %3945 = vrot.lane.b32.xlu2 %v7758_v23, %s8494_s9 }
0x17dd   : > { %v3608_v41 = vpop.xlane.xlu1 %3607 }
0x17de   : > { %v3613_v43 = vsub.f32 %v3604_v38, %v3608_v41 }
0x17e0   : > { %v3615_v44 = vmul.f32 1.442695, %v3613_v43 }
0x17e2   : > { %6608 = vpow2.f32 %v3615_v44 }
0x17e5   : > { %v3612_v45 = vpop.xlane.xlu2 %3611 }
0x17e6   : > { %v3614_v46 = vsub.f32 %v3605_v40, %v3612_v45 }
0x17e8   : > { %v6609_v47 = vpop.eup %6608  ;;  %v3617_v36 = vmul.f32 1.442695, %v3614_v46 }
0x17e9   : > { %v3619_v10 = vsel %vm1757_vm4, %v6609_v47, 0.0 }
0x17ea   : > { %6610 = vpow2.f32 %v3617_v36  ;;  %3620 = vadd.xlane.f32.xlu0 %v3619_v10 }
0x17ed   : > { %v3658_v42 = vpop.permute.xlu2 %3657 }
0x17ee   : > { %v3663_v51 = vsel %vm1809_vm3, %v3658_v42, 0 }
0x17ef   : > { %3672 = vmatpush.bf16.msra.mxu0 %v3663_v51 }
0x17f0   : > { %v6611_v50 = vpop.eup %6610 }
0x17f1   : > { %v3622_v52 = vsel %vm3609_vm5, %v6611_v50, 0.0 }
0x17f2   : > { %3623 = vadd.xlane.f32.xlu1 %v3622_v52 }
0x17f3   : > { %3814 = vmatpush.bf16.msrb.mxu0 %v3805_v24 }
0x17f5   : > { %v3946_v25 = vpop.permute.xlu2 %3945 }
0x17f6   : > { %v3951_v33 = vsel %vm1757_vm4, %v3946_v25, 0 }
0x17fe   : > { %3683 = vrot.lane.b32.xlu0 %v7758_v23, %s8484_s22 }
0x1806   : > { %3823 = vrot.lane.b32.xlu0 %v7758_v23, %s8497_s12 }
0x180b   : > { %3681 = vrot.lane.b32.xlu1 %v3577_v29, %s8484_s22 }
0x180e   : > { %3943 = vrot.lane.b32.xlu0 %v3577_v29, %s8494_s9 }
0x1813   : > { %3821 = vrot.lane.b32.xlu1 %v3577_v29, %s8497_s12 }
0x185d   : > { %v3621_v22 = vpop.xlane.xlu0 %3620 }
0x185e   : > { %6612 = vrcp.f32 %v3621_v22  ;;  %v3636_v0 = vand.u32 2147483648, %v3621_v22  ;;  %vm3630_vm7 = vweird.f32 %v3621_v22  ;;  %v3634_v17 = vand.u32 2147483647, %v3621_v22 }
0x1860   : > { %v3637_v1 = vor.u32 1.1754944e-38, %v3636_v0  ;;  %vm3635_vm13 = vcmp.eq.f32.partialorder %v3634_v17, 8.507059e+37 }
0x1864   : > { %v6613_v56 = vpop.eup %6612 }
0x1865   : > { %v3626_v58 = vmul.f32 %v6613_v56, %v3621_v22  ;;  %v3624_v59 = vpop.xlane.xlu1 %3623  ;;  %vm3631_vm6 = vweird.f32 %v6613_v56 }
0x1866   : > { %6614 = vrcp.f32 %v3624_v59  ;;  %vm3632_vm8 = vmor %vm3630_vm7, %vm3631_vm6  ;;  %v3649_v5 = vand.u32 2147483647, %v3624_v59  ;;  %v3651_v7 = vand.u32 2147483648, %v3624_v59  ;;  %vm3645_vm14 = vweird.f32 %v3624_v59 }
0x1867   : > { %v3627_v60 = vsub.f32 1.0, %v3626_v58 }
0x1868   : > { %v3652_v21 = vor.u32 1.1754944e-38, %v3651_v7  ;;  %vm3650_vm12 = vcmp.eq.f32.partialorder %v3649_v5, 8.507059e+37 }
0x1869   : > { %v3628_v61 = vmul.f32 %v6613_v56, %v3627_v60 }
0x186b   : > { %v3629_v63 = vadd.f32 %v6613_v56, %v3628_v61 }
0x186c   : > { %v6615_v62 = vpop.eup %6614 }
0x186d   : > { %v3641_v16 = vmul.f32 %v6615_v62, %v3624_v59  ;;  %v3633_v19 = vsel %vm3632_vm8, %v6613_v56, %v3629_v63  ;;  %vm3646_vm9 = vweird.f32 %v6615_v62 }
0x186e   : > { %v3638_v20 = vsel %vm3635_vm13, %v3637_v1, %v3633_v19  ;;  %vm3647_vm1 = vmor %vm3645_vm14, %vm3646_vm9 }
0x186f   : > { %v3642_v3 = vsub.f32 1.0, %v3641_v16  ;;  %v3639_v30 = vmul.f32 %v6609_v47, %v3638_v20 }
0x1870   : > { %v3684_v12 = vpop.permute.xlu0 %3683 }
0x1871   : > { %v3643_v9 = vmul.f32 %v6615_v62, %v3642_v3  ;;  %v3689_v13 = vsel %vm1757_vm4, %v3684_v12, 0 }
0x1872   : > { %3698 = vmatpush.bf16.xpose.msra.mxu2 %v3689_v13 }
0x1873   : > { %v3644_v14 = vadd.f32 %v6615_v62, %v3643_v9 }
0x1875   : > { %v3648_v4 = vsel %vm3647_vm1, %v6615_v62, %v3644_v14 }
0x1876   : > { %v3653_v35 = vsel %vm3650_vm12, %v3652_v21, %v3648_v4 }
0x1877   : > { %v3654_v2 = vmul.f32 %v6611_v50, %v3653_v35 }
0x1878   : > { %v3824_v26 = vpop.permute.xlu0 %3823 }
0x1879   : > { %v3655_v27 = vpack.c.bf16 %v3654_v2, %v3639_v30  ;;  %v3829_v28 = vsel %vm1757_vm4, %v3824_v26, 0 }
0x187a   : > { %3838 = vmatpush.bf16.xpose.msrb.mxu2 %v3829_v28 }
0x187b   : > { %6143 = vmatmul.msk.bf16.vlgmr.msra.gmra.mxu0 %vm1757_vm4, %v3655_v27 }
0x187c   : > { %3960 = vmatpush.bf16.xpose.msra.mxu0 %v3951_v33 }
0x187d   : > { %v3682_v29 = vpop.permute.xlu1 %3681 }
0x187e   : > { %6144 = vmatmul.msk.bf16.vlgmr.msra.gmra.mxu2 %vm1757_vm4, %v3682_v29 }
0x1880   : > { %v3944_v45 = vpop.permute.xlu0 %3943 }
0x1885   : > { %v3822_v31 = vpop.permute.xlu1 %3821 }
0x188e   : > { %6148 = vmatmul.msk.bf16.vlgmr.msrb.gmra.mxu2 %vm1757_vm4, %v3822_v31 }
0x18f8   : > { %v3674_v32 = vpop.f32.mrf.mxu0 }
0x1900   : > { %v3676_v34 = vpop.f32.mrf.mxu0 }
0x1901   : > { %v3679_v37 = vpack.c.bf16 %v3676_v34, %v3674_v32  ;;  %v3700_v38 = vpop.f32.mrf.mxu2 }
0x1902   : > { %v3705_v48 = vmul.f32 0.35355338, %v3700_v38 }
0x1903   : > { %6147 = vmatmul.msk.bf16.vlgmr.msrb.gmra.mxu0 %vm1757_vm4, %v3679_v37 }
0x1904   : > { %v3707_v57 = vadd.f32 %v3705_v48, %v7766_v49 }
0x1906   : > { %v3709_v54 = vsel %vm1757_vm4, %v3707_v57, -inf }
0x1907   : > { %3710 = vmax.xlane.f32.xlu2 %v3709_v54 }
0x1909   : > { %v3702_v40 = vpop.f32.mrf.mxu2 }
0x190a   : > { %v3706_v39 = vmul.f32 0.35355338, %v3702_v40 }
0x190c   : > { %v3708_v41 = vadd.f32 %v3706_v39, %v7766_v49 }
0x190e   : > { %v3712_v43 = vsel %vm3609_vm5, %v3708_v41, -inf }
0x190f   : > { %3713 = vmax.xlane.f32.xlu1 %v3712_v43 }
0x1911   : > { %v3840_v44 = vpop.f32.mrf.mxu2 }
0x1912   : > { %v3845_v46 = vmul.f32 0.35355338, %v3840_v44 }
0x1913   : > { %6151 = vmatmul.msk.bf16.vlgmr.msra.gmra.mxu0 %vm1757_vm4, %v3944_v45 }
0x1914   : > { %v3847_v47 = vadd.f32 %v3845_v46, %v7766_v49 }
0x1916   : > { %v3849_v36 = vsel %vm1757_vm4, %v3847_v47, -inf }
0x1917   : > { %3850 = vmax.xlane.f32.xlu1 %v3849_v36 }
0x1919   : > { %v3842_v62 = vpop.f32.mrf.mxu2 }
0x191a   : > { %v3846_v17 = vmul.f32 0.35355338, %v3842_v62 }
0x191c   : > { %v3848_v9 = vadd.f32 %v3846_v17, %v7766_v49 }
0x191e   : > { %v3852_v1 = vsel %vm3609_vm5, %v3848_v9, -inf }
0x197a   : > { %v3711_v60 = vpop.xlane.xlu2 %3710 }
0x197b   : > { %v3715_v16 = vsub.f32 %v3707_v57, %v3711_v60 }
0x197d   : > { %v3717_v7 = vmul.f32 1.442695, %v3715_v16 }
0x1980   : > { %v7802_v10 = vpop.f32.mrf.mxu0 }
0x1982   : > { %v3714_v42 = vpop.xlane.xlu1 %3713 }
0x1983   : > { %v3716_v51 = vsub.f32 %v3708_v41, %v3714_v42 }
0x1985   : > { %v3719_v50 = vmul.f32 1.442695, %v3716_v51 }
0x1987   : > { %6616 = vpow2.f32 %v3719_v50 }
0x1988   : > { %v7804_v52 = vpop.f32.mrf.mxu0 }
0x198a   : > { %v3851_v53 = vpop.xlane.xlu1 %3850 }
0x198b   : > { %v3855_v24 = vsub.f32 %v3847_v47, %v3851_v53 }
0x198d   : > { %v7806_v22 = vpop.eup %6616  ;;  %v3857_v56 = vmul.f32 1.442695, %v3855_v24 }
0x198e   : > { %v3724_v58 = vsel %vm3609_vm5, %v7806_v22, 0.0 }
0x198f   : > { %6618 = vpow2.f32 %v3857_v56  ;;  %3725 = vadd.xlane.f32.xlu1 %v3724_v58 }
0x1990   : > { %v3962_v59 = vpop.f32.mrf.mxu0  ;;  %6620 = vpow2.f32 %v3717_v7 }
0x1991   : > { %v3967_v61 = vmul.f32 0.35355338, %v3962_v59 }
0x1993   : > { %v3969_v63 = vadd.f32 %v3967_v61, %v7766_v49 }
0x1995   : > { %v7811_v0 = vpop.eup %6618  ;;  %v3971_v3 = vsel %vm1757_vm4, %v3969_v63, -inf }
0x1996   : > { %3972 = vmax.xlane.f32.xlu0 %v3971_v3  ;;  %v3861_v5 = vsel %vm1757_vm4, %v7811_v0, 0.0  ;;  %v7820_v20 = vpop.eup %6620 }
0x1997   : > { %3862 = vadd.xlane.f32.xlu1 %v3861_v5  ;;  %v3721_v21 = vsel %vm1757_vm4, %v7820_v20, 0.0 }
0x1998   : > { %v3964_v12 = vpop.f32.mrf.mxu0 }
0x1999   : > { %v3968_v19 = vmul.f32 0.35355338, %v3964_v12 }
0x199b   : > { %v3970_v13 = vadd.f32 %v3968_v19, %v7766_v49 }
0x199d   : > { %v3974_v14 = vsel %vm3609_vm5, %v3970_v13, -inf }
0x199e   : > { %3853 = vmax.xlane.f32.xlu0 %v3852_v1  ;;  %3975 = vmax.xlane.f32.xlu2 %v3974_v14 }
0x19a6   : > { %3722 = vadd.xlane.f32.xlu2 %v3721_v21 }
0x19b0   : > { %4020 = vrot.lane.b32.xlu1 %v7758_v23, %s8483_s18 }
0x1a02   : > { %v7826_v35 = vpop.xlane.xlu1 %3725 }
0x1a03   : > { %v3753_v56 = vand.u32 2147483648, %v7826_v35  ;;  %vm3747_vm9 = vweird.f32 %v7826_v35  ;;  %v3751_v60 = vand.u32 2147483647, %v7826_v35 }
0x1a05   : > { %v3754_v16 = vor.u32 1.1754944e-38, %v3753_v56  ;;  %vm3752_vm1 = vcmp.eq.f32.partialorder %v3751_v60, 8.507059e+37 }
0x1a09   : > { %v3973_v4 = vpop.xlane.xlu0 %3972 }
0x1a0a   : > { %v3977_v27 = vsub.f32 %v3969_v63, %v3973_v4  ;;  %v7828_v31 = vpop.xlane.xlu1 %3862 }
0x1a0c   : > { %v3979_v29 = vmul.f32 1.442695, %v3977_v27 }
0x1a11   : > { %v3854_v30 = vpop.xlane.xlu0 %3853  ;;  %v3976_v2 = vpop.xlane.xlu2 %3975 }
0x1a12   : > { %v3856_v25 = vsub.f32 %v3848_v9, %v3854_v30  ;;  %v3978_v26 = vsub.f32 %v3970_v13, %v3976_v2 }
0x1a14   : > { %v3859_v28 = vmul.f32 1.442695, %v3856_v25  ;;  %v3981_v33 = vmul.f32 1.442695, %v3978_v26 }
0x1a16   : > { %6622 = vpow2.f32 %v3859_v28 }
0x1a17   : > { %6624 = vpow2.f32 %v3981_v33 }
0x1a18   : > { %6626 = vpow2.f32 %v3979_v29 }
0x1a19   : > { %v3723_v39 = vpop.xlane.xlu2 %3722 }
0x1a1a   : > { %6628 = vrcp.f32 %v3723_v39  ;;  %v3738_v50 = vand.u32 2147483648, %v3723_v39  ;;  %vm3732_vm7 = vweird.f32 %v3723_v39 }
0x1a1b   : > { %6630 = vrcp.f32 %v7826_v35 }
0x1a1c   : > { %v7830_v32 = vpop.eup %6622  ;;  %6632 = vrcp.f32 %v7828_v31  ;;  %v3739_v62 = vor.u32 1.1754944e-38, %v3738_v50 }
0x1a1d   : > { %v7832_v34 = vpop.eup %6624  ;;  %v3864_v37 = vsel %vm3609_vm5, %v7830_v32, 0.0 }
0x1a1e   : > { %3865 = vadd.xlane.f32.xlu0 %v3864_v37  ;;  %v3986_v38 = vsel %vm3609_vm5, %v7832_v34, 0.0  ;;  %v7838_v48 = vpop.eup %6626 }
0x1a1f   : > { %3987 = vadd.xlane.f32.xlu2 %v3986_v38  ;;  %v3983_v40 = vsel %vm1757_vm4, %v7838_v48, 0.0 }
0x1a20   : > { %v6629_v41 = vpop.eup %6628 }
0x1a21   : > { %v6631_v43 = vpop.eup %6630  ;;  %v3728_v44 = vmul.f32 %v6629_v41, %v3723_v39  ;;  %vm3733_vm12 = vweird.f32 %v6629_v41 }
0x1a22   : > { %v4021_v57 = vpop.permute.xlu1 %4020  ;;  %v3743_v45 = vmul.f32 %v6631_v43, %v7826_v35  ;;  %vm3748_vm6 = vweird.f32 %v6631_v43  ;;  %vm3734_vm8 = vmor %vm3732_vm7, %vm3733_vm12  ;;  %v7856_v59 = vpop.eup %6632  ;;  %vm3872_vm12 = vweird.f32 %v7828_v31 }
0x1a23   : > { %v4026_v54 = vsel %vm1809_vm3, %v4021_v57, 0  ;;  %v3729_v46 = vsub.f32 1.0, %v3728_v44  ;;  %vm3749_vm13 = vmor %vm3747_vm9, %vm3748_vm6  ;;  %v3868_v17 = vmul.f32 %v7856_v59, %v7828_v31  ;;  %vm3873_vm6 = vweird.f32 %v7856_v59 }
0x1a24   : > { %4035 = vmatpush.bf16.msra.mxu2 %v4026_v54  ;;  %v3744_v47 = vsub.f32 1.0, %v3743_v45  ;;  %v3878_v44 = vand.u32 2147483648, %v7828_v31 }
0x1a25   : > { %v3730_v36 = vmul.f32 %v6629_v41, %v3729_v46  ;;  %v3869_v1 = vsub.f32 1.0, %v3868_v17 }
0x1a26   : > { %3984 = vadd.xlane.f32.xlu0 %v3983_v40  ;;  %v3745_v42 = vmul.f32 %v6631_v43, %v3744_v47  ;;  %v3879_v56 = vor.u32 1.1754944e-38, %v3878_v44 }
0x1a27   : > { %v3731_v51 = vadd.f32 %v6629_v41, %v3730_v36  ;;  %v3870_v27 = vmul.f32 %v7856_v59, %v3869_v1 }
0x1a28   : > { %v3746_v53 = vadd.f32 %v6631_v43, %v3745_v42 }
0x1a29   : > { %v3735_v61 = vsel %vm3734_vm8, %v6629_v41, %v3731_v51  ;;  %v3871_v37 = vadd.f32 %v7856_v59, %v3870_v27 }
0x1a2a   : > { %v3750_v63 = vsel %vm3749_vm13, %v6631_v43, %v3746_v53  ;;  %v3876_v43 = vand.u32 2147483647, %v7828_v31 }
0x1a2b   : > { %v3755_v7 = vsel %vm3752_vm1, %v3754_v16, %v3750_v63 }
0x1a2c   : > { %v3756_v4 = vmul.f32 %v7806_v22, %v3755_v7 }
0x1a37   : > { %3758 = vrot.lane.b32.xlu2 %v7758_v23, %s8496_s10 }
0x1a3a   : > { %3898 = vrot.lane.b32.xlu0 %v7758_v23, %s8482_s4  ;;  %v3736_v23 = vand.u32 2147483647, %v3723_v39 }
0x1a3c   : > { %vm3737_vm14 = vcmp.eq.f32.partialorder %v3736_v23, 8.507059e+37 }
0x1a3d   : > { %v3740_v3 = vsel %vm3737_vm14, %v3739_v62, %v3735_v61 }
0x1a3e   : > { %v3741_v19 = vmul.f32 %v7820_v20, %v3740_v3 }
0x1a40   : > { %v3757_v25 = vpack.c.bf16 %v3756_v4, %v3741_v19 }
0x1a91   : > { %v7850_v24 = vpop.xlane.xlu0 %3865 }
0x1a92   : > { %6634 = vrcp.f32 %v7850_v24  ;;  %v7854_v58 = vpop.xlane.xlu2 %3987  ;;  %vm3887_vm9 = vweird.f32 %v7850_v24  ;;  %v3893_v38 = vand.u32 2147483648, %v7850_v24  ;;  %v3891_v40 = vand.u32 2147483647, %v7850_v24 }
0x1a93   : > { %6636 = vrcp.f32 %v7854_v58  ;;  %v4015_v57 = vand.u32 2147483648, %v7854_v58  ;;  %vm4009_vm14 = vweird.f32 %v7854_v58  ;;  %v4013_v39 = vand.u32 2147483647, %v7854_v58 }
0x1a94   : > { %v3894_v23 = vor.u32 1.1754944e-38, %v3893_v38 }
0x1a98   : > { %v6635_v5 = vpop.eup %6634 }
0x1a99   : > { %v6637_v12 = vpop.eup %6636  ;;  %v3883_v9 = vmul.f32 %v6635_v5, %v7850_v24  ;;  %v3985_v13 = vpop.xlane.xlu0 %3984  ;;  %vm3888_vm7 = vweird.f32 %v6635_v5  ;;  %v4016_v24 = vor.u32 1.1754944e-38, %v4015_v57 }
0x1a9a   : > { %v4005_v14 = vmul.f32 %v6637_v12, %v7854_v58  ;;  %6638 = vrcp.f32 %v3985_v13  ;;  %v3759_v21 = vpop.permute.xlu2 %3758  ;;  %vm4010_vm8 = vweird.f32 %v6637_v12  ;;  %vm7876_vm13 = vmor %vm3887_vm9, %vm3888_vm7  ;;  %v3998_v46 = vand.u32 2147483647, %v3985_v13 }
0x1a9b   : > { %v3884_v35 = vsub.f32 1.0, %v3883_v9  ;;  %v3764_v30 = vsel %vm1809_vm3, %v3759_v21, 0  ;;  %vm7885_vm1 = vmor %vm4009_vm14, %vm4010_vm8  ;;  %v4000_v47 = vand.u32 2147483648, %v3985_v13  ;;  %vm3892_vm9 = vcmp.eq.f32.partialorder %v3891_v40, 8.507059e+37 }
0x1a9c   : > { %v4006_v2 = vsub.f32 1.0, %v4005_v14  ;;  %3773 = vmatpush.bf16.msra.mxu3 %v3764_v30  ;;  %vm7893_vm7 = vmor %vm3872_vm12, %vm3873_vm6  ;;  %vm4014_vm14 = vcmp.eq.f32.partialorder %v4013_v39, 8.507059e+37  ;;  %vm3994_vm12 = vweird.f32 %v3985_v13 }
0x1a9d   : > { %v3885_v26 = vmul.f32 %v6635_v5, %v3884_v35  ;;  %v3875_v53 = vsel %vm7893_vm7, %v7856_v59, %v3871_v37  ;;  %v4001_v61 = vor.u32 1.1754944e-38, %v4000_v47  ;;  %v6505_v37 = vld [vmem:[%s8513_s23] ss:$0 sm:$0xff] }
0x1a9e   : > { %v4007_v20 = vmul.f32 %v6637_v12, %v4006_v2 }
0x1a9f   : > { %6145 = vmatmul.msk.bf16.vlgmr.msra.gmra.mxu3 %vm1757_vm4, %v3757_v25  ;;  %v3886_v33 = vadd.f32 %v6635_v5, %v3885_v26 }
0x1aa0   : > { %v6639_v28 = vpop.eup %6638  ;;  %v4008_v22 = vadd.f32 %v6637_v12, %v4007_v20 }
0x1aa1   : > { %v3990_v29 = vmul.f32 %v6639_v28, %v3985_v13  ;;  %v3890_v42 = vsel %vm7876_vm13, %v6635_v5, %v3886_v33  ;;  %vm3995_vm8 = vweird.f32 %v6639_v28  ;;  %vm3877_vm13 = vcmp.eq.f32.partialorder %v3876_v43, 8.507059e+37  ;;  %v3574_v13 = vld [vmem:[%s8506_s24 + $0x4] sm:$0xf] }
0x1aa2   : > { %v4012_v51 = vsel %vm7885_vm1, %v6637_v12, %v4008_v22  ;;  %v3895_v58 = vsel %vm3892_vm9, %v3894_v23, %v3890_v42  ;;  %vm3996_vm6 = vmor %vm3994_vm12, %vm3995_vm8  ;;  %vm3999_vm1 = vcmp.eq.f32.partialorder %v3998_v46, 8.507059e+37  ;;  %v3880_v63 = vsel %vm3877_vm13, %v3879_v56, %v3875_v53 }
0x1aa3   : > { %v3991_v41 = vsub.f32 1.0, %v3990_v29  ;;  %v4017_v60 = vsel %vm4014_vm14, %v4016_v24, %v4012_v51  ;;  %v3896_v59 = vmul.f32 %v7830_v32, %v3895_v58  ;;  %v3881_v7 = vmul.f32 %v7811_v0, %v3880_v63  ;;  %v6338_v58 = vld [vmem:[%s8514_s25 + $0x8] sm:$0xff] }
0x1aa4   : > { %v4018_v17 = vmul.f32 %v7832_v34, %v4017_v60  ;;  %v3785_v32 = vsel %vm1809_vm3, %v3574_v13, 0  ;;  %v3576_v34 = vld [vmem:[%s8506_s24 + $0xc] sm:$0xf] }
0x1aa5   : > { %v3992_v50 = vmul.f32 %v6639_v28, %v3991_v41  ;;  %v3897_v9 = vpack.c.bf16 %v3896_v59, %v3881_v7  ;;  %3794 = vmatpush.bf16.msra.mxu1 %v3785_v32  ;;  %v4047_v1 = vsel %vm1809_vm3, %v3576_v34, 0 }
0x1aa7   : > { %v3993_v31 = vadd.f32 %v6639_v28, %v3992_v50 }
0x1aa9   : > { %v3997_v62 = vsel %vm3996_vm6, %v6639_v28, %v3993_v31 }
0x1aaa   : > { %v4002_v16 = vsel %vm3999_vm1, %v4001_v61, %v3997_v62  ;;  %v6337_v62 = vld [vmem:[%s8514_s25] sm:$0xff] }
0x1aab   : > { %v4003_v3 = vmul.f32 %v7838_v48, %v4002_v16  ;;  %v3575_v48 = vld [vmem:[%s8506_s24 + $0x8] sm:$0xf] }
0x1aac   : > { %v3899_v5 = vpop.permute.xlu0 %3898  ;;  %v3925_v0 = vsel %vm1809_vm3, %v3575_v48, 0 }
0x1aad   : > { %v4019_v12 = vpack.c.bf16 %v4018_v17, %v4003_v3  ;;  %v3904_v19 = vsel %vm1809_vm3, %v3899_v5, 0  ;;  %3934 = vmatpush.bf16.msrb.mxu1 %v3925_v0  ;;  %v6506_v0 = vld [vmem:[%s8515_s26] ss:$0 sm:$0xff] }
0x1aae   : > { %3913 = vmatpush.bf16.msrb.mxu3 %v3904_v19 }
0x1aaf   : > { %6152 = vmatmul.msk.bf16.vlgmr.msra.gmra.mxu2 %vm1757_vm4, %v4019_v12 }
0x1ab1   : > { %6149 = vmatmul.msk.bf16.vlgmr.msrb.gmra.mxu3 %vm1757_vm4, %v3897_v9 }
0x1ab2   : > { %4056 = vmatpush.bf16.msra.mxu3 %v4047_v1 }
0x1b22   : > { %v3775_v14 = vpop.f32.mrf.mxu3 }
0x1b2a   : > { %v3777_v21 = vpop.f32.mrf.mxu3 }
0x1b2b   : > { %v3780_v4 = vpack.c.bf16 %v3777_v21, %v3775_v14 }
0x1b2d   : > { %6146 = vmatmul.msk.bf16.vlgmr.msra.gmra.mxu1 %vm1757_vm4, %v3780_v4 }
0x1b2e   : > { %4159 = vmatpush.bf16.msra.mxu1 %v6338_v58 }
0x1b32   : > { %v4037_v35 = vpop.f32.mrf.mxu2  ;;  %4160 = vmatpush.bf16.msra.mxu1 %v6337_v62  ;;  %v6344_v62 = vld [vmem:[%s8487_s5 + $0x18] sm:$0xff] }
0x1b33   : > { %4313 = vmatpush.bf16.msrb.mxu2 %v6344_v62 }
0x1b34   : > { %v3915_v30 = vpop.f32.mrf.mxu3 }
0x1b3a   : > { %v4039_v2 = vpop.f32.mrf.mxu2 }
0x1b3b   : > { %v4042_v25 = vpack.c.bf16 %v4039_v2, %v4037_v35  ;;  %v6507_v35 = vld [vmem:[%s8516_s27] ss:$0 sm:$0xff] }
0x1b3c   : > { %v3917_v26 = vpop.f32.mrf.mxu3 }
0x1b3d   : > { %v3920_v27 = vpack.c.bf16 %v3917_v26, %v3915_v30  ;;  %6153 = vmatmul.msk.bf16.vlgmr.msra.gmra.mxu3 %vm1757_vm4, %v4042_v25 }
0x1b3f   : > { %6150 = vmatmul.msk.bf16.vlgmr.msrb.gmra.mxu1 %vm1757_vm4, %v3920_v27 }
0x1baa   : > { %v3796_v20 = vpop.f32.mrf.mxu1 }
0x1bab   : > { %v3817_v22 = vadd.f32 %v7802_v10, %v3796_v20 }
0x1bb2   : > { %v3798_v28 = vpop.f32.mrf.mxu1 }
0x1bb3   : > { %v3819_v39 = vadd.f32 %v7804_v52, %v3798_v28  ;;  %v6342_v28 = vld [vmem:[%s8517_s28 + $0x18] sm:$0xff] }
0x1bb4   : > { %4213 = vmatpush.bf16.msrb.mxu0 %v6342_v28 }
0x1bbc   : > { %v3936_v33 = vpop.f32.mrf.mxu1 }
0x1bbd   : > { %v3941_v29 = vadd.f32 %v3936_v33, %v3817_v22  ;;  %v6341_v33 = vld [vmem:[%s8517_s28 + $0x10] sm:$0xff]  ;;  %v6340_v22 = vld [vmem:[%s8517_s28 + $0x8] sm:$0xff] }
0x1bbe   : > { %4214 = vmatpush.bf16.msrb.mxu0 %v6341_v33 }
0x1bc0   : > { %v4058_v38 = vpop.f32.mrf.mxu3 }
0x1bc1   : > { %v4063_v57 = vadd.f32 %v4058_v38, %v3941_v29  ;;  %v6339_v29 = vld [vmem:[%s8517_s28] sm:$0xff] }
0x1bc2   : > { %4215 = vmatpush.bf16.msrb.mxu0 %v6340_v22  ;;  %v6508_v38 = vld [vmem:[%s8518_s29] ss:$0 sm:$0xff] }
0x1bc3   : > { %v4069_v54 = vadd.f32 %v6505_v37, %v4063_v57 }
0x1bc4   : > { %v3938_v40 = vpop.f32.mrf.mxu1 }
0x1bc5   : > { %v4071_v41 = vadd.f32 %v4069_v54, %v7750_v55  ;;  %v3942_v43 = vadd.f32 %v3938_v40, %v3819_v39 }
0x1bc6   : > { %4216 = vmatpush.bf16.msrb.mxu0 %v6339_v29 }
0x1bc7   : > { %v4075_v44 = vsel %vm1732_vm2, %v4071_v41, 0.0 }
0x1bc8   : > { %v4060_v45 = vpop.f32.mrf.mxu3  ;;  %4076 = vadd.xlane.f32.xlu2 %v4075_v44  ;;  %v6509_v44 = vld [vmem:[%s8519_s30] ss:$0 sm:$0xff] }
0x1bc9   : > { %v4064_v46 = vadd.f32 %v4060_v45, %v3942_v43 }
0x1bcb   : > { %v4070_v47 = vadd.f32 %v6505_v37, %v4064_v46 }
0x1bcd   : > { %v4072_v36 = vadd.f32 %v4070_v47, %v7752_v18 }
0x1bcf   : > { %v4078_v10 = vsel %vm3446_vm0, %v4072_v36, 0.0 }
0x1bd0   : > { %4079 = vadd.xlane.f32.xlu0 %v4078_v10 }
0x1c3b   : > { %v4077_v42 = vpop.xlane.xlu2 %4076 }
0x1c3c   : > { %v4081_v51 = vmul.f32 %v4077_v42, %v7452_v11 }
0x1c3e   : > { %v4083_v52 = vsub.f32 %v4071_v41, %v4081_v51 }
0x1c40   : > { %v4085_v50 = vmul.f32 %v4083_v52, %v4083_v52 }
0x1c42   : > { %v4087_v55 = vsel %vm1732_vm2, %v4085_v50, 0.0 }
0x1c43   : > { %4088 = vadd.xlane.f32.xlu1 %v4087_v55  ;;  %v4080_v53 = vpop.xlane.xlu0 %4079 }
0x1c44   : > { %v4082_v23 = vmul.f32 %v4080_v53, %v7452_v11 }
0x1c46   : > { %v4084_v24 = vsub.f32 %v4072_v36, %v4082_v23 }
0x1c48   : > { %v4086_v31 = vmul.f32 %v4084_v24, %v4084_v24 }
0x1c4a   : > { %v4090_v18 = vsel %vm3446_vm0, %v4086_v31, 0.0 }
0x1c4b   : > { %4091 = vadd.xlane.f32.xlu2 %v4090_v18 }
0x1cb6   : > { %v4089_v56 = vpop.xlane.xlu1 %4088 }
0x1cb7   : > { %v4093_v60 = vmul.f32 %v4089_v56, %v7452_v11 }
0x1cb9   : > { %v4095_v61 = vadd.f32 1e-05, %v4093_v60 }
0x1cbb   : > { %6640 = vrsqrt.f32 %v4095_v61  ;;  %vm4103_vm8 = vweird.f32 %v4095_v61 }
0x1cbe   : > { %v4092_v63 = vpop.xlane.xlu2 %4091 }
0x1cbf   : > { %v4094_v16 = vmul.f32 %v4092_v63, %v7452_v11 }
0x1cc1   : > { %v6641_v59 = vpop.eup %6640  ;;  %v4096_v17 = vadd.f32 1e-05, %v4094_v16 }
0x1cc2   : > { %v4098_v3 = vmul.f32 %v6641_v59, %v4095_v61  ;;  %vm4104_vm7 = vweird.f32 %v6641_v59 }
0x1cc3   : > { %6642 = vrsqrt.f32 %v4096_v17  ;;  %vm4105_vm9 = vmor %vm4103_vm8, %vm4104_vm7  ;;  %vm4113_vm12 = vweird.f32 %v4096_v17 }
0x1cc4   : > { %v4099_v5 = vmul.f32 %v6641_v59, %v4098_v3 }
0x1cc6   : > { %v4100_v7 = vmul.f32 0.5, %v4099_v5 }
0x1cc8   : > { %v4101_v12 = vsub.f32 1.5, %v4100_v7 }
0x1cc9   : > { %v6643_v19 = vpop.eup %6642 }
0x1cca   : > { %v4102_v9 = vmul.f32 %v6641_v59, %v4101_v12  ;;  %v4108_v13 = vmul.f32 %v6643_v19, %v4096_v17  ;;  %vm4114_vm14 = vweird.f32 %v6643_v19 }
0x1ccb   : > { %vm4115_vm6 = vmor %vm4113_vm12, %vm4114_vm14  ;;  %vm8522_vm12 = vcmask 1044480  }
0x1ccc   : > { %v4109_v32 = vmul.f32 %v6643_v19, %v4108_v13  ;;  %v4106_v34 = vsel %vm4105_vm9, %v6641_v59, %v4102_v9  ;;  %v6343_v59 = vld [vmem:[%s8487_s5 + $0x10] sm:$0xff] }
0x1ccd   : > { %v4117_v14 = vmul.f32 %v4106_v34, %v4083_v52  ;;  %4314 = vmatpush.bf16.msrb.mxu2 %v6343_v59 }
0x1cce   : > { %v4110_v1 = vmul.f32 0.5, %v4109_v32 }
0x1ccf   : > { %v4122_v30 = vmul.f32 %v6506_v0, %v4117_v14 }
0x1cd0   : > { %v4111_v48 = vsub.f32 1.5, %v4110_v1 }
0x1cd1   : > { %v4127_v26 = vadd.f32 %v6507_v35, %v4122_v30 }
0x1cd2   : > { %v4112_v21 = vmul.f32 %v6643_v19, %v4111_v48 }
0x1cd4   : > { %v4116_v4 = vsel %vm4115_vm6, %v6643_v19, %v4112_v21 }
0x1cd5   : > { %v4118_v2 = vmul.f32 %v4116_v4, %v4084_v24  ;;  %v6510_v4 = vld [vmem:[%s8520_s0] ss:$0 sm:$0xff] }
0x1cd7   : > { %v4123_v25 = vmul.f32 %v6506_v0, %v4118_v2 }
0x1cd9   : > { %v4128_v27 = vadd.f32 %v6507_v35, %v4123_v25  ;;  %v6511_v25 = vld [vmem:[%s8521_s20] ss:$0 sm:$0xff] }
0x1cdb   : > { %v4133_v20 = vpack.c.bf16 %v4128_v27, %v4127_v26 }
0x1cdd   : > { %6162 = vmatmul.msk.bf16.vlgmr.msra.gmra.mxu1 %vm1732_vm2, %v4133_v20 }
0x1d5a   : > { %v4162_v37 = vpop.f32.mrf.mxu1 }
0x1d5b   : > { %v4163_v57 = vadd.f32 %v6508_v38, %v4162_v37  ;;  %v6512_v37 = vld [vmem:[%s8490_s13 + $0x1] ss:$0 sm:$0xff] }
0x1d5d   : > { %v4167_v39 = vmax.f32 %v4163_v57, 0.0 }
0x1d62   : > { %v4164_v54 = vpop.f32.mrf.mxu1 }
0x1d63   : > { %v4165_v40 = vadd.f32 %v6508_v38, %v4164_v54 }
0x1d65   : > { %v4168_v41 = vmax.f32 %v4165_v40, 0.0 }
0x1d67   : > { %v4177_v43 = vpack.c.bf16 %v4168_v41, %v4167_v39 }
0x1d69   : > { %6179 = vmatmul.msk.bf16.vlgmr.msrb.gmra.mxu0 %vm2241_vm15, %v4177_v43 }
0x1de6   : > { %v4218_v45 = vpop.f32.mrf.mxu0 }
0x1de7   : > { %v4219_v46 = vadd.f32 %v6509_v44, %v4218_v45 }
0x1de9   : > { %v4223_v47 = vadd.f32 %v4219_v46, %v4127_v26 }
0x1deb   : > { %v4227_v36 = vsel %vm1732_vm2, %v4223_v47, 0.0 }
0x1dec   : > { %4228 = vadd.xlane.f32.xlu0 %v4227_v36 }
0x1dee   : > { %v4220_v10 = vpop.f32.mrf.mxu0 }
0x1def   : > { %v4221_v42 = vadd.f32 %v6509_v44, %v4220_v10 }
0x1df1   : > { %v4224_v51 = vadd.f32 %v4221_v42, %v4128_v27 }
0x1df3   : > { %v4230_v52 = vsel %vm3446_vm0, %v4224_v51, 0.0 }
0x1df4   : > { %4231 = vadd.xlane.f32.xlu1 %v4230_v52 }
0x1e5f   : > { %v4229_v50 = vpop.xlane.xlu0 %4228 }
0x1e60   : > { %v4233_v55 = vmul.f32 %v4229_v50, %v7452_v11 }
0x1e62   : > { %v4235_v53 = vsub.f32 %v4223_v47, %v4233_v55 }
0x1e64   : > { %v4237_v23 = vmul.f32 %v4235_v53, %v4235_v53 }
0x1e66   : > { %v4239_v24 = vsel %vm1732_vm2, %v4237_v23, 0.0 }
0x1e67   : > { %v4232_v31 = vpop.xlane.xlu1 %4231  ;;  %4240 = vadd.xlane.f32.xlu2 %v4239_v24 }
0x1e68   : > { %v4234_v18 = vmul.f32 %v4232_v31, %v7452_v11 }
0x1e6a   : > { %v4236_v56 = vsub.f32 %v4224_v51, %v4234_v18 }
0x1e6c   : > { %v4238_v58 = vmul.f32 %v4236_v56, %v4236_v56 }
0x1e6e   : > { %v4242_v60 = vsel %vm3446_vm0, %v4238_v58, 0.0 }
0x1e6f   : > { %4243 = vadd.xlane.f32.xlu0 %v4242_v60  ;;  %v6194_v60 = vld [vmem:[%s8495_s17 + $0x10] sm:$0xf] }
0x1e70   : > { %v4550_v59 = vsel %vm1809_vm3, %v6194_v60, 0 }
0x1eda   : > { %v4241_v61 = vpop.xlane.xlu2 %4240 }
0x1edb   : > { %v4245_v63 = vmul.f32 %v4241_v61, %v7452_v11 }
0x1edd   : > { %v4247_v16 = vadd.f32 1e-05, %v4245_v63 }
0x1edf   : > { %6644 = vrsqrt.f32 %v4247_v16  ;;  %vm4255_vm1 = vweird.f32 %v4247_v16 }
0x1ee2   : > { %v4244_v17 = vpop.xlane.xlu0 %4243 }
0x1ee3   : > { %v4246_v3 = vmul.f32 %v4244_v17, %v7452_v11 }
0x1ee5   : > { %v6645_v5 = vpop.eup %6644  ;;  %v4248_v7 = vadd.f32 1e-05, %v4246_v3 }
0x1ee6   : > { %v4250_v12 = vmul.f32 %v6645_v5, %v4247_v16  ;;  %vm4256_vm13 = vweird.f32 %v6645_v5 }
0x1ee7   : > { %6646 = vrsqrt.f32 %v4248_v7  ;;  %vm4257_vm7 = vmor %vm4255_vm1, %vm4256_vm13  ;;  %vm4265_vm9 = vweird.f32 %v4248_v7 }
0x1ee8   : > { %v4251_v19 = vmul.f32 %v6645_v5, %v4250_v12 }
0x1eea   : > { %v4252_v9 = vmul.f32 0.5, %v4251_v19 }
0x1eec   : > { %v4253_v13 = vsub.f32 1.5, %v4252_v9 }
0x1eed   : > { %v6647_v32 = vpop.eup %6646 }
0x1eee   : > { %v4254_v34 = vmul.f32 %v6645_v5, %v4253_v13  ;;  %v4260_v1 = vmul.f32 %v6647_v32, %v4248_v7  ;;  %vm4266_vm8 = vweird.f32 %v6647_v32 }
0x1eef   : > { %vm4267_vm14 = vmor %vm4265_vm9, %vm4266_vm8 }
0x1ef0   : > { %v4261_v48 = vmul.f32 %v6647_v32, %v4260_v1  ;;  %v4258_v0 = vsel %vm4257_vm7, %v6645_v5, %v4254_v34 }
0x1ef1   : > { %v4269_v35 = vmul.f32 %v4258_v0, %v4235_v53 }
0x1ef2   : > { %v4262_v14 = vmul.f32 0.5, %v4261_v48 }
0x1ef3   : > { %v4274_v26 = vmul.f32 %v6510_v4, %v4269_v35 }
0x1ef4   : > { %v4263_v21 = vsub.f32 1.5, %v4262_v14 }
0x1ef5   : > { %v7957_v28 = vadd.f32 %v6511_v25, %v4274_v26 }
0x1ef6   : > { %v4264_v30 = vmul.f32 %v6647_v32, %v4263_v21 }
0x1ef8   : > { %v4268_v2 = vsel %vm4267_vm14, %v6647_v32, %v4264_v30 }
0x1ef9   : > { %v4270_v27 = vmul.f32 %v4268_v2, %v4236_v56 }
0x1efb   : > { %v4275_v20 = vmul.f32 %v6510_v4, %v4270_v27 }
0x1efd   : > { %v7959_v33 = vadd.f32 %v6511_v25, %v4275_v20 }
0x1eff   : > { %v4286_v22 = vpack.c.bf16 %v7959_v33, %v7957_v28 }
0x1f01   : > { %6193 = vmatmul.msk.bf16.vlgmr.msrb.gmra.mxu2 %vm1732_vm2, %v4286_v22 }
0x1f84   : > { %v4316_v29 = vpop.f32.mrf.mxu2 }
0x1f85   : > { %v4317_v57 = vadd.f32 %v6512_v37, %v4316_v29 }
0x1f8c   : > { %v4318_v38 = vpop.f32.mrf.mxu2 }
0x1f8d   : > { %v4319_v54 = vadd.f32 %v6512_v37, %v4318_v38 }
0x1f8f   : > { %v7965_v40 = vpack.c.bf16 %v4319_v54, %v4317_v57 }
0x1f91   : > { %4328 = vrot.lane.b32.xlu1 %v7965_v40, %s8491_s6 }
0x1f99   : > { %4426 = vrot.lane.b32.xlu1 %v7965_v40, %s8484_s22 }
0x1fa1   : > { %4568 = vrot.lane.b32.xlu1 %v7965_v40, %s8482_s4 }
0x1fa9   : > { %4688 = vrot.lane.b32.xlu1 %v7965_v40, %s8494_s9 }
0x2003   : > { %v4329_v39 = vpop.permute.xlu1 %4328 }
0x2004   : > { %v4334_v41 = vsel %vm1757_vm4, %v4329_v39, 0 }
0x2005   : > { %4343 = vmatpush.bf16.xpose.msrb.mxu3 %v4334_v41 }
0x200b   : > { %v4427_v12 = vpop.permute.xlu1 %4426 }
0x200c   : > { %6198 = vmatmul.msk.bf16.vlgmr.msrb.gmra.mxu3 %vm1757_vm4, %v7965_v40 }
0x2013   : > { %v4569_v26 = vpop.permute.xlu1 %4568 }
0x2014   : > { %v4574_v57 = vsel %vm1757_vm4, %v4569_v26, 0 }
0x208f   : > { %v4345_v43 = vpop.f32.mrf.mxu3 }
0x2090   : > { %v4350_v44 = vmul.f32 0.35355338, %v4345_v43 }
0x2092   : > { %v4352_v45 = vadd.f32 %v4350_v44, %v7582_v6 }
0x2094   : > { %v4354_v46 = vsel %vm2974_vm10, %v4352_v45, -inf }
0x2095   : > { %4355 = vmax.xlane.f32.xlu2 %v4354_v46  ;;  %v6348_v46 = vld [vmem:[%s8499_s2 + $0x18] sm:$0xff] }
0x2097   : > { %v4347_v47 = vpop.f32.mrf.mxu3 }
0x2098   : > { %v4351_v36 = vmul.f32 0.35355338, %v4347_v47 }
0x209a   : > { %v4353_v10 = vadd.f32 %v4351_v36, %v7588_v15 }
0x209c   : > { %v4357_v42 = vsel %vm2978_vm11, %v4353_v10, -inf }
0x209d   : > { %4358 = vmax.xlane.f32.xlu0 %v4357_v42  ;;  %v6347_v42 = vld [vmem:[%s8499_s2 + $0x10] sm:$0xff] }
0x2108   : > { %v4356_v51 = vpop.xlane.xlu2 %4355 }
0x2109   : > { %v4360_v52 = vsub.f32 %v4352_v45, %v4356_v51 }
0x210b   : > { %v4362_v50 = vmul.f32 1.442695, %v4360_v52 }
0x210d   : > { %6648 = vpow2.f32 %v4362_v50 }
0x2110   : > { %v4359_v55 = vpop.xlane.xlu0 %4358 }
0x2111   : > { %v4361_v53 = vsub.f32 %v4353_v10, %v4359_v55 }
0x2113   : > { %v6649_v23 = vpop.eup %6648  ;;  %v4364_v24 = vmul.f32 1.442695, %v4361_v53 }
0x2114   : > { %v4366_v31 = vsel %vm2974_vm10, %v6649_v23, 0.0 }
0x2115   : > { %6650 = vpow2.f32 %v4364_v24  ;;  %4367 = vadd.xlane.f32.xlu2 %v4366_v31  ;;  %v4689_v31 = vpop.permute.xlu1 %4688 }
0x211b   : > { %v6651_v18 = vpop.eup %6650 }
0x211c   : > { %v4369_v56 = vsel %vm2978_vm11, %v6651_v18, 0.0 }
0x211d   : > { %4370 = vadd.xlane.f32.xlu0 %v4369_v56 }
0x212d   : > { %4403 = vrot.lane.b32.xlu2 %v7965_v40, %s8481_s7 }
0x2131   : > { %4428 = vrot.lane.b32.xlu0 %v7965_v40, %s8496_s10 }
0x2135   : > { %4690 = vrot.lane.b32.xlu2 %v7965_v40, %s8483_s18 }
0x2139   : > { %4566 = vrot.lane.b32.xlu0 %v7965_v40, %s8497_s12 }
0x2188   : > { %v4368_v58 = vpop.xlane.xlu2 %4367 }
0x2189   : > { %6652 = vrcp.f32 %v4368_v58  ;;  %v4383_v13 = vand.u32 2147483648, %v4368_v58  ;;  %vm4377_vm13 = vweird.f32 %v4368_v58  ;;  %v4381_v32 = vand.u32 2147483647, %v4368_v58 }
0x218b   : > { %v4384_v21 = vor.u32 1.1754944e-38, %v4383_v13  ;;  %vm4382_vm8 = vcmp.eq.f32.partialorder %v4381_v32, 8.507059e+37 }
0x218f   : > { %v6653_v61 = vpop.eup %6652 }
0x2190   : > { %v4373_v62 = vmul.f32 %v6653_v61, %v4368_v58  ;;  %v4404_v63 = vpop.permute.xlu2 %4403  ;;  %v4371_v16 = vpop.xlane.xlu0 %4370  ;;  %vm4378_vm6 = vweird.f32 %v6653_v61 }
0x2191   : > { %v4409_v17 = vsel %vm8522_vm12, %v4404_v63, 0  ;;  %6654 = vrcp.f32 %v4371_v16  ;;  %vm4379_vm1 = vmor %vm4377_vm13, %vm4378_vm6  ;;  %v4398_v1 = vand.u32 2147483648, %v4371_v16  ;;  %v4396_v14 = vand.u32 2147483647, %v4371_v16 }
0x2192   : > { %v4374_v3 = vsub.f32 1.0, %v4373_v62  ;;  %4418 = vmatpush.bf16.msrb.mxu1 %v4409_v17  ;;  %vm4392_vm9 = vweird.f32 %v4371_v16 }
0x2193   : > { %v4399_v30 = vor.u32 1.1754944e-38, %v4398_v1  ;;  %vm4397_vm12 = vcmp.eq.f32.partialorder %v4396_v14, 8.507059e+37 }
0x2194   : > { %v4375_v5 = vmul.f32 %v6653_v61, %v4374_v3 }
0x2196   : > { %4559 = vmatpush.bf16.msra.mxu1 %v4550_v59  ;;  %v4376_v19 = vadd.f32 %v6653_v61, %v4375_v5 }
0x2197   : > { %v6655_v7 = vpop.eup %6654 }
0x2198   : > { %v4388_v9 = vmul.f32 %v6655_v7, %v4371_v16  ;;  %v4380_v48 = vsel %vm4379_vm1, %v6653_v61, %v4376_v19  ;;  %vm4393_vm7 = vweird.f32 %v6655_v7  ;;  %v4691_v22 = vpop.permute.xlu2 %4690 }
0x2199   : > { %v4385_v35 = vsel %vm4382_vm8, %v4384_v21, %v4380_v48  ;;  %vm4394_vm14 = vmor %vm4392_vm9, %vm4393_vm7  ;;  %v4696_v54 = vsel %vm1757_vm4, %v4691_v22, 0 }
0x219a   : > { %v4389_v34 = vsub.f32 1.0, %v4388_v9  ;;  %v4386_v27 = vmul.f32 %v6649_v23, %v4385_v35 }
0x219c   : > { %v4390_v0 = vmul.f32 %v6655_v7, %v4389_v34 }
0x219e   : > { %v4391_v4 = vadd.f32 %v6655_v7, %v4390_v0 }
0x21a0   : > { %v4395_v2 = vsel %vm4394_vm14, %v6655_v7, %v4391_v4 }
0x21a1   : > { %v4400_v25 = vsel %vm4397_vm12, %v4399_v30, %v4395_v2 }
0x21a2   : > { %v4401_v20 = vmul.f32 %v6651_v18, %v4400_v25 }
0x21a3   : > { %v4429_v29 = vpop.permute.xlu0 %4428 }
0x21a4   : > { %v4402_v37 = vpack.c.bf16 %v4401_v20, %v4386_v27  ;;  %v4434_v38 = vsel %vm1757_vm4, %v4429_v29, 0 }
0x21a5   : > { %4443 = vmatpush.bf16.xpose.msra.mxu0 %v4434_v38 }
0x21a6   : > { %6199 = vmatmul.msk.bf16.vlgmr.msrb.gmra.mxu1 %vm2974_vm10, %v4402_v37 }
0x21a7   : > { %4705 = vmatpush.bf16.xpose.msrb.mxu1 %v4696_v54 }
0x21ab   : > { %v4567_v39 = vpop.permute.xlu0 %4566 }
0x21ac   : > { %6200 = vmatmul.msk.bf16.vlgmr.msra.gmra.mxu0 %vm1757_vm4, %v4427_v12 }
0x21ad   : > { %4583 = vmatpush.bf16.xpose.msrb.mxu0 %v4574_v57 }
0x21bc   : > { %6204 = vmatmul.msk.bf16.vlgmr.msrb.gmra.mxu0 %vm1757_vm4, %v4567_v39 }
0x2223   : > { %v4420_v41 = vpop.f32.mrf.mxu1 }
0x2229   : > { %v4445_v43 = vpop.f32.mrf.mxu0 }
0x222a   : > { %v4450_v44 = vmul.f32 0.35355338, %v4445_v43 }
0x222b   : > { %v4422_v45 = vpop.f32.mrf.mxu1 }
0x222c   : > { %v4425_v47 = vpack.c.bf16 %v4422_v45, %v4420_v41  ;;  %v4452_v36 = vadd.f32 %v4450_v44, %v7582_v6 }
0x222e   : > { %6203 = vmatmul.msk.bf16.vlgmr.msra.gmra.mxu1 %vm1757_vm4, %v4425_v47  ;;  %v4454_v10 = vsel %vm2974_vm10, %v4452_v36, -inf }
0x222f   : > { %4455 = vmax.xlane.f32.xlu0 %v4454_v10  ;;  %4945 = vmatpush.bf16.msra.mxu1 %v6348_v46 }
0x2231   : > { %v4447_v51 = vpop.f32.mrf.mxu0 }
0x2232   : > { %v4451_v52 = vmul.f32 0.35355338, %v4447_v51 }
0x2233   : > { %4946 = vmatpush.bf16.msra.mxu1 %v6347_v42 }
0x2234   : > { %v4453_v50 = vadd.f32 %v4451_v52, %v7588_v15 }
0x2236   : > { %v4457_v55 = vsel %vm2978_vm11, %v4453_v50, -inf }
0x2237   : > { %4458 = vmax.xlane.f32.xlu2 %v4457_v55 }
0x2239   : > { %v4585_v53 = vpop.f32.mrf.mxu0 }
0x223a   : > { %v4590_v23 = vmul.f32 0.35355338, %v4585_v53 }
0x223c   : > { %v4592_v24 = vadd.f32 %v4590_v23, %v7582_v6 }
0x223e   : > { %6207 = vmatmul.msk.bf16.vlgmr.msrb.gmra.mxu1 %vm1757_vm4, %v4689_v31  ;;  %v4594_v18 = vsel %vm2974_vm10, %v4592_v24, -inf }
0x223f   : > { %4595 = vmax.xlane.f32.xlu1 %v4594_v18 }
0x2241   : > { %v4587_v56 = vpop.f32.mrf.mxu0 }
0x2242   : > { %v4591_v58 = vmul.f32 0.35355338, %v4587_v56 }
0x2244   : > { %v4593_v60 = vadd.f32 %v4591_v58, %v7588_v15 }
0x2246   : > { %v4597_v61 = vsel %vm2978_vm11, %v4593_v60, -inf }
0x2247   : > { %4598 = vmax.xlane.f32.xlu2 %v4597_v61 }
0x224e   : > { %6240 = vmatmul.msk.bf16.vlgmr.msra.gmra.mxu1 %vm1732_vm2, %v7740_v8 }
0x22a2   : > { %v4456_v62 = vpop.xlane.xlu0 %4455 }
0x22a3   : > { %v4460_v63 = vsub.f32 %v4452_v36, %v4456_v62 }
0x22a5   : > { %v4462_v16 = vmul.f32 1.442695, %v4460_v63 }
0x22a7   : > { %6656 = vpow2.f32 %v4462_v16 }
0x22aa   : > { %v4459_v5 = vpop.xlane.xlu2 %4458 }
0x22ab   : > { %v8015_v59 = vpop.f32.mrf.mxu1  ;;  %v4461_v12 = vsub.f32 %v4453_v50, %v4459_v5 }
0x22ad   : > { %v8017_v17 = vpop.eup %6656  ;;  %v4464_v19 = vmul.f32 1.442695, %v4461_v12 }
0x22ae   : > { %v4466_v3 = vsel %vm2974_vm10, %v8017_v17, 0.0 }
0x22af   : > { %4467 = vadd.xlane.f32.xlu2 %v4466_v3  ;;  %6658 = vpow2.f32 %v4464_v19 }
0x22b2   : > { %v4596_v32 = vpop.xlane.xlu1 %4595 }
0x22b3   : > { %v8021_v7 = vpop.f32.mrf.mxu1  ;;  %v4600_v0 = vsub.f32 %v4592_v24, %v4596_v32 }
0x22b5   : > { %v4602_v21 = vmul.f32 1.442695, %v4600_v0  ;;  %v8025_v35 = vpop.eup %6658 }
0x22ba   : > { %v4599_v9 = vpop.xlane.xlu2 %4598 }
0x22bb   : > { %v4601_v13 = vsub.f32 %v4593_v60, %v4599_v9  ;;  %v4707_v8 = vpop.f32.mrf.mxu1 }
0x22bc   : > { %v4712_v34 = vmul.f32 0.35355338, %v4707_v8 }
0x22bd   : > { %v4604_v1 = vmul.f32 1.442695, %v4601_v13 }
0x22be   : > { %v4714_v48 = vadd.f32 %v4712_v34, %v7582_v6  ;;  %v4469_v6 = vsel %vm2978_vm11, %v8025_v35, 0.0 }
0x22bf   : > { %6660 = vpow2.f32 %v4604_v1 }
0x22c0   : > { %v4716_v14 = vsel %vm2974_vm10, %v4714_v48, -inf  ;;  %6662 = vpow2.f32 %v4602_v21  ;;  %v6513_v21 = vld [vmem:[%s8503_s19 + $0x1] ss:$0 sm:$0xff] }
0x22c1   : > { %4717 = vmax.xlane.f32.xlu0 %v4716_v14 }
0x22c3   : > { %v4709_v4 = vpop.f32.mrf.mxu1 }
0x22c4   : > { %v4713_v30 = vmul.f32 0.35355338, %v4709_v4 }
0x22c5   : > { %v8027_v2 = vpop.eup %6660 }
0x22c6   : > { %v4609_v25 = vsel %vm2978_vm11, %v8027_v2, 0.0  ;;  %v4715_v26 = vadd.f32 %v4713_v30, %v7588_v15  ;;  %v8037_v22 = vpop.eup %6662 }
0x22c7   : > { %4610 = vadd.xlane.f32.xlu2 %v4609_v25  ;;  %v4606_v29 = vsel %vm2974_vm10, %v8037_v22, 0.0 }
0x22c8   : > { %v4719_v27 = vsel %vm2978_vm11, %v4715_v26, -inf }
0x22c9   : > { %4470 = vadd.xlane.f32.xlu0 %v4469_v6  ;;  %4720 = vmax.xlane.f32.xlu1 %v4719_v27 }
0x22cb   : > { %v8035_v20 = vpop.f32.mrf.mxu1 }
0x22cc   : > { %v4949_v25 = vadd.f32 %v6513_v21, %v8035_v20 }
0x22d1   : > { %4607 = vadd.xlane.f32.xlu1 %v4606_v29 }
0x22d3   : > { %v4950_v37 = vpop.f32.mrf.mxu1 }
0x22d4   : > { %v6195_v37 = vld [vmem:[%s8495_s17 + $0x14] sm:$0xf] }
0x22dd   : > { %4503 = vrot.lane.b32.xlu0 %v7965_v40, %s8486_s3  ;;  %s8535_s3 = sld [smem:[#allocation60_spill]] }
0x2322   : > { %v4468_v15 = vpop.xlane.xlu2 %4467 }
0x2323   : > { %6664 = vrcp.f32 %v4468_v15  ;;  %vm4477_vm13 = vweird.f32 %v4468_v15  ;;  %v4483_v53 = vand.u32 2147483648, %v4468_v15  ;;  %v4481_v31 = vand.u32 2147483647, %v4468_v15 }
0x2325   : > { %v4484_v62 = vor.u32 1.1754944e-38, %v4483_v53  ;;  %vm4482_vm14 = vcmp.eq.f32.partialorder %v4481_v31, 8.507059e+37 }
0x2329   : > { %v6665_v54 = vpop.eup %6664 }
0x232a   : > { %v4473_v41 = vmul.f32 %v6665_v54, %v4468_v15  ;;  %vm4478_vm6 = vweird.f32 %v6665_v54  ;;  %v8062_v15 = vpack.c.bf16 %v4949_v25, %v4949_v25  ;;  %v6196_v25 = vld [vmem:[%s8495_s17 + $0x18] sm:$0xf] }
0x232b   : > { %vm4479_vm7 = vmor %vm4477_vm13, %vm4478_vm6  ;;  %vm8523_vm6 = vcmask 1044480  }
0x232c   : > { %v4474_v45 = vsub.f32 1.0, %v4473_v41 }
0x232e   : > { %v4475_v42 = vmul.f32 %v6665_v54, %v4474_v45 }
0x2330   : > { %v4476_v50 = vadd.f32 %v6665_v54, %v4475_v42 }
0x2332   : > { %v4480_v60 = vsel %vm4479_vm7, %v6665_v54, %v4476_v50 }
0x2333   : > { %v4485_v3 = vsel %vm4482_vm14, %v4484_v62, %v4480_v60 }
0x2334   : > { %v4718_v38 = vpop.xlane.xlu0 %4717  ;;  %v4486_v9 = vmul.f32 %v8017_v17, %v4485_v3 }
0x2335   : > { %v4722_v57 = vsub.f32 %v4714_v48, %v4718_v38  ;;  %v4530_v38 = vsel %vm1809_vm3, %v6195_v37, 0 }
0x2336   : > { %4539 = vmatpush.bf16.msra.mxu3 %v4530_v38 }
0x2337   : > { %v4724_v39 = vmul.f32 1.442695, %v4722_v57 }
0x2339   : > { %6666 = vpow2.f32 %v4724_v39 }
0x233a   : > { %v4611_v34 = vpop.xlane.xlu2 %4610 }
0x233b   : > { %vm4632_vm7 = vweird.f32 %v4611_v34  ;;  %v4638_v45 = vand.u32 2147483648, %v4611_v34 }
0x233c   : > { %v4471_v43 = vpop.xlane.xlu0 %4470  ;;  %v4721_v44 = vpop.xlane.xlu1 %4720 }
0x233d   : > { %6668 = vrcp.f32 %v4471_v43  ;;  %v4723_v46 = vsub.f32 %v4715_v26, %v4721_v44  ;;  %v4498_v23 = vand.u32 2147483648, %v4471_v43  ;;  %v4496_v56 = vand.u32 2147483647, %v4471_v43 }
0x233e   : > { %vm4492_vm8 = vweird.f32 %v4471_v43  ;;  %v4636_v44 = vand.u32 2147483647, %v4611_v34 }
0x233f   : > { %v8043_v47 = vpop.eup %6666  ;;  %v4726_v36 = vmul.f32 1.442695, %v4723_v46  ;;  %v4499_v63 = vor.u32 1.1754944e-38, %v4498_v23  ;;  %vm4497_vm12 = vcmp.eq.f32.partialorder %v4496_v56, 8.507059e+37 }
0x2340   : > { %v4728_v10 = vsel %vm2974_vm10, %v8043_v47, 0.0 }
0x2341   : > { %4729 = vadd.xlane.f32.xlu1 %v4728_v10  ;;  %6670 = vpow2.f32 %v4726_v36  ;;  %v4963_v36 = vsel %vm1757_vm4, %v8062_v15, 0 }
0x2343   : > { %v6669_v51 = vpop.eup %6668 }
0x2344   : > { %v4488_v52 = vmul.f32 %v6669_v51, %v4471_v43  ;;  %vm4493_vm1 = vweird.f32 %v6669_v51  ;;  %v4608_v32 = vpop.xlane.xlu1 %4607 }
0x2345   : > { %vm4494_vm9 = vmor %vm4492_vm8, %vm4493_vm1  ;;  %6672 = vrcp.f32 %v4608_v32  ;;  %v4621_v39 = vand.u32 2147483647, %v4608_v32  ;;  %v4623_v41 = vand.u32 2147483648, %v4608_v32  ;;  %vm4617_vm1 = vweird.f32 %v4608_v32 }
0x2346   : > { %v4489_v55 = vsub.f32 1.0, %v4488_v52  ;;  %6674 = vrcp.f32 %v4611_v34 }
0x2347   : > { %v8047_v24 = vpop.eup %6670 }
0x2348   : > { %v4490_v18 = vmul.f32 %v6669_v51, %v4489_v55  ;;  %v4731_v58 = vsel %vm2978_vm11, %v8047_v24, 0.0  ;;  %v4624_v55 = vor.u32 1.1754944e-38, %v4623_v41 }
0x2349   : > { %4732 = vadd.xlane.f32.xlu2 %v4731_v58  ;;  %v4639_v58 = vor.u32 1.1754944e-38, %v4638_v45 }
0x234a   : > { %v4491_v61 = vadd.f32 %v6669_v51, %v4490_v18 }
0x234b   : > { %v6673_v1 = vpop.eup %6672 }
0x234c   : > { %v4495_v16 = vsel %vm4494_vm9, %v6669_v51, %v4491_v61  ;;  %v6675_v48 = vpop.eup %6674  ;;  %v4613_v0 = vmul.f32 %v6673_v1, %v4608_v32  ;;  %vm4618_vm11 = vweird.f32 %v6673_v1 }
0x234d   : > { %v4500_v5 = vsel %vm4497_vm12, %v4499_v63, %v4495_v16  ;;  %v4628_v14 = vmul.f32 %v6675_v48, %v4611_v34  ;;  %vm4633_vm13 = vweird.f32 %v6675_v48  ;;  %vm8065_vm8 = vmor %vm4617_vm1, %vm4618_vm11  ;;  %vm4622_vm12 = vcmp.eq.f32.partialorder %v4621_v39, 8.507059e+37 }
0x234e   : > { %v4501_v12 = vmul.f32 %v8025_v35, %v4500_v5  ;;  %v4614_v4 = vsub.f32 1.0, %v4613_v0  ;;  %vm8073_vm14 = vmor %vm4632_vm7, %vm4633_vm13  ;;  %vm4637_vm1 = vcmp.eq.f32.partialorder %v4636_v44, 8.507059e+37 }
0x234f   : > { %v4504_v19 = vpop.permute.xlu0 %4503  ;;  %v4629_v30 = vsub.f32 1.0, %v4628_v14 }
0x2350   : > { %v4509_v13 = vsel %vm8523_vm6, %v4504_v19, 0  ;;  %v4502_v8 = vpack.c.bf16 %v4501_v12, %v4486_v9  ;;  %v4615_v6 = vmul.f32 %v6673_v1, %v4614_v4 }
0x2351   : > { %4518 = vmatpush.bf16.msra.mxu2 %v4509_v13  ;;  %v4630_v29 = vmul.f32 %v6675_v48, %v4629_v30 }
0x2352   : > { %v4616_v57 = vadd.f32 %v6673_v1, %v4615_v6 }
0x2353   : > { %v4631_v43 = vadd.f32 %v6675_v48, %v4630_v29 }
0x2354   : > { %6201 = vmatmul.msk.bf16.vlgmr.msra.gmra.mxu2 %vm2974_vm10, %v4502_v8  ;;  %v4620_v10 = vsel %vm8065_vm8, %v6673_v1, %v4616_v57 }
0x2355   : > { %v4635_v31 = vsel %vm8073_vm14, %v6675_v48, %v4631_v43  ;;  %v4625_v60 = vsel %vm4622_vm12, %v4624_v55, %v4620_v10  ;;  %vm8528_vm12 = vcmask 1044480   ;;  %v6514_v43 = vld [vmem:[%s8498_s1 + $0x1] ss:$0 sm:$0xff] }
0x2356   : > { %v4640_v3 = vsel %vm4637_vm1, %v4639_v58, %v4635_v31  ;;  %v4626_v12 = vmul.f32 %v8037_v22, %v4625_v60 }
0x2357   : > { %v4641_v32 = vmul.f32 %v8027_v2, %v4640_v3  ;;  %v6345_v3 = vld [vmem:[%s8500_s11 + $0x10] sm:$0xff] }
0x235a   : > { %4643 = vrot.lane.b32.xlu1 %v7965_v40, %s8488_s8  ;;  %s8536_s8 = sld [smem:[#allocation64_spill]] }
0x2361   : > { %4765 = vrot.lane.b32.xlu2 %v7965_v40, %s8485_s16 }
0x23b4   : > { %v4730_v17 = vpop.xlane.xlu1 %4729 }
0x23b5   : > { %6676 = vrcp.f32 %v4730_v17  ;;  %v4745_v53 = vand.u32 2147483648, %v4730_v17  ;;  %vm4739_vm11 = vweird.f32 %v4730_v17  ;;  %v4743_v18 = vand.u32 2147483647, %v4730_v17 }
0x23b7   : > { %v4746_v5 = vor.u32 1.1754944e-38, %v4745_v53  ;;  %vm4744_vm8 = vcmp.eq.f32.partialorder %v4743_v18, 8.507059e+37 }
0x23bb   : > { %v6677_v35 = vpop.eup %6676 }
0x23bc   : > { %v4735_v26 = vmul.f32 %v6677_v35, %v4730_v17  ;;  %v4733_v40 = vpop.xlane.xlu2 %4732  ;;  %vm4740_vm9 = vweird.f32 %v6677_v35  ;;  %v4642_v17 = vpack.c.bf16 %v4641_v32, %v4626_v12 }
0x23bd   : > { %6678 = vrcp.f32 %v4733_v40  ;;  %vm4741_vm13 = vmor %vm4739_vm11, %vm4740_vm9  ;;  %v4760_v61 = vand.u32 2147483648, %v4733_v40  ;;  %v4758_v16 = vand.u32 2147483647, %v4733_v40  ;;  %vm4754_vm14 = vweird.f32 %v4733_v40 }
0x23be   : > { %v4736_v27 = vsub.f32 1.0, %v4735_v26  ;;  %v4670_v26 = vsel %vm1809_vm3, %v6196_v25, 0  ;;  %v6516_v25 = vld [vmem:[%s8502_s15 + $0x1] ss:$0 sm:$0xff] }
0x23bf   : > { %v4761_v13 = vor.u32 1.1754944e-38, %v4760_v61  ;;  %vm4759_vm9 = vcmp.eq.f32.partialorder %v4758_v16, 8.507059e+37  ;;  %4679 = vmatpush.bf16.msrb.mxu3 %v4670_v26 }
0x23c0   : > { %v4737_v54 = vmul.f32 %v6677_v35, %v4736_v27 }
0x23c2   : > { %v4738_v42 = vadd.f32 %v6677_v35, %v4737_v54 }
0x23c3   : > { %v6679_v20 = vpop.eup %6678 }
0x23c4   : > { %v4750_v51 = vmul.f32 %v6679_v20, %v4733_v40  ;;  %v4766_v52 = vpop.permute.xlu2 %4765  ;;  %v4742_v62 = vsel %vm4741_vm13, %v6677_v35, %v4738_v42  ;;  %vm4755_vm7 = vweird.f32 %v6679_v20  ;;  %v6197_v35 = vld [vmem:[%s8495_s17 + $0x1c] sm:$0xf] }
0x23c5   : > { %v4771_v23 = vsel %vm8523_vm6, %v4766_v52, 0  ;;  %v4747_v9 = vsel %vm4744_vm8, %v4746_v5, %v4742_v62  ;;  %vm4756_vm6 = vmor %vm4754_vm14, %vm4755_vm7  ;;  %v4792_v30 = vsel %vm1809_vm3, %v6197_v35, 0  ;;  %v6346_v62 = vld [vmem:[%s8500_s11 + $0x18] sm:$0xff] }
0x23c6   : > { %v4751_v56 = vsub.f32 1.0, %v4750_v51  ;;  %4780 = vmatpush.bf16.msra.mxu0 %v4771_v23  ;;  %v4748_v22 = vmul.f32 %v8043_v47, %v4747_v9 }
0x23c8   : > { %v4752_v63 = vmul.f32 %v6679_v20, %v4751_v56 }
0x23ca   : > { %4972 = vmatpush.bf16.xpose.msrb.mxu0 %v4963_v36  ;;  %v4753_v19 = vadd.f32 %v6679_v20, %v4752_v63 }
0x23cc   : > { %v4644_v8 = vpop.permute.xlu1 %4643  ;;  %v4757_v34 = vsel %vm4756_vm6, %v6679_v20, %v4753_v19 }
0x23cd   : > { %v4649_v1 = vsel %vm8528_vm12, %v4644_v8, 0  ;;  %v4762_v48 = vsel %vm4759_vm9, %v4761_v13, %v4757_v34 }
0x23ce   : > { %4658 = vmatpush.bf16.msrb.mxu2 %v4649_v1  ;;  %v4763_v0 = vmul.f32 %v8047_v24, %v4762_v48 }
0x23d0   : > { %v4764_v14 = vpack.c.bf16 %v4763_v0, %v4748_v22 }
0x23d1   : > { %6205 = vmatmul.msk.bf16.vlgmr.msrb.gmra.mxu2 %vm2974_vm10, %v4642_v17 }
0x23d2   : > { %6208 = vmatmul.msk.bf16.vlgmr.msra.gmra.mxu0 %vm2974_vm10, %v4764_v14  ;;  %4801 = vmatpush.bf16.msra.mxu2 %v4792_v30 }
0x23d7   : > { %v4520_v21 = vpop.f32.mrf.mxu2 }
0x23df   : > { %v4522_v2 = vpop.f32.mrf.mxu2 }
0x23e0   : > { %v4525_v4 = vpack.c.bf16 %v4522_v2, %v4520_v21  ;;  %v6515_v2 = vld [vmem:[%s8501_s14 + $0x1] ss:$0 sm:$0xff] }
0x23e2   : > { %6202 = vmatmul.msk.bf16.vlgmr.msra.gmra.mxu3 %vm1757_vm4, %v4525_v4 }
0x23e3   : > { %4909 = vmatpush.bf16.msra.mxu3 %v6346_v62 }
0x23e7   : > { %4910 = vmatpush.bf16.msra.mxu3 %v6345_v3 }
0x244f   : > { %v4782_v47 = vpop.f32.mrf.mxu0 }
0x2454   : > { %v4660_v24 = vpop.f32.mrf.mxu2 }
0x2457   : > { %v4784_v6 = vpop.f32.mrf.mxu0 }
0x2458   : > { %v4787_v40 = vpack.c.bf16 %v4784_v6, %v4782_v47 }
0x245a   : > { %6209 = vmatmul.msk.bf16.vlgmr.msra.gmra.mxu2 %vm1757_vm4, %v4787_v40 }
0x245c   : > { %v4662_v27 = vpop.f32.mrf.mxu2 }
0x245d   : > { %v4665_v29 = vpack.c.bf16 %v4662_v27, %v4660_v24 }
0x245f   : > { %6206 = vmatmul.msk.bf16.vlgmr.msrb.gmra.mxu3 %vm1757_vm4, %v4665_v29 }
0x2465   : > { %v4541_v37 = vpop.f32.mrf.mxu3 }
0x2466   : > { %v4562_v57 = vadd.f32 %v8015_v59, %v4541_v37  ;;  %v6517_v37 = vld [vmem:[%s8504_s21 + $0x1] ss:$0 sm:$0xff] }
0x246d   : > { %v4543_v38 = vpop.f32.mrf.mxu3 }
0x246e   : > { %v4564_v45 = vadd.f32 %v8021_v7, %v4543_v38 }
0x24dd   : > { %v4803_v54 = vpop.f32.mrf.mxu2 }
0x24e2   : > { %v4681_v39 = vpop.f32.mrf.mxu3 }
0x24e3   : > { %v4686_v41 = vadd.f32 %v4681_v39, %v4562_v57 }
0x24e5   : > { %v4808_v20 = vadd.f32 %v4803_v54, %v4686_v41  ;;  %v4805_v51 = vpop.f32.mrf.mxu2 }
0x24e7   : > { %v4815_v44 = vadd.f32 %v6514_v43, %v4808_v20 }
0x24e9   : > { %v4817_v46 = vadd.f32 %v4815_v44, %v7957_v28 }
0x24ea   : > { %v4683_v36 = vpop.f32.mrf.mxu3 }
0x24eb   : > { %v4687_v10 = vadd.f32 %v4683_v36, %v4564_v45  ;;  %v4823_v42 = vsel %vm1732_vm2, %v4817_v46, 0.0 }
0x24ec   : > { %4824 = vadd.xlane.f32.xlu0 %v4823_v42 }
0x24ed   : > { %v4809_v52 = vadd.f32 %v4805_v51, %v4687_v10 }
0x24ef   : > { %v4816_v50 = vadd.f32 %v6514_v43, %v4809_v52 }
0x24f1   : > { %v4818_v59 = vadd.f32 %v4816_v50, %v7959_v33 }
0x24f3   : > { %v4826_v55 = vsel %vm3446_vm0, %v4818_v59, 0.0 }
0x24f4   : > { %4827 = vadd.xlane.f32.xlu1 %v4826_v55 }
0x255f   : > { %v4825_v53 = vpop.xlane.xlu0 %4824 }
0x2560   : > { %v4829_v23 = vmul.f32 %v4825_v53, %v7452_v11 }
0x2562   : > { %v4831_v7 = vsub.f32 %v4817_v46, %v4829_v23 }
0x2564   : > { %v4833_v28 = vmul.f32 %v4831_v7, %v4831_v7 }
0x2566   : > { %v4835_v31 = vsel %vm1732_vm2, %v4833_v28, 0.0 }
0x2567   : > { %4836 = vadd.xlane.f32.xlu2 %v4835_v31  ;;  %v4828_v18 = vpop.xlane.xlu1 %4827 }
0x2568   : > { %v4830_v56 = vmul.f32 %v4828_v18, %v7452_v11 }
0x256a   : > { %v4832_v58 = vsub.f32 %v4818_v59, %v4830_v56  ;;  %v6241_v56 = vld [vmem:[%s8506_s24 + $0x10] sm:$0xf] }
0x256c   : > { %v4834_v60 = vmul.f32 %v4832_v58, %v4832_v58 }
0x256e   : > { %v4838_v33 = vsel %vm3446_vm0, %v4834_v60, 0.0 }
0x256f   : > { %4839 = vadd.xlane.f32.xlu0 %v4838_v33 }
0x25da   : > { %v4837_v61 = vpop.xlane.xlu2 %4836 }
0x25db   : > { %v4841_v63 = vmul.f32 %v4837_v61, %v7452_v11 }
0x25dd   : > { %v4843_v16 = vadd.f32 1e-05, %v4841_v63 }
0x25df   : > { %6680 = vrsqrt.f32 %v4843_v16  ;;  %vm4851_vm11 = vweird.f32 %v4843_v16 }
0x25e2   : > { %v4840_v5 = vpop.xlane.xlu0 %4839 }
0x25e3   : > { %v4842_v12 = vmul.f32 %v4840_v5, %v7452_v11 }
0x25e5   : > { %v6681_v19 = vpop.eup %6680  ;;  %v4844_v9 = vadd.f32 1e-05, %v4842_v12 }
0x25e6   : > { %v4846_v13 = vmul.f32 %v6681_v19, %v4843_v16  ;;  %vm4852_vm10 = vweird.f32 %v6681_v19 }
0x25e7   : > { %6682 = vrsqrt.f32 %v4844_v9  ;;  %vm4853_vm1 = vmor %vm4851_vm11, %vm4852_vm10  ;;  %vm4861_vm7 = vweird.f32 %v4844_v9 }
0x25e8   : > { %v4847_v8 = vmul.f32 %v6681_v19, %v4846_v13 }
0x25ea   : > { %v4848_v32 = vmul.f32 0.5, %v4847_v8 }
0x25ec   : > { %v4849_v34 = vsub.f32 1.5, %v4848_v32 }
0x25ed   : > { %v6683_v1 = vpop.eup %6682 }
0x25ee   : > { %v4850_v48 = vmul.f32 %v6681_v19, %v4849_v34  ;;  %v4856_v17 = vmul.f32 %v6683_v1, %v4844_v9  ;;  %vm4862_vm13 = vweird.f32 %v6683_v1 }
0x25ef   : > { %vm4863_vm8 = vmor %vm4861_vm7, %vm4862_vm13 }
0x25f0   : > { %v4857_v22 = vmul.f32 %v6683_v1, %v4856_v17  ;;  %v4854_v0 = vsel %vm4853_vm1, %v6681_v19, %v4850_v48 }
0x25f1   : > { %v4865_v4 = vmul.f32 %v4854_v0, %v4831_v7 }
0x25f2   : > { %v4858_v14 = vmul.f32 0.5, %v4857_v22 }
0x25f3   : > { %v4870_v26 = vmul.f32 %v6515_v2, %v4865_v4 }
0x25f4   : > { %v4859_v21 = vsub.f32 1.5, %v4858_v14 }
0x25f5   : > { %v8112_v6 = vadd.f32 %v6516_v25, %v4870_v26 }
0x25f6   : > { %v4860_v35 = vmul.f32 %v6683_v1, %v4859_v21 }
0x25f8   : > { %v4864_v30 = vsel %vm4863_vm8, %v6683_v1, %v4860_v35 }
0x25f9   : > { %v4866_v47 = vmul.f32 %v4864_v30, %v4832_v58  ;;  %v5181_v58 = vsel %vm1809_vm3, %v6241_v56, 0 }
0x25fb   : > { %v4871_v24 = vmul.f32 %v6515_v2, %v4866_v47 }
0x25fd   : > { %v8114_v40 = vadd.f32 %v6516_v25, %v4871_v24 }
0x25ff   : > { %v4882_v27 = vpack.c.bf16 %v8114_v40, %v8112_v6 }
0x2601   : > { %6226 = vmatmul.msk.bf16.vlgmr.msra.gmra.mxu3 %vm1732_vm2, %v4882_v27 }
0x2684   : > { %v4912_v29 = vpop.f32.mrf.mxu3 }
0x2685   : > { %v4913_v57 = vadd.f32 %v6517_v37, %v4912_v29 }
0x268c   : > { %v4914_v38 = vpop.f32.mrf.mxu3 }
0x268d   : > { %v4915_v54 = vadd.f32 %v6517_v37, %v4914_v38 }
0x268f   : > { %v4957_v39 = vpack.c.bf16 %v4915_v54, %v4913_v57 }
0x2691   : > { %6245 = vmatmul.msk.bf16.vlgmr.msrb.gmra.mxu0 %vm1757_vm4, %v4957_v39 }
0x270e   : > { %v4974_v41 = vpop.f32.mrf.mxu0 }
0x270f   : > { %v4979_v43 = vmul.f32 0.35355338, %v4974_v41 }
0x2711   : > { %v4981_v20 = vadd.f32 %v4979_v43, %v7766_v49 }
0x2713   : > { %v4983_v44 = vsel %vm1757_vm4, %v4981_v20, -inf }
0x2714   : > { %4984 = vmax.xlane.f32.xlu0 %v4983_v44 }
0x2716   : > { %v4976_v45 = vpop.f32.mrf.mxu0 }
0x2717   : > { %v4980_v46 = vmul.f32 0.35355338, %v4976_v45 }
0x2719   : > { %v4982_v36 = vadd.f32 %v4980_v46, %v7766_v49 }
0x271b   : > { %v4986_v10 = vsel %vm3609_vm5, %v4982_v36, -inf }
0x271c   : > { %4987 = vmax.xlane.f32.xlu1 %v4986_v10 }
0x2735   : > { %5033 = vrot.lane.b32.xlu1 %v8062_v15, %s8491_s6  ;;  %s8537_s6 = sld [smem:[#allocation62_spill]] }
0x273d   : > { %5199 = vrot.lane.b32.xlu1 %v8062_v15, %s8497_s12 }
0x2787   : > { %v4985_v42 = vpop.xlane.xlu0 %4984 }
0x2788   : > { %v4989_v51 = vsub.f32 %v4981_v20, %v4985_v42 }
0x278a   : > { %v4991_v52 = vmul.f32 1.442695, %v4989_v51 }
0x278c   : > { %6684 = vpow2.f32 %v4991_v52 }
0x278f   : > { %v4988_v50 = vpop.xlane.xlu1 %4987 }
0x2790   : > { %v4990_v59 = vsub.f32 %v4982_v36, %v4988_v50 }
0x2792   : > { %v6685_v55 = vpop.eup %6684  ;;  %v4993_v53 = vmul.f32 1.442695, %v4990_v59 }
0x2793   : > { %v4995_v23 = vsel %vm1757_vm4, %v6685_v55, 0.0 }
0x2794   : > { %6686 = vpow2.f32 %v4993_v53  ;;  %4996 = vadd.xlane.f32.xlu0 %v4995_v23 }
0x279a   : > { %v6687_v7 = vpop.eup %6686 }
0x279b   : > { %v4998_v28 = vsel %vm3609_vm5, %v6687_v7, 0.0 }
0x279c   : > { %4999 = vadd.xlane.f32.xlu2 %v4998_v28 }
0x27a7   : > { %v5034_v31 = vpop.permute.xlu1 %5033 }
0x27a8   : > { %v5039_v18 = vsel %vm1809_vm3, %v5034_v31, 0  ;;  %5059 = vrot.lane.b32.xlu0 %v8062_v15, %s8484_s22 }
0x27a9   : > { %5048 = vmatpush.bf16.msrb.mxu2 %v5039_v18 }
0x27ad   : > { %5190 = vmatpush.bf16.msra.mxu2 %v5181_v58 }
0x27af   : > { %v5200_v9 = vpop.permute.xlu1 %5199 }
0x27b0   : > { %5321 = vrot.lane.b32.xlu0 %v8062_v15, %s8494_s9  ;;  %v5205_v14 = vsel %vm1757_vm4, %v5200_v9, 0 }
0x27b4   : > { %5057 = vrot.lane.b32.xlu2 %v4957_v39, %s8484_s22 }
0x27b8   : > { %5197 = vrot.lane.b32.xlu0 %v4957_v39, %s8497_s12  ;;  %s8538_s12 = sshll.u32 %s8536_s8, 4 }
0x27b9   : > { %s1594_s16 = scalar_lea.vmem %s8537_s6, %s8538_s12 }
0x27bc   : > { %5319 = vrot.lane.b32.xlu2 %v4957_v39, %s8494_s9 }
0x2807   : > { %v4997_v60 = vpop.xlane.xlu0 %4996 }
0x2808   : > { %6688 = vrcp.f32 %v4997_v60  ;;  %v5012_v19 = vand.u32 2147483648, %v4997_v60  ;;  %vm5006_vm6 = vweird.f32 %v4997_v60  ;;  %v5010_v13 = vand.u32 2147483647, %v4997_v60 }
0x280a   : > { %v5013_v21 = vor.u32 1.1754944e-38, %v5012_v19  ;;  %vm5011_vm10 = vcmp.eq.f32.partialorder %v5010_v13, 8.507059e+37 }
0x280e   : > { %v6689_v33 = vpop.eup %6688 }
0x280f   : > { %v5002_v61 = vmul.f32 %v6689_v33, %v4997_v60  ;;  %v5000_v62 = vpop.xlane.xlu2 %4999  ;;  %vm5007_vm14 = vweird.f32 %v6689_v33 }
0x2810   : > { %6690 = vrcp.f32 %v5000_v62  ;;  %vm8141_vm9 = vmor %vm5006_vm6, %vm5007_vm14  ;;  %v5025_v34 = vand.u32 2147483647, %v5000_v62  ;;  %v5027_v1 = vand.u32 2147483648, %v5000_v62  ;;  %vm5021_vm11 = vweird.f32 %v5000_v62 }
0x2811   : > { %v5003_v63 = vsub.f32 1.0, %v5002_v61 }
0x2812   : > { %v5028_v35 = vor.u32 1.1754944e-38, %v5027_v1  ;;  %vm5026_vm13 = vcmp.eq.f32.partialorder %v5025_v34, 8.507059e+37 }
0x2813   : > { %v5004_v16 = vmul.f32 %v6689_v33, %v5003_v63 }
0x2815   : > { %v5005_v5 = vadd.f32 %v6689_v33, %v5004_v16 }
0x2816   : > { %v6691_v3 = vpop.eup %6690 }
0x2817   : > { %v5017_v12 = vmul.f32 %v6691_v3, %v5000_v62  ;;  %v5009_v17 = vsel %vm8141_vm9, %v6689_v33, %v5005_v5  ;;  %vm5022_vm12 = vweird.f32 %v6691_v3  ;;  %v5058_v24 = vpop.permute.xlu2 %5057 }
0x2818   : > { %v5014_v4 = vsel %vm5011_vm10, %v5013_v21, %v5009_v17  ;;  %vm5023_vm1 = vmor %vm5021_vm11, %vm5022_vm12 }
0x2819   : > { %v5018_v8 = vsub.f32 1.0, %v5017_v12  ;;  %v5015_v26 = vmul.f32 %v6685_v55, %v5014_v4 }
0x281a   : > { %v5060_v48 = vpop.permute.xlu0 %5059 }
0x281b   : > { %v5019_v22 = vmul.f32 %v6691_v3, %v5018_v8  ;;  %v5065_v0 = vsel %vm1757_vm4, %v5060_v48, 0 }
0x281c   : > { %5074 = vmatpush.bf16.xpose.msrb.mxu3 %v5065_v0 }
0x281d   : > { %v5020_v2 = vadd.f32 %v6691_v3, %v5019_v22 }
0x281f   : > { %v5024_v30 = vsel %vm5023_vm1, %v6691_v3, %v5020_v2  ;;  %v5320_v59 = vpop.permute.xlu2 %5319 }
0x2820   : > { %v5029_v25 = vsel %vm5026_vm13, %v5028_v35, %v5024_v30 }
0x2821   : > { %v5030_v47 = vmul.f32 %v6687_v7, %v5029_v25 }
0x2822   : > { %v5322_v27 = vpop.permute.xlu0 %5321 }
0x2823   : > { %v5031_v29 = vpack.c.bf16 %v5030_v47, %v5015_v26  ;;  %v5327_v37 = vsel %vm1757_vm4, %v5322_v27, 0  ;;  %6247 = vmatmul.msk.bf16.vlgmr.msrb.gmra.mxu3 %vm1757_vm4, %v5058_v24 }
0x2824   : > { %5214 = vmatpush.bf16.xpose.msra.mxu3 %v5205_v14 }
0x2825   : > { %6246 = vmatmul.msk.bf16.vlgmr.msrb.gmra.mxu2 %vm1757_vm4, %v5031_v29 }
0x2826   : > { %5336 = vmatpush.bf16.xpose.msrb.mxu2 %v5327_v37 }
0x282a   : > { %v5198_v38 = vpop.permute.xlu0 %5197 }
0x2833   : > { %6251 = vmatmul.msk.bf16.vlgmr.msra.gmra.mxu3 %vm1757_vm4, %v5198_v38 }
0x28a6   : > { %v5076_v57 = vpop.f32.mrf.mxu3 }
0x28a7   : > { %v5081_v54 = vmul.f32 0.35355338, %v5076_v57 }
0x28a8   : > { %v5050_v39 = vpop.f32.mrf.mxu2 }
0x28a9   : > { %v5083_v41 = vadd.f32 %v5081_v54, %v7766_v49 }
0x28ab   : > { %v5085_v43 = vsel %vm1757_vm4, %v5083_v41, -inf }
0x28ac   : > { %5086 = vmax.xlane.f32.xlu1 %v5085_v43 }
0x28ae   : > { %v5078_v20 = vpop.f32.mrf.mxu3 }
0x28af   : > { %v5082_v44 = vmul.f32 0.35355338, %v5078_v20 }
0x28b0   : > { %v5052_v45 = vpop.f32.mrf.mxu2 }
0x28b1   : > { %v5084_v46 = vadd.f32 %v5082_v44, %v7766_v49  ;;  %v5055_v36 = vpack.c.bf16 %v5052_v45, %v5050_v39 }
0x28b3   : > { %6250 = vmatmul.msk.bf16.vlgmr.msra.gmra.mxu2 %vm1757_vm4, %v5055_v36  ;;  %v5088_v10 = vsel %vm3609_vm5, %v5084_v46, -inf }
0x28b4   : > { %5089 = vmax.xlane.f32.xlu2 %v5088_v10 }
0x28b6   : > { %v5216_v42 = vpop.f32.mrf.mxu3 }
0x28b7   : > { %v5221_v51 = vmul.f32 0.35355338, %v5216_v42 }
0x28b9   : > { %v5223_v52 = vadd.f32 %v5221_v51, %v7766_v49 }
0x28bb   : > { %v5225_v50 = vsel %vm1757_vm4, %v5223_v52, -inf }
0x28bc   : > { %5226 = vmax.xlane.f32.xlu2 %v5225_v50 }
0x28be   : > { %v5218_v3 = vpop.f32.mrf.mxu3 }
0x28bf   : > { %v5222_v9 = vmul.f32 0.35355338, %v5218_v3 }
0x28c1   : > { %v5224_v34 = vadd.f32 %v5222_v9, %v7766_v49 }
0x28c3   : > { %6254 = vmatmul.msk.bf16.vlgmr.msrb.gmra.mxu2 %vm1757_vm4, %v5320_v59  ;;  %v5228_v17 = vsel %vm3609_vm5, %v5224_v34, -inf }
0x291f   : > { %v5087_v63 = vpop.xlane.xlu1 %5086 }
0x2920   : > { %v5091_v12 = vsub.f32 %v5083_v41, %v5087_v63 }
0x2922   : > { %v5093_v13 = vmul.f32 1.442695, %v5091_v12 }
0x2927   : > { %v5090_v55 = vpop.xlane.xlu2 %5089 }
0x2928   : > { %v5092_v53 = vsub.f32 %v5084_v46, %v5090_v55 }
0x292a   : > { %v5095_v23 = vmul.f32 1.442695, %v5092_v53 }
0x292c   : > { %6692 = vpow2.f32 %v5095_v23 }
0x292f   : > { %v5227_v7 = vpop.xlane.xlu2 %5226 }
0x2930   : > { %v5231_v28 = vsub.f32 %v5223_v52, %v5227_v7 }
0x2932   : > { %v8161_v31 = vpop.eup %6692  ;;  %v5233_v18 = vmul.f32 1.442695, %v5231_v28 }
0x2933   : > { %v5100_v56 = vsel %vm3609_vm5, %v8161_v31, 0.0 }
0x2934   : > { %6694 = vpow2.f32 %v5233_v18  ;;  %5101 = vadd.xlane.f32.xlu2 %v5100_v56 }
0x2935   : > { %6696 = vpow2.f32 %v5093_v13 }
0x2936   : > { %v8165_v58 = vpop.f32.mrf.mxu2 }
0x293a   : > { %v8167_v60 = vpop.eup %6694 }
0x293b   : > { %v5237_v33 = vsel %vm1757_vm4, %v8167_v60, 0.0  ;;  %v8181_v22 = vpop.eup %6696 }
0x293c   : > { %5238 = vadd.xlane.f32.xlu2 %v5237_v33  ;;  %v5097_v0 = vsel %vm1757_vm4, %v8181_v22, 0.0 }
0x293e   : > { %v8171_v61 = vpop.f32.mrf.mxu2 }
0x2946   : > { %v5338_v62 = vpop.f32.mrf.mxu2 }
0x2947   : > { %v5343_v16 = vmul.f32 0.35355338, %v5338_v62 }
0x2949   : > { %v5345_v5 = vadd.f32 %v5343_v16, %v7766_v49 }
0x294b   : > { %v5347_v19 = vsel %vm1757_vm4, %v5345_v5, -inf }
0x294c   : > { %5348 = vmax.xlane.f32.xlu0 %v5347_v19 }
0x294e   : > { %v5340_v8 = vpop.f32.mrf.mxu2 }
0x294f   : > { %v5344_v32 = vmul.f32 0.35355338, %v5340_v8 }
0x2951   : > { %v5346_v1 = vadd.f32 %v5344_v32, %v7766_v49 }
0x2953   : > { %v5350_v48 = vsel %vm3609_vm5, %v5346_v1, -inf }
0x2954   : > { %5351 = vmax.xlane.f32.xlu1 %v5350_v48  ;;  %5396 = vrot.lane.b32.xlu2 %v8062_v15, %s8483_s18 }
0x2955   : > { %5229 = vmax.xlane.f32.xlu0 %v5228_v17 }
0x295c   : > { %5098 = vadd.xlane.f32.xlu1 %v5097_v0 }
0x29a7   : > { %v8185_v14 = vpop.xlane.xlu2 %5101 }
0x29a8   : > { %v5127_v7 = vand.u32 2147483647, %v8185_v14  ;;  %vm5123_vm8 = vweird.f32 %v8185_v14  ;;  %v5129_v62 = vand.u32 2147483648, %v8185_v14 }
0x29aa   : > { %vm5128_vm12 = vcmp.eq.f32.partialorder %v5127_v7, 8.507059e+37 }
0x29af   : > { %v8187_v21 = vpop.xlane.xlu2 %5238 }
0x29b7   : > { %v5397_v49 = vpop.permute.xlu2 %5396 }
0x29b8   : > { %v5402_v2 = vsel %vm1809_vm3, %v5397_v49, 0 }
0x29b9   : > { %5411 = vmatpush.bf16.msrb.mxu3 %v5402_v2 }
0x29bf   : > { %v5349_v4 = vpop.xlane.xlu0 %5348 }
0x29c0   : > { %v5353_v24 = vsub.f32 %v5345_v5, %v5349_v4 }
0x29c2   : > { %v5355_v29 = vmul.f32 1.442695, %v5353_v24 }
0x29c7   : > { %v5352_v35 = vpop.xlane.xlu1 %5351 }
0x29c8   : > { %v5230_v30 = vpop.xlane.xlu0 %5229  ;;  %v5354_v25 = vsub.f32 %v5346_v1, %v5352_v35 }
0x29c9   : > { %v5232_v26 = vsub.f32 %v5224_v34, %v5230_v30  ;;  %v5130_v34 = vor.u32 1.1754944e-38, %v5129_v62 }
0x29ca   : > { %v5357_v47 = vmul.f32 1.442695, %v5354_v25 }
0x29cb   : > { %v5235_v27 = vmul.f32 1.442695, %v5232_v26 }
0x29cc   : > { %6698 = vpow2.f32 %v5357_v47 }
0x29cd   : > { %6700 = vpow2.f32 %v5235_v27 }
0x29ce   : > { %6702 = vpow2.f32 %v5355_v29 }
0x29cf   : > { %v5099_v43 = vpop.xlane.xlu1 %5098  ;;  %6704 = vrcp.f32 %v8185_v14 }
0x29d0   : > { %6706 = vrcp.f32 %v5099_v43  ;;  %vm5108_vm6 = vweird.f32 %v5099_v43  ;;  %v5114_v63 = vand.u32 2147483648, %v5099_v43  ;;  %v5112_v5 = vand.u32 2147483647, %v5099_v43 }
0x29d2   : > { %v8190_v37 = vpop.eup %6698  ;;  %v5115_v48 = vor.u32 1.1754944e-38, %v5114_v63  ;;  %vm5113_vm11 = vcmp.eq.f32.partialorder %v5112_v5, 8.507059e+37  ;;  %v6244_v5 = vld [vmem:[%s8506_s24 + $0x1c] sm:$0xf] }
0x29d3   : > { %v8192_v38 = vpop.eup %6700  ;;  %v5362_v57 = vsel %vm3609_vm5, %v8190_v37, 0.0 }
0x29d4   : > { %v5240_v54 = vsel %vm3609_vm5, %v8192_v38, 0.0  ;;  %5363 = vadd.xlane.f32.xlu1 %v5362_v57  ;;  %v8198_v39 = vpop.eup %6702 }
0x29d5   : > { %5241 = vadd.xlane.f32.xlu0 %v5240_v54  ;;  %v5359_v41 = vsel %vm1757_vm4, %v8198_v39, 0.0  ;;  %v6705_v20 = vpop.eup %6704 }
0x29d6   : > { %v6707_v44 = vpop.eup %6706  ;;  %v5119_v45 = vmul.f32 %v6705_v20, %v8185_v14  ;;  %vm5124_vm5 = vweird.f32 %v6705_v20 }
0x29d7   : > { %v5104_v46 = vmul.f32 %v6707_v44, %v5099_v43  ;;  %vm5109_vm7 = vweird.f32 %v6707_v44  ;;  %vm8216_vm14 = vmor %vm5123_vm8, %vm5124_vm5 }
0x29d8   : > { %v5120_v42 = vsub.f32 1.0, %v5119_v45  ;;  %vm8223_vm9 = vmor %vm5108_vm6, %vm5109_vm7 }
0x29d9   : > { %v5105_v51 = vsub.f32 1.0, %v5104_v46 }
0x29da   : > { %v5121_v50 = vmul.f32 %v6705_v20, %v5120_v42 }
0x29db   : > { %v5106_v59 = vmul.f32 %v6707_v44, %v5105_v51 }
0x29dc   : > { %v5122_v23 = vadd.f32 %v6705_v20, %v5121_v50 }
0x29dd   : > { %5360 = vadd.xlane.f32.xlu0 %v5359_v41  ;;  %v5107_v28 = vadd.f32 %v6707_v44, %v5106_v59 }
0x29de   : > { %v5126_v19 = vsel %vm8216_vm14, %v6705_v20, %v5122_v23 }
0x29df   : > { %v5111_v9 = vsel %vm8223_vm9, %v6707_v44, %v5107_v28  ;;  %v5131_v49 = vsel %vm5128_vm12, %v5130_v34, %v5126_v19 }
0x29e0   : > { %v5116_v2 = vsel %vm5113_vm11, %v5115_v48, %v5111_v9  ;;  %v5132_v57 = vmul.f32 %v8161_v31, %v5131_v49 }
0x29e1   : > { %v5117_v27 = vmul.f32 %v8181_v22, %v5116_v2 }
0x29e3   : > { %v5133_v22 = vpack.c.bf16 %v5132_v57, %v5117_v27 }
0x29ed   : > { %5134 = vrot.lane.b32.xlu1 %v8062_v15, %s8496_s10 }
0x29f1   : > { %5274 = vrot.lane.b32.xlu0 %v8062_v15, %s8482_s4 }
0x2a47   : > { %v5364_v36 = vpop.xlane.xlu1 %5363 }
0x2a48   : > { %v8208_v10 = vpop.xlane.xlu0 %5241  ;;  %6708 = vrcp.f32 %v5364_v36  ;;  %v5391_v17 = vand.u32 2147483648, %v5364_v36  ;;  %vm5385_vm1 = vweird.f32 %v5364_v36  ;;  %v5389_v0 = vand.u32 2147483647, %v5364_v36 }
0x2a49   : > { %6710 = vrcp.f32 %v8208_v10 }
0x2a4a   : > { %6712 = vrcp.f32 %v8187_v21  ;;  %v5392_v24 = vor.u32 1.1754944e-38, %v5391_v17  ;;  %vm5390_vm7 = vcmp.eq.f32.partialorder %v5389_v0, 8.507059e+37 }
0x2a4e   : > { %v6709_v52 = vpop.eup %6708 }
0x2a4f   : > { %v5381_v15 = vmul.f32 %v6709_v52, %v5364_v36  ;;  %v8214_v56 = vpop.eup %6710  ;;  %vm5386_vm10 = vweird.f32 %v6709_v52 }
0x2a50   : > { %v5361_v55 = vpop.xlane.xlu0 %5360  ;;  %v8221_v16 = vpop.eup %6712  ;;  %v5259_v13 = vmul.f32 %v8214_v56, %v8208_v10  ;;  %vm5387_vm13 = vmor %vm5385_vm1, %vm5386_vm10  ;;  %vm5264_vm9 = vweird.f32 %v8214_v56  ;;  %vm5263_vm10 = vweird.f32 %v8208_v10  ;;  %vm5248_vm1 = vweird.f32 %v8187_v21 }
0x2a51   : > { %v5382_v53 = vsub.f32 1.0, %v5381_v15  ;;  %6714 = vrcp.f32 %v5361_v55  ;;  %v5244_v1 = vmul.f32 %v8221_v16, %v8187_v21  ;;  %v5374_v4 = vand.u32 2147483647, %v5361_v55  ;;  %vm5265_vm11 = vmor %vm5263_vm10, %vm5264_vm9 }
0x2a52   : > { %v5376_v35 = vand.u32 2147483648, %v5361_v55  ;;  %v5260_v30 = vsub.f32 1.0, %v5259_v13  ;;  %vm5370_vm8 = vweird.f32 %v5361_v55  ;;  %v5269_v15 = vand.u32 2147483648, %v8208_v10 }
0x2a53   : > { %v5383_v18 = vmul.f32 %v6709_v52, %v5382_v53  ;;  %v5245_v47 = vsub.f32 1.0, %v5244_v1  ;;  %vm5375_vm6 = vcmp.eq.f32.partialorder %v5374_v4, 8.507059e+37  ;;  %vm5249_vm12 = vweird.f32 %v8221_v16 }
0x2a54   : > { %v5377_v41 = vor.u32 1.1754944e-38, %v5376_v35  ;;  %v5261_v20 = vmul.f32 %v8214_v56, %v5260_v30  ;;  %v5252_v53 = vand.u32 2147483647, %v8187_v21  ;;  %v5270_v7 = vor.u32 1.1754944e-38, %v5269_v15  ;;  %v6518_v35 = vld [vmem:[%s8513_s23 + $0x1] ss:$0 sm:$0xff] }
0x2a55   : > { %v5384_v8 = vadd.f32 %v6709_v52, %v5383_v18  ;;  %v5246_v36 = vmul.f32 %v8221_v16, %v5245_v47 }
0x2a57   : > { %v6715_v12 = vpop.eup %6714  ;;  %v5388_v25 = vsel %vm5387_vm13, %v6709_v52, %v5384_v8  ;;  %v5262_v52 = vadd.f32 %v8214_v56, %v5261_v20  ;;  %vm5250_vm13 = vmor %vm5248_vm1, %vm5249_vm12 }
0x2a58   : > { %v5366_v32 = vmul.f32 %v6715_v12, %v5361_v55  ;;  %vm5371_vm5 = vweird.f32 %v6715_v12  ;;  %v5393_v54 = vsel %vm5390_vm7, %v5392_v24, %v5388_v25  ;;  %v5247_v55 = vadd.f32 %v8221_v16, %v5246_v36 }
0x2a59   : > { %vm5372_vm14 = vmor %vm5370_vm8, %vm5371_vm5  ;;  %v5394_v42 = vmul.f32 %v8190_v37, %v5393_v54  ;;  %v5267_v37 = vand.u32 2147483647, %v8208_v10  ;;  %v5266_v23 = vsel %vm5265_vm11, %v8214_v56, %v5262_v52  ;;  %vm5253_vm7 = vcmp.eq.f32.partialorder %v5252_v53, 8.507059e+37 }
0x2a5a   : > { %v5367_v14 = vsub.f32 1.0, %v5366_v32  ;;  %v5251_v28 = vsel %vm5250_vm13, %v8221_v16, %v5247_v55  ;;  %v5423_v16 = vsel %vm1809_vm3, %v6244_v5, 0 }
0x2a5b   : > { %vm5268_vm5 = vcmp.eq.f32.partialorder %v5267_v37, 8.507059e+37 }
0x2a5c   : > { %v5368_v26 = vmul.f32 %v6715_v12, %v5367_v14  ;;  %v5271_v18 = vsel %vm5268_vm5, %v5270_v7, %v5266_v23 }
0x2a5d   : > { %v5272_v62 = vmul.f32 %v8192_v38, %v5271_v18 }
0x2a5e   : > { %v5369_v29 = vadd.f32 %v6715_v12, %v5368_v26 }
0x2a5f   : > { %v5135_v43 = vpop.permute.xlu1 %5134 }
0x2a60   : > { %v5373_v44 = vsel %vm5372_vm14, %v6715_v12, %v5369_v29  ;;  %v5140_v45 = vsel %vm1809_vm3, %v5135_v43, 0  ;;  %v6243_v12 = vld [vmem:[%s8506_s24 + $0x18] sm:$0xf] }
0x2a61   : > { %v5378_v46 = vsel %vm5375_vm6, %v5377_v41, %v5373_v44  ;;  %5149 = vmatpush.bf16.msrb.mxu1 %v5140_v45  ;;  %v5301_v19 = vsel %vm1809_vm3, %v6243_v12, 0 }
0x2a62   : > { %v5379_v51 = vmul.f32 %v8198_v39, %v5378_v46  ;;  %v5254_v39 = vand.u32 2147483648, %v8187_v21  ;;  %v6242_v21 = vld [vmem:[%s8506_s24 + $0x14] sm:$0xf] }
0x2a63   : > { %v5275_v31 = vpop.permute.xlu0 %5274  ;;  %v5161_v56 = vsel %vm1809_vm3, %v6242_v21, 0 }
0x2a64   : > { %v5395_v50 = vpack.c.bf16 %v5394_v42, %v5379_v51  ;;  %v5280_v59 = vsel %vm1809_vm3, %v5275_v31, 0  ;;  %6248 = vmatmul.msk.bf16.vlgmr.msrb.gmra.mxu1 %vm1757_vm4, %v5133_v22  ;;  %v5255_v10 = vor.u32 1.1754944e-38, %v5254_v39  ;;  %5170 = vmatpush.bf16.msra.mxu0 %v5161_v56  ;;  %v6350_v31 = vld [vmem:[%s8514_s25 + $0x18] sm:$0xff]  ;;  %v6519_v56 = vld [vmem:[%s8515_s26 + $0x1] ss:$0 sm:$0xff] }
0x2a65   : > { %5289 = vmatpush.bf16.msra.mxu1 %v5280_v59  ;;  %v6349_v59 = vld [vmem:[%s8514_s25 + $0x10] sm:$0xff] }
0x2a66   : > { %6255 = vmatmul.msk.bf16.vlgmr.msrb.gmra.mxu3 %vm1757_vm4, %v5395_v50  ;;  %v5256_v33 = vsel %vm5253_vm7, %v5255_v10, %v5251_v28 }
0x2a67   : > { %v5257_v63 = vmul.f32 %v8167_v60, %v5256_v33 }
0x2a68   : > { %5310 = vmatpush.bf16.msrb.mxu0 %v5301_v19  ;;  %v6520_v19 = vld [vmem:[%s8516_s27 + $0x1] ss:$0 sm:$0xff] }
0x2a69   : > { %v5273_v3 = vpack.c.bf16 %v5272_v62, %v5257_v63  ;;  %5432 = vmatpush.bf16.msrb.mxu1 %v5423_v16 }
0x2a74   : > { %6252 = vmatmul.msk.bf16.vlgmr.msra.gmra.mxu1 %vm1757_vm4, %v5273_v3 }
0x2ae1   : > { %v5151_v9 = vpop.f32.mrf.mxu1 }
0x2ae9   : > { %v5413_v13 = vpop.f32.mrf.mxu3  ;;  %v5153_v38 = vpop.f32.mrf.mxu1 }
0x2aea   : > { %v5156_v60 = vpack.c.bf16 %v5153_v38, %v5151_v9 }
0x2aec   : > { %6249 = vmatmul.msk.bf16.vlgmr.msra.gmra.mxu0 %vm1757_vm4, %v5156_v60 }
0x2aed   : > { %5540 = vmatpush.bf16.msra.mxu0 %v6350_v31 }
0x2af1   : > { %v5415_v8 = vpop.f32.mrf.mxu3  ;;  %v5291_v32 = vpop.f32.mrf.mxu1  ;;  %5541 = vmatpush.bf16.msra.mxu0 %v6349_v59 }
0x2af2   : > { %v5418_v34 = vpack.c.bf16 %v5415_v8, %v5413_v13 }
0x2af4   : > { %6256 = vmatmul.msk.bf16.vlgmr.msrb.gmra.mxu1 %vm1757_vm4, %v5418_v34  ;;  %v6354_v34 = vld [vmem:[%s8517_s28 + $0x38] sm:$0xff] }
0x2af5   : > { %5596 = vmatpush.bf16.msra.mxu2 %v6354_v34 }
0x2af9   : > { %v5293_v1 = vpop.f32.mrf.mxu1 }
0x2afa   : > { %v5296_v48 = vpack.c.bf16 %v5293_v1, %v5291_v32  ;;  %v6353_v1 = vld [vmem:[%s8517_s28 + $0x30] sm:$0xff] }
0x2afb   : > { %5597 = vmatpush.bf16.msra.mxu2 %v6353_v1 }
0x2afc   : > { %6253 = vmatmul.msk.bf16.vlgmr.msrb.gmra.mxu0 %vm1757_vm4, %v5296_v48  ;;  %v6352_v48 = vld [vmem:[%s8517_s28 + $0x28] sm:$0xff] }
0x2aff   : > { %5598 = vmatpush.bf16.msra.mxu2 %v6352_v48 }
0x2b69   : > { %v5172_v17 = vpop.f32.mrf.mxu0 }
0x2b6a   : > { %v5193_v14 = vadd.f32 %v8165_v58, %v5172_v17  ;;  %v6351_v17 = vld [vmem:[%s8517_s28 + $0x20] sm:$0xff] }
0x2b6b   : > { %5599 = vmatpush.bf16.msra.mxu2 %v6351_v17 }
0x2b71   : > { %v5174_v0 = vpop.f32.mrf.mxu0  ;;  %v5434_v49 = vpop.f32.mrf.mxu1 }
0x2b72   : > { %v5195_v26 = vadd.f32 %v8171_v61, %v5174_v0 }
0x2b79   : > { %v5312_v2 = vpop.f32.mrf.mxu0  ;;  %v5436_v57 = vpop.f32.mrf.mxu1 }
0x2b7a   : > { %v5317_v4 = vadd.f32 %v5312_v2, %v5193_v14  ;;  %v6521_v14 = vld [vmem:[%s8518_s29 + $0x1] ss:$0 sm:$0xff] }
0x2b7c   : > { %v5439_v30 = vadd.f32 %v5434_v49, %v5317_v4 }
0x2b7e   : > { %v5446_v25 = vadd.f32 %v6518_v35, %v5439_v30 }
0x2b80   : > { %v5448_v47 = vadd.f32 %v5446_v25, %v8112_v6 }
0x2b81   : > { %v5314_v24 = vpop.f32.mrf.mxu0 }
0x2b82   : > { %v5318_v27 = vadd.f32 %v5314_v24, %v5195_v26  ;;  %v5454_v29 = vsel %vm1732_vm2, %v5448_v47, 0.0  ;;  %v6522_v26 = vld [vmem:[%s8519_s30 + $0x1] ss:$0 sm:$0xff] }
0x2b83   : > { %5455 = vadd.xlane.f32.xlu0 %v5454_v29 }
0x2b84   : > { %v5440_v54 = vadd.f32 %v5436_v57, %v5318_v27 }
0x2b86   : > { %v5447_v41 = vadd.f32 %v6518_v35, %v5440_v54 }
0x2b88   : > { %v5449_v58 = vadd.f32 %v5447_v41, %v8114_v40 }
0x2b8a   : > { %v5457_v43 = vsel %vm3446_vm0, %v5449_v58, 0.0 }
0x2b8b   : > { %5458 = vadd.xlane.f32.xlu1 %v5457_v43 }
0x2bf6   : > { %v5456_v20 = vpop.xlane.xlu0 %5455 }
0x2bf7   : > { %v5460_v44 = vmul.f32 %v5456_v20, %v7452_v11 }
0x2bf9   : > { %v5462_v61 = vsub.f32 %v5448_v47, %v5460_v44 }
0x2bfb   : > { %v5464_v6 = vmul.f32 %v5462_v61, %v5462_v61 }
0x2bfd   : > { %v5466_v45 = vsel %vm1732_vm2, %v5464_v6, 0.0 }
0x2bfe   : > { %5467 = vadd.xlane.f32.xlu2 %v5466_v45  ;;  %v5459_v46 = vpop.xlane.xlu1 %5458 }
0x2bff   : > { %v5461_v36 = vmul.f32 %v5459_v46, %v7452_v11 }
0x2c01   : > { %v5463_v22 = vsub.f32 %v5449_v58, %v5461_v36 }
0x2c03   : > { %v5465_v42 = vmul.f32 %v5463_v22, %v5463_v22 }
0x2c05   : > { %v5469_v40 = vsel %vm3446_vm0, %v5465_v42, 0.0 }
0x2c06   : > { %5470 = vadd.xlane.f32.xlu0 %v5469_v40 }
0x2c71   : > { %v5468_v51 = vpop.xlane.xlu2 %5467 }
0x2c72   : > { %v5472_v52 = vmul.f32 %v5468_v51, %v7452_v11 }
0x2c74   : > { %v5474_v50 = vadd.f32 1e-05, %v5472_v52 }
0x2c76   : > { %6716 = vrsqrt.f32 %v5474_v50  ;;  %vm5482_vm4 = vweird.f32 %v5474_v50 }
0x2c79   : > { %v5471_v15 = vpop.xlane.xlu0 %5470 }
0x2c7a   : > { %v5473_v55 = vmul.f32 %v5471_v15, %v7452_v11 }
0x2c7c   : > { %v6717_v37 = vpop.eup %6716  ;;  %v5475_v39 = vadd.f32 1e-05, %v5473_v55 }
0x2c7d   : > { %v5477_v53 = vmul.f32 %v6717_v37, %v5474_v50  ;;  %vm5483_vm3 = vweird.f32 %v6717_v37 }
0x2c7e   : > { %6718 = vrsqrt.f32 %v5475_v39  ;;  %vm5484_vm8 = vmor %vm5482_vm4, %vm5483_vm3  ;;  %vm5492_vm6 = vweird.f32 %v5475_v39 }
0x2c7f   : > { %v5478_v23 = vmul.f32 %v6717_v37, %v5477_v53 }
0x2c81   : > { %v5479_v7 = vmul.f32 0.5, %v5478_v23 }
0x2c83   : > { %v5480_v28 = vsub.f32 1.5, %v5479_v7 }
0x2c84   : > { %v6719_v10 = vpop.eup %6718 }
0x2c85   : > { %v5481_v18 = vmul.f32 %v6717_v37, %v5480_v28  ;;  %v5487_v33 = vmul.f32 %v6719_v10, %v5475_v39  ;;  %vm5493_vm14 = vweird.f32 %v6719_v10 }
0x2c86   : > { %vm5494_vm9 = vmor %vm5492_vm6, %vm5493_vm14 }
0x2c87   : > { %v5488_v62 = vmul.f32 %v6719_v10, %v5487_v33  ;;  %v5485_v63 = vsel %vm5484_vm8, %v6717_v37, %v5481_v18 }
0x2c88   : > { %v5496_v5 = vmul.f32 %v5485_v63, %v5462_v61  ;;  %v6524_v63 = vld [vmem:[%s8521_s20 + $0x1] ss:$0 sm:$0xff] }
0x2c89   : > { %v5489_v3 = vmul.f32 0.5, %v5488_v62 }
0x2c8a   : > { %v5501_v9 = vmul.f32 %v6519_v56, %v5496_v5 }
0x2c8b   : > { %v5490_v21 = vsub.f32 1.5, %v5489_v3 }
0x2c8c   : > { %v5506_v60 = vadd.f32 %v6520_v19, %v5501_v9 }
0x2c8d   : > { %v5491_v16 = vmul.f32 %v6719_v10, %v5490_v21 }
0x2c8f   : > { %v5495_v12 = vsel %vm5494_vm9, %v6719_v10, %v5491_v16  ;;  %v6523_v10 = vld [vmem:[%s8520_s0 + $0x1] ss:$0 sm:$0xff] }
0x2c90   : > { %v5497_v13 = vmul.f32 %v5495_v12, %v5463_v22 }
0x2c92   : > { %v5502_v38 = vmul.f32 %v6519_v56, %v5497_v13 }
0x2c94   : > { %v5507_v8 = vadd.f32 %v6520_v19, %v5502_v38 }
0x2c96   : > { %v5513_v32 = vpack.c.bf16 %v5507_v8, %v5506_v60 }
0x2c98   : > { %6273 = vmatmul.msk.bf16.vlgmr.msra.gmra.mxu0 %vm1732_vm2, %v5513_v32 }
0x2d15   : > { %v5543_v0 = vpop.f32.mrf.mxu0 }
0x2d16   : > { %v5544_v49 = vadd.f32 %v6521_v14, %v5543_v0 }
0x2d18   : > { %v5548_v35 = vmax.f32 %v5544_v49, 0.0 }
0x2d1d   : > { %v5545_v2 = vpop.f32.mrf.mxu0 }
0x2d1e   : > { %v5546_v4 = vadd.f32 %v6521_v14, %v5545_v2 }
0x2d20   : > { %v5549_v30 = vmax.f32 %v5546_v4, 0.0 }
0x2d22   : > { %v5559_v25 = vpack.c.bf16 %v5549_v30, %v5548_v35  ;;  %v6356_v35 = vld [vmem:[%s8535_s3 + $0x8] sm:$0xff] }
0x2d23   : > { %5752 = vmatpush.bf16.msra.mxu3 %v6356_v35 }
0x2d24   : > { %6299 = vmatmul.msk.bf16.vlgmr.msra.gmra.mxu2 %vm2241_vm15, %v5559_v25 }
0x2da7   : > { %v5601_v47 = vpop.f32.mrf.mxu2 }
0x2da8   : > { %v5602_v24 = vadd.f32 %v6522_v26, %v5601_v47 }
0x2daa   : > { %v5606_v27 = vadd.f32 %v5602_v24, %v5506_v60 }
0x2dac   : > { %v5612_v29 = vsel %vm1732_vm2, %v5606_v27, 0.0 }
0x2dad   : > { %5613 = vadd.xlane.f32.xlu1 %v5612_v29 }
0x2daf   : > { %v5603_v57 = vpop.f32.mrf.mxu2 }
0x2db0   : > { %v5604_v54 = vadd.f32 %v6522_v26, %v5603_v57  ;;  %v6355_v26 = vld [vmem:[%s8535_s3] sm:$0xff] }
0x2db1   : > { %5753 = vmatpush.bf16.msra.mxu3 %v6355_v26 }
0x2db2   : > { %v5607_v41 = vadd.f32 %v5604_v54, %v5507_v8 }
0x2db4   : > { %v5615_v58 = vsel %vm3446_vm0, %v5607_v41, 0.0 }
0x2db5   : > { %5616 = vadd.xlane.f32.xlu2 %v5615_v58 }
0x2e20   : > { %v5614_v43 = vpop.xlane.xlu1 %5613 }
0x2e21   : > { %v5618_v20 = vmul.f32 %v5614_v43, %v7452_v11 }
0x2e23   : > { %v5620_v44 = vsub.f32 %v5606_v27, %v5618_v20 }
0x2e25   : > { %v5622_v61 = vmul.f32 %v5620_v44, %v5620_v44 }
0x2e27   : > { %v5624_v6 = vsel %vm1732_vm2, %v5622_v61, 0.0 }
0x2e28   : > { %v5617_v45 = vpop.xlane.xlu2 %5616  ;;  %5625 = vadd.xlane.f32.xlu0 %v5624_v6 }
0x2e29   : > { %v5619_v46 = vmul.f32 %v5617_v45, %v7452_v11 }
0x2e2b   : > { %v5621_v36 = vsub.f32 %v5607_v41, %v5619_v46 }
0x2e2d   : > { %v5623_v22 = vmul.f32 %v5621_v36, %v5621_v36 }
0x2e2f   : > { %v5627_v42 = vsel %vm3446_vm0, %v5623_v22, 0.0 }
0x2e30   : > { %5628 = vadd.xlane.f32.xlu1 %v5627_v42 }
0x2e9b   : > { %v5626_v40 = vpop.xlane.xlu0 %5625 }
0x2e9c   : > { %v5630_v51 = vmul.f32 %v5626_v40, %v7452_v11  ;;  %v6526_v40 = vld [vmem:[#allocation7] ss:$0 sm:$0xff] }
0x2e9e   : > { %v5632_v31 = vadd.f32 1e-05, %v5630_v51 }
0x2ea0   : > { %6720 = vrsqrt.f32 %v5632_v31  ;;  %vm5640_vm12 = vweird.f32 %v5632_v31 }
0x2ea3   : > { %v5629_v52 = vpop.xlane.xlu1 %5628 }
0x2ea4   : > { %v5631_v50 = vmul.f32 %v5629_v52, %v7452_v11 }
0x2ea6   : > { %v6721_v59 = vpop.eup %6720  ;;  %v5633_v15 = vadd.f32 1e-05, %v5631_v50 }
0x2ea7   : > { %v5635_v55 = vmul.f32 %v6721_v59, %v5632_v31  ;;  %vm5641_vm15 = vweird.f32 %v6721_v59 }
0x2ea8   : > { %6722 = vrsqrt.f32 %v5633_v15  ;;  %vm5642_vm10 = vmor %vm5640_vm12, %vm5641_vm15  ;;  %vm5650_vm1 = vweird.f32 %v5633_v15 }
0x2ea9   : > { %v5636_v37 = vmul.f32 %v6721_v59, %v5635_v55  ;;  %v6527_v55 = vld [vmem:[#allocation9] ss:$0 sm:$0xff] }
0x2eab   : > { %v5637_v39 = vmul.f32 0.5, %v5636_v37 }
0x2ead   : > { %v5638_v53 = vsub.f32 1.5, %v5637_v39 }
0x2eae   : > { %v6723_v23 = vpop.eup %6722 }
0x2eaf   : > { %v5639_v7 = vmul.f32 %v6721_v59, %v5638_v53  ;;  %v5645_v28 = vmul.f32 %v6723_v23, %v5633_v15  ;;  %vm5651_vm11 = vweird.f32 %v6723_v23 }
0x2eb0   : > { %vm5652_vm13 = vmor %vm5650_vm1, %vm5651_vm11 }
0x2eb1   : > { %v5646_v18 = vmul.f32 %v6723_v23, %v5645_v28  ;;  %v5643_v33 = vsel %vm5642_vm10, %v6721_v59, %v5639_v7 }
0x2eb2   : > { %v5654_v62 = vmul.f32 %v5643_v33, %v5620_v44 }
0x2eb3   : > { %v5647_v3 = vmul.f32 0.5, %v5646_v18 }
0x2eb4   : > { %v5659_v21 = vmul.f32 %v6523_v10, %v5654_v62 }
0x2eb5   : > { %v5648_v56 = vsub.f32 1.5, %v5647_v3 }
0x2eb6   : > { %v5664_v5 = vadd.f32 %v6524_v63, %v5659_v21 }
0x2eb7   : > { %v5649_v16 = vmul.f32 %v6723_v23, %v5648_v56 }
0x2eb8   : > { %v5668_v12 = vsel %vm1732_vm2, %v5664_v5, 0.0 }
0x2eb9   : > { %5669 = vadd.xlane.f32.xlu2 %v5668_v12  ;;  %v5653_v19 = vsel %vm5652_vm13, %v6723_v23, %v5649_v16 }
0x2eba   : > { %v5655_v9 = vmul.f32 %v5653_v19, %v5621_v36 }
0x2ebc   : > { %v5660_v13 = vmul.f32 %v6523_v10, %v5655_v9 }
0x2ebe   : > { %v5665_v38 = vadd.f32 %v6524_v63, %v5660_v13 }
0x2ec0   : > { %v5671_v60 = vsel %vm3446_vm0, %v5665_v38, 0.0 }
0x2ec1   : > { %5672 = vadd.xlane.f32.xlu0 %v5671_v60 }
0x2f2c   : > { %v5670_v8 = vpop.xlane.xlu2 %5669 }
0x2f2d   : > { %v5674_v32 = vmul.f32 %v5670_v8, %v7452_v11 }
0x2f2f   : > { %v5676_v34 = vsub.f32 %v5664_v5, %v5674_v32 }
0x2f31   : > { %v5678_v1 = vmul.f32 %v5676_v34, %v5676_v34 }
0x2f33   : > { %v5680_v48 = vsel %vm1732_vm2, %v5678_v1, 0.0 }
0x2f34   : > { %5681 = vadd.xlane.f32.xlu1 %v5680_v48  ;;  %v5673_v17 = vpop.xlane.xlu0 %5672 }
0x2f35   : > { %v5675_v0 = vmul.f32 %v5673_v17, %v7452_v11 }
0x2f37   : > { %v5677_v14 = vsub.f32 %v5665_v38, %v5675_v0 }
0x2f39   : > { %v5679_v49 = vmul.f32 %v5677_v14, %v5677_v14 }
0x2f3b   : > { %v5683_v2 = vsel %vm3446_vm0, %v5679_v49, 0.0 }
0x2f3c   : > { %5684 = vadd.xlane.f32.xlu2 %v5683_v2 }
0x2fa7   : > { %v5682_v4 = vpop.xlane.xlu1 %5681 }
0x2fa8   : > { %v5686_v30 = vmul.f32 %v5682_v4, %v7452_v11 }
0x2faa   : > { %v5688_v25 = vadd.f32 1e-05, %v5686_v30 }
0x2fac   : > { %6724 = vrsqrt.f32 %v5688_v25  ;;  %vm5696_vm5 = vweird.f32 %v5688_v25 }
0x2faf   : > { %v5685_v47 = vpop.xlane.xlu2 %5684 }
0x2fb0   : > { %v5687_v24 = vmul.f32 %v5685_v47, %v7452_v11  ;;  %v6525_v11 = vld [vmem:[#allocation6] ss:$0 sm:$0xff] }
0x2fb2   : > { %v6725_v27 = vpop.eup %6724  ;;  %v5689_v29 = vadd.f32 1e-05, %v5687_v24 }
0x2fb3   : > { %v5691_v57 = vmul.f32 %v6725_v27, %v5688_v25  ;;  %vm5697_vm0 = vweird.f32 %v6725_v27 }
0x2fb4   : > { %6726 = vrsqrt.f32 %v5689_v29  ;;  %vm5698_vm7 = vmor %vm5696_vm5, %vm5697_vm0  ;;  %vm5706_vm4 = vweird.f32 %v5689_v29 }
0x2fb5   : > { %v5692_v54 = vmul.f32 %v6725_v27, %v5691_v57 }
0x2fb7   : > { %v5693_v41 = vmul.f32 0.5, %v5692_v54 }
0x2fb9   : > { %v5694_v58 = vsub.f32 1.5, %v5693_v41 }
0x2fba   : > { %v6727_v43 = vpop.eup %6726 }
0x2fbb   : > { %v5695_v20 = vmul.f32 %v6725_v27, %v5694_v58  ;;  %v5701_v44 = vmul.f32 %v6727_v43, %v5689_v29  ;;  %vm5707_vm3 = vweird.f32 %v6727_v43 }
0x2fbc   : > { %vm5708_vm8 = vmor %vm5706_vm4, %vm5707_vm3 }
0x2fbd   : > { %v5702_v61 = vmul.f32 %v6727_v43, %v5701_v44  ;;  %v5699_v6 = vsel %vm5698_vm7, %v6725_v27, %v5695_v20 }
0x2fbe   : > { %v5710_v36 = vmul.f32 %v5699_v6, %v5676_v34 }
0x2fbf   : > { %v5703_v45 = vmul.f32 0.5, %v5702_v61 }
0x2fc0   : > { %v5715_v51 = vmul.f32 %v6525_v11, %v5710_v36 }
0x2fc1   : > { %v5704_v46 = vsub.f32 1.5, %v5703_v45 }
0x2fc2   : > { %v5720_v50 = vadd.f32 %v6526_v40, %v5715_v51 }
0x2fc3   : > { %v5705_v22 = vmul.f32 %v6727_v43, %v5704_v46 }
0x2fc5   : > { %v5709_v42 = vsel %vm5708_vm8, %v6727_v43, %v5705_v22 }
0x2fc6   : > { %v5711_v31 = vmul.f32 %v5709_v42, %v5677_v14 }
0x2fc8   : > { %v5716_v52 = vmul.f32 %v6525_v11, %v5711_v31 }
0x2fca   : > { %v5721_v59 = vadd.f32 %v6526_v40, %v5716_v52 }
0x2fcc   : > { %v5726_v15 = vpack.c.bf16 %v5721_v59, %v5720_v50 }
0x2fce   : > { %6310 = vmatmul.msk.bf16.vlgmr.msra.gmra.mxu3 %vm1732_vm2, %v5726_v15 }
0x3051   : > { %v5755_v37 = vpop.f32.mrf.mxu3 }
0x3052   : > { %v5756_v39 = vadd.f32 %v6527_v55, %v5755_v37 }
0x3054   : > { %5760 = vst [vmem:[%s1594_s16] sm:$0xff] %v5756_v39 }
0x3059   : > { %v5757_v53 = vpop.f32.mrf.mxu3 }
0x305a   : > { %v5758_v23 = vadd.f32 %v6527_v55, %v5757_v53 }
0x305c   : > { %5761 = vst [vmem:[%s1594_s16 + $0x8] sm:$0x3] %v5758_v23 }
0x305d PF: > { %s8539_s18 = sld [smem:[#allocation63_spill]] }
0x3063   : > { %s112_s7 = sadd.s32 1, %s8539_s18  }
0x3064   : > { %p109_p2 = scmp.ge.s32.totalorder %s112_s7, 4  }
0x3066   :  { %111 = sbr.rel (!%p109_p2) target bundleno = 107 (0x6b), region = 360 }
0x306b   :  { %5783 = vsyncpa [#allocation3], 1 }
0x306c   :  { %5785 = vsyncpa [#allocation3 + $0x1], 1 }
0x306d   :  { %5786 = vsyncpa [#allocation5], 1 }
0x306e   :  { %5787 = vsyncpa [#allocation8], 1 }

</bundles_post_ra>
